<compile_context>
chip_gen: v7x
topology: tpu7x:2x2x1
jax: 0.10.0
libtpu: 0.0.40
codegen_flags: <defaults>
</compile_context>

<pallas_src>
import jax
import jax.numpy as jnp
from jax import lax
from jax.experimental import pallas as pl
from jax.experimental.pallas import tpu as pltpu


# ----------------------------- Pallas kernels ------------------------------

def _gemm_bias_kernel(w_ref, b_ref, a_ref, o_ref):
    # (Cout, K) @ (K, S) + bias -> lane-dense (Cout, S)
    o_ref[...] = (
        jnp.dot(w_ref[...], a_ref[...], preferred_element_type=jnp.float32)
        + b_ref[...]
    )


def _gemm_in_affine_relu_kernel(w_ref, b_ref, g_ref, bt_ref, a_ref, o_ref):
    # GEMM + bias + InstanceNorm3d(affine=True) + ReLU.  Per-(n, c) stats over the full S tile.
    y = jnp.dot(w_ref[...], a_ref[...], preferred_element_type=jnp.float32) + b_ref[...]
    mean = jnp.mean(y, axis=-1, keepdims=True)
    var = jnp.mean(y * y, axis=-1, keepdims=True) - mean * mean     # biased, like PyTorch IN
    yn = (y - mean) * lax.rsqrt(var + 1e-5)
    o_ref[...] = jnp.maximum(yn * g_ref[...] + bt_ref[...], 0.0)


def _gemm_in_relu_pool_kernel(w_ref, b_ref, a_ref, o_ref, p_ref):
    # GEMM + bias + InstanceNorm3d (no affine) + ReLU, plus fused SE global average pool.
    y = jnp.dot(w_ref[...], a_ref[...], preferred_element_type=jnp.float32) + b_ref[...]
    mean = jnp.mean(y, axis=-1, keepdims=True)
    var = jnp.mean(y * y, axis=-1, keepdims=True) - mean * mean
    out = jnp.maximum((y - mean) * lax.rsqrt(var + 1e-5), 0.0)
    o_ref[...] = out
    p_ref[...] = jnp.mean(out, axis=-1, keepdims=True)


def _in_affine_relu_kernel(x_ref, g_ref, b_ref, o_ref):
    # Standalone InstanceNorm3d(affine=True) + ReLU (used after the sub-pixel deconv).
    x = x_ref[...]
    mean = jnp.mean(x, axis=-1, keepdims=True)
    var = jnp.mean(x * x, axis=-1, keepdims=True) - mean * mean
    y = (x - mean) * lax.rsqrt(var + 1e-5)
    o_ref[...] = jnp.maximum(y * g_ref[...] + b_ref[...], 0.0)


def _scale_residual_relu_kernel(y_ref, s_ref, x_ref, o_ref):
    o_ref[...] = jnp.maximum(y_ref[...] * s_ref[...] + x_ref[...], 0.0)


_PARALLEL_1D = pltpu.CompilerParams(dimension_semantics=("parallel",))


# ------------------------- conv glue (im2col + fused GEMM) ------------------

def _im2col(x, kd, kh, kw, stride, padding):
    """NCDHW -> (N, K=Cin*kd*kh*kw, S=Do*Ho*Wo) bf16 patch matrix (already transposed for
    the lane-dense GEMM), plus the output spatial dims."""
    N, Cin, D, H, W = x.shape
    sd, sh, sw = stride
    pd, ph, pw = padding
    xp = jnp.pad(x, ((0, 0), (0, 0), (pd, pd), (ph, ph), (pw, pw))).astype(jnp.bfloat16)
    Do = (D + 2 * pd - kd) // sd + 1
    Ho = (H + 2 * ph - kh) // sh + 1
    Wo = (W + 2 * pw - kw) // sw + 1
    # TODO(synk): for large spatial extents, fuse this window gather into the Pallas kernel
    # (grid over kernel offsets with in-kernel accumulation) instead of materializing the
    # K-fold-expanded patch matrix in HBM.
    patches = []
    for i in range(kd):
        for j in range(kh):
            for l in range(kw):
                patches.append(
                    xp[:, :, i:i + Do * sd:sd, j:j + Ho * sh:sh, l:l + Wo * sw:sw])
    a = jnp.stack(patches, axis=2)                        # (N, Cin, kd*kh*kw, Do, Ho, Wo)
    a = a.reshape(N, Cin * kd * kh * kw, Do * Ho * Wo)    # matches w.reshape(Cout, K) order
    return a, (Do, Ho, Wo)


def conv3d_fused(x, w, b, stride, padding, mode, gamma=None, beta=None):
    """Conv3d as a per-batch lane-dense transposed GEMM with a fused epilogue.

    mode:
      "bias"           -> conv + bias
      "in_affine_relu" -> conv + bias + InstanceNorm3d(affine=True) + ReLU
      "in_relu_pool"   -> conv + bias + InstanceNorm3d (affine=False) + ReLU,
                          also returns the spatial mean per (n, c) (SE squeeze), (N, Cout)
    """
    Cout, Cin, kd, kh, kw = w.shape
    N = x.shape[0]
    a, (Do, Ho, Wo) = _im2col(x, kd, kh, kw, stride, padding)
    K = Cin * kd * kh * kw
    S = Do * Ho * Wo
    w2 = w.reshape(Cout, K).astype(jnp.bfloat16)
    b2 = b.reshape(Cout, 1).astype(jnp.float32)

    w_spec = pl.BlockSpec((Cout, K), lambda n: (0, 0))
    vec_spec = pl.BlockSpec((Cout, 1), lambda n: (0, 0))
    a_spec = pl.BlockSpec((None, K, S), lambda n: (n, 0, 0))
    o_spec = pl.BlockSpec((None, Cout, S), lambda n: (n, 0, 0))

    if mode == "bias":
        out = pl.pallas_call(
            _gemm_bias_kernel,
            out_shape=jax.ShapeDtypeStruct((N, Cout, S), jnp.float32),
            grid=(N,),
            in_specs=[w_spec, vec_spec, a_spec],
            out_specs=o_spec,
            compiler_params=_PARALLEL_1D,
        )(w2, b2, a)
        return out.reshape(N, Cout, Do, Ho, Wo)

    if mode == "in_affine_relu":
        g2 = gamma.reshape(Cout, 1).astype(jnp.float32)
        bt2 = beta.reshape(Cout, 1).astype(jnp.float32)
        out = pl.pallas_call(
            _gemm_in_affine_relu_kernel,
            out_shape=jax.ShapeDtypeStruct((N, Cout, S), jnp.float32),
            grid=(N,),
            in_specs=[w_spec, vec_spec, vec_spec, vec_spec, a_spec],
            out_specs=o_spec,
            compiler_params=_PARALLEL_1D,
        )(w2, b2, g2, bt2, a)
        return out.reshape(N, Cout, Do, Ho, Wo)

    assert mode == "in_relu_pool"
    out, pooled = pl.pallas_call(
        _gemm_in_relu_pool_kernel,
        out_shape=(jax.ShapeDtypeStruct((N, Cout, S), jnp.float32),
                   jax.ShapeDtypeStruct((N, Cout, 1), jnp.float32)),
        grid=(N,),
        in_specs=[w_spec, vec_spec, a_spec],
        out_specs=(o_spec, pl.BlockSpec((None, Cout, 1), lambda n: (n, 0, 0))),
        compiler_params=_PARALLEL_1D,
    )(w2, b2, a)
    return out.reshape(N, Cout, Do, Ho, Wo), pooled.reshape(N, Cout)


def instance_norm_relu(x, gamma, beta):
    """Standalone InstanceNorm3d(affine=True) + ReLU over (D,H,W) per (n, c).  x: NCDHW."""
    N, C, D, H, W = x.shape
    S = D * H * W
    out = pl.pallas_call(
        _in_affine_relu_kernel,
        out_shape=jax.ShapeDtypeStruct((N, C, S), jnp.float32),
        grid=(N,),
        in_specs=[pl.BlockSpec((None, C, S), lambda n: (n, 0, 0)),
                  pl.BlockSpec((C, 1), lambda n: (0, 0)),
                  pl.BlockSpec((C, 1), lambda n: (0, 0))],
        out_specs=pl.BlockSpec((None, C, S), lambda n: (n, 0, 0)),
        compiler_params=_PARALLEL_1D,
    )(x.reshape(N, C, S),
      gamma.reshape(C, 1).astype(jnp.float32),
      beta.reshape(C, 1).astype(jnp.float32))
    return out.reshape(N, C, D, H, W)


def scale_residual_relu(y, se, x):
    """relu(y * se[per n,c] + x).  y, x: NCDHW, se: (N, C)."""
    N, C, D, H, W = y.shape
    S = D * H * W
    out = pl.pallas_call(
        _scale_residual_relu_kernel,
        out_shape=jax.ShapeDtypeStruct((N, C, S), jnp.float32),
        grid=(N,),
        in_specs=[pl.BlockSpec((None, C, S), lambda n: (n, 0, 0)),
                  pl.BlockSpec((None, C, 1), lambda n: (n, 0, 0)),
                  pl.BlockSpec((None, C, S), lambda n: (n, 0, 0))],
        out_specs=pl.BlockSpec((None, C, S), lambda n: (n, 0, 0)),
        compiler_params=_PARALLEL_1D,
    )(y.reshape(N, C, S), se.reshape(N, C, 1).astype(jnp.float32), x.reshape(N, C, S))
    return out.reshape(N, C, D, H, W)


def conv_transpose3d_subpixel(x, w, b):
    """ConvTranspose3d(kernel=3, stride=(1,2,2), padding=1, output_padding=(0,1,1)) without
    zero-stuffing: 4 sub-pixel stride-1 convolutions whose outputs are interleaved.
    w: (Cin, Cout, 3, 3, 3) as in PyTorch."""
    N, Cin, D, H, W = x.shape
    Cout = w.shape[1]
    # transposed conv == conv with channel-swapped, spatially-flipped weights
    wt = jnp.flip(w, axis=(2, 3, 4)).transpose(1, 0, 2, 3, 4)      # (Cout, Cin, 3, 3, 3)
    sel = {0: (1,), 1: (0, 2)}                                     # taps per output parity

    def take(arr, axis, idxs):
        parts = [lax.slice_in_dim(arr, i, i + 1, axis=axis) for i in idxs]
        return parts[0] if len(parts) == 1 else jnp.concatenate(parts, axis=axis)

    phases = {}
    for a in (0, 1):            # output row parity (H)
        for c in (0, 1):        # output col parity (W)
            wsub = take(take(wt, 3, sel[a]), 4, sel[c])            # (Cout, Cin, 3, la, lc)
            xin = x
            if a == 1:
                xin = jnp.pad(xin, ((0, 0), (0, 0), (0, 0), (0, 1), (0, 0)))
            if c == 1:
                xin = jnp.pad(xin, ((0, 0), (0, 0), (0, 0), (0, 0), (0, 1)))
            phases[(a, c)] = conv3d_fused(xin, wsub, b, (1, 1, 1), (1, 0, 0), mode="bias")

    even = jnp.stack([phases[(0, 0)], phases[(0, 1)]], axis=-1).reshape(N, Cout, D, H, 2 * W)
    odd = jnp.stack([phases[(1, 0)], phases[(1, 1)]], axis=-1).reshape(N, Cout, D, H, 2 * W)
    return jnp.stack([even, odd], axis=-2).reshape(N, Cout, D, 2 * H, 2 * W)


# ------------------------------ model forward -------------------------------

def residual_block(x, p):
    C = x.shape[1]
    y, _ = conv3d_fused(x, p["w1"], p["b1"], (1, 1, 1), (1, 1, 1), mode="in_relu_pool")
    y, pooled = conv3d_fused(y, p["w2"], p["b2"], (1, 1, 1), (1, 1, 1), mode="in_relu_pool")
    # SE excitation: tiny per-sample MLP (C -> C//16 -> C).  Plain JAX glue (too small for MXU).
    w1 = p["sew1"].reshape(-1, C)                 # (C//16, C)
    w2 = p["sew2"].reshape(C, -1)                 # (C, C//16)
    se = jnp.maximum(pooled @ w1.T + p["seb1"], 0.0)
    se = jax.nn.sigmoid(se @ w2.T + p["seb2"])    # (N, C)
    return scale_residual_relu(y, se, x)          # relu(y*se + x)  -- Pallas


def resnet_basic_forward(x, params, cfg):
    p = params["downsample"][0]
    out = conv3d_fused(x, p["w"], p["b"], (1, 1, 1), (1, 3, 3),
                       mode="in_affine_relu", gamma=p["gamma"], beta=p["beta"])
    for i in range(cfg.num_downsample):
        p = params["downsample"][i + 1]
        out = conv3d_fused(out, p["w"], p["b"], (1, 2, 2), (1, 1, 1),
                           mode="in_affine_relu", gamma=p["gamma"], beta=p["beta"])
    for bp in params["blocks"]:
        out = residual_block(out, bp)
    for i in range(cfg.num_downsample):
        p = params["upsample"][i]
        out = conv_transpose3d_subpixel(out, p["w"], p["b"])
        out = instance_norm_relu(out, p["gamma"], p["beta"])
    pf = params["final"]
    out = conv3d_fused(out, pf["w"], pf["b"], (1, 1, 1), (1, 3, 3), mode="bias")
    return out


# ------------------------------ param init ----------------------------------

class Config:
    channel = 8
    num_downsample = 1
    num_block = 1


def init_params(cfg, key):
    keys = iter(jax.random.split(key, 256))

    def nrm(shape, scale=0.1):
        return scale * jax.random.normal(next(keys), shape, jnp.float32)

    params = {}
    ds = [dict(w=nrm((cfg.channel, 3, 3, 7, 7)), b=nrm((cfg.channel,)),
               gamma=1.0 + nrm((cfg.channel,)), beta=nrm((cfg.channel,)))]
    for i in range(cfg.num_downsample):
        cin = cfg.channel * (2 ** i)
        cout = cin * 2
        ds.append(dict(w=nrm((cout, cin, 3, 3, 3)), b=nrm((cout,)),
                       gamma=1.0 + nrm((cout,)), beta=nrm((cout,))))
    params["downsample"] = ds

    cres = cfg.channel * (2 ** cfg.num_downsample)
    blocks = []
    for _ in range(cfg.num_block):
        blocks.append(dict(
            w1=nrm((cres, cres, 3, 3, 3)), b1=nrm((cres,)),
            w2=nrm((cres, cres, 3, 3, 3)), b2=nrm((cres,)),
            sew1=nrm((cres // 16, cres, 1, 1, 1)), seb1=nrm((cres // 16,)),
            sew2=nrm((cres, cres // 16, 1, 1, 1)), seb2=nrm((cres,))))
    params["blocks"] = blocks

    us = []
    for i in range(cfg.num_downsample):
        cin = cfg.channel * (2 ** (cfg.num_downsample - i))
        cout = cin // 2
        us.append(dict(w=nrm((cin, cout, 3, 3, 3)), b=nrm((cout,)),
                       gamma=1.0 + nrm((cout,)), beta=nrm((cout,))))
    params["upsample"] = us

    params["final"] = dict(w=nrm((3, cfg.channel, 3, 7, 7)), b=nrm((3,)))
    return params


if __name__ == "__main__":
    cfg = Config()
    key = jax.random.PRNGKey(0)
    kx, kp = jax.random.split(key)
    # NCDHW; bottleneck channel = 16 so the SE reduction (C // 16) is valid.
    x = jax.random.normal(kx, (2, 3, 4, 16, 16), jnp.float32)
    params = init_params(cfg, kp)

    fwd = jax.jit(lambda xx, pp: resnet_basic_forward(xx, pp, cfg))
    out = fwd(x, params)
    jax.block_until_ready(out)
    assert out.shape == (2, 3, 4, 16, 16), out.shape
    assert bool(jnp.all(jnp.isfinite(out)))
    print("KERNEL_OK")
</pallas_src>

<mosaic_0001>
module attributes {stable_mosaic.version = 11 : i64} {
  func.func @_gemm_in_affine_relu_kernel(%arg0: i32, %arg1: memref<8x441xbf16, #tpu.memory_space<vmem>>, %arg2: memref<8x1xf32, #tpu.memory_space<vmem>>, %arg3: memref<8x1xf32, #tpu.memory_space<vmem>>, %arg4: memref<8x1xf32, #tpu.memory_space<vmem>>, %arg5: memref<1x441x1024xbf16, #tpu.memory_space<vmem>>, %arg6: memref<1x8x1024xf32, #tpu.memory_space<vmem>>) attributes {dimension_semantics = [#tpu.dimension_semantics<parallel>], iteration_bounds = array<i64: 2>, scalar_prefetch = 0 : i64, scratch_operands = 0 : i64, tpu.core_type = #tpu.core_type<tc>, window_params = [{pipeline_mode = #tpu.pipeline_mode<synchronous>, transform_indices = @transform_0, window_bounds = array<i64: 8, 441>}, {pipeline_mode = #tpu.pipeline_mode<synchronous>, transform_indices = @transform_1, window_bounds = array<i64: 8, 1>}, {pipeline_mode = #tpu.pipeline_mode<synchronous>, transform_indices = @transform_2, window_bounds = array<i64: 8, 1>}, {pipeline_mode = #tpu.pipeline_mode<synchronous>, transform_indices = @transform_3, window_bounds = array<i64: 8, 1>}, {transform_indices = @transform_4, window_bounds = array<i64: 1, 441, 1024>}, {transform_indices = @transform_5, window_bounds = array<i64: 1, 8, 1024>}]} {
    %c0 = arith.constant 0 : index
    %c0_0 = arith.constant 0 : index
    %0 = vector.load %arg1[%c0, %c0_0] : memref<8x441xbf16, #tpu.memory_space<vmem>>, vector<8x441xbf16>
    %c0_1 = arith.constant 0 : index
    %c0_2 = arith.constant 0 : index
    %c0_3 = arith.constant 0 : index
    %1 = vector.load %arg5[%c0_1, %c0_2, %c0_3] : memref<1x441x1024xbf16, #tpu.memory_space<vmem>>, vector<1x441x1024xbf16>
    %2 = vector.shape_cast %1 : vector<1x441x1024xbf16> to vector<441x1024xbf16>
    %cst = arith.constant dense<0.000000e+00> : vector<8x1024xf32>
    %3 = tpu.matmul %0, %2, %cst {dimension_numbers = #tpu.dot_dimension_numbers<[1], [0], [0], [1], [0, 0, 1, 1], [], []>} : vector<8x441xbf16>, vector<441x1024xbf16>, vector<8x1024xf32> -> vector<8x1024xf32>
    %c0_4 = arith.constant 0 : index
    %c0_5 = arith.constant 0 : index
    %4 = vector.load %arg2[%c0_4, %c0_5] : memref<8x1xf32, #tpu.memory_space<vmem>>, vector<8x1xf32>
    %5 = vector.broadcast %4 : vector<8x1xf32> to vector<8x1024xf32>
    %6 = arith.addf %3, %5 : vector<8x1024xf32>
    %cst_6 = arith.constant dense<0.000000e+00> : vector<8xf32>
    %7 = vector.multi_reduction <add>, %6, %cst_6 [1] : vector<8x1024xf32> to vector<8xf32>
    %8 = vector.shape_cast %7 : vector<8xf32> to vector<8x1xf32>
    %cst_7 = arith.constant 1.024000e+03 : f32
    %9 = vector.broadcast %cst_7 : f32 to vector<8x1xf32>
    %10 = arith.divf %8, %9 : vector<8x1xf32>
    %11 = arith.mulf %6, %6 : vector<8x1024xf32>
    %cst_8 = arith.constant dense<0.000000e+00> : vector<8xf32>
    %12 = vector.multi_reduction <add>, %11, %cst_8 [1] : vector<8x1024xf32> to vector<8xf32>
    %13 = vector.shape_cast %12 : vector<8xf32> to vector<8x1xf32>
    %cst_9 = arith.constant 1.024000e+03 : f32
    %14 = vector.broadcast %cst_9 : f32 to vector<8x1xf32>
    %15 = arith.divf %13, %14 : vector<8x1xf32>
    %16 = arith.mulf %10, %10 : vector<8x1xf32>
    %17 = arith.subf %15, %16 : vector<8x1xf32>
    %18 = vector.broadcast %10 : vector<8x1xf32> to vector<8x1024xf32>
    %19 = arith.subf %6, %18 : vector<8x1024xf32>
    %cst_10 = arith.constant 9.99999974E-6 : f32
    %20 = vector.broadcast %cst_10 : f32 to vector<8x1xf32>
    %21 = arith.addf %17, %20 : vector<8x1xf32>
    %22 = math.rsqrt %21 : vector<8x1xf32>
    %23 = vector.broadcast %22 : vector<8x1xf32> to vector<8x1024xf32>
    %24 = arith.mulf %19, %23 : vector<8x1024xf32>
    %c0_11 = arith.constant 0 : index
    %c0_12 = arith.constant 0 : index
    %25 = vector.load %arg3[%c0_11, %c0_12] : memref<8x1xf32, #tpu.memory_space<vmem>>, vector<8x1xf32>
    %26 = vector.broadcast %25 : vector<8x1xf32> to vector<8x1024xf32>
    %27 = arith.mulf %24, %26 : vector<8x1024xf32>
    %c0_13 = arith.constant 0 : index
    %c0_14 = arith.constant 0 : index
    %28 = vector.load %arg4[%c0_13, %c0_14] : memref<8x1xf32, #tpu.memory_space<vmem>>, vector<8x1xf32>
    %29 = vector.broadcast %28 : vector<8x1xf32> to vector<8x1024xf32>
    %30 = arith.addf %27, %29 : vector<8x1024xf32>
    %cst_15 = arith.constant 0.000000e+00 : f32
    %31 = vector.broadcast %cst_15 : f32 to vector<8x1024xf32>
    %32 = arith.maximumf %30, %31 : vector<8x1024xf32>
    %c0_16 = arith.constant 0 : index
    %c0_17 = arith.constant 0 : index
    %c0_18 = arith.constant 0 : index
    %33 = vector.load %arg6[%c0_16, %c0_17, %c0_18] : memref<1x8x1024xf32, #tpu.memory_space<vmem>>, vector<1x8x1024xf32>
    %34 = vector.shape_cast %33 : vector<1x8x1024xf32> to vector<8x1024xf32>
    %35 = vector.shape_cast %32 : vector<8x1024xf32> to vector<1x8x1024xf32>
    tpu.vector_store %arg6[%c0_16, %c0_17, %c0_18], %35 {strides = array<i32>} : memref<1x8x1024xf32, #tpu.memory_space<vmem>>, vector<1x8x1024xf32>,
    return
  }
  func.func @transform_0(%arg0: i32) -> (i32, i32) {
    %c0_i32 = arith.constant 0 : i32
    %c0_i32_0 = arith.constant 0 : i32
    %c0_i32_1 = arith.constant 0 : i32
    return %c0_i32, %c0_i32_0 : i32, i32
  }
  func.func @transform_1(%arg0: i32) -> (i32, i32) {
    %c0_i32 = arith.constant 0 : i32
    %c0_i32_0 = arith.constant 0 : i32
    %c0_i32_1 = arith.constant 0 : i32
    return %c0_i32, %c0_i32_0 : i32, i32
  }
  func.func @transform_2(%arg0: i32) -> (i32, i32) {
    %c0_i32 = arith.constant 0 : i32
    %c0_i32_0 = arith.constant 0 : i32
    %c0_i32_1 = arith.constant 0 : i32
    return %c0_i32, %c0_i32_0 : i32, i32
  }
  func.func @transform_3(%arg0: i32) -> (i32, i32) {
    %c0_i32 = arith.constant 0 : i32
    %c0_i32_0 = arith.constant 0 : i32
    %c0_i32_1 = arith.constant 0 : i32
    return %c0_i32, %c0_i32_0 : i32, i32
  }
  func.func @transform_4(%arg0: i32) -> (i32, i32, i32) {
    %c0_i32 = arith.constant 0 : i32
    %c0_i32_0 = arith.constant 0 : i32
    %c0_i32_1 = arith.constant 0 : i32
    return %arg0, %c0_i32, %c0_i32_0 : i32, i32, i32
  }
  func.func @transform_5(%arg0: i32) -> (i32, i32, i32) {
    %c0_i32 = arith.constant 0 : i32
    %c0_i32_0 = arith.constant 0 : i32
    %c0_i32_1 = arith.constant 0 : i32
    return %arg0, %c0_i32, %c0_i32_0 : i32, i32, i32
  }
}

module attributes {stable_mosaic.version = 11 : i64} {
  func.func @_gemm_in_affine_relu_kernel(%arg0: i32, %arg1: memref<16x216xbf16, #tpu.memory_space<vmem>>, %arg2: memref<16x1xf32, #tpu.memory_space<vmem>>, %arg3: memref<16x1xf32, #tpu.memory_space<vmem>>, %arg4: memref<16x1xf32, #tpu.memory_space<vmem>>, %arg5: memref<1x216x256xbf16, #tpu.memory_space<vmem>>, %arg6: memref<1x16x256xf32, #tpu.memory_space<vmem>>) attributes {dimension_semantics = [#tpu.dimension_semantics<parallel>], iteration_bounds = array<i64: 2>, scalar_prefetch = 0 : i64, scratch_operands = 0 : i64, tpu.core_type = #tpu.core_type<tc>, window_params = [{pipeline_mode = #tpu.pipeline_mode<synchronous>, transform_indices = @transform_0, window_bounds = array<i64: 16, 216>}, {pipeline_mode = #tpu.pipeline_mode<synchronous>, transform_indices = @transform_1, window_bounds = array<i64: 16, 1>}, {pipeline_mode = #tpu.pipeline_mode<synchronous>, transform_indices = @transform_2, window_bounds = array<i64: 16, 1>}, {pipeline_mode = #tpu.pipeline_mode<synchronous>, transform_indices = @transform_3, window_bounds = array<i64: 16, 1>}, {transform_indices = @transform_4, window_bounds = array<i64: 1, 216, 256>}, {transform_indices = @transform_5, window_bounds = array<i64: 1, 16, 256>}]} {
    %c0 = arith.constant 0 : index
    %c0_0 = arith.constant 0 : index
    %0 = vector.load %arg1[%c0, %c0_0] : memref<16x216xbf16, #tpu.memory_space<vmem>>, vector<16x216xbf16>
    %c0_1 = arith.constant 0 : index
    %c0_2 = arith.constant 0 : index
    %c0_3 = arith.constant 0 : index
    %1 = vector.load %arg5[%c0_1, %c0_2, %c0_3] : memref<1x216x256xbf16, #tpu.memory_space<vmem>>, vector<1x216x256xbf16>
    %2 = vector.shape_cast %1 : vector<1x216x256xbf16> to vector<216x256xbf16>
    %cst = arith.constant dense<0.000000e+00> : vector<16x256xf32>
    %3 = tpu.matmul %0, %2, %cst {dimension_numbers = #tpu.dot_dimension_numbers<[1], [0], [0], [1], [0, 0, 1, 1], [], []>} : vector<16x216xbf16>, vector<216x256xbf16>, vector<16x256xf32> -> vector<16x256xf32>
    %c0_4 = arith.constant 0 : index
    %c0_5 = arith.constant 0 : index
    %4 = vector.load %arg2[%c0_4, %c0_5] : memref<16x1xf32, #tpu.memory_space<vmem>>, vector<16x1xf32>
    %5 = vector.broadcast %4 : vector<16x1xf32> to vector<16x256xf32>
    %6 = arith.addf %3, %5 : vector<16x256xf32>
    %cst_6 = arith.constant dense<0.000000e+00> : vector<16xf32>
    %7 = vector.multi_reduction <add>, %6, %cst_6 [1] : vector<16x256xf32> to vector<16xf32>
    %8 = vector.shape_cast %7 : vector<16xf32> to vector<16x1xf32>
    %cst_7 = arith.constant 2.560000e+02 : f32
    %9 = vector.broadcast %cst_7 : f32 to vector<16x1xf32>
    %10 = arith.divf %8, %9 : vector<16x1xf32>
    %11 = arith.mulf %6, %6 : vector<16x256xf32>
    %cst_8 = arith.constant dense<0.000000e+00> : vector<16xf32>
    %12 = vector.multi_reduction <add>, %11, %cst_8 [1] : vector<16x256xf32> to vector<16xf32>
    %13 = vector.shape_cast %12 : vector<16xf32> to vector<16x1xf32>
    %cst_9 = arith.constant 2.560000e+02 : f32
    %14 = vector.broadcast %cst_9 : f32 to vector<16x1xf32>
    %15 = arith.divf %13, %14 : vector<16x1xf32>
    %16 = arith.mulf %10, %10 : vector<16x1xf32>
    %17 = arith.subf %15, %16 : vector<16x1xf32>
    %18 = vector.broadcast %10 : vector<16x1xf32> to vector<16x256xf32>
    %19 = arith.subf %6, %18 : vector<16x256xf32>
    %cst_10 = arith.constant 9.99999974E-6 : f32
    %20 = vector.broadcast %cst_10 : f32 to vector<16x1xf32>
    %21 = arith.addf %17, %20 : vector<16x1xf32>
    %22 = math.rsqrt %21 : vector<16x1xf32>
    %23 = vector.broadcast %22 : vector<16x1xf32> to vector<16x256xf32>
    %24 = arith.mulf %19, %23 : vector<16x256xf32>
    %c0_11 = arith.constant 0 : index
    %c0_12 = arith.constant 0 : index
    %25 = vector.load %arg3[%c0_11, %c0_12] : memref<16x1xf32, #tpu.memory_space<vmem>>, vector<16x1xf32>
    %26 = vector.broadcast %25 : vector<16x1xf32> to vector<16x256xf32>
    %27 = arith.mulf %24, %26 : vector<16x256xf32>
    %c0_13 = arith.constant 0 : index
    %c0_14 = arith.constant 0 : index
    %28 = vector.load %arg4[%c0_13, %c0_14] : memref<16x1xf32, #tpu.memory_space<vmem>>, vector<16x1xf32>
    %29 = vector.broadcast %28 : vector<16x1xf32> to vector<16x256xf32>
    %30 = arith.addf %27, %29 : vector<16x256xf32>
    %cst_15 = arith.constant 0.000000e+00 : f32
    %31 = vector.broadcast %cst_15 : f32 to vector<16x256xf32>
    %32 = arith.maximumf %30, %31 : vector<16x256xf32>
    %c0_16 = arith.constant 0 : index
    %c0_17 = arith.constant 0 : index
    %c0_18 = arith.constant 0 : index
    %33 = vector.load %arg6[%c0_16, %c0_17, %c0_18] : memref<1x16x256xf32, #tpu.memory_space<vmem>>, vector<1x16x256xf32>
    %34 = vector.shape_cast %33 : vector<1x16x256xf32> to vector<16x256xf32>
    %35 = vector.shape_cast %32 : vector<16x256xf32> to vector<1x16x256xf32>
    tpu.vector_store %arg6[%c0_16, %c0_17, %c0_18], %35 {strides = array<i32>} : memref<1x16x256xf32, #tpu.memory_space<vmem>>, vector<1x16x256xf32>,
    return
  }
  func.func @transform_0(%arg0: i32) -> (i32, i32) {
    %c0_i32 = arith.constant 0 : i32
    %c0_i32_0 = arith.constant 0 : i32
    %c0_i32_1 = arith.constant 0 : i32
    return %c0_i32, %c0_i32_0 : i32, i32
  }
  func.func @transform_1(%arg0: i32) -> (i32, i32) {
    %c0_i32 = arith.constant 0 : i32
    %c0_i32_0 = arith.constant 0 : i32
    %c0_i32_1 = arith.constant 0 : i32
    return %c0_i32, %c0_i32_0 : i32, i32
  }
  func.func @transform_2(%arg0: i32) -> (i32, i32) {
    %c0_i32 = arith.constant 0 : i32
    %c0_i32_0 = arith.constant 0 : i32
    %c0_i32_1 = arith.constant 0 : i32
    return %c0_i32, %c0_i32_0 : i32, i32
  }
  func.func @transform_3(%arg0: i32) -> (i32, i32) {
    %c0_i32 = arith.constant 0 : i32
    %c0_i32_0 = arith.constant 0 : i32
    %c0_i32_1 = arith.constant 0 : i32
    return %c0_i32, %c0_i32_0 : i32, i32
  }
  func.func @transform_4(%arg0: i32) -> (i32, i32, i32) {
    %c0_i32 = arith.constant 0 : i32
    %c0_i32_0 = arith.constant 0 : i32
    %c0_i32_1 = arith.constant 0 : i32
    return %arg0, %c0_i32, %c0_i32_0 : i32, i32, i32
  }
  func.func @transform_5(%arg0: i32) -> (i32, i32, i32) {
    %c0_i32 = arith.constant 0 : i32
    %c0_i32_0 = arith.constant 0 : i32
    %c0_i32_1 = arith.constant 0 : i32
    return %arg0, %c0_i32, %c0_i32_0 : i32, i32, i32
  }
}

module attributes {stable_mosaic.version = 11 : i64} {
  func.func @_gemm_in_relu_pool_kernel(%arg0: i32, %arg1: memref<16x432xbf16, #tpu.memory_space<vmem>>, %arg2: memref<16x1xf32, #tpu.memory_space<vmem>>, %arg3: memref<1x432x256xbf16, #tpu.memory_space<vmem>>, %arg4: memref<1x16x256xf32, #tpu.memory_space<vmem>>, %arg5: memref<1x16x1xf32, #tpu.memory_space<vmem>>) attributes {dimension_semantics = [#tpu.dimension_semantics<parallel>], iteration_bounds = array<i64: 2>, scalar_prefetch = 0 : i64, scratch_operands = 0 : i64, tpu.core_type = #tpu.core_type<tc>, window_params = [{pipeline_mode = #tpu.pipeline_mode<synchronous>, transform_indices = @transform_0, window_bounds = array<i64: 16, 432>}, {pipeline_mode = #tpu.pipeline_mode<synchronous>, transform_indices = @transform_1, window_bounds = array<i64: 16, 1>}, {transform_indices = @transform_2, window_bounds = array<i64: 1, 432, 256>}, {transform_indices = @transform_3, window_bounds = array<i64: 1, 16, 256>}, {transform_indices = @transform_4, window_bounds = array<i64: 1, 16, 1>}]} {
    %c0 = arith.constant 0 : index
    %c0_0 = arith.constant 0 : index
    %0 = vector.load %arg1[%c0, %c0_0] : memref<16x432xbf16, #tpu.memory_space<vmem>>, vector<16x432xbf16>
    %c0_1 = arith.constant 0 : index
    %c0_2 = arith.constant 0 : index
    %c0_3 = arith.constant 0 : index
    %1 = vector.load %arg3[%c0_1, %c0_2, %c0_3] : memref<1x432x256xbf16, #tpu.memory_space<vmem>>, vector<1x432x256xbf16>
    %2 = vector.shape_cast %1 : vector<1x432x256xbf16> to vector<432x256xbf16>
    %cst = arith.constant dense<0.000000e+00> : vector<16x256xf32>
    %3 = tpu.matmul %0, %2, %cst {dimension_numbers = #tpu.dot_dimension_numbers<[1], [0], [0], [1], [0, 0, 1, 1], [], []>} : vector<16x432xbf16>, vector<432x256xbf16>, vector<16x256xf32> -> vector<16x256xf32>
    %c0_4 = arith.constant 0 : index
    %c0_5 = arith.constant 0 : index
    %4 = vector.load %arg2[%c0_4, %c0_5] : memref<16x1xf32, #tpu.memory_space<vmem>>, vector<16x1xf32>
    %5 = vector.broadcast %4 : vector<16x1xf32> to vector<16x256xf32>
    %6 = arith.addf %3, %5 : vector<16x256xf32>
    %cst_6 = arith.constant dense<0.000000e+00> : vector<16xf32>
    %7 = vector.multi_reduction <add>, %6, %cst_6 [1] : vector<16x256xf32> to vector<16xf32>
    %8 = vector.shape_cast %7 : vector<16xf32> to vector<16x1xf32>
    %cst_7 = arith.constant 2.560000e+02 : f32
    %9 = vector.broadcast %cst_7 : f32 to vector<16x1xf32>
    %10 = arith.divf %8, %9 : vector<16x1xf32>
    %11 = arith.mulf %6, %6 : vector<16x256xf32>
    %cst_8 = arith.constant dense<0.000000e+00> : vector<16xf32>
    %12 = vector.multi_reduction <add>, %11, %cst_8 [1] : vector<16x256xf32> to vector<16xf32>
    %13 = vector.shape_cast %12 : vector<16xf32> to vector<16x1xf32>
    %cst_9 = arith.constant 2.560000e+02 : f32
    %14 = vector.broadcast %cst_9 : f32 to vector<16x1xf32>
    %15 = arith.divf %13, %14 : vector<16x1xf32>
    %16 = arith.mulf %10, %10 : vector<16x1xf32>
    %17 = arith.subf %15, %16 : vector<16x1xf32>
    %18 = vector.broadcast %10 : vector<16x1xf32> to vector<16x256xf32>
    %19 = arith.subf %6, %18 : vector<16x256xf32>
    %cst_10 = arith.constant 9.99999974E-6 : f32
    %20 = vector.broadcast %cst_10 : f32 to vector<16x1xf32>
    %21 = arith.addf %17, %20 : vector<16x1xf32>
    %22 = math.rsqrt %21 : vector<16x1xf32>
    %23 = vector.broadcast %22 : vector<16x1xf32> to vector<16x256xf32>
    %24 = arith.mulf %19, %23 : vector<16x256xf32>
    %cst_11 = arith.constant 0.000000e+00 : f32
    %25 = vector.broadcast %cst_11 : f32 to vector<16x256xf32>
    %26 = arith.maximumf %24, %25 : vector<16x256xf32>
    %c0_12 = arith.constant 0 : index
    %c0_13 = arith.constant 0 : index
    %c0_14 = arith.constant 0 : index
    %27 = vector.load %arg4[%c0_12, %c0_13, %c0_14] : memref<1x16x256xf32, #tpu.memory_space<vmem>>, vector<1x16x256xf32>
    %28 = vector.shape_cast %27 : vector<1x16x256xf32> to vector<16x256xf32>
    %29 = vector.shape_cast %26 : vector<16x256xf32> to vector<1x16x256xf32>
    tpu.vector_store %arg4[%c0_12, %c0_13, %c0_14], %29 {strides = array<i32>} : memref<1x16x256xf32, #tpu.memory_space<vmem>>, vector<1x16x256xf32>,
    %cst_15 = arith.constant dense<0.000000e+00> : vector<16xf32>
    %30 = vector.multi_reduction <add>, %26, %cst_15 [1] : vector<16x256xf32> to vector<16xf32>
    %31 = vector.shape_cast %30 : vector<16xf32> to vector<16x1xf32>
    %cst_16 = arith.constant 2.560000e+02 : f32
    %32 = vector.broadcast %cst_16 : f32 to vector<16x1xf32>
    %33 = arith.divf %31, %32 : vector<16x1xf32>
    %c0_17 = arith.constant 0 : index
    %c0_18 = arith.constant 0 : index
    %c0_19 = arith.constant 0 : index
    %34 = vector.load %arg5[%c0_17, %c0_18, %c0_19] : memref<1x16x1xf32, #tpu.memory_space<vmem>>, vector<1x16x1xf32>
    %35 = vector.shape_cast %34 : vector<1x16x1xf32> to vector<16x1xf32>
    %36 = vector.shape_cast %33 : vector<16x1xf32> to vector<1x16x1xf32>
    tpu.vector_store %arg5[%c0_17, %c0_18, %c0_19], %36 {strides = array<i32>} : memref<1x16x1xf32, #tpu.memory_space<vmem>>, vector<1x16x1xf32>,
    return
  }
  func.func @transform_0(%arg0: i32) -> (i32, i32) {
    %c0_i32 = arith.constant 0 : i32
    %c0_i32_0 = arith.constant 0 : i32
    %c0_i32_1 = arith.constant 0 : i32
    return %c0_i32, %c0_i32_0 : i32, i32
  }
  func.func @transform_1(%arg0: i32) -> (i32, i32) {
    %c0_i32 = arith.constant 0 : i32
    %c0_i32_0 = arith.constant 0 : i32
    %c0_i32_1 = arith.constant 0 : i32
    return %c0_i32, %c0_i32_0 : i32, i32
  }
  func.func @transform_2(%arg0: i32) -> (i32, i32, i32) {
    %c0_i32 = arith.constant 0 : i32
    %c0_i32_0 = arith.constant 0 : i32
    %c0_i32_1 = arith.constant 0 : i32
    return %arg0, %c0_i32, %c0_i32_0 : i32, i32, i32
  }
  func.func @transform_3(%arg0: i32) -> (i32, i32, i32) {
    %c0_i32 = arith.constant 0 : i32
    %c0_i32_0 = arith.constant 0 : i32
    %c0_i32_1 = arith.constant 0 : i32
    return %arg0, %c0_i32, %c0_i32_0 : i32, i32, i32
  }
  func.func @transform_4(%arg0: i32) -> (i32, i32, i32) {
    %c0_i32 = arith.constant 0 : i32
    %c0_i32_0 = arith.constant 0 : i32
    %c0_i32_1 = arith.constant 0 : i32
    return %arg0, %c0_i32, %c0_i32_0 : i32, i32, i32
  }
}

module attributes {stable_mosaic.version = 11 : i64} {
  func.func @_gemm_in_relu_pool_kernel(%arg0: i32, %arg1: memref<16x432xbf16, #tpu.memory_space<vmem>>, %arg2: memref<16x1xf32, #tpu.memory_space<vmem>>, %arg3: memref<1x432x256xbf16, #tpu.memory_space<vmem>>, %arg4: memref<1x16x256xf32, #tpu.memory_space<vmem>>, %arg5: memref<1x16x1xf32, #tpu.memory_space<vmem>>) attributes {dimension_semantics = [#tpu.dimension_semantics<parallel>], iteration_bounds = array<i64: 2>, scalar_prefetch = 0 : i64, scratch_operands = 0 : i64, tpu.core_type = #tpu.core_type<tc>, window_params = [{pipeline_mode = #tpu.pipeline_mode<synchronous>, transform_indices = @transform_0, window_bounds = array<i64: 16, 432>}, {pipeline_mode = #tpu.pipeline_mode<synchronous>, transform_indices = @transform_1, window_bounds = array<i64: 16, 1>}, {transform_indices = @transform_2, window_bounds = array<i64: 1, 432, 256>}, {transform_indices = @transform_3, window_bounds = array<i64: 1, 16, 256>}, {transform_indices = @transform_4, window_bounds = array<i64: 1, 16, 1>}]} {
    %c0 = arith.constant 0 : index
    %c0_0 = arith.constant 0 : index
    %0 = vector.load %arg1[%c0, %c0_0] : memref<16x432xbf16, #tpu.memory_space<vmem>>, vector<16x432xbf16>
    %c0_1 = arith.constant 0 : index
    %c0_2 = arith.constant 0 : index
    %c0_3 = arith.constant 0 : index
    %1 = vector.load %arg3[%c0_1, %c0_2, %c0_3] : memref<1x432x256xbf16, #tpu.memory_space<vmem>>, vector<1x432x256xbf16>
    %2 = vector.shape_cast %1 : vector<1x432x256xbf16> to vector<432x256xbf16>
    %cst = arith.constant dense<0.000000e+00> : vector<16x256xf32>
    %3 = tpu.matmul %0, %2, %cst {dimension_numbers = #tpu.dot_dimension_numbers<[1], [0], [0], [1], [0, 0, 1, 1], [], []>} : vector<16x432xbf16>, vector<432x256xbf16>, vector<16x256xf32> -> vector<16x256xf32>
    %c0_4 = arith.constant 0 : index
    %c0_5 = arith.constant 0 : index
    %4 = vector.load %arg2[%c0_4, %c0_5] : memref<16x1xf32, #tpu.memory_space<vmem>>, vector<16x1xf32>
    %5 = vector.broadcast %4 : vector<16x1xf32> to vector<16x256xf32>
    %6 = arith.addf %3, %5 : vector<16x256xf32>
    %cst_6 = arith.constant dense<0.000000e+00> : vector<16xf32>
    %7 = vector.multi_reduction <add>, %6, %cst_6 [1] : vector<16x256xf32> to vector<16xf32>
    %8 = vector.shape_cast %7 : vector<16xf32> to vector<16x1xf32>
    %cst_7 = arith.constant 2.560000e+02 : f32
    %9 = vector.broadcast %cst_7 : f32 to vector<16x1xf32>
    %10 = arith.divf %8, %9 : vector<16x1xf32>
    %11 = arith.mulf %6, %6 : vector<16x256xf32>
    %cst_8 = arith.constant dense<0.000000e+00> : vector<16xf32>
    %12 = vector.multi_reduction <add>, %11, %cst_8 [1] : vector<16x256xf32> to vector<16xf32>
    %13 = vector.shape_cast %12 : vector<16xf32> to vector<16x1xf32>
    %cst_9 = arith.constant 2.560000e+02 : f32
    %14 = vector.broadcast %cst_9 : f32 to vector<16x1xf32>
    %15 = arith.divf %13, %14 : vector<16x1xf32>
    %16 = arith.mulf %10, %10 : vector<16x1xf32>
    %17 = arith.subf %15, %16 : vector<16x1xf32>
    %18 = vector.broadcast %10 : vector<16x1xf32> to vector<16x256xf32>
    %19 = arith.subf %6, %18 : vector<16x256xf32>
    %cst_10 = arith.constant 9.99999974E-6 : f32
    %20 = vector.broadcast %cst_10 : f32 to vector<16x1xf32>
    %21 = arith.addf %17, %20 : vector<16x1xf32>
    %22 = math.rsqrt %21 : vector<16x1xf32>
    %23 = vector.broadcast %22 : vector<16x1xf32> to vector<16x256xf32>
    %24 = arith.mulf %19, %23 : vector<16x256xf32>
    %cst_11 = arith.constant 0.000000e+00 : f32
    %25 = vector.broadcast %cst_11 : f32 to vector<16x256xf32>
    %26 = arith.maximumf %24, %25 : vector<16x256xf32>
    %c0_12 = arith.constant 0 : index
    %c0_13 = arith.constant 0 : index
    %c0_14 = arith.constant 0 : index
    %27 = vector.load %arg4[%c0_12, %c0_13, %c0_14] : memref<1x16x256xf32, #tpu.memory_space<vmem>>, vector<1x16x256xf32>
    %28 = vector.shape_cast %27 : vector<1x16x256xf32> to vector<16x256xf32>
    %29 = vector.shape_cast %26 : vector<16x256xf32> to vector<1x16x256xf32>
    tpu.vector_store %arg4[%c0_12, %c0_13, %c0_14], %29 {strides = array<i32>} : memref<1x16x256xf32, #tpu.memory_space<vmem>>, vector<1x16x256xf32>,
    %cst_15 = arith.constant dense<0.000000e+00> : vector<16xf32>
    %30 = vector.multi_reduction <add>, %26, %cst_15 [1] : vector<16x256xf32> to vector<16xf32>
    %31 = vector.shape_cast %30 : vector<16xf32> to vector<16x1xf32>
    %cst_16 = arith.constant 2.560000e+02 : f32
    %32 = vector.broadcast %cst_16 : f32 to vector<16x1xf32>
    %33 = arith.divf %31, %32 : vector<16x1xf32>
    %c0_17 = arith.constant 0 : index
    %c0_18 = arith.constant 0 : index
    %c0_19 = arith.constant 0 : index
    %34 = vector.load %arg5[%c0_17, %c0_18, %c0_19] : memref<1x16x1xf32, #tpu.memory_space<vmem>>, vector<1x16x1xf32>
    %35 = vector.shape_cast %34 : vector<1x16x1xf32> to vector<16x1xf32>
    %36 = vector.shape_cast %33 : vector<16x1xf32> to vector<1x16x1xf32>
    tpu.vector_store %arg5[%c0_17, %c0_18, %c0_19], %36 {strides = array<i32>} : memref<1x16x1xf32, #tpu.memory_space<vmem>>, vector<1x16x1xf32>,
    return
  }
  func.func @transform_0(%arg0: i32) -> (i32, i32) {
    %c0_i32 = arith.constant 0 : i32
    %c0_i32_0 = arith.constant 0 : i32
    %c0_i32_1 = arith.constant 0 : i32
    return %c0_i32, %c0_i32_0 : i32, i32
  }
  func.func @transform_1(%arg0: i32) -> (i32, i32) {
    %c0_i32 = arith.constant 0 : i32
    %c0_i32_0 = arith.constant 0 : i32
    %c0_i32_1 = arith.constant 0 : i32
    return %c0_i32, %c0_i32_0 : i32, i32
  }
  func.func @transform_2(%arg0: i32) -> (i32, i32, i32) {
    %c0_i32 = arith.constant 0 : i32
    %c0_i32_0 = arith.constant 0 : i32
    %c0_i32_1 = arith.constant 0 : i32
    return %arg0, %c0_i32, %c0_i32_0 : i32, i32, i32
  }
  func.func @transform_3(%arg0: i32) -> (i32, i32, i32) {
    %c0_i32 = arith.constant 0 : i32
    %c0_i32_0 = arith.constant 0 : i32
    %c0_i32_1 = arith.constant 0 : i32
    return %arg0, %c0_i32, %c0_i32_0 : i32, i32, i32
  }
  func.func @transform_4(%arg0: i32) -> (i32, i32, i32) {
    %c0_i32 = arith.constant 0 : i32
    %c0_i32_0 = arith.constant 0 : i32
    %c0_i32_1 = arith.constant 0 : i32
    return %arg0, %c0_i32, %c0_i32_0 : i32, i32, i32
  }
}

module attributes {stable_mosaic.version = 11 : i64} {
  func.func @_scale_residual_relu_kernel(%arg0: i32, %arg1: memref<1x16x256xf32, #tpu.memory_space<vmem>>, %arg2: memref<1x16x1xf32, #tpu.memory_space<vmem>>, %arg3: memref<1x16x256xf32, #tpu.memory_space<vmem>>, %arg4: memref<1x16x256xf32, #tpu.memory_space<vmem>>) attributes {dimension_semantics = [#tpu.dimension_semantics<parallel>], iteration_bounds = array<i64: 2>, scalar_prefetch = 0 : i64, scratch_operands = 0 : i64, tpu.core_type = #tpu.core_type<tc>, window_params = [{transform_indices = @transform_0, window_bounds = array<i64: 1, 16, 256>}, {transform_indices = @transform_1, window_bounds = array<i64: 1, 16, 1>}, {transform_indices = @transform_2, window_bounds = array<i64: 1, 16, 256>}, {transform_indices = @transform_3, window_bounds = array<i64: 1, 16, 256>}]} {
    %c0 = arith.constant 0 : index
    %c0_0 = arith.constant 0 : index
    %c0_1 = arith.constant 0 : index
    %0 = vector.load %arg1[%c0, %c0_0, %c0_1] : memref<1x16x256xf32, #tpu.memory_space<vmem>>, vector<1x16x256xf32>
    %1 = vector.shape_cast %0 : vector<1x16x256xf32> to vector<16x256xf32>
    %c0_2 = arith.constant 0 : index
    %c0_3 = arith.constant 0 : index
    %c0_4 = arith.constant 0 : index
    %2 = vector.load %arg2[%c0_2, %c0_3, %c0_4] : memref<1x16x1xf32, #tpu.memory_space<vmem>>, vector<1x16x1xf32>
    %3 = vector.shape_cast %2 : vector<1x16x1xf32> to vector<16x1xf32>
    %4 = vector.broadcast %3 : vector<16x1xf32> to vector<16x256xf32>
    %5 = arith.mulf %1, %4 : vector<16x256xf32>
    %c0_5 = arith.constant 0 : index
    %c0_6 = arith.constant 0 : index
    %c0_7 = arith.constant 0 : index
    %6 = vector.load %arg3[%c0_5, %c0_6, %c0_7] : memref<1x16x256xf32, #tpu.memory_space<vmem>>, vector<1x16x256xf32>
    %7 = vector.shape_cast %6 : vector<1x16x256xf32> to vector<16x256xf32>
    %8 = arith.addf %5, %7 : vector<16x256xf32>
    %cst = arith.constant 0.000000e+00 : f32
    %9 = vector.broadcast %cst : f32 to vector<16x256xf32>
    %10 = arith.maximumf %8, %9 : vector<16x256xf32>
    %c0_8 = arith.constant 0 : index
    %c0_9 = arith.constant 0 : index
    %c0_10 = arith.constant 0 : index
    %11 = vector.load %arg4[%c0_8, %c0_9, %c0_10] : memref<1x16x256xf32, #tpu.memory_space<vmem>>, vector<1x16x256xf32>
    %12 = vector.shape_cast %11 : vector<1x16x256xf32> to vector<16x256xf32>
    %13 = vector.shape_cast %10 : vector<16x256xf32> to vector<1x16x256xf32>
    tpu.vector_store %arg4[%c0_8, %c0_9, %c0_10], %13 {strides = array<i32>} : memref<1x16x256xf32, #tpu.memory_space<vmem>>, vector<1x16x256xf32>,
    return
  }
  func.func @transform_0(%arg0: i32) -> (i32, i32, i32) {
    %c0_i32 = arith.constant 0 : i32
    %c0_i32_0 = arith.constant 0 : i32
    %c0_i32_1 = arith.constant 0 : i32
    return %arg0, %c0_i32, %c0_i32_0 : i32, i32, i32
  }
  func.func @transform_1(%arg0: i32) -> (i32, i32, i32) {
    %c0_i32 = arith.constant 0 : i32
    %c0_i32_0 = arith.constant 0 : i32
    %c0_i32_1 = arith.constant 0 : i32
    return %arg0, %c0_i32, %c0_i32_0 : i32, i32, i32
  }
  func.func @transform_2(%arg0: i32) -> (i32, i32, i32) {
    %c0_i32 = arith.constant 0 : i32
    %c0_i32_0 = arith.constant 0 : i32
    %c0_i32_1 = arith.constant 0 : i32
    return %arg0, %c0_i32, %c0_i32_0 : i32, i32, i32
  }
  func.func @transform_3(%arg0: i32) -> (i32, i32, i32) {
    %c0_i32 = arith.constant 0 : i32
    %c0_i32_0 = arith.constant 0 : i32
    %c0_i32_1 = arith.constant 0 : i32
    return %arg0, %c0_i32, %c0_i32_0 : i32, i32, i32
  }
}

module attributes {stable_mosaic.version = 11 : i64} {
  func.func @_gemm_bias_kernel(%arg0: i32, %arg1: memref<8x48xbf16, #tpu.memory_space<vmem>>, %arg2: memref<8x1xf32, #tpu.memory_space<vmem>>, %arg3: memref<1x48x256xbf16, #tpu.memory_space<vmem>>, %arg4: memref<1x8x256xf32, #tpu.memory_space<vmem>>) attributes {dimension_semantics = [#tpu.dimension_semantics<parallel>], iteration_bounds = array<i64: 2>, scalar_prefetch = 0 : i64, scratch_operands = 0 : i64, tpu.core_type = #tpu.core_type<tc>, window_params = [{pipeline_mode = #tpu.pipeline_mode<synchronous>, transform_indices = @transform_0, window_bounds = array<i64: 8, 48>}, {pipeline_mode = #tpu.pipeline_mode<synchronous>, transform_indices = @transform_1, window_bounds = array<i64: 8, 1>}, {transform_indices = @transform_2, window_bounds = array<i64: 1, 48, 256>}, {transform_indices = @transform_3, window_bounds = array<i64: 1, 8, 256>}]} {
    %c0 = arith.constant 0 : index
    %c0_0 = arith.constant 0 : index
    %0 = vector.load %arg1[%c0, %c0_0] : memref<8x48xbf16, #tpu.memory_space<vmem>>, vector<8x48xbf16>
    %c0_1 = arith.constant 0 : index
    %c0_2 = arith.constant 0 : index
    %c0_3 = arith.constant 0 : index
    %1 = vector.load %arg3[%c0_1, %c0_2, %c0_3] : memref<1x48x256xbf16, #tpu.memory_space<vmem>>, vector<1x48x256xbf16>
    %2 = vector.shape_cast %1 : vector<1x48x256xbf16> to vector<48x256xbf16>
    %cst = arith.constant dense<0.000000e+00> : vector<8x256xf32>
    %3 = tpu.matmul %0, %2, %cst {dimension_numbers = #tpu.dot_dimension_numbers<[1], [0], [0], [1], [0, 0, 1, 1], [], []>} : vector<8x48xbf16>, vector<48x256xbf16>, vector<8x256xf32> -> vector<8x256xf32>
    %c0_4 = arith.constant 0 : index
    %c0_5 = arith.constant 0 : index
    %4 = vector.load %arg2[%c0_4, %c0_5] : memref<8x1xf32, #tpu.memory_space<vmem>>, vector<8x1xf32>
    %5 = vector.broadcast %4 : vector<8x1xf32> to vector<8x256xf32>
    %6 = arith.addf %3, %5 : vector<8x256xf32>
    %c0_6 = arith.constant 0 : index
    %c0_7 = arith.constant 0 : index
    %c0_8 = arith.constant 0 : index
    %7 = vector.load %arg4[%c0_6, %c0_7, %c0_8] : memref<1x8x256xf32, #tpu.memory_space<vmem>>, vector<1x8x256xf32>
    %8 = vector.shape_cast %7 : vector<1x8x256xf32> to vector<8x256xf32>
    %9 = vector.shape_cast %6 : vector<8x256xf32> to vector<1x8x256xf32>
    tpu.vector_store %arg4[%c0_6, %c0_7, %c0_8], %9 {strides = array<i32>} : memref<1x8x256xf32, #tpu.memory_space<vmem>>, vector<1x8x256xf32>,
    return
  }
  func.func @transform_0(%arg0: i32) -> (i32, i32) {
    %c0_i32 = arith.constant 0 : i32
    %c0_i32_0 = arith.constant 0 : i32
    %c0_i32_1 = arith.constant 0 : i32
    return %c0_i32, %c0_i32_0 : i32, i32
  }
  func.func @transform_1(%arg0: i32) -> (i32, i32) {
    %c0_i32 = arith.constant 0 : i32
    %c0_i32_0 = arith.constant 0 : i32
    %c0_i32_1 = arith.constant 0 : i32
    return %c0_i32, %c0_i32_0 : i32, i32
  }
  func.func @transform_2(%arg0: i32) -> (i32, i32, i32) {
    %c0_i32 = arith.constant 0 : i32
    %c0_i32_0 = arith.constant 0 : i32
    %c0_i32_1 = arith.constant 0 : i32
    return %arg0, %c0_i32, %c0_i32_0 : i32, i32, i32
  }
  func.func @transform_3(%arg0: i32) -> (i32, i32, i32) {
    %c0_i32 = arith.constant 0 : i32
    %c0_i32_0 = arith.constant 0 : i32
    %c0_i32_1 = arith.constant 0 : i32
    return %arg0, %c0_i32, %c0_i32_0 : i32, i32, i32
  }
}

module attributes {stable_mosaic.version = 11 : i64} {
  func.func @_gemm_bias_kernel(%arg0: i32, %arg1: memref<8x96xbf16, #tpu.memory_space<vmem>>, %arg2: memref<8x1xf32, #tpu.memory_space<vmem>>, %arg3: memref<1x96x256xbf16, #tpu.memory_space<vmem>>, %arg4: memref<1x8x256xf32, #tpu.memory_space<vmem>>) attributes {dimension_semantics = [#tpu.dimension_semantics<parallel>], iteration_bounds = array<i64: 2>, scalar_prefetch = 0 : i64, scratch_operands = 0 : i64, tpu.core_type = #tpu.core_type<tc>, window_params = [{pipeline_mode = #tpu.pipeline_mode<synchronous>, transform_indices = @transform_0, window_bounds = array<i64: 8, 96>}, {pipeline_mode = #tpu.pipeline_mode<synchronous>, transform_indices = @transform_1, window_bounds = array<i64: 8, 1>}, {transform_indices = @transform_2, window_bounds = array<i64: 1, 96, 256>}, {transform_indices = @transform_3, window_bounds = array<i64: 1, 8, 256>}]} {
    %c0 = arith.constant 0 : index
    %c0_0 = arith.constant 0 : index
    %0 = vector.load %arg1[%c0, %c0_0] : memref<8x96xbf16, #tpu.memory_space<vmem>>, vector<8x96xbf16>
    %c0_1 = arith.constant 0 : index
    %c0_2 = arith.constant 0 : index
    %c0_3 = arith.constant 0 : index
    %1 = vector.load %arg3[%c0_1, %c0_2, %c0_3] : memref<1x96x256xbf16, #tpu.memory_space<vmem>>, vector<1x96x256xbf16>
    %2 = vector.shape_cast %1 : vector<1x96x256xbf16> to vector<96x256xbf16>
    %cst = arith.constant dense<0.000000e+00> : vector<8x256xf32>
    %3 = tpu.matmul %0, %2, %cst {dimension_numbers = #tpu.dot_dimension_numbers<[1], [0], [0], [1], [0, 0, 1, 1], [], []>} : vector<8x96xbf16>, vector<96x256xbf16>, vector<8x256xf32> -> vector<8x256xf32>
    %c0_4 = arith.constant 0 : index
    %c0_5 = arith.constant 0 : index
    %4 = vector.load %arg2[%c0_4, %c0_5] : memref<8x1xf32, #tpu.memory_space<vmem>>, vector<8x1xf32>
    %5 = vector.broadcast %4 : vector<8x1xf32> to vector<8x256xf32>
    %6 = arith.addf %3, %5 : vector<8x256xf32>
    %c0_6 = arith.constant 0 : index
    %c0_7 = arith.constant 0 : index
    %c0_8 = arith.constant 0 : index
    %7 = vector.load %arg4[%c0_6, %c0_7, %c0_8] : memref<1x8x256xf32, #tpu.memory_space<vmem>>, vector<1x8x256xf32>
    %8 = vector.shape_cast %7 : vector<1x8x256xf32> to vector<8x256xf32>
    %9 = vector.shape_cast %6 : vector<8x256xf32> to vector<1x8x256xf32>
    tpu.vector_store %arg4[%c0_6, %c0_7, %c0_8], %9 {strides = array<i32>} : memref<1x8x256xf32, #tpu.memory_space<vmem>>, vector<1x8x256xf32>,
    return
  }
  func.func @transform_0(%arg0: i32) -> (i32, i32) {
    %c0_i32 = arith.constant 0 : i32
    %c0_i32_0 = arith.constant 0 : i32
    %c0_i32_1 = arith.constant 0 : i32
    return %c0_i32, %c0_i32_0 : i32, i32
  }
  func.func @transform_1(%arg0: i32) -> (i32, i32) {
    %c0_i32 = arith.constant 0 : i32
    %c0_i32_0 = arith.constant 0 : i32
    %c0_i32_1 = arith.constant 0 : i32
    return %c0_i32, %c0_i32_0 : i32, i32
  }
  func.func @transform_2(%arg0: i32) -> (i32, i32, i32) {
    %c0_i32 = arith.constant 0 : i32
    %c0_i32_0 = arith.constant 0 : i32
    %c0_i32_1 = arith.constant 0 : i32
    return %arg0, %c0_i32, %c0_i32_0 : i32, i32, i32
  }
  func.func @transform_3(%arg0: i32) -> (i32, i32, i32) {
    %c0_i32 = arith.constant 0 : i32
    %c0_i32_0 = arith.constant 0 : i32
    %c0_i32_1 = arith.constant 0 : i32
    return %arg0, %c0_i32, %c0_i32_0 : i32, i32, i32
  }
}

module attributes {stable_mosaic.version = 11 : i64} {
  func.func @_gemm_bias_kernel(%arg0: i32, %arg1: memref<8x192xbf16, #tpu.memory_space<vmem>>, %arg2: memref<8x1xf32, #tpu.memory_space<vmem>>, %arg3: memref<1x192x256xbf16, #tpu.memory_space<vmem>>, %arg4: memref<1x8x256xf32, #tpu.memory_space<vmem>>) attributes {dimension_semantics = [#tpu.dimension_semantics<parallel>], iteration_bounds = array<i64: 2>, scalar_prefetch = 0 : i64, scratch_operands = 0 : i64, tpu.core_type = #tpu.core_type<tc>, window_params = [{pipeline_mode = #tpu.pipeline_mode<synchronous>, transform_indices = @transform_0, window_bounds = array<i64: 8, 192>}, {pipeline_mode = #tpu.pipeline_mode<synchronous>, transform_indices = @transform_1, window_bounds = array<i64: 8, 1>}, {transform_indices = @transform_2, window_bounds = array<i64: 1, 192, 256>}, {transform_indices = @transform_3, window_bounds = array<i64: 1, 8, 256>}]} {
    %c0 = arith.constant 0 : index
    %c0_0 = arith.constant 0 : index
    %0 = vector.load %arg1[%c0, %c0_0] : memref<8x192xbf16, #tpu.memory_space<vmem>>, vector<8x192xbf16>
    %c0_1 = arith.constant 0 : index
    %c0_2 = arith.constant 0 : index
    %c0_3 = arith.constant 0 : index
    %1 = vector.load %arg3[%c0_1, %c0_2, %c0_3] : memref<1x192x256xbf16, #tpu.memory_space<vmem>>, vector<1x192x256xbf16>
    %2 = vector.shape_cast %1 : vector<1x192x256xbf16> to vector<192x256xbf16>
    %cst = arith.constant dense<0.000000e+00> : vector<8x256xf32>
    %3 = tpu.matmul %0, %2, %cst {dimension_numbers = #tpu.dot_dimension_numbers<[1], [0], [0], [1], [0, 0, 1, 1], [], []>} : vector<8x192xbf16>, vector<192x256xbf16>, vector<8x256xf32> -> vector<8x256xf32>
    %c0_4 = arith.constant 0 : index
    %c0_5 = arith.constant 0 : index
    %4 = vector.load %arg2[%c0_4, %c0_5] : memref<8x1xf32, #tpu.memory_space<vmem>>, vector<8x1xf32>
    %5 = vector.broadcast %4 : vector<8x1xf32> to vector<8x256xf32>
    %6 = arith.addf %3, %5 : vector<8x256xf32>
    %c0_6 = arith.constant 0 : index
    %c0_7 = arith.constant 0 : index
    %c0_8 = arith.constant 0 : index
    %7 = vector.load %arg4[%c0_6, %c0_7, %c0_8] : memref<1x8x256xf32, #tpu.memory_space<vmem>>, vector<1x8x256xf32>
    %8 = vector.shape_cast %7 : vector<1x8x256xf32> to vector<8x256xf32>
    %9 = vector.shape_cast %6 : vector<8x256xf32> to vector<1x8x256xf32>
    tpu.vector_store %arg4[%c0_6, %c0_7, %c0_8], %9 {strides = array<i32>} : memref<1x8x256xf32, #tpu.memory_space<vmem>>, vector<1x8x256xf32>,
    return
  }
  func.func @transform_0(%arg0: i32) -> (i32, i32) {
    %c0_i32 = arith.constant 0 : i32
    %c0_i32_0 = arith.constant 0 : i32
    %c0_i32_1 = arith.constant 0 : i32
    return %c0_i32, %c0_i32_0 : i32, i32
  }
  func.func @transform_1(%arg0: i32) -> (i32, i32) {
    %c0_i32 = arith.constant 0 : i32
    %c0_i32_0 = arith.constant 0 : i32
    %c0_i32_1 = arith.constant 0 : i32
    return %c0_i32, %c0_i32_0 : i32, i32
  }
  func.func @transform_2(%arg0: i32) -> (i32, i32, i32) {
    %c0_i32 = arith.constant 0 : i32
    %c0_i32_0 = arith.constant 0 : i32
    %c0_i32_1 = arith.constant 0 : i32
    return %arg0, %c0_i32, %c0_i32_0 : i32, i32, i32
  }
  func.func @transform_3(%arg0: i32) -> (i32, i32, i32) {
    %c0_i32 = arith.constant 0 : i32
    %c0_i32_0 = arith.constant 0 : i32
    %c0_i32_1 = arith.constant 0 : i32
    return %arg0, %c0_i32, %c0_i32_0 : i32, i32, i32
  }
}

module attributes {stable_mosaic.version = 11 : i64} {
  func.func @_in_affine_relu_kernel(%arg0: i32, %arg1: memref<1x8x1024xf32, #tpu.memory_space<vmem>>, %arg2: memref<8x1xf32, #tpu.memory_space<vmem>>, %arg3: memref<8x1xf32, #tpu.memory_space<vmem>>, %arg4: memref<1x8x1024xf32, #tpu.memory_space<vmem>>) attributes {dimension_semantics = [#tpu.dimension_semantics<parallel>], iteration_bounds = array<i64: 2>, scalar_prefetch = 0 : i64, scratch_operands = 0 : i64, tpu.core_type = #tpu.core_type<tc>, window_params = [{transform_indices = @transform_0, window_bounds = array<i64: 1, 8, 1024>}, {pipeline_mode = #tpu.pipeline_mode<synchronous>, transform_indices = @transform_1, window_bounds = array<i64: 8, 1>}, {pipeline_mode = #tpu.pipeline_mode<synchronous>, transform_indices = @transform_2, window_bounds = array<i64: 8, 1>}, {transform_indices = @transform_3, window_bounds = array<i64: 1, 8, 1024>}]} {
    %c0 = arith.constant 0 : index
    %c0_0 = arith.constant 0 : index
    %c0_1 = arith.constant 0 : index
    %0 = vector.load %arg1[%c0, %c0_0, %c0_1] : memref<1x8x1024xf32, #tpu.memory_space<vmem>>, vector<1x8x1024xf32>
    %1 = vector.shape_cast %0 : vector<1x8x1024xf32> to vector<8x1024xf32>
    %cst = arith.constant dense<0.000000e+00> : vector<8xf32>
    %2 = vector.multi_reduction <add>, %1, %cst [1] : vector<8x1024xf32> to vector<8xf32>
    %3 = vector.shape_cast %2 : vector<8xf32> to vector<8x1xf32>
    %cst_2 = arith.constant 1.024000e+03 : f32
    %4 = vector.broadcast %cst_2 : f32 to vector<8x1xf32>
    %5 = arith.divf %3, %4 : vector<8x1xf32>
    %6 = arith.mulf %1, %1 : vector<8x1024xf32>
    %cst_3 = arith.constant dense<0.000000e+00> : vector<8xf32>
    %7 = vector.multi_reduction <add>, %6, %cst_3 [1] : vector<8x1024xf32> to vector<8xf32>
    %8 = vector.shape_cast %7 : vector<8xf32> to vector<8x1xf32>
    %cst_4 = arith.constant 1.024000e+03 : f32
    %9 = vector.broadcast %cst_4 : f32 to vector<8x1xf32>
    %10 = arith.divf %8, %9 : vector<8x1xf32>
    %11 = arith.mulf %5, %5 : vector<8x1xf32>
    %12 = arith.subf %10, %11 : vector<8x1xf32>
    %13 = vector.broadcast %5 : vector<8x1xf32> to vector<8x1024xf32>
    %14 = arith.subf %1, %13 : vector<8x1024xf32>
    %cst_5 = arith.constant 9.99999974E-6 : f32
    %15 = vector.broadcast %cst_5 : f32 to vector<8x1xf32>
    %16 = arith.addf %12, %15 : vector<8x1xf32>
    %17 = math.rsqrt %16 : vector<8x1xf32>
    %18 = vector.broadcast %17 : vector<8x1xf32> to vector<8x1024xf32>
    %19 = arith.mulf %14, %18 : vector<8x1024xf32>
    %c0_6 = arith.constant 0 : index
    %c0_7 = arith.constant 0 : index
    %20 = vector.load %arg2[%c0_6, %c0_7] : memref<8x1xf32, #tpu.memory_space<vmem>>, vector<8x1xf32>
    %21 = vector.broadcast %20 : vector<8x1xf32> to vector<8x1024xf32>
    %22 = arith.mulf %19, %21 : vector<8x1024xf32>
    %c0_8 = arith.constant 0 : index
    %c0_9 = arith.constant 0 : index
    %23 = vector.load %arg3[%c0_8, %c0_9] : memref<8x1xf32, #tpu.memory_space<vmem>>, vector<8x1xf32>
    %24 = vector.broadcast %23 : vector<8x1xf32> to vector<8x1024xf32>
    %25 = arith.addf %22, %24 : vector<8x1024xf32>
    %cst_10 = arith.constant 0.000000e+00 : f32
    %26 = vector.broadcast %cst_10 : f32 to vector<8x1024xf32>
    %27 = arith.maximumf %25, %26 : vector<8x1024xf32>
    %c0_11 = arith.constant 0 : index
    %c0_12 = arith.constant 0 : index
    %c0_13 = arith.constant 0 : index
    %28 = vector.load %arg4[%c0_11, %c0_12, %c0_13] : memref<1x8x1024xf32, #tpu.memory_space<vmem>>, vector<1x8x1024xf32>
    %29 = vector.shape_cast %28 : vector<1x8x1024xf32> to vector<8x1024xf32>
    %30 = vector.shape_cast %27 : vector<8x1024xf32> to vector<1x8x1024xf32>
    tpu.vector_store %arg4[%c0_11, %c0_12, %c0_13], %30 {strides = array<i32>} : memref<1x8x1024xf32, #tpu.memory_space<vmem>>, vector<1x8x1024xf32>,
    return
  }
  func.func @transform_0(%arg0: i32) -> (i32, i32, i32) {
    %c0_i32 = arith.constant 0 : i32
    %c0_i32_0 = arith.constant 0 : i32
    %c0_i32_1 = arith.constant 0 : i32
    return %arg0, %c0_i32, %c0_i32_0 : i32, i32, i32
  }
  func.func @transform_1(%arg0: i32) -> (i32, i32) {
    %c0_i32 = arith.constant 0 : i32
    %c0_i32_0 = arith.constant 0 : i32
    %c0_i32_1 = arith.constant 0 : i32
    return %c0_i32, %c0_i32_0 : i32, i32
  }
  func.func @transform_2(%arg0: i32) -> (i32, i32) {
    %c0_i32 = arith.constant 0 : i32
    %c0_i32_0 = arith.constant 0 : i32
    %c0_i32_1 = arith.constant 0 : i32
    return %c0_i32, %c0_i32_0 : i32, i32
  }
  func.func @transform_3(%arg0: i32) -> (i32, i32, i32) {
    %c0_i32 = arith.constant 0 : i32
    %c0_i32_0 = arith.constant 0 : i32
    %c0_i32_1 = arith.constant 0 : i32
    return %arg0, %c0_i32, %c0_i32_0 : i32, i32, i32
  }
}

module attributes {stable_mosaic.version = 11 : i64} {
  func.func @_gemm_bias_kernel(%arg0: i32, %arg1: memref<3x1176xbf16, #tpu.memory_space<vmem>>, %arg2: memref<3x1xf32, #tpu.memory_space<vmem>>, %arg3: memref<1x1176x1024xbf16, #tpu.memory_space<vmem>>, %arg4: memref<1x3x1024xf32, #tpu.memory_space<vmem>>) attributes {dimension_semantics = [#tpu.dimension_semantics<parallel>], iteration_bounds = array<i64: 2>, scalar_prefetch = 0 : i64, scratch_operands = 0 : i64, tpu.core_type = #tpu.core_type<tc>, window_params = [{pipeline_mode = #tpu.pipeline_mode<synchronous>, transform_indices = @transform_0, window_bounds = array<i64: 3, 1176>}, {pipeline_mode = #tpu.pipeline_mode<synchronous>, transform_indices = @transform_1, window_bounds = array<i64: 3, 1>}, {transform_indices = @transform_2, window_bounds = array<i64: 1, 1176, 1024>}, {transform_indices = @transform_3, window_bounds = array<i64: 1, 3, 1024>}]} {
    %c0 = arith.constant 0 : index
    %c0_0 = arith.constant 0 : index
    %0 = vector.load %arg1[%c0, %c0_0] : memref<3x1176xbf16, #tpu.memory_space<vmem>>, vector<3x1176xbf16>
    %c0_1 = arith.constant 0 : index
    %c0_2 = arith.constant 0 : index
    %c0_3 = arith.constant 0 : index
    %1 = vector.load %arg3[%c0_1, %c0_2, %c0_3] : memref<1x1176x1024xbf16, #tpu.memory_space<vmem>>, vector<1x1176x1024xbf16>
    %2 = vector.shape_cast %1 : vector<1x1176x1024xbf16> to vector<1176x1024xbf16>
    %cst = arith.constant dense<0.000000e+00> : vector<3x1024xf32>
    %3 = tpu.matmul %0, %2, %cst {dimension_numbers = #tpu.dot_dimension_numbers<[1], [0], [0], [1], [0, 0, 1, 1], [], []>} : vector<3x1176xbf16>, vector<1176x1024xbf16>, vector<3x1024xf32> -> vector<3x1024xf32>
    %c0_4 = arith.constant 0 : index
    %c0_5 = arith.constant 0 : index
    %4 = vector.load %arg2[%c0_4, %c0_5] : memref<3x1xf32, #tpu.memory_space<vmem>>, vector<3x1xf32>
    %5 = vector.broadcast %4 : vector<3x1xf32> to vector<3x1024xf32>
    %6 = arith.addf %3, %5 : vector<3x1024xf32>
    %c0_6 = arith.constant 0 : index
    %c0_7 = arith.constant 0 : index
    %c0_8 = arith.constant 0 : index
    %7 = vector.load %arg4[%c0_6, %c0_7, %c0_8] : memref<1x3x1024xf32, #tpu.memory_space<vmem>>, vector<1x3x1024xf32>
    %8 = vector.shape_cast %7 : vector<1x3x1024xf32> to vector<3x1024xf32>
    %9 = vector.shape_cast %6 : vector<3x1024xf32> to vector<1x3x1024xf32>
    tpu.vector_store %arg4[%c0_6, %c0_7, %c0_8], %9 {strides = array<i32>} : memref<1x3x1024xf32, #tpu.memory_space<vmem>>, vector<1x3x1024xf32>,
    return
  }
  func.func @transform_0(%arg0: i32) -> (i32, i32) {
    %c0_i32 = arith.constant 0 : i32
    %c0_i32_0 = arith.constant 0 : i32
    %c0_i32_1 = arith.constant 0 : i32
    return %c0_i32, %c0_i32_0 : i32, i32
  }
  func.func @transform_1(%arg0: i32) -> (i32, i32) {
    %c0_i32 = arith.constant 0 : i32
    %c0_i32_0 = arith.constant 0 : i32
    %c0_i32_1 = arith.constant 0 : i32
    return %c0_i32, %c0_i32_0 : i32, i32
  }
  func.func @transform_2(%arg0: i32) -> (i32, i32, i32) {
    %c0_i32 = arith.constant 0 : i32
    %c0_i32_0 = arith.constant 0 : i32
    %c0_i32_1 = arith.constant 0 : i32
    return %arg0, %c0_i32, %c0_i32_0 : i32, i32, i32
  }
  func.func @transform_3(%arg0: i32) -> (i32, i32, i32) {
    %c0_i32 = arith.constant 0 : i32
    %c0_i32_0 = arith.constant 0 : i32
    %c0_i32_1 = arith.constant 0 : i32
    return %arg0, %c0_i32, %c0_i32_0 : i32, i32, i32
  }
}

</mosaic_0001>

<bundles_post_ra>
// kernel: _lambda_.11
= control target key start
LH: loop header
LB: loop body
LE: loop exit
PB: predicated region body
PF: predicated region fallthrough
CT: control target
= control target key end

     0   :  { %s2417_s18 = smov 0   ;;  %s2729_s0 = inlined_call_operand.vmem [shape: bf16[8,441], index: 0, kind: input, shape index: {}]   ;;  %s2730_s1 = inlined_call_operand.vmem [shape: f32[8,1], index: 1, kind: input, shape index: {}]   ;;  %s2731_s2 = inlined_call_operand.vmem [shape: f32[8,1], index: 2, kind: input, shape index: {}]   ;;  %s2732_s3 = inlined_call_operand.vmem [shape: f32[8,1], index: 3, kind: input, shape index: {}]   ;;  %s2733_s4 = inlined_call_operand.vmem [shape: bf16[2,441,1024], index: 4, kind: input, shape index: {}]   ;;  %s2734_s5 = inlined_call_operand.vmem [shape: f32[2,8,1024], index: 5, kind: output, shape index: {}]  }
   0x1 LB: > { %s2091_s19 = sadd.s32 4294967295, %s2383_s18   ;;  %p2095_p0 = scmp.ge.s32.totalorder %s2383_s18, 1  ;;  %s2383_s18 = sphi %s2417_s18, %s15_s18  }
   0x2   : > { %p187_p1 = scmp.lt.s32.totalorder %s2383_s18, 3 }
   0x4   : > { %p188_p2 = pnand %p2095_p0, %p187_p1 }
   0x5   : > { %p215_p3 = scmp.lt.s32.totalorder (!%p188_p2), %s2091_s19, 1  ;;  %v2428_v0 = vld [vmem:[%s2729_s0] sm:$0xff] (!%p188_p2)  ;;  %vm1583_vm0 = vcmask (!%p188_p2), 465920   ;;  %vm1587_vm1 = vcmask (!%p188_p2), 1043456   ;;  %vm1588_vm2 = vcmask (!%p188_p2), 1044480  }
   0x6   : > { %191 = sbr.rel (%p188_p2) target bundleno = 640 (0x280), region = 40  ;;  %v2432_v1 = vcombine.high (!%p188_p2), %v2428_v0, %v2428_v0 }
   0x8   : > { %1647 = vmatprep.mubr.bf16.mxu0 (!%p188_p2), %v2432_v1  ;;  %1729 = vmatprep.mubr.bf16.mxu1 (!%p188_p2), %v2432_v1 }
   0xd   : > { %s2736_s19 = smov (!%p215_p3, %s2091_s19), 1 }
   0xe   : > { %s2358_s22 = smul.u32 1792, %s2736_s19  ;;  %s2333_s9 = sshll.u32 %s2736_s19, 6 }
   0xf   : > { %s224_s12 = scalar_lea.vmem %s2734_s5, %s2333_s9 }
  0x10   : > { %s2442_s25 = scalar_lea.vmem %s2733_s4, %s2358_s22 }
  0x11   : > { %v228_v2 = vld [vmem:[%s2442_s25] sm:$0xff]  ;;  %v229_v4 = vld [vmem:[%s2442_s25 + $0x8] sm:$0xff] }
  0x12   : > { %v232_v3 = vld [vmem:[%s2442_s25 + $0x20] sm:$0xff]  ;;  %v233_v6 = vld [vmem:[%s2442_s25 + $0x28] sm:$0xff] }
  0x13   : > { %v2104_v5 = vcombine.high %v228_v2, %v232_v3  ;;  %v2103_v7 = vcombine.low %v228_v2, %v232_v3  ;;  %v236_v8 = vld [vmem:[%s2442_s25 + $0x40] sm:$0xff]  ;;  %v2106_v10 = vcombine.high %v229_v4, %v233_v6  ;;  %v2105_v11 = vcombine.low %v229_v4, %v233_v6  ;;  %v237_v13 = vld [vmem:[%s2442_s25 + $0x48] sm:$0xff] }
  0x14   : > { %v240_v9 = vld [vmem:[%s2442_s25 + $0x60] sm:$0xff]  ;;  %v241_v14 = vld [vmem:[%s2442_s25 + $0x68] sm:$0xff] }
  0x15   : > { %v2112_v12 = vcombine.high %v236_v8, %v240_v9  ;;  %v244_v15 = vld [vmem:[%s2442_s25 + $0x80] sm:$0xff]  ;;  %1615 = vmatprep.subr.bf16.mxu0 %v2104_v5  ;;  %v2114_v16 = vcombine.high %v237_v13, %v241_v14  ;;  %v245_v18 = vld [vmem:[%s2442_s25 + $0x88] sm:$0xff]  ;;  %1697 = vmatprep.subr.bf16.mxu1 %v2106_v10  ;;  %v2111_v20 = vcombine.low %v236_v8, %v240_v9 }
  0x16   : > { %v248_v17 = vld [vmem:[%s2442_s25 + $0xa0] sm:$0xff]  ;;  %v249_v19 = vld [vmem:[%s2442_s25 + $0xa8] sm:$0xff]  ;;  %1616 = vmatpush1.bf16.msra.mxu0 %v2103_v7  ;;  %1698 = vmatpush1.bf16.msra.mxu1 %v2105_v11  ;;  %v2113_v21 = vcombine.low %v237_v13, %v241_v14 }
  0x17   : > { %1617 = vmatprep.subr.bf16.mxu0 %v2112_v12  ;;  %v2120_v22 = vcombine.high %v244_v15, %v248_v17  ;;  %1699 = vmatprep.subr.bf16.mxu1 %v2114_v16  ;;  %v2122_v23 = vcombine.high %v245_v18, %v249_v19  ;;  %v252_v24 = vld [vmem:[%s2442_s25 + $0xc0] sm:$0xff]  ;;  %v253_v26 = vld [vmem:[%s2442_s25 + $0xc8] sm:$0xff]  ;;  %v2119_v28 = vcombine.low %v244_v15, %v248_v17 }
  0x18   : > { %v256_v25 = vld [vmem:[%s2442_s25 + $0xe0] sm:$0xff]  ;;  %v257_v27 = vld [vmem:[%s2442_s25 + $0xe8] sm:$0xff]  ;;  %v2121_v29 = vcombine.low %v245_v18, %v249_v19 }
  0x19   : > { %v2128_v30 = vcombine.high %v252_v24, %v256_v25  ;;  %v2130_v31 = vcombine.high %v253_v26, %v257_v27  ;;  %v260_v32 = vld [vmem:[%s2442_s25 + $0x100] sm:$0xff]  ;;  %v261_v34 = vld [vmem:[%s2442_s25 + $0x108] sm:$0xff]  ;;  %v2127_v36 = vcombine.low %v252_v24, %v256_v25  ;;  %v2129_v37 = vcombine.low %v253_v26, %v257_v27 }
  0x1a   : > { %1618 = vmatpush1.bf16.msra.mxu0 %v2111_v20  ;;  %1700 = vmatpush1.bf16.msra.mxu1 %v2113_v21  ;;  %v264_v33 = vld [vmem:[%s2442_s25 + $0x120] sm:$0xff]  ;;  %v265_v35 = vld [vmem:[%s2442_s25 + $0x128] sm:$0xff] }
  0x1b   : > { %1619 = vmatprep.subr.bf16.mxu0 %v2120_v22  ;;  %1701 = vmatprep.subr.bf16.mxu1 %v2122_v23  ;;  %v2136_v38 = vcombine.high %v260_v32, %v264_v33  ;;  %v2138_v39 = vcombine.high %v261_v34, %v265_v35  ;;  %v268_v40 = vld [vmem:[%s2442_s25 + $0x140] sm:$0xff]  ;;  %v269_v42 = vld [vmem:[%s2442_s25 + $0x148] sm:$0xff]  ;;  %v2135_v44 = vcombine.low %v260_v32, %v264_v33 }
  0x1c   : > { %v272_v41 = vld [vmem:[%s2442_s25 + $0x160] sm:$0xff]  ;;  %v273_v43 = vld [vmem:[%s2442_s25 + $0x168] sm:$0xff]  ;;  %v2137_v45 = vcombine.low %v261_v34, %v265_v35 }
  0x1d   : > { %v2144_v46 = vcombine.high %v268_v40, %v272_v41  ;;  %v2146_v47 = vcombine.high %v269_v42, %v273_v43  ;;  %v276_v48 = vld [vmem:[%s2442_s25 + $0x180] sm:$0xff]  ;;  %v277_v50 = vld [vmem:[%s2442_s25 + $0x188] sm:$0xff]  ;;  %v2143_v52 = vcombine.low %v268_v40, %v272_v41  ;;  %v2145_v53 = vcombine.low %v269_v42, %v273_v43 }
  0x1e   : > { %1620 = vmatpush1.bf16.msra.mxu0 %v2119_v28  ;;  %1702 = vmatpush1.bf16.msra.mxu1 %v2121_v29  ;;  %v280_v49 = vld [vmem:[%s2442_s25 + $0x1a0] sm:$0xff]  ;;  %v281_v51 = vld [vmem:[%s2442_s25 + $0x1a8] sm:$0xff] }
  0x1f   : > { %1621 = vmatprep.subr.bf16.mxu0 %v2128_v30  ;;  %1703 = vmatprep.subr.bf16.mxu1 %v2130_v31  ;;  %v2152_v54 = vcombine.high %v276_v48, %v280_v49  ;;  %v2154_v55 = vcombine.high %v277_v50, %v281_v51  ;;  %v284_v56 = vld [vmem:[%s2442_s25 + $0x1c0] sm:$0xff]  ;;  %v285_v58 = vld [vmem:[%s2442_s25 + $0x1c8] sm:$0xff]  ;;  %v2151_v60 = vcombine.low %v276_v48, %v280_v49 }
  0x20   : > { %v288_v57 = vld [vmem:[%s2442_s25 + $0x1e0] sm:$0xff]  ;;  %v289_v59 = vld [vmem:[%s2442_s25 + $0x1e8] sm:$0xff]  ;;  %v2153_v61 = vcombine.low %v277_v50, %v281_v51 }
  0x21   : > { %v2160_v62 = vcombine.high %v284_v56, %v288_v57  ;;  %v2162_v63 = vcombine.high %v285_v58, %v289_v59  ;;  %v292_v2 = vld [vmem:[%s2442_s25 + $0x200] sm:$0xff]  ;;  %v293_v4 = vld [vmem:[%s2442_s25 + $0x208] sm:$0xff]  ;;  %v2159_v6 = vcombine.low %v284_v56, %v288_v57  ;;  %v2161_v7 = vcombine.low %v285_v58, %v289_v59 }
  0x22   : > { %1622 = vmatpush1.bf16.msra.mxu0 %v2127_v36  ;;  %1704 = vmatpush1.bf16.msra.mxu1 %v2129_v37  ;;  %v296_v3 = vld [vmem:[%s2442_s25 + $0x220] sm:$0xff]  ;;  %v297_v5 = vld [vmem:[%s2442_s25 + $0x228] sm:$0xff] }
  0x23   : > { %1623 = vmatprep.subr.bf16.mxu0 %v2136_v38  ;;  %1705 = vmatprep.subr.bf16.mxu1 %v2138_v39  ;;  %v2168_v8 = vcombine.high %v292_v2, %v296_v3  ;;  %v2170_v9 = vcombine.high %v293_v4, %v297_v5  ;;  %v300_v10 = vld [vmem:[%s2442_s25 + $0x240] sm:$0xff]  ;;  %v301_v12 = vld [vmem:[%s2442_s25 + $0x248] sm:$0xff]  ;;  %v2167_v14 = vcombine.low %v292_v2, %v296_v3 }
  0x24   : > { %v304_v11 = vld [vmem:[%s2442_s25 + $0x260] sm:$0xff]  ;;  %v305_v13 = vld [vmem:[%s2442_s25 + $0x268] sm:$0xff]  ;;  %v2169_v15 = vcombine.low %v293_v4, %v297_v5 }
  0x25   : > { %v2176_v16 = vcombine.high %v300_v10, %v304_v11  ;;  %v2178_v17 = vcombine.high %v301_v12, %v305_v13  ;;  %v308_v18 = vld [vmem:[%s2442_s25 + $0x280] sm:$0xff]  ;;  %v309_v20 = vld [vmem:[%s2442_s25 + $0x288] sm:$0xff]  ;;  %v2175_v22 = vcombine.low %v300_v10, %v304_v11  ;;  %v2177_v23 = vcombine.low %v301_v12, %v305_v13 }
  0x26   : > { %1624 = vmatpush1.bf16.msra.mxu0 %v2135_v44  ;;  %1706 = vmatpush1.bf16.msra.mxu1 %v2137_v45  ;;  %v312_v19 = vld [vmem:[%s2442_s25 + $0x2a0] sm:$0xff]  ;;  %v313_v21 = vld [vmem:[%s2442_s25 + $0x2a8] sm:$0xff] }
  0x27   : > { %1625 = vmatprep.subr.bf16.mxu0 %v2144_v46  ;;  %1707 = vmatprep.subr.bf16.mxu1 %v2146_v47  ;;  %v2184_v24 = vcombine.high %v308_v18, %v312_v19  ;;  %v2186_v25 = vcombine.high %v309_v20, %v313_v21  ;;  %v316_v26 = vld [vmem:[%s2442_s25 + $0x2c0] sm:$0xff]  ;;  %v317_v28 = vld [vmem:[%s2442_s25 + $0x2c8] sm:$0xff]  ;;  %v2183_v30 = vcombine.low %v308_v18, %v312_v19 }
  0x28   : > { %v320_v27 = vld [vmem:[%s2442_s25 + $0x2e0] sm:$0xff]  ;;  %v321_v29 = vld [vmem:[%s2442_s25 + $0x2e8] sm:$0xff]  ;;  %v2185_v31 = vcombine.low %v309_v20, %v313_v21 }
  0x29   : > { %v2192_v32 = vcombine.high %v316_v26, %v320_v27  ;;  %v2194_v33 = vcombine.high %v317_v28, %v321_v29  ;;  %v324_v34 = vld [vmem:[%s2442_s25 + $0x300] sm:$0xff]  ;;  %v325_v36 = vld [vmem:[%s2442_s25 + $0x308] sm:$0xff]  ;;  %v2191_v38 = vcombine.low %v316_v26, %v320_v27  ;;  %v2193_v39 = vcombine.low %v317_v28, %v321_v29 }
  0x2a   : > { %1626 = vmatpush1.bf16.msra.mxu0 %v2143_v52  ;;  %1708 = vmatpush1.bf16.msra.mxu1 %v2145_v53  ;;  %v328_v35 = vld [vmem:[%s2442_s25 + $0x320] sm:$0xff]  ;;  %v329_v37 = vld [vmem:[%s2442_s25 + $0x328] sm:$0xff] }
  0x2b   : > { %1627 = vmatprep.subr.bf16.mxu0 %v2152_v54  ;;  %1709 = vmatprep.subr.bf16.mxu1 %v2154_v55  ;;  %v2200_v40 = vcombine.high %v324_v34, %v328_v35  ;;  %v2202_v41 = vcombine.high %v325_v36, %v329_v37  ;;  %v332_v42 = vld [vmem:[%s2442_s25 + $0x340] sm:$0xff]  ;;  %v333_v44 = vld [vmem:[%s2442_s25 + $0x348] sm:$0xff]  ;;  %v2199_v46 = vcombine.low %v324_v34, %v328_v35  ;;  %v2385_v35 = vmov 0  }
  0x2c   : > { %v336_v43 = vld [vmem:[%s2442_s25 + $0x360] sm:$0xff]  ;;  %v337_v45 = vld [vmem:[%s2442_s25 + $0x368] sm:$0xff]  ;;  %v2201_v47 = vcombine.low %v325_v36, %v329_v37  ;;  %2369 = vset.pattern.permute.xlu0 %v2385_v35  ;;  %2370 = vset.pattern.permute.xlu1 %v2385_v35 }
  0x2d   : > { %v2208_v48 = vcombine.high %v332_v42, %v336_v43  ;;  %v2210_v49 = vcombine.high %v333_v44, %v337_v45  ;;  %v340_v50 = vld [vmem:[%s2442_s25 + $0x380] sm:$0xff]  ;;  %v341_v52 = vld [vmem:[%s2442_s25 + $0x388] sm:$0xff]  ;;  %v2207_v54 = vcombine.low %v332_v42, %v336_v43  ;;  %v2209_v55 = vcombine.low %v333_v44, %v337_v45 }
  0x2e   : > { %1628 = vmatpush1.bf16.msra.mxu0 %v2151_v60  ;;  %1710 = vmatpush1.bf16.msra.mxu1 %v2153_v61  ;;  %v344_v51 = vld [vmem:[%s2442_s25 + $0x3a0] sm:$0xff]  ;;  %v345_v53 = vld [vmem:[%s2442_s25 + $0x3a8] sm:$0xff] }
  0x2f   : > { %1629 = vmatprep.subr.bf16.mxu0 %v2160_v62  ;;  %1711 = vmatprep.subr.bf16.mxu1 %v2162_v63  ;;  %v2216_v56 = vcombine.high %v340_v50, %v344_v51  ;;  %v2218_v57 = vcombine.high %v341_v52, %v345_v53  ;;  %v348_v58 = vld [vmem:[%s2442_s25 + $0x3c0] sm:$0xff]  ;;  %v349_v60 = vld [vmem:[%s2442_s25 + $0x3c8] sm:$0xff]  ;;  %v2215_v62 = vcombine.low %v340_v50, %v344_v51 }
  0x30   : > { %v352_v59 = vld [vmem:[%s2442_s25 + $0x3e0] sm:$0xff]  ;;  %v353_v61 = vld [vmem:[%s2442_s25 + $0x3e8] sm:$0xff]  ;;  %v2217_v63 = vcombine.low %v341_v52, %v345_v53 }
  0x31   : > { %v2224_v2 = vcombine.high %v348_v58, %v352_v59  ;;  %v2226_v3 = vcombine.high %v349_v60, %v353_v61  ;;  %v356_v4 = vld [vmem:[%s2442_s25 + $0x400] sm:$0xff]  ;;  %v385_v34 = vld [vmem:[%s2442_s25 + $0x4e8] sm:$0xff] }
  0x32   : > { %1630 = vmatpush1.bf16.msra.mxu0 %v2159_v6  ;;  %1712 = vmatpush1.bf16.msra.mxu1 %v2161_v7  ;;  %v360_v5 = vld [vmem:[%s2442_s25 + $0x420] sm:$0xff]  ;;  %v357_v6 = vld [vmem:[%s2442_s25 + $0x408] sm:$0xff] }
  0x33   : > { %1631 = vmatprep.subr.bf16.mxu0 %v2168_v8  ;;  %1713 = vmatprep.subr.bf16.mxu1 %v2170_v9  ;;  %v361_v7 = vld [vmem:[%s2442_s25 + $0x428] sm:$0xff]  ;;  %v2223_v8 = vcombine.low %v348_v58, %v352_v59  ;;  %v2225_v9 = vcombine.low %v349_v60, %v353_v61  ;;  %v2232_v10 = vcombine.high %v356_v4, %v360_v5  ;;  %v364_v12 = vld [vmem:[%s2442_s25 + $0x440] sm:$0xff] }
  0x34   : > { %v2234_v11 = vcombine.high %v357_v6, %v361_v7  ;;  %v368_v13 = vld [vmem:[%s2442_s25 + $0x460] sm:$0xff]  ;;  %v2231_v18 = vcombine.low %v356_v4, %v360_v5  ;;  %v2233_v19 = vcombine.low %v357_v6, %v361_v7  ;;  %v389_v42 = vld [vmem:[%s2442_s25 + $0x508] sm:$0xff] }
  0x35   : > { %v2240_v20 = vcombine.high %v364_v12, %v368_v13  ;;  %v2239_v26 = vcombine.low %v364_v12, %v368_v13  ;;  %v452_v29 = vld [vmem:[%s2730_s1] sm:$0xff]  ;;  %v393_v43 = vld [vmem:[%s2442_s25 + $0x528] sm:$0xff] }
  0x36   : > { %1632 = vmatpush1.bf16.msra.mxu0 %v2167_v14  ;;  %1714 = vmatpush1.bf16.msra.mxu1 %v2169_v15  ;;  %v2516_v14 = vcombine.low %v2428_v0, %v2428_v0  ;;  %v365_v15 = vld [vmem:[%s2442_s25 + $0x448] sm:$0xff]  ;;  %v376_v0 = vld [vmem:[%s2442_s25 + $0x4a0] sm:$0xff]  ;;  %v2265_v53 = vcombine.low %v389_v42, %v393_v43 }
  0x37   : > { %1633 = vmatprep.subr.bf16.mxu0 %v2176_v16  ;;  %1715 = vmatprep.subr.bf16.mxu1 %v2178_v17  ;;  %v369_v16 = vld [vmem:[%s2442_s25 + $0x468] sm:$0xff] }
  0x38   : > { %v2523_v17 = vld [vmem:[%s2729_s0 + $0x8] sm:$0xff]  ;;  %v2242_v21 = vcombine.high %v365_v15, %v369_v16  ;;  %v2241_v27 = vcombine.low %v365_v15, %v369_v16  ;;  %455 = vperm.xlu0 %2369, %v452_v29  }
  0x39   : > { %v397_v50 = vld [vmem:[%s2442_s25 + $0x548] sm:$0xff] }
  0x3a   : > { %1634 = vmatpush1.bf16.msra.mxu0 %v2175_v22  ;;  %1716 = vmatpush1.bf16.msra.mxu1 %v2177_v23  ;;  %v372_v22 = vld [vmem:[%s2442_s25 + $0x480] sm:$0xff]  ;;  %v2529_v23 = vcombine.high %v2523_v17, %v2523_v17  ;;  %v401_v51 = vld [vmem:[%s2442_s25 + $0x568] sm:$0xff] }
  0x3b   : > { %1635 = vmatprep.subr.bf16.mxu0 %v2184_v24  ;;  %1717 = vmatprep.subr.bf16.mxu1 %v2186_v25  ;;  %v373_v24 = vld [vmem:[%s2442_s25 + $0x488] sm:$0xff]  ;;  %v2248_v28 = vcombine.high %v372_v22, %v376_v0  ;;  %v2247_v36 = vcombine.low %v372_v22, %v376_v0  ;;  %v2273_v61 = vcombine.low %v397_v50, %v401_v51 }
  0x3c   : > { %v377_v25 = vld [vmem:[%s2442_s25 + $0x4a8] sm:$0xff] }
  0x3d   : > { %v2249_v37 = vcombine.low %v373_v24, %v377_v25  ;;  %v405_v58 = vld [vmem:[%s2442_s25 + $0x588] sm:$0xff] }
  0x3e   : > { %1636 = vmatpush1.bf16.msra.mxu0 %v2183_v30  ;;  %1718 = vmatpush1.bf16.msra.mxu1 %v2185_v31  ;;  %v2250_v30 = vcombine.high %v373_v24, %v377_v25  ;;  %v380_v31 = vld [vmem:[%s2442_s25 + $0x4c0] sm:$0xff]  ;;  %v409_v59 = vld [vmem:[%s2442_s25 + $0x5a8] sm:$0xff] }
  0x3f   : > { %1637 = vmatprep.subr.bf16.mxu0 %v2192_v32  ;;  %1719 = vmatprep.subr.bf16.mxu1 %v2194_v33  ;;  %v384_v32 = vld [vmem:[%s2442_s25 + $0x4e0] sm:$0xff]  ;;  %v381_v33 = vld [vmem:[%s2442_s25 + $0x4c8] sm:$0xff]  ;;  %v2281_v7 = vcombine.low %v405_v58, %v409_v59 }
  0x40   : > { %v2255_v44 = vcombine.low %v380_v31, %v384_v32  ;;  %v2257_v45 = vcombine.low %v381_v33, %v385_v34  ;;  %v413_v4 = vld [vmem:[%s2442_s25 + $0x5c8] sm:$0xff] }
  0x41   : > { %v417_v5 = vld [vmem:[%s2442_s25 + $0x5e8] sm:$0xff] }
  0x42   : > { %1638 = vmatpush1.bf16.msra.mxu0 %v2191_v38  ;;  %1720 = vmatpush1.bf16.msra.mxu1 %v2193_v39  ;;  %v2256_v38 = vcombine.high %v380_v31, %v384_v32  ;;  %v2258_v39 = vcombine.high %v381_v33, %v385_v34  ;;  %v421_v12 = vld [vmem:[%s2442_s25 + $0x608] sm:$0xff]  ;;  %v2289_v16 = vcombine.low %v413_v4, %v417_v5  ;;  %v444_v31 = vld [vmem:[%s2442_s25 + $0x6c0] sm:$0xff]  ;;  %v2386_v34 = vmov 65535  }
  0x43   : > { %1639 = vmatprep.subr.bf16.mxu0 %v2200_v40  ;;  %1721 = vmatprep.subr.bf16.mxu1 %v2202_v41  ;;  %v388_v40 = vld [vmem:[%s2442_s25 + $0x500] sm:$0xff]  ;;  %v425_v13 = vld [vmem:[%s2442_s25 + $0x628] sm:$0xff]  ;;  %v1589_v35 = vsel %vm1587_vm1, 4294967295, %v2386_v34 }
  0x44   : > { %v392_v41 = vld [vmem:[%s2442_s25 + $0x520] sm:$0xff]  ;;  %v429_v22 = vld [vmem:[%s2442_s25 + $0x648] sm:$0xff]  ;;  %v2297_v25 = vcombine.low %v421_v12, %v425_v13 }
  0x45   : > { %v2263_v52 = vcombine.low %v388_v40, %v392_v41  ;;  %v433_v0 = vld [vmem:[%s2442_s25 + $0x668] sm:$0xff]  ;;  %v448_v32 = vld [vmem:[%s2442_s25 + $0x6e0] sm:$0x11] }
  0x46   : > { %1640 = vmatpush1.bf16.msra.mxu0 %v2199_v46  ;;  %1722 = vmatpush1.bf16.msra.mxu1 %v2201_v47  ;;  %v2264_v46 = vcombine.high %v388_v40, %v392_v41  ;;  %v2266_v47 = vcombine.high %v389_v42, %v393_v43  ;;  %v2306_v29 = vcombine.high %v429_v22, %v433_v0  ;;  %v441_v33 = vld [vmem:[%s2442_s25 + $0x6a8] sm:$0xff]  ;;  %v2578_v43 = vsel %vm1588_vm2, %v1589_v35, 0 }
  0x47   : > { %1641 = vmatprep.subr.bf16.mxu0 %v2208_v48  ;;  %1723 = vmatprep.subr.bf16.mxu1 %v2210_v49  ;;  %v396_v48 = vld [vmem:[%s2442_s25 + $0x540] sm:$0xff]  ;;  %v2320_v41 = vcombine.high %v444_v31, %v448_v32 }
  0x48   : > { %v400_v49 = vld [vmem:[%s2442_s25 + $0x560] sm:$0xff] }
  0x49   : > { %v2271_v60 = vcombine.low %v396_v48, %v400_v49 }
  0x4a   : > { %1642 = vmatpush1.bf16.msra.mxu0 %v2207_v54  ;;  %1724 = vmatpush1.bf16.msra.mxu1 %v2209_v55  ;;  %v2272_v54 = vcombine.high %v396_v48, %v400_v49  ;;  %v2274_v55 = vcombine.high %v397_v50, %v401_v51  ;;  %v1595_v48 = vand.u32 %v2320_v41, %v2578_v43  ;;  %v230_v51 = vld [vmem:[%s2442_s25 + $0x10] sm:$0xff]  ;;  %v283_v41 = vld [vmem:[%s2442_s25 + $0x1b8] sm:$0xff] }
  0x4b   : > { %1643 = vmatprep.subr.bf16.mxu0 %v2216_v56  ;;  %1725 = vmatprep.subr.bf16.mxu1 %v2218_v57  ;;  %v404_v56 = vld [vmem:[%s2442_s25 + $0x580] sm:$0xff] }
  0x4c   : > { %v408_v57 = vld [vmem:[%s2442_s25 + $0x5a0] sm:$0xff] }
  0x4d   : > { %v2279_v6 = vcombine.low %v404_v56, %v408_v57 }
  0x4e   : > { %1644 = vmatpush1.bf16.msra.mxu0 %v2215_v62  ;;  %1726 = vmatpush1.bf16.msra.mxu1 %v2217_v63  ;;  %v2280_v62 = vcombine.high %v404_v56, %v408_v57  ;;  %v2282_v63 = vcombine.high %v405_v58, %v409_v59  ;;  %v238_v59 = vld [vmem:[%s2442_s25 + $0x50] sm:$0xff] }
  0x4f   : > { %1645 = vmatprep.subr.bf16.mxu0 %v2224_v2  ;;  %1727 = vmatprep.subr.bf16.mxu1 %v2226_v3  ;;  %v412_v2 = vld [vmem:[%s2442_s25 + $0x5c0] sm:$0xff] }
  0x50   : > { %v416_v3 = vld [vmem:[%s2442_s25 + $0x5e0] sm:$0xff] }
  0x51   : > { %v2287_v15 = vcombine.low %v412_v2, %v416_v3 }
  0x52   : > { %1646 = vmatpush1.bf16.msra.mxu0 %v2223_v8  ;;  %1728 = vmatpush1.bf16.msra.mxu1 %v2225_v9  ;;  %v2288_v8 = vcombine.high %v412_v2, %v416_v3  ;;  %v2290_v9 = vcombine.high %v413_v4, %v417_v5 }
  0x53   : > { %1656 = vmatprep.subr.bf16.mxu0 %v2232_v10  ;;  %1738 = vmatprep.subr.bf16.mxu1 %v2234_v11  ;;  %v420_v10 = vld [vmem:[%s2442_s25 + $0x600] sm:$0xff] }
  0x54   : > { %v424_v11 = vld [vmem:[%s2442_s25 + $0x620] sm:$0xff] }
  0x55   : > { %1648 = vmatmul.mubr.bf16.vlgmr.msra.gmra.mrb[0].mxu0 %v2516_v14  ;;  %1730 = vmatmul.mubr.bf16.vlgmr.msra.gmra.mrb[0].mxu1 %v2516_v14  ;;  %v2295_v24 = vcombine.low %v420_v10, %v424_v11 }
  0x56   : > { %1657 = vmatpush1.bf16.msra.mxu0 %v2231_v18  ;;  %1739 = vmatpush1.bf16.msra.mxu1 %v2233_v19  ;;  %v2296_v18 = vcombine.high %v420_v10, %v424_v11  ;;  %v2298_v19 = vcombine.high %v421_v12, %v425_v13  ;;  %v254_v13 = vld [vmem:[%s2442_s25 + $0xd0] sm:$0xff] }
  0x57   : > { %1658 = vmatprep.subr.bf16.mxu0 %v2240_v20  ;;  %1740 = vmatprep.subr.bf16.mxu1 %v2242_v21  ;;  %v428_v20 = vld [vmem:[%s2442_s25 + $0x640] sm:$0xff] }
  0x58   : > { %2327 = vmatprep.mubr.msk.bf16.mxu0 %vm1583_vm0, %v2529_v23  ;;  %2328 = vmatprep.mubr.msk.bf16.mxu1 %vm1583_vm0, %v2529_v23  ;;  %v432_v21 = vld [vmem:[%s2442_s25 + $0x660] sm:$0xff] }
  0x5a   : > { %1659 = vmatpush1.bf16.msra.mxu0 %v2239_v26  ;;  %1741 = vmatpush1.bf16.msra.mxu1 %v2241_v27  ;;  %v2304_v26 = vcombine.high %v428_v20, %v432_v21  ;;  %v436_v27 = vld [vmem:[%s2442_s25 + $0x680] sm:$0xff] }
  0x5b   : > { %1660 = vmatprep.subr.bf16.mxu0 %v2248_v28  ;;  %1742 = vmatprep.subr.bf16.mxu1 %v2250_v30  ;;  %v440_v28 = vld [vmem:[%s2442_s25 + $0x6a0] sm:$0xff]  ;;  %v437_v30 = vld [vmem:[%s2442_s25 + $0x688] sm:$0xff] }
  0x5c   : > { %v2312_v40 = vcombine.high %v436_v27, %v440_v28  ;;  %v2314_v42 = vcombine.high %v437_v30, %v441_v33 }
  0x5e   : > { %1661 = vmatpush1.bf16.msra.mxu0 %v2247_v36  ;;  %1743 = vmatpush1.bf16.msra.mxu1 %v2249_v37  ;;  %v445_v36 = vld [vmem:[%s2442_s25 + $0x6c8] sm:$0xff] }
  0x5f   : > { %1662 = vmatprep.subr.bf16.mxu0 %v2256_v38  ;;  %1744 = vmatprep.subr.bf16.mxu1 %v2258_v39  ;;  %v449_v37 = vld [vmem:[%s2442_s25 + $0x6e8] sm:$0x11]  ;;  %v2303_v38 = vcombine.low %v428_v20, %v432_v21  ;;  %v2305_v39 = vcombine.low %v429_v22, %v433_v0  ;;  %v262_v0 = vld [vmem:[%s2442_s25 + $0x110] sm:$0xff] }
  0x60   : > { %v2321_v49 = vcombine.low %v445_v36, %v449_v37 }
  0x62   : > { %1663 = vmatpush1.bf16.msra.mxu0 %v2255_v44  ;;  %1745 = vmatpush1.bf16.msra.mxu1 %v2257_v45  ;;  %v2322_v44 = vcombine.high %v445_v36, %v449_v37  ;;  %v2311_v45 = vcombine.low %v436_v27, %v440_v28  ;;  %v1598_v56 = vand.u32 %v2321_v49, %v2578_v43  ;;  %v287_v49 = vld [vmem:[%s2442_s25 + $0x1d8] sm:$0xff] }
  0x63   : > { %1664 = vmatprep.subr.bf16.mxu0 %v2264_v46  ;;  %1746 = vmatprep.subr.bf16.mxu1 %v2266_v47  ;;  %v2319_v46 = vcombine.low %v444_v31, %v448_v32  ;;  %v2313_v47 = vcombine.low %v437_v30, %v441_v33  ;;  %v270_v30 = vld [vmem:[%s2442_s25 + $0x150] sm:$0xff]  ;;  %v271_v32 = vld [vmem:[%s2442_s25 + $0x158] sm:$0xff] }
  0x64   : > { %v1601_v50 = vand.u32 %v2322_v44, %v2578_v43  ;;  %v274_v31 = vld [vmem:[%s2442_s25 + $0x170] sm:$0xff]  ;;  %v275_v33 = vld [vmem:[%s2442_s25 + $0x178] sm:$0xff] }
  0x65   : > { %v2148_v36 = vcombine.high %v270_v30, %v274_v31  ;;  %v2150_v37 = vcombine.high %v271_v32, %v275_v33  ;;  %v2149_v44 = vcombine.low %v271_v32, %v275_v33 }
  0x66   : > { %1665 = vmatpush1.bf16.msra.mxu0 %v2263_v52  ;;  %1747 = vmatpush1.bf16.msra.mxu1 %v2265_v53  ;;  %v234_v52 = vld [vmem:[%s2442_s25 + $0x30] sm:$0xff]  ;;  %v231_v53 = vld [vmem:[%s2442_s25 + $0x18] sm:$0xff] }
  0x67   : > { %1666 = vmatprep.subr.bf16.mxu0 %v2272_v54  ;;  %1748 = vmatprep.subr.bf16.mxu1 %v2274_v55  ;;  %v235_v54 = vld [vmem:[%s2442_s25 + $0x38] sm:$0xff]  ;;  %v1592_v55 = vand.u32 %v2319_v46, %v2578_v43  ;;  %v2108_v57 = vcombine.high %v230_v51, %v234_v52  ;;  %v2107_v2 = vcombine.low %v230_v51, %v234_v52 }
  0x68   : > { %v2110_v58 = vcombine.high %v231_v53, %v235_v54  ;;  %v2109_v3 = vcombine.low %v231_v53, %v235_v54 }
  0x6a   : > { %1667 = vmatpush1.bf16.msra.mxu0 %v2271_v60  ;;  %1749 = vmatpush1.bf16.msra.mxu1 %v2273_v61  ;;  %v242_v60 = vld [vmem:[%s2442_s25 + $0x70] sm:$0xff]  ;;  %v2592_v61 = vcombine.low %v2523_v17, %v2523_v17  ;;  %v247_v17 = vld [vmem:[%s2442_s25 + $0x98] sm:$0xff] }
  0x6b   : > { %1668 = vmatprep.subr.bf16.mxu0 %v2280_v62  ;;  %1750 = vmatprep.subr.bf16.mxu1 %v2282_v63  ;;  %v239_v62 = vld [vmem:[%s2442_s25 + $0x58] sm:$0xff]  ;;  %v2116_v4 = vcombine.high %v238_v59, %v242_v60 }
  0x6c   : > { %v243_v63 = vld [vmem:[%s2442_s25 + $0x78] sm:$0xff] }
  0x6d   : > { %v2118_v5 = vcombine.high %v239_v62, %v243_v63  ;;  %v2117_v10 = vcombine.low %v239_v62, %v243_v63 }
  0x6e   : > { %1669 = vmatpush1.bf16.msra.mxu0 %v2279_v6  ;;  %1751 = vmatpush1.bf16.msra.mxu1 %v2281_v7  ;;  %v246_v6 = vld [vmem:[%s2442_s25 + $0x90] sm:$0xff] }
  0x6f   : > { %1670 = vmatprep.subr.bf16.mxu0 %v2288_v8  ;;  %1752 = vmatprep.subr.bf16.mxu1 %v2290_v9  ;;  %v250_v7 = vld [vmem:[%s2442_s25 + $0xb0] sm:$0xff]  ;;  %v251_v8 = vld [vmem:[%s2442_s25 + $0xb8] sm:$0xff]  ;;  %v2115_v9 = vcombine.low %v238_v59, %v242_v60 }
  0x70   : > { %v2124_v11 = vcombine.high %v246_v6, %v250_v7  ;;  %v2126_v12 = vcombine.high %v247_v17, %v251_v8  ;;  %v2125_v20 = vcombine.low %v247_v17, %v251_v8 }
  0x72   : > { %1671 = vmatpush1.bf16.msra.mxu0 %v2287_v15  ;;  %1753 = vmatpush1.bf16.msra.mxu1 %v2289_v16  ;;  %v258_v15 = vld [vmem:[%s2442_s25 + $0xf0] sm:$0xff]  ;;  %v255_v16 = vld [vmem:[%s2442_s25 + $0xd8] sm:$0xff] }
  0x73   : > { %1672 = vmatprep.subr.bf16.mxu0 %v2296_v18  ;;  %1754 = vmatprep.subr.bf16.mxu1 %v2298_v19  ;;  %v259_v18 = vld [vmem:[%s2442_s25 + $0xf8] sm:$0xff]  ;;  %v2123_v19 = vcombine.low %v246_v6, %v250_v7  ;;  %v2132_v21 = vcombine.high %v254_v13, %v258_v15  ;;  %v2131_v27 = vcombine.low %v254_v13, %v258_v15 }
  0x74   : > { %v2134_v22 = vcombine.high %v255_v16, %v259_v18 }
  0x76   : > { %1673 = vmatpush1.bf16.msra.mxu0 %v2295_v24  ;;  %1755 = vmatpush1.bf16.msra.mxu1 %v2297_v25  ;;  %v266_v24 = vld [vmem:[%s2442_s25 + $0x130] sm:$0xff]  ;;  %v263_v25 = vld [vmem:[%s2442_s25 + $0x118] sm:$0xff] }
  0x77   : > { %1674 = vmatprep.subr.bf16.mxu0 %v2304_v26  ;;  %1756 = vmatprep.subr.bf16.mxu1 %v2306_v29  ;;  %v267_v26 = vld [vmem:[%s2442_s25 + $0x138] sm:$0xff]  ;;  %v2140_v28 = vcombine.high %v262_v0, %v266_v24  ;;  %v2139_v34 = vcombine.low %v262_v0, %v266_v24 }
  0x78   : > { %v2142_v29 = vcombine.high %v263_v25, %v267_v26  ;;  %v2141_v35 = vcombine.low %v263_v25, %v267_v26 }
  0x7a   : > { %1675 = vmatpush1.bf16.msra.mxu0 %v2303_v38  ;;  %1757 = vmatpush1.bf16.msra.mxu1 %v2305_v39  ;;  %v278_v38 = vld [vmem:[%s2442_s25 + $0x190] sm:$0xff] }
  0x7b   : > { %1676 = vmatprep.subr.bf16.mxu0 %v2312_v40  ;;  %1758 = vmatprep.subr.bf16.mxu1 %v2314_v42  ;;  %v282_v39 = vld [vmem:[%s2442_s25 + $0x1b0] sm:$0xff]  ;;  %v279_v40 = vld [vmem:[%s2442_s25 + $0x198] sm:$0xff]  ;;  %v2147_v42 = vcombine.low %v270_v30, %v274_v31 }
  0x7c   : > { %v2158_v46 = vcombine.high %v279_v40, %v283_v41  ;;  %v2155_v51 = vcombine.low %v278_v38, %v282_v39  ;;  %v2157_v52 = vcombine.low %v279_v40, %v283_v41 }
  0x7e   : > { %1677 = vmatpush1.bf16.msra.mxu0 %v2311_v45  ;;  %1759 = vmatpush1.bf16.msra.mxu1 %v2313_v47  ;;  %v2156_v45 = vcombine.high %v278_v38, %v282_v39  ;;  %v286_v47 = vld [vmem:[%s2442_s25 + $0x1d0] sm:$0xff] }
  0x7f   : > { %1678 = vmatprep.subr.bf16.mxu0 %v1595_v48  ;;  %1760 = vmatprep.subr.bf16.mxu1 %v1601_v50  ;;  %v290_v48 = vld [vmem:[%s2442_s25 + $0x1f0] sm:$0xff]  ;;  %v291_v50 = vld [vmem:[%s2442_s25 + $0x1f8] sm:$0xff] }
  0x80   : > { %v2164_v53 = vcombine.high %v286_v47, %v290_v48  ;;  %v2166_v54 = vcombine.high %v287_v49, %v291_v50  ;;  %v2163_v59 = vcombine.low %v286_v47, %v290_v48  ;;  %v2165_v60 = vcombine.low %v287_v49, %v291_v50 }
  0x82   : > { %1679 = vmatpush1.bf16.msra.mxu0 %v1592_v55  ;;  %1761 = vmatpush1.bf16.msra.mxu1 %v1598_v56  ;;  %v294_v55 = vld [vmem:[%s2442_s25 + $0x210] sm:$0xff] }
  0x83   : > { %1779 = vmatprep.subr.bf16.mxu0 %v2108_v57  ;;  %1861 = vmatprep.subr.bf16.mxu1 %v2110_v58  ;;  %v298_v56 = vld [vmem:[%s2442_s25 + $0x230] sm:$0xff]  ;;  %v295_v57 = vld [vmem:[%s2442_s25 + $0x218] sm:$0xff] }
  0x84   : > { %v299_v58 = vld [vmem:[%s2442_s25 + $0x238] sm:$0xff]  ;;  %v2172_v62 = vcombine.high %v294_v55, %v298_v56  ;;  %v2171_v6 = vcombine.low %v294_v55, %v298_v56 }
  0x85   : > { %1689 = vmatmul.mubr.bf16.vlgmr.msra.gmra.mrb[0].mxu0 %v2592_v61  ;;  %1771 = vmatmul.mubr.bf16.vlgmr.msra.gmra.mrb[0].mxu1 %v2592_v61  ;;  %v2174_v63 = vcombine.high %v295_v57, %v299_v58  ;;  %v2173_v7 = vcombine.low %v295_v57, %v299_v58 }
  0x86   : > { %1780 = vmatpush1.bf16.msra.mxu0 %v2107_v2  ;;  %1862 = vmatpush1.bf16.msra.mxu1 %v2109_v3  ;;  %v302_v2 = vld [vmem:[%s2442_s25 + $0x250] sm:$0xff] }
  0x87   : > { %1781 = vmatprep.subr.bf16.mxu0 %v2116_v4  ;;  %1863 = vmatprep.subr.bf16.mxu1 %v2118_v5  ;;  %v306_v3 = vld [vmem:[%s2442_s25 + $0x270] sm:$0xff]  ;;  %v303_v4 = vld [vmem:[%s2442_s25 + $0x258] sm:$0xff] }
  0x88   : > { %1811 = vmatprep.mubr.bf16.mxu0 %v2432_v1  ;;  %1893 = vmatprep.mubr.bf16.mxu1 %v2432_v1  ;;  %v2133_v1 = vcombine.low %v255_v16, %v259_v18  ;;  %v307_v5 = vld [vmem:[%s2442_s25 + $0x278] sm:$0xff]  ;;  %v2180_v17 = vcombine.high %v302_v2, %v306_v3  ;;  %v2179_v13 = vcombine.low %v302_v2, %v306_v3 }
  0x89   : > { %v2182_v8 = vcombine.high %v303_v4, %v307_v5  ;;  %v2181_v15 = vcombine.low %v303_v4, %v307_v5 }
  0x8a   : > { %1782 = vmatpush1.bf16.msra.mxu0 %v2115_v9  ;;  %1864 = vmatpush1.bf16.msra.mxu1 %v2117_v10  ;;  %v310_v9 = vld [vmem:[%s2442_s25 + $0x290] sm:$0xff] }
  0x8b   : > { %1783 = vmatprep.subr.bf16.mxu0 %v2124_v11  ;;  %1865 = vmatprep.subr.bf16.mxu1 %v2126_v12  ;;  %v314_v10 = vld [vmem:[%s2442_s25 + $0x2b0] sm:$0xff]  ;;  %v311_v11 = vld [vmem:[%s2442_s25 + $0x298] sm:$0xff] }
  0x8c   : > { %v315_v12 = vld [vmem:[%s2442_s25 + $0x2b8] sm:$0xff]  ;;  %v2188_v16 = vcombine.high %v310_v9, %v314_v10  ;;  %v2187_v0 = vcombine.low %v310_v9, %v314_v10 }
  0x8d   : > { %v2190_v18 = vcombine.high %v311_v11, %v315_v12  ;;  %v2189_v24 = vcombine.low %v311_v11, %v315_v12 }
  0x8e   : > { %1784 = vmatpush1.bf16.msra.mxu0 %v2123_v19  ;;  %1866 = vmatpush1.bf16.msra.mxu1 %v2125_v20  ;;  %v318_v19 = vld [vmem:[%s2442_s25 + $0x2d0] sm:$0xff] }
  0x8f   : > { %1785 = vmatprep.subr.bf16.mxu0 %v2132_v21  ;;  %1867 = vmatprep.subr.bf16.mxu1 %v2134_v22  ;;  %v322_v20 = vld [vmem:[%s2442_s25 + $0x2f0] sm:$0xff]  ;;  %v319_v21 = vld [vmem:[%s2442_s25 + $0x2d8] sm:$0xff] }
  0x90   : > { %v323_v22 = vld [vmem:[%s2442_s25 + $0x2f8] sm:$0xff]  ;;  %v2196_v25 = vcombine.high %v318_v19, %v322_v20  ;;  %v2195_v30 = vcombine.low %v318_v19, %v322_v20 }
  0x91   : > { %v2198_v26 = vcombine.high %v319_v21, %v323_v22  ;;  %v2197_v31 = vcombine.low %v319_v21, %v323_v22 }
  0x92   : > { %1786 = vmatpush1.bf16.msra.mxu0 %v2131_v27  ;;  %1868 = vmatpush1.bf16.msra.mxu1 %v2133_v1  ;;  %v326_v27 = vld [vmem:[%s2442_s25 + $0x310] sm:$0xff] }
  0x93   : > { %1787 = vmatprep.subr.bf16.mxu0 %v2140_v28  ;;  %1869 = vmatprep.subr.bf16.mxu1 %v2142_v29  ;;  %v330_v1 = vld [vmem:[%s2442_s25 + $0x330] sm:$0xff]  ;;  %v327_v28 = vld [vmem:[%s2442_s25 + $0x318] sm:$0xff] }
  0x94   : > { %v331_v29 = vld [vmem:[%s2442_s25 + $0x338] sm:$0xff]  ;;  %v2204_v32 = vcombine.high %v326_v27, %v330_v1  ;;  %v2203_v38 = vcombine.low %v326_v27, %v330_v1 }
  0x95   : > { %v2206_v33 = vcombine.high %v327_v28, %v331_v29  ;;  %v2205_v39 = vcombine.low %v327_v28, %v331_v29  ;;  %v390_v29 = vld [vmem:[%s2442_s25 + $0x510] sm:$0xff] }
  0x96   : > { %1788 = vmatpush1.bf16.msra.mxu0 %v2139_v34  ;;  %1870 = vmatpush1.bf16.msra.mxu1 %v2141_v35  ;;  %v334_v34 = vld [vmem:[%s2442_s25 + $0x350] sm:$0xff] }
  0x97   : > { %1789 = vmatprep.subr.bf16.mxu0 %v2148_v36  ;;  %1871 = vmatprep.subr.bf16.mxu1 %v2150_v37  ;;  %v338_v35 = vld [vmem:[%s2442_s25 + $0x370] sm:$0xff]  ;;  %v335_v36 = vld [vmem:[%s2442_s25 + $0x358] sm:$0xff] }
  0x98   : > { %v339_v37 = vld [vmem:[%s2442_s25 + $0x378] sm:$0xff]  ;;  %v2212_v40 = vcombine.high %v334_v34, %v338_v35  ;;  %v2211_v47 = vcombine.low %v334_v34, %v338_v35 }
  0x99   : > { %v2214_v41 = vcombine.high %v335_v36, %v339_v37  ;;  %v2213_v48 = vcombine.low %v335_v36, %v339_v37  ;;  %v398_v36 = vld [vmem:[%s2442_s25 + $0x550] sm:$0xff] }
  0x9a   : > { %1790 = vmatpush1.bf16.msra.mxu0 %v2147_v42  ;;  %1872 = vmatpush1.bf16.msra.mxu1 %v2149_v44  ;;  %v342_v42 = vld [vmem:[%s2442_s25 + $0x390] sm:$0xff] }
  0x9b   : > { %1791 = vmatprep.subr.bf16.mxu0 %v2156_v45  ;;  %1873 = vmatprep.subr.bf16.mxu1 %v2158_v46  ;;  %v346_v44 = vld [vmem:[%s2442_s25 + $0x3b0] sm:$0xff]  ;;  %v343_v45 = vld [vmem:[%s2442_s25 + $0x398] sm:$0xff] }
  0x9c   : > { %v347_v46 = vld [vmem:[%s2442_s25 + $0x3b8] sm:$0xff]  ;;  %v2220_v49 = vcombine.high %v342_v42, %v346_v44  ;;  %v2219_v55 = vcombine.low %v342_v42, %v346_v44  ;;  %v402_v37 = vld [vmem:[%s2442_s25 + $0x570] sm:$0xff] }
  0x9d   : > { %v2222_v50 = vcombine.high %v343_v45, %v347_v46  ;;  %v2221_v56 = vcombine.low %v343_v45, %v347_v46  ;;  %v2276_v42 = vcombine.high %v398_v36, %v402_v37  ;;  %v406_v45 = vld [vmem:[%s2442_s25 + $0x590] sm:$0xff] }
  0x9e   : > { %1792 = vmatpush1.bf16.msra.mxu0 %v2155_v51  ;;  %1874 = vmatpush1.bf16.msra.mxu1 %v2157_v52  ;;  %v350_v51 = vld [vmem:[%s2442_s25 + $0x3d0] sm:$0xff] }
  0x9f   : > { %1793 = vmatprep.subr.bf16.mxu0 %v2164_v53  ;;  %1875 = vmatprep.subr.bf16.mxu1 %v2166_v54  ;;  %v354_v52 = vld [vmem:[%s2442_s25 + $0x3f0] sm:$0xff]  ;;  %v351_v53 = vld [vmem:[%s2442_s25 + $0x3d8] sm:$0xff] }
  0xa0   : > { %v355_v54 = vld [vmem:[%s2442_s25 + $0x3f8] sm:$0xff]  ;;  %v2228_v57 = vcombine.high %v350_v51, %v354_v52  ;;  %v2227_v2 = vcombine.low %v350_v51, %v354_v52  ;;  %v410_v46 = vld [vmem:[%s2442_s25 + $0x5b0] sm:$0xff] }
  0xa1   : > { %v2230_v58 = vcombine.high %v351_v53, %v355_v54  ;;  %v2229_v3 = vcombine.low %v351_v53, %v355_v54  ;;  %v2284_v51 = vcombine.high %v406_v45, %v410_v46  ;;  %v414_v53 = vld [vmem:[%s2442_s25 + $0x5d0] sm:$0xff] }
  0xa2   : > { %1794 = vmatpush1.bf16.msra.mxu0 %v2163_v59  ;;  %1876 = vmatpush1.bf16.msra.mxu1 %v2165_v60  ;;  %v358_v59 = vld [vmem:[%s2442_s25 + $0x410] sm:$0xff] }
  0xa3   : > { %1795 = vmatprep.subr.bf16.mxu0 %v2172_v62  ;;  %1877 = vmatprep.subr.bf16.mxu1 %v2174_v63  ;;  %v362_v60 = vld [vmem:[%s2442_s25 + $0x430] sm:$0xff]  ;;  %v359_v62 = vld [vmem:[%s2442_s25 + $0x418] sm:$0xff] }
  0xa4   : > { %v363_v63 = vld [vmem:[%s2442_s25 + $0x438] sm:$0xff]  ;;  %v2236_v4 = vcombine.high %v358_v59, %v362_v60  ;;  %v2235_v9 = vcombine.low %v358_v59, %v362_v60  ;;  %v418_v54 = vld [vmem:[%s2442_s25 + $0x5f0] sm:$0xff] }
  0xa5   : > { %v2238_v5 = vcombine.high %v359_v62, %v363_v63  ;;  %v2237_v10 = vcombine.low %v359_v62, %v363_v63  ;;  %v2292_v59 = vcombine.high %v414_v53, %v418_v54  ;;  %v422_v62 = vld [vmem:[%s2442_s25 + $0x610] sm:$0xff] }
  0xa6   : > { %1796 = vmatpush1.bf16.msra.mxu0 %v2171_v6  ;;  %1878 = vmatpush1.bf16.msra.mxu1 %v2173_v7  ;;  %v366_v6 = vld [vmem:[%s2442_s25 + $0x450] sm:$0xff] }
  0xa7   : > { %1797 = vmatprep.subr.bf16.mxu0 %v2180_v17  ;;  %1879 = vmatprep.subr.bf16.mxu1 %v2182_v8  ;;  %v370_v7 = vld [vmem:[%s2442_s25 + $0x470] sm:$0xff]  ;;  %v367_v17 = vld [vmem:[%s2442_s25 + $0x458] sm:$0xff] }
  0xa8   : > { %v371_v8 = vld [vmem:[%s2442_s25 + $0x478] sm:$0xff]  ;;  %v2244_v11 = vcombine.high %v366_v6, %v370_v7  ;;  %v2243_v19 = vcombine.low %v366_v6, %v370_v7  ;;  %v426_v63 = vld [vmem:[%s2442_s25 + $0x630] sm:$0xff] }
  0xa9   : > { %v2246_v12 = vcombine.high %v367_v17, %v371_v8  ;;  %v2245_v20 = vcombine.low %v367_v17, %v371_v8  ;;  %v2300_v6 = vcombine.high %v422_v62, %v426_v63  ;;  %v430_v17 = vld [vmem:[%s2442_s25 + $0x650] sm:$0xff] }
  0xaa   : > { %1798 = vmatpush1.bf16.msra.mxu0 %v2179_v13  ;;  %1880 = vmatpush1.bf16.msra.mxu1 %v2181_v15  ;;  %v374_v13 = vld [vmem:[%s2442_s25 + $0x490] sm:$0xff] }
  0xab   : > { %1799 = vmatprep.subr.bf16.mxu0 %v2188_v16  ;;  %1881 = vmatprep.subr.bf16.mxu1 %v2190_v18  ;;  %v378_v15 = vld [vmem:[%s2442_s25 + $0x4b0] sm:$0xff]  ;;  %v375_v16 = vld [vmem:[%s2442_s25 + $0x498] sm:$0xff] }
  0xac   : > { %v379_v18 = vld [vmem:[%s2442_s25 + $0x4b8] sm:$0xff]  ;;  %v2252_v21 = vcombine.high %v374_v13, %v378_v15  ;;  %v434_v8 = vld [vmem:[%s2442_s25 + $0x670] sm:$0xff] }
  0xad   : > { %v2254_v22 = vcombine.high %v375_v16, %v379_v18  ;;  %v2253_v27 = vcombine.low %v375_v16, %v379_v18  ;;  %v438_v16 = vld [vmem:[%s2442_s25 + $0x690] sm:$0xff] }
  0xae   : > { %1800 = vmatpush1.bf16.msra.mxu0 %v2187_v0  ;;  %1882 = vmatpush1.bf16.msra.mxu1 %v2189_v24  ;;  %v382_v0 = vld [vmem:[%s2442_s25 + $0x4d0] sm:$0xff] }
  0xaf   : > { %1801 = vmatprep.subr.bf16.mxu0 %v2196_v25  ;;  %1883 = vmatprep.subr.bf16.mxu1 %v2198_v26  ;;  %v386_v24 = vld [vmem:[%s2442_s25 + $0x4f0] sm:$0xff]  ;;  %v383_v25 = vld [vmem:[%s2442_s25 + $0x4d8] sm:$0xff] }
  0xb0   : > { %v387_v26 = vld [vmem:[%s2442_s25 + $0x4f8] sm:$0xff]  ;;  %v2260_v1 = vcombine.high %v382_v0, %v386_v24  ;;  %v442_v18 = vld [vmem:[%s2442_s25 + $0x6b0] sm:$0xff] }
  0xb1   : > { %v2262_v28 = vcombine.high %v383_v25, %v387_v26 }
  0xb2   : > { %1802 = vmatpush1.bf16.msra.mxu0 %v2195_v30  ;;  %1884 = vmatpush1.bf16.msra.mxu1 %v2197_v31  ;;  %v394_v30 = vld [vmem:[%s2442_s25 + $0x530] sm:$0xff]  ;;  %v391_v31 = vld [vmem:[%s2442_s25 + $0x518] sm:$0xff] }
  0xb3   : > { %1803 = vmatprep.subr.bf16.mxu0 %v2204_v32  ;;  %1885 = vmatprep.subr.bf16.mxu1 %v2206_v33  ;;  %v395_v32 = vld [vmem:[%s2442_s25 + $0x538] sm:$0xff]  ;;  %v2259_v33 = vcombine.low %v382_v0, %v386_v24  ;;  %v2268_v34 = vcombine.high %v390_v29, %v394_v30 }
  0xb4   : > { %v2270_v35 = vcombine.high %v391_v31, %v395_v32  ;;  %v443_v0 = vld [vmem:[%s2442_s25 + $0x6b8] sm:$0xff] }
  0xb5   : > { %v447_v24 = vld [vmem:[%s2442_s25 + $0x6d8] sm:$0xff] }
  0xb6   : > { %1804 = vmatpush1.bf16.msra.mxu0 %v2203_v38  ;;  %1886 = vmatpush1.bf16.msra.mxu1 %v2205_v39  ;;  %v399_v38 = vld [vmem:[%s2442_s25 + $0x558] sm:$0xff] }
  0xb7   : > { %1805 = vmatprep.subr.bf16.mxu0 %v2212_v40  ;;  %1887 = vmatprep.subr.bf16.mxu1 %v2214_v41  ;;  %v403_v39 = vld [vmem:[%s2442_s25 + $0x578] sm:$0xff]  ;;  %v2267_v40 = vcombine.low %v390_v29, %v394_v30  ;;  %v2269_v41 = vcombine.low %v391_v31, %v395_v32  ;;  %v2315_v30 = vcombine.low %v438_v16, %v442_v18 }
  0xb8   : > { %v2278_v44 = vcombine.high %v399_v38, %v403_v39 }
  0xba   : > { %1806 = vmatpush1.bf16.msra.mxu0 %v2211_v47  ;;  %1888 = vmatpush1.bf16.msra.mxu1 %v2213_v48  ;;  %v407_v47 = vld [vmem:[%s2442_s25 + $0x598] sm:$0xff] }
  0xbb   : > { %1807 = vmatprep.subr.bf16.mxu0 %v2220_v49  ;;  %1889 = vmatprep.subr.bf16.mxu1 %v2222_v50  ;;  %v411_v48 = vld [vmem:[%s2442_s25 + $0x5b8] sm:$0xff]  ;;  %v2275_v49 = vcombine.low %v398_v36, %v402_v37  ;;  %v2277_v50 = vcombine.low %v399_v38, %v403_v39 }
  0xbc   : > { %v2286_v52 = vcombine.high %v407_v47, %v411_v48 }
  0xbe   : > { %1808 = vmatpush1.bf16.msra.mxu0 %v2219_v55  ;;  %1890 = vmatpush1.bf16.msra.mxu1 %v2221_v56  ;;  %v415_v55 = vld [vmem:[%s2442_s25 + $0x5d8] sm:$0xff] }
  0xbf   : > { %1809 = vmatprep.subr.bf16.mxu0 %v2228_v57  ;;  %1891 = vmatprep.subr.bf16.mxu1 %v2230_v58  ;;  %v419_v56 = vld [vmem:[%s2442_s25 + $0x5f8] sm:$0xff]  ;;  %v2283_v57 = vcombine.low %v406_v45, %v410_v46  ;;  %v2285_v58 = vcombine.low %v407_v47, %v411_v48  ;;  %v456_v46 = vpop.permute.xlu0 %455 }
  0xc0   : > { %v2294_v60 = vcombine.high %v415_v55, %v419_v56 }
  0xc2   : > { %1810 = vmatpush1.bf16.msra.mxu0 %v2227_v2  ;;  %1892 = vmatpush1.bf16.msra.mxu1 %v2229_v3  ;;  %v423_v2 = vld [vmem:[%s2442_s25 + $0x618] sm:$0xff] }
  0xc3   : > { %1820 = vmatprep.subr.bf16.mxu0 %v2236_v4  ;;  %1902 = vmatprep.subr.bf16.mxu1 %v2238_v5  ;;  %v427_v3 = vld [vmem:[%s2442_s25 + $0x638] sm:$0xff]  ;;  %v2291_v4 = vcombine.low %v414_v53, %v418_v54  ;;  %v2293_v5 = vcombine.low %v415_v55, %v419_v56 }
  0xc4   : > { %v2302_v7 = vcombine.high %v423_v2, %v427_v3 }
  0xc5   : > { %1812 = vmatmul.mubr.bf16.vlgmr.msra.gmra.mrb[4].mxu0 %v2516_v14  ;;  %1894 = vmatmul.mubr.bf16.vlgmr.msra.gmra.mrb[4].mxu1 %v2516_v14  ;;  %v2251_v14 = vcombine.low %v374_v13, %v378_v15  ;;  %v2301_v13 = vcombine.low %v423_v2, %v427_v3  ;;  %v2308_v15 = vcombine.high %v430_v17, %v434_v8 }
  0xc6   : > { %1821 = vmatpush1.bf16.msra.mxu0 %v2235_v9  ;;  %1903 = vmatpush1.bf16.msra.mxu1 %v2237_v10  ;;  %v431_v9 = vld [vmem:[%s2442_s25 + $0x658] sm:$0xff] }
  0xc7   : > { %1822 = vmatprep.subr.bf16.mxu0 %v2244_v11  ;;  %1904 = vmatprep.subr.bf16.mxu1 %v2246_v12  ;;  %v435_v10 = vld [vmem:[%s2442_s25 + $0x678] sm:$0xff]  ;;  %v2299_v11 = vcombine.low %v422_v62, %v426_v63  ;;  %v1992_v12 = vld [vmem:[%s2731_s2] sm:$0xff] }
  0xc8   : > { %2329 = vmatprep.mubr.msk.bf16.mxu0 %vm1583_vm0, %v2529_v23  ;;  %2330 = vmatprep.mubr.msk.bf16.mxu1 %vm1583_vm0, %v2529_v23  ;;  %v2261_v23 = vcombine.low %v383_v25, %v387_v26  ;;  %v451_v25 = vld [vmem:[%s2442_s25 + $0x6f8] sm:$0x11]  ;;  %v2307_v26 = vcombine.low %v430_v17, %v434_v8 }
  0xc9   : > { %1995 = vperm.xlu1 %2370, %v1992_v12   ;;  %v2326_v29 = vcombine.high %v447_v24, %v451_v25 }
  0xca   : > { %1823 = vmatpush1.bf16.msra.mxu0 %v2243_v19  ;;  %1905 = vmatpush1.bf16.msra.mxu1 %v2245_v20  ;;  %v2310_v19 = vcombine.high %v431_v9, %v435_v10  ;;  %v439_v20 = vld [vmem:[%s2442_s25 + $0x698] sm:$0xff] }
  0xcb   : > { %1824 = vmatprep.subr.bf16.mxu0 %v2252_v21  ;;  %1906 = vmatprep.subr.bf16.mxu1 %v2254_v22  ;;  %v446_v21 = vld [vmem:[%s2442_s25 + $0x6d0] sm:$0xff]  ;;  %v2317_v32 = vcombine.low %v439_v20, %v443_v0 }
  0xcc   : > { %v450_v22 = vld [vmem:[%s2442_s25 + $0x6f0] sm:$0x11] }
  0xcd   : > { %v2323_v31 = vcombine.low %v446_v21, %v450_v22 }
  0xce   : > { %1825 = vmatpush1.bf16.msra.mxu0 %v2251_v14  ;;  %1907 = vmatpush1.bf16.msra.mxu1 %v2253_v27  ;;  %v2309_v14 = vcombine.low %v431_v9, %v435_v10  ;;  %v2316_v27 = vcombine.high %v438_v16, %v442_v18 }
  0xcf   : > { %1826 = vmatprep.subr.bf16.mxu0 %v2260_v1  ;;  %1908 = vmatprep.subr.bf16.mxu1 %v2262_v28  ;;  %v2324_v1 = vcombine.high %v446_v21, %v450_v22  ;;  %v2318_v28 = vcombine.high %v439_v20, %v443_v0  ;;  %v2006_v0 = vld [vmem:[%s2732_s3] sm:$0xff] }
  0xd2   : > { %1827 = vmatpush1.bf16.msra.mxu0 %v2259_v33  ;;  %1909 = vmatpush1.bf16.msra.mxu1 %v2261_v23  ;;  %v1607_v33 = vand.u32 %v2324_v1, %v2578_v43  ;;  %v2325_v23 = vcombine.low %v447_v24, %v451_v25 }
  0xd3   : > { %1828 = vmatprep.subr.bf16.mxu0 %v2268_v34  ;;  %1910 = vmatprep.subr.bf16.mxu1 %v2270_v35  ;;  %v1613_v34 = vand.u32 %v2326_v29, %v2578_v43  ;;  %v1604_v35 = vand.u32 %v2323_v31, %v2578_v43 }
  0xd4   : > { %v1610_v36 = vand.u32 %v2325_v23, %v2578_v43 }
  0xd6   : > { %1829 = vmatpush1.bf16.msra.mxu0 %v2267_v40  ;;  %1911 = vmatpush1.bf16.msra.mxu1 %v2269_v41 }
  0xd7   : > { %1830 = vmatprep.subr.bf16.mxu0 %v2276_v42  ;;  %1912 = vmatprep.subr.bf16.mxu1 %v2278_v44 }
  0xda   : > { %1831 = vmatpush1.bf16.msra.mxu0 %v2275_v49  ;;  %1913 = vmatpush1.bf16.msra.mxu1 %v2277_v50 }
  0xdb   : > { %1832 = vmatprep.subr.bf16.mxu0 %v2284_v51  ;;  %1914 = vmatprep.subr.bf16.mxu1 %v2286_v52 }
  0xde   : > { %1833 = vmatpush1.bf16.msra.mxu0 %v2283_v57  ;;  %1915 = vmatpush1.bf16.msra.mxu1 %v2285_v58 }
  0xdf   : > { %1834 = vmatprep.subr.bf16.mxu0 %v2292_v59  ;;  %1916 = vmatprep.subr.bf16.mxu1 %v2294_v60 }
  0xe2   : > { %1835 = vmatpush1.bf16.msra.mxu0 %v2291_v4  ;;  %1917 = vmatpush1.bf16.msra.mxu1 %v2293_v5 }
  0xe3   : > { %1836 = vmatprep.subr.bf16.mxu0 %v2300_v6  ;;  %1918 = vmatprep.subr.bf16.mxu1 %v2302_v7 }
  0xe6   : > { %1837 = vmatpush1.bf16.msra.mxu0 %v2299_v11  ;;  %1919 = vmatpush1.bf16.msra.mxu1 %v2301_v13 }
  0xe7   : > { %1838 = vmatprep.subr.bf16.mxu0 %v2308_v15  ;;  %1920 = vmatprep.subr.bf16.mxu1 %v2310_v19 }
  0xea   : > { %1839 = vmatpush1.bf16.msra.mxu0 %v2307_v26  ;;  %1921 = vmatpush1.bf16.msra.mxu1 %v2309_v14 }
  0xeb   : > { %1840 = vmatprep.subr.bf16.mxu0 %v2316_v27  ;;  %1922 = vmatprep.subr.bf16.mxu1 %v2318_v28 }
  0xee   : > { %1841 = vmatpush1.bf16.msra.mxu0 %v2315_v30  ;;  %1923 = vmatpush1.bf16.msra.mxu1 %v2317_v32 }
  0xef   : > { %1842 = vmatprep.subr.bf16.mxu0 %v1607_v33  ;;  %1924 = vmatprep.subr.bf16.mxu1 %v1613_v34 }
  0xf2   : > { %1843 = vmatpush1.bf16.msra.mxu0 %v1604_v35  ;;  %1925 = vmatpush1.bf16.msra.mxu1 %v1610_v36 }
  0xf5   : > { %1853 = vmatmul.mubr.bf16.vlgmr.msra.gmra.mrb[4].mxu0 %v2592_v61  ;;  %1935 = vmatmul.mubr.bf16.vlgmr.msra.gmra.mrb[4].mxu1 %v2592_v61 }
 0x148   : > { %v1996_v24 = vpop.permute.xlu1 %1995 }
 0x158   : > { %v1690_v37 = vpop.f32.mrb[0].mxu0  ;;  %v1772_v38 = vpop.f32.mrb[0].mxu1 }
 0x159   : > { %v1692_v39 = vpop.f32.mrb[1].mxu0  ;;  %v1774_v40 = vpop.f32.mrb[1].mxu1  ;;  %v2334_v47 = vadd.f32 %v1690_v37, %v456_v46  ;;  %v2336_v50 = vadd.f32 %v1772_v38, %v456_v46 }
 0x15a   : > { %v1694_v41 = vpop.f32.mrb[2].mxu0  ;;  %v1776_v42 = vpop.f32.mrb[2].mxu1  ;;  %v2335_v48 = vadd.f32 %v1692_v39, %v456_v46  ;;  %v2337_v54 = vadd.f32 %v1774_v40, %v456_v46 }
 0x15b   : > { %v1695_v44 = vpop.f32.mrb[3].mxu0  ;;  %v1777_v45 = vpop.f32.mrb[3].mxu1  ;;  %v1954_v49 = vmul.f32 %v2334_v47, %v2334_v47  ;;  %v1956_v53 = vmul.f32 %v2336_v50, %v2336_v50 }
 0x15c   : > { %v1955_v43 = vmul.f32 %v2335_v48, %v2335_v48  ;;  %v1943_v51 = vadd.f32 %v2335_v48, %v2334_v47  ;;  %v1957_v58 = vmul.f32 %v2337_v54, %v2337_v54 }
 0x15e   : > { %v1962_v52 = vadd.f32 %v1955_v43, %v1954_v49  ;;  %v1944_v55 = vadd.f32 %v2336_v50, %v1943_v51 }
 0x160   : > { %v1963_v61 = vadd.f32 %v1962_v52, %v1956_v53  ;;  %v1945_v57 = vadd.f32 %v2337_v54, %v1944_v55 }
 0x162   : > { %v1964_v4 = vadd.f32 %v1963_v61, %v1957_v58 }
 0x1c8   : > { %v1854_v56 = vpop.f32.mrb[4].mxu0  ;;  %v1936_v60 = vpop.f32.mrb[4].mxu1 }
 0x1c9   : > { %v2338_v59 = vadd.f32 %v1854_v56, %v456_v46  ;;  %v1856_v62 = vpop.f32.mrb[5].mxu0  ;;  %v1938_v2 = vpop.f32.mrb[5].mxu1  ;;  %v2340_v7 = vadd.f32 %v1936_v60, %v456_v46 }
 0x1ca   : > { %v2339_v63 = vadd.f32 %v1856_v62, %v456_v46  ;;  %v1858_v3 = vpop.f32.mrb[6].mxu0  ;;  %v1940_v17 = vpop.f32.mrb[6].mxu1  ;;  %v2341_v13 = vadd.f32 %v1938_v2, %v456_v46 }
 0x1cb   : > { %v1946_v5 = vadd.f32 %v2338_v59, %v1945_v57  ;;  %v1958_v6 = vmul.f32 %v2338_v59, %v2338_v59  ;;  %v1859_v8 = vpop.f32.mrb[7].mxu0  ;;  %v1941_v10 = vpop.f32.mrb[7].mxu1  ;;  %v1960_v15 = vmul.f32 %v2340_v7, %v2340_v7 }
 0x1cc   : > { %v1959_v9 = vmul.f32 %v2339_v63, %v2339_v63  ;;  %v1961_v20 = vmul.f32 %v2341_v13, %v2341_v13 }
 0x1cd   : > { %v1965_v11 = vadd.f32 %v1964_v4, %v1958_v6  ;;  %v1947_v12 = vadd.f32 %v2339_v63, %v1946_v5 }
 0x1cf   : > { %v1948_v16 = vadd.f32 %v2340_v7, %v1947_v12  ;;  %v1966_v18 = vadd.f32 %v1965_v11, %v1959_v9 }
 0x1d1   : > { %v1949_v19 = vadd.f32 %v2341_v13, %v1948_v16  ;;  %v1967_v21 = vadd.f32 %v1966_v18, %v1960_v15 }
 0x1d3   : > { %1950 = vadd.xlane.f32.xlu0 %v1949_v19  ;;  %v1968_v22 = vadd.f32 %v1967_v21, %v1961_v20 }
 0x1d5   : > { %1969 = vadd.xlane.f32.xlu1 %v1968_v22 }
 0x1e6   : > { %2009 = vperm.xlu1 %2370, %v2006_v0  }
 0x260   : > { %v1951_v25 = vpop.xlane.xlu0 %1950 }
 0x261   : > { %v1953_v26 = vmul.f32 0.0009765625, %v1951_v25 }
 0x262   : > { %v1970_v14 = vpop.xlane.xlu1 %1969 }
 0x263   : > { %v1971_v27 = vmul.f32 0.0009765625, %v1970_v14  ;;  %v1972_v1 = vmul.f32 %v1953_v26, %v1953_v26  ;;  %v1974_v30 = vsub.f32 %v2334_v47, %v1953_v26  ;;  %v1975_v31 = vsub.f32 %v2335_v48, %v1953_v26 }
 0x264   : > { %v1976_v32 = vsub.f32 %v2336_v50, %v1953_v26  ;;  %v1977_v33 = vsub.f32 %v2337_v54, %v1953_v26  ;;  %v1978_v34 = vsub.f32 %v2338_v59, %v1953_v26  ;;  %v1979_v35 = vsub.f32 %v2339_v63, %v1953_v26 }
 0x265   : > { %v1973_v28 = vsub.f32 %v1971_v27, %v1972_v1  ;;  %v1980_v36 = vsub.f32 %v2340_v7, %v1953_v26  ;;  %v1981_v37 = vsub.f32 %v2341_v13, %v1953_v26 }
 0x266   : > { %v2010_v50 = vpop.permute.xlu1 %2009 }
 0x267   : > { %v1982_v29 = vadd.f32 1e-05, %v1973_v28 }
 0x269   : > { %2375 = vrsqrt.f32 %v1982_v29 }
 0x273   : > { %v2376_v23 = vpop.eup %2375 }
 0x274   : > { %v1984_v38 = vmul.f32 %v2376_v23, %v1974_v30  ;;  %v1985_v39 = vmul.f32 %v2376_v23, %v1975_v31  ;;  %v1986_v40 = vmul.f32 %v2376_v23, %v1976_v32  ;;  %v1987_v41 = vmul.f32 %v2376_v23, %v1977_v33 }
 0x275   : > { %v1988_v42 = vmul.f32 %v2376_v23, %v1978_v34  ;;  %v1989_v44 = vmul.f32 %v2376_v23, %v1979_v35  ;;  %v1990_v45 = vmul.f32 %v2376_v23, %v1980_v36  ;;  %v1991_v46 = vmul.f32 %v2376_v23, %v1981_v37 }
 0x276   : > { %v1998_v49 = vmul.f32 %v1996_v24, %v1984_v38  ;;  %v1999_v47 = vmul.f32 %v1996_v24, %v1985_v39  ;;  %v2000_v48 = vmul.f32 %v1996_v24, %v1986_v40  ;;  %v2001_v43 = vmul.f32 %v1996_v24, %v1987_v41 }
 0x277   : > { %v2002_v51 = vmul.f32 %v1996_v24, %v1988_v42  ;;  %v2003_v52 = vmul.f32 %v1996_v24, %v1989_v44  ;;  %v2004_v53 = vmul.f32 %v1996_v24, %v1990_v45  ;;  %v2005_v54 = vmul.f32 %v1996_v24, %v1991_v46 }
 0x278   : > { %v2012_v55 = vadd.f32 %v2010_v50, %v1998_v49  ;;  %v2013_v61 = vadd.f32 %v2010_v50, %v1999_v47  ;;  %v2014_v56 = vadd.f32 %v2010_v50, %v2000_v48  ;;  %v2015_v57 = vadd.f32 %v2010_v50, %v2001_v43 }
 0x279   : > { %v2016_v58 = vadd.f32 %v2010_v50, %v2002_v51  ;;  %v2017_v59 = vadd.f32 %v2010_v50, %v2003_v52  ;;  %v2018_v60 = vadd.f32 %v2010_v50, %v2004_v53  ;;  %v2019_v62 = vadd.f32 %v2010_v50, %v2005_v54 }
 0x27a   : > { %v2020_v63 = vmax.f32 %v2012_v55, 0.0  ;;  %v2021_v2 = vmax.f32 %v2013_v61, 0.0  ;;  %v2022_v3 = vmax.f32 %v2014_v56, 0.0  ;;  %v2023_v4 = vmax.f32 %v2015_v57, 0.0 }
 0x27b   : > { %v2024_v5 = vmax.f32 %v2016_v58, 0.0  ;;  %v2025_v6 = vmax.f32 %v2017_v59, 0.0  ;;  %v2026_v7 = vmax.f32 %v2018_v60, 0.0  ;;  %v2027_v17 = vmax.f32 %v2019_v62, 0.0 }
 0x27c   : > { %2028 = vst [vmem:[%s224_s12] sm:$0xff] %v2020_v63  ;;  %2029 = vst [vmem:[%s224_s12 + $0x8] sm:$0xff] %v2021_v2 }
 0x27d   : > { %2030 = vst [vmem:[%s224_s12 + $0x10] sm:$0xff] %v2022_v3  ;;  %2031 = vst [vmem:[%s224_s12 + $0x18] sm:$0xff] %v2023_v4 }
 0x27e   : > { %2032 = vst [vmem:[%s224_s12 + $0x20] sm:$0xff] %v2024_v5  ;;  %2033 = vst [vmem:[%s224_s12 + $0x28] sm:$0xff] %v2025_v6 }
 0x27f   : > { %2034 = vst [vmem:[%s224_s12 + $0x30] sm:$0xff] %v2026_v7  ;;  %2035 = vst [vmem:[%s224_s12 + $0x38] sm:$0xff] %v2027_v17 }
 0x280 PF: > { %s15_s18 = sadd.s32 1, %s2383_s18  }
 0x281   : > { %p12_p4 = scmp.ge.s32.totalorder %s15_s18, 4  }
 0x283   :  { %14 = sbr.rel (!%p12_p4) target bundleno = 1 (0x1), region = 70 }

// kernel: _lambda_.12
= control target key start
LH: loop header
LB: loop body
LE: loop exit
PB: predicated region body
PF: predicated region fallthrough
CT: control target
= control target key end

     0   :  { %s739_s18 = smov 0   ;;  %s813_s0 = inlined_call_operand.vmem [shape: bf16[16,216], index: 0, kind: input, shape index: {}]   ;;  %s814_s1 = inlined_call_operand.vmem [shape: f32[16,1], index: 1, kind: input, shape index: {}]   ;;  %s815_s2 = inlined_call_operand.vmem [shape: f32[16,1], index: 2, kind: input, shape index: {}]   ;;  %s816_s3 = inlined_call_operand.vmem [shape: f32[16,1], index: 3, kind: input, shape index: {}]   ;;  %s817_s4 = inlined_call_operand.vmem [shape: bf16[2,216,256], index: 4, kind: input, shape index: {}]   ;;  %s818_s5 = inlined_call_operand.vmem [shape: f32[2,16,256], index: 5, kind: output, shape index: {}]  }
   0x1 LB: > { %s597_s19 = sadd.s32 4294967295, %s706_s18   ;;  %p601_p0 = scmp.ge.s32.totalorder %s706_s18, 1  ;;  %s706_s18 = sphi %s739_s18, %s15_s18  }
   0x2   : > { %p187_p1 = scmp.lt.s32.totalorder %s706_s18, 3 }
   0x4   : > { %p188_p2 = pnand %p601_p0, %p187_p1 }
   0x5   : > { %p215_p3 = scmp.lt.s32.totalorder (!%p188_p2), %s597_s19, 1  ;;  %v695_v0 = vld [vmem:[%s813_s0 + $0x4] ss:$8 sps:$4 sm:$0xff] (!%p188_p2)   ;;  %vm411_vm0 = vcmask (!%p188_p2), 719872   ;;  %v708_v2 = vmov (!%p188_p2), 0   ;;  %vm415_vm1 = vcmask (!%p188_p2), 1043456  }
   0x6   : > { %191 = sbr.rel (%p188_p2) target bundleno = 524 (0x20c), region = 40  ;;  %v255_v1 = vld [vmem:[%s814_s1] sm:$0xff] (!%p188_p2)  ;;  %650 = vset.pattern.permute.xlu0 (!%p188_p2), %v708_v2  ;;  %651 = vset.pattern.permute.xlu1 (!%p188_p2), %v708_v2  ;;  %v256_v3 = vld [vmem:[%s814_s1 + $0x8] sm:$0xff] (!%p188_p2) }
   0x7   : > { %636 = vmatprep.mubr.msk.bf16.mxu0 (!%p188_p2), %vm411_vm0, %v695_v0  ;;  %259 = vperm.xlu0 (!%p188_p2), %650, %v255_v1   ;;  %v693_v34 = vld [vmem:[%s813_s0] ss:$8 sps:$4 sm:$0xff] (!%p188_p2)  }
   0x8   : > { %v502_v50 = vld [vmem:[%s815_s2] sm:$0xff] (!%p188_p2)  ;;  %v503_v51 = vld [vmem:[%s815_s2 + $0x8] sm:$0xff] (!%p188_p2) }
   0x9   : > { %v518_v52 = vld [vmem:[%s816_s3] sm:$0xff] (!%p188_p2)  ;;  %v519_v56 = vld [vmem:[%s816_s3 + $0x8] sm:$0xff] (!%p188_p2) }
   0xb   : > { %264 = vperm.xlu0 (!%p188_p2), %650, %v256_v3  }
   0xd   : > { %s820_s19 = smov (!%p215_p3, %s597_s19), 1 }
   0xe   : > { %s640_s24 = smul.u32 216, %s820_s19  ;;  %s639_s15 = sshll.u32 %s820_s19, 5 }
   0xf   : > { %s224_s20 = scalar_lea.vmem %s818_s5, %s639_s15 }
  0x10   : > { %s762_s29 = scalar_lea.vmem %s817_s4, %s640_s24 }
  0x11   : > { %v652_v4 = vld [vmem:[%s762_s29 + $0x4] ss:$8 sps:$4 sm:$0xff]   ;;  %v654_v5 = vld [vmem:[%s762_s29] ss:$8 sps:$4 sm:$0xff]   ;;  %v655_v6 = vld [vmem:[%s762_s29 + $0x14] ss:$8 sps:$4 sm:$0xff]  }
  0x12   : > { %422 = vmatprep.subr.bf16.mxu0 %v652_v4  ;;  %v657_v7 = vld [vmem:[%s762_s29 + $0x10] ss:$8 sps:$4 sm:$0xff]   ;;  %v658_v8 = vld [vmem:[%s762_s29 + $0x24] ss:$8 sps:$4 sm:$0xff]   ;;  %v660_v9 = vld [vmem:[%s762_s29 + $0x20] ss:$8 sps:$4 sm:$0xff]  }
  0x13   : > { %423 = vmatpush1.bf16.msra.mxu0 %v654_v5  ;;  %v661_v10 = vld [vmem:[%s762_s29 + $0x34] ss:$8 sps:$4 sm:$0xff]   ;;  %v663_v11 = vld [vmem:[%s762_s29 + $0x30] ss:$8 sps:$4 sm:$0xff]   ;;  %v664_v12 = vld [vmem:[%s762_s29 + $0x44] ss:$8 sps:$4 sm:$0xff]  }
  0x14   : > { %424 = vmatprep.subr.bf16.mxu0 %v655_v6  ;;  %v666_v13 = vld [vmem:[%s762_s29 + $0x40] ss:$8 sps:$4 sm:$0xff]   ;;  %v667_v14 = vld [vmem:[%s762_s29 + $0x54] ss:$8 sps:$4 sm:$0xff]   ;;  %v669_v15 = vld [vmem:[%s762_s29 + $0x50] ss:$8 sps:$4 sm:$0xff]  }
  0x15   : > { %v670_v16 = vld [vmem:[%s762_s29 + $0x64] ss:$8 sps:$4 sm:$0xff]   ;;  %v672_v17 = vld [vmem:[%s762_s29 + $0x60] ss:$8 sps:$4 sm:$0xff]   ;;  %v673_v18 = vld [vmem:[%s762_s29 + $0x74] ss:$8 sps:$4 sm:$0xff]  }
  0x16   : > { %v675_v19 = vld [vmem:[%s762_s29 + $0x70] ss:$8 sps:$4 sm:$0xff]   ;;  %v676_v20 = vld [vmem:[%s762_s29 + $0x84] ss:$8 sps:$4 sm:$0xff]   ;;  %v678_v21 = vld [vmem:[%s762_s29 + $0x80] ss:$8 sps:$4 sm:$0xff]  }
  0x17   : > { %425 = vmatpush1.bf16.msra.mxu0 %v657_v7  ;;  %v679_v22 = vld [vmem:[%s762_s29 + $0x94] ss:$8 sps:$4 sm:$0xff]   ;;  %v681_v23 = vld [vmem:[%s762_s29 + $0x90] ss:$8 sps:$4 sm:$0xff]   ;;  %v682_v24 = vld [vmem:[%s762_s29 + $0xa4] ss:$8 sps:$4 sm:$0xff]  }
  0x18   : > { %426 = vmatprep.subr.bf16.mxu0 %v658_v8  ;;  %v684_v25 = vld [vmem:[%s762_s29 + $0xa0] ss:$8 sps:$4 sm:$0xff]   ;;  %v685_v26 = vld [vmem:[%s762_s29 + $0xb4] ss:$8 sps:$4 sm:$0xff]   ;;  %v687_v27 = vld [vmem:[%s762_s29 + $0xb0] ss:$8 sps:$4 sm:$0xff]  }
  0x19   : > { %v688_v28 = vld [vmem:[%s762_s29 + $0xc4] ss:$8 sps:$4 sm:$0xff]   ;;  %v254_v29 = vld [vmem:[%s762_s29 + $0xd0] sm:$0xff]  ;;  %v690_v30 = vld [vmem:[%s762_s29 + $0xc0] ss:$8 sps:$4 sm:$0xff]  }
  0x1a   : > { %v634_v31 = vcombine.high %v254_v29, %v254_v29  ;;  %v633_v32 = vcombine.low %v254_v29, %v254_v29 }
  0x1b   : > { %427 = vmatpush1.bf16.msra.mxu0 %v660_v9 }
  0x1c   : > { %428 = vmatprep.subr.bf16.mxu0 %v661_v10  ;;  %v417_v33 = vsel %vm415_vm1, %v633_v32, 0 }
  0x1f   : > { %429 = vmatpush1.bf16.msra.mxu0 %v663_v11 }
  0x20   : > { %430 = vmatprep.subr.bf16.mxu0 %v664_v12 }
  0x23   : > { %431 = vmatpush1.bf16.msra.mxu0 %v666_v13 }
  0x24   : > { %432 = vmatprep.subr.bf16.mxu0 %v667_v14 }
  0x27   : > { %433 = vmatpush1.bf16.msra.mxu0 %v669_v15 }
  0x28   : > { %434 = vmatprep.subr.bf16.mxu0 %v670_v16 }
  0x2b   : > { %435 = vmatpush1.bf16.msra.mxu0 %v672_v17 }
  0x2c   : > { %436 = vmatprep.subr.bf16.mxu0 %v673_v18 }
  0x2f   : > { %437 = vmatpush1.bf16.msra.mxu0 %v675_v19 }
  0x30   : > { %438 = vmatprep.subr.bf16.mxu0 %v676_v20 }
  0x33   : > { %439 = vmatpush1.bf16.msra.mxu0 %v678_v21 }
  0x34   : > { %440 = vmatprep.subr.bf16.mxu0 %v679_v22 }
  0x37   : > { %441 = vmatpush1.bf16.msra.mxu0 %v681_v23 }
  0x38   : > { %442 = vmatprep.subr.bf16.mxu0 %v682_v24 }
  0x3b   : > { %443 = vmatpush1.bf16.msra.mxu0 %v684_v25 }
  0x3c   : > { %444 = vmatprep.subr.bf16.mxu0 %v685_v26 }
  0x3f   : > { %445 = vmatpush1.bf16.msra.mxu0 %v687_v27 }
  0x40   : > { %446 = vmatprep.subr.bf16.mxu0 %v688_v28 }
  0x43   : > { %447 = vmatpush1.bf16.msra.mxu0 %v690_v30 }
  0x44   : > { %635 = vmatprep.subr.msk.bf16.mxu0 %vm415_vm1, %v634_v31 }
  0x47   : > { %449 = vmatpush1.bf16.msra.mxu0 %v417_v33 }
  0x4a   : > { %455 = vmatmul.mubr.bf16.vlgmr.msra.gmra.mrb[0].mxu0 %v693_v34 }
  0x86   : > { %v260_v35 = vpop.permute.xlu0 %259 }
  0x8a   : > { %v265_v38 = vpop.permute.xlu0 %264 }
 0x11d   : > { %v456_v36 = vpop.f32.mrb[0].mxu0 }
 0x11e   : > { %v457_v37 = vadd.f32 %v456_v36, %v260_v35  ;;  %v458_v39 = vpop.f32.mrb[1].mxu0 }
 0x11f   : > { %v459_v40 = vadd.f32 %v458_v39, %v260_v35  ;;  %v460_v41 = vpop.f32.mrb[2].mxu0 }
 0x120   : > { %v462_v42 = vpop.f32.mrb[3].mxu0  ;;  %v474_v43 = vmul.f32 %v457_v37, %v457_v37  ;;  %v461_v44 = vadd.f32 %v460_v41, %v265_v38 }
 0x121   : > { %v463_v45 = vadd.f32 %v462_v42, %v265_v38  ;;  %v465_v46 = vadd.f32 %v459_v40, %v457_v37  ;;  %v475_v47 = vmul.f32 %v459_v40, %v459_v40 }
 0x122   : > { %v476_v53 = vmul.f32 %v461_v44, %v461_v44 }
 0x123   : > { %466 = vadd.xlane.f32.xlu1 %v465_v46  ;;  %v478_v48 = vadd.f32 %v475_v47, %v474_v43  ;;  %v468_v49 = vadd.f32 %v463_v45, %v461_v44  ;;  %v477_v54 = vmul.f32 %v463_v45, %v463_v45 }
 0x125   : > { %479 = vadd.xlane.f32.xlu0 %v478_v48  ;;  %v481_v55 = vadd.f32 %v477_v54, %v476_v53 }
 0x127   : > { %469 = vadd.xlane.f32.xlu1 %v468_v49 }
 0x138   : > { %506 = vperm.xlu1 %651, %v502_v50  }
 0x13c   : > { %511 = vperm.xlu1 %651, %v503_v51  }
 0x140   : > { %522 = vperm.xlu1 %651, %v518_v52  }
 0x164   : > { %482 = vadd.xlane.f32.xlu1 %v481_v55 }
 0x175   : > { %527 = vperm.xlu1 %651, %v519_v56  }
 0x1b0   : > { %v467_v57 = vpop.xlane.xlu1 %466 }
 0x1b1   : > { %v472_v58 = vmul.f32 0.00390625, %v467_v57 }
 0x1b2   : > { %v480_v59 = vpop.xlane.xlu0 %479 }
 0x1b3   : > { %v484_v60 = vmul.f32 0.00390625, %v480_v59  ;;  %v486_v61 = vmul.f32 %v472_v58, %v472_v58  ;;  %v490_v3 = vsub.f32 %v457_v37, %v472_v58  ;;  %v491_v4 = vsub.f32 %v459_v40, %v472_v58 }
 0x1b4   : > { %v470_v63 = vpop.xlane.xlu1 %469 }
 0x1b5   : > { %v488_v62 = vsub.f32 %v484_v60, %v486_v61  ;;  %v473_v15 = vmul.f32 0.00390625, %v470_v63 }
 0x1b7   : > { %v494_v0 = vadd.f32 1e-05, %v488_v62  ;;  %v487_v17 = vmul.f32 %v473_v15, %v473_v15  ;;  %v492_v21 = vsub.f32 %v461_v44, %v473_v15  ;;  %v493_v22 = vsub.f32 %v463_v45, %v473_v15 }
 0x1b8   : > { %v507_v1 = vpop.permute.xlu1 %506 }
 0x1b9   : > { %696 = vrsqrt.f32 %v494_v0 }
 0x1bc   : > { %v512_v2 = vpop.permute.xlu1 %511 }
 0x1c0   : > { %v523_v10 = vpop.permute.xlu1 %522 }
 0x1c3   : > { %v697_v5 = vpop.eup %696 }
 0x1c4   : > { %v498_v6 = vmul.f32 %v697_v5, %v490_v3  ;;  %v499_v7 = vmul.f32 %v697_v5, %v491_v4 }
 0x1c6   : > { %v514_v8 = vmul.f32 %v507_v1, %v498_v6  ;;  %v515_v9 = vmul.f32 %v507_v1, %v499_v7 }
 0x1c8   : > { %v530_v11 = vadd.f32 %v523_v10, %v514_v8  ;;  %v531_v12 = vadd.f32 %v523_v10, %v515_v9 }
 0x1ca   : > { %v534_v13 = vmax.f32 %v530_v11, 0.0  ;;  %v535_v14 = vmax.f32 %v531_v12, 0.0 }
 0x1cc   : > { %538 = vst [vmem:[%s224_s20] sm:$0xff] %v534_v13  ;;  %539 = vst [vmem:[%s224_s20 + $0x8] sm:$0xff] %v535_v14 }
 0x1f1   : > { %v483_v16 = vpop.xlane.xlu1 %482 }
 0x1f2   : > { %v485_v18 = vmul.f32 0.00390625, %v483_v16 }
 0x1f4   : > { %v489_v19 = vsub.f32 %v485_v18, %v487_v17 }
 0x1f5   : > { %v528_v28 = vpop.permute.xlu1 %527 }
 0x1f6   : > { %v495_v20 = vadd.f32 1e-05, %v489_v19 }
 0x1f8   : > { %698 = vrsqrt.f32 %v495_v20 }
 0x202   : > { %v699_v23 = vpop.eup %698 }
 0x203   : > { %v500_v24 = vmul.f32 %v699_v23, %v492_v21  ;;  %v501_v25 = vmul.f32 %v699_v23, %v493_v22 }
 0x205   : > { %v516_v26 = vmul.f32 %v512_v2, %v500_v24  ;;  %v517_v27 = vmul.f32 %v512_v2, %v501_v25 }
 0x207   : > { %v532_v29 = vadd.f32 %v528_v28, %v516_v26  ;;  %v533_v30 = vadd.f32 %v528_v28, %v517_v27 }
 0x209   : > { %v536_v31 = vmax.f32 %v532_v29, 0.0  ;;  %v537_v32 = vmax.f32 %v533_v30, 0.0 }
 0x20b   : > { %540 = vst [vmem:[%s224_s20 + $0x10] sm:$0xff] %v536_v31  ;;  %541 = vst [vmem:[%s224_s20 + $0x18] sm:$0xff] %v537_v32 }
 0x20c PF: > { %s15_s18 = sadd.s32 1, %s706_s18  }
 0x20d   : > { %p12_p4 = scmp.ge.s32.totalorder %s15_s18, 4  }
 0x20f   :  { %14 = sbr.rel (!%p12_p4) target bundleno = 1 (0x1), region = 70 }

// kernel: _lambda_.13
= control target key start
LH: loop header
LB: loop body
LE: loop exit
PB: predicated region body
PF: predicated region fallthrough
CT: control target
= control target key end

     0   :  { %10 = vsyncpa [#allocation3], 0  ;;  %s1318_s0 = inlined_call_operand.vmem [shape: bf16[16,432], index: 0, kind: input, shape index: {}]   ;;  %s1319_s1 = inlined_call_operand.vmem [shape: f32[16,1], index: 1, kind: input, shape index: {}]   ;;  %s1320_s2 = inlined_call_operand.vmem [shape: bf16[2,432,256], index: 2, kind: input, shape index: {}]   ;;  %s1321_s3 = inlined_call_operand.vmem [shape: f32[2,16,256], index: 3, kind: output, shape index: {0}]   ;;  %s1322_s4 = inlined_call_operand.hbm [shape: f32[2,16,1], index: 4, kind: output, shape index: {1}]  }
   0x1   :  { %12 = vsyncpa [#allocation3 + $0x1], 0  ;;  %s1134_s15 = smov 0   ;;  %s1136_s16 = smov 0  }
   0x2   :  { %s1138_s17 = smov 0   ;;  %s1140_s18 = smov 0  }
   0x3 LB: > { %s1155_s19 = sadd.s32 4294967295, %s1103_s18   ;;  %s824_s20 = sadd.s32 4294967294, %s1103_s18   ;;  %s1103_s18 = sphi %s1140_s18, %s1328_s18   ;;  %s1099_s17 = sphi %s1138_s17, %s1327_s17   ;;  %s1095_s16 = sphi %s1136_s16, %s1326_s16   ;;  %s1091_s15 = sphi %s1134_s15, %s1325_s15  }
   0x4   : > { %s1159_s21 = sadd.s32 1, %s1103_s18   ;;  %s119_s22 = sadd.s32 1, %s1099_s17 }
   0x5   : > { %s116_s23 = ssub.s32 %s1103_s18, %s1159_s21  ;;  %p129_p0 = scmp.ne.s32.totalorder %s1099_s17, %s1095_s16 }
   0x6   : > { %p117_p1 = scmp.eq.s32.totalorder %s116_s23, 0  ;;  %p130_p2 = scmp.eq.s32.totalorder %s1155_s19, 1 }
   0x7   : > { %p135_p3 = scmp.ne.s32.totalorder %s1095_s16, %s1091_s15  ;;  %p136_p4 = scmp.eq.s32.totalorder %s824_s20, 1 }
   0x8   : > { %s1170_s24 = scalar_select %p117_p1, %s1099_s17, %s119_s22  }
   0x9   : > { %p1172_p5 = por %p130_p2, %p129_p0  ;;  %p1176_p6 = por %p136_p4, %p135_p3 }
   0xa   : > { %p827_p7 = scmp.ge.s32.totalorder %s1103_s18, 1  ;;  %p168_p8 = scmp.lt.s32.totalorder %s1103_s18, 3 }
   0xc   : > { %p169_p9 = pnand %p827_p7, %p168_p8 }
   0xd   : > { %p199_p10 = scmp.lt.s32.totalorder (!%p169_p9), %s1155_s19, 1  ;;  %vm569_vm0 = vcmask (!%p169_p9), 392192   ;;  %v1033_v0 = vld [vmem:[%s1318_s0 + $0xc] ss:$16 sps:$4 sm:$0xff] (!%p169_p9)   ;;  %v1036_v1 = vld [vmem:[%s1318_s0 + $0x4] ss:$16 sps:$4 sm:$0xff] (!%p169_p9)  }
   0xe   : > { %172 = sbr.rel (%p169_p9) target bundleno = 642 (0x282), region = 32  ;;  %v1105_v2 = vmov (!%p169_p9), 0   ;;  %v268_v3 = vld [vmem:[%s1319_s1] sm:$0xff] (!%p169_p9)  ;;  %890 = vmatprep.mubr.msk.bf16.mxu0 (!%p169_p9), %vm569_vm0, %v1033_v0  ;;  %605 = vmatprep.mubr.bf16.mxu1 (!%p169_p9), %v1036_v1  ;;  %v269_v4 = vld [vmem:[%s1319_s1 + $0x8] sm:$0xff] (!%p169_p9)  ;;  %vm712_vm1 = vcmask (!%p169_p9), 7168   ;;  %s897_s9 = sshll.u32 (!%p169_p9), %s1155_s19, 8 }
   0xf   : > { %949 = vset.pattern.permute.xlu0 (!%p169_p9), %v1105_v2  ;;  %v1031_v54 = vld [vmem:[%s1318_s0 + $0x8] ss:$16 sps:$4 sm:$0xff] (!%p169_p9)   ;;  %v1034_v60 = vld [vmem:[%s1318_s0] ss:$16 sps:$4 sm:$0xff] (!%p169_p9)   ;;  %s1275_s12 = scalar_lea.hbm (!%p169_p9), %s1322_s4, %s897_s9 }
  0x10   : > { %272 = vperm.xlu0 (!%p169_p9), %949, %v268_v3  }
  0x14   : > { %277 = vperm.xlu0 (!%p169_p9), %949, %v269_v4  }
  0x15   : > { %s1187_s29 = scalar_select %p199_p10, %s1155_s19, 1 }
  0x16   : > { %s1106_s19 = smov [#allocation2]  }
  0x17   : > { %s906_s8 = smul.u32 432, %s1187_s29  ;;  %s896_s27 = sshll.u32 %s1187_s29, 5 }
  0x18   : > { %s208_s5 = scalar_lea.vmem %s1321_s3, %s896_s27  ;;  %s196_s29 = sand.u32 1, %s1095_s16  }
  0x19   : > { %s1202_s13 = scalar_lea.vmem %s1320_s2, %s906_s8  ;;  %s828_s6 = sshll.u32 %s196_s29, 4 }
  0x1a   : > { %v950_v5 = vld [vmem:[%s1202_s13 + $0x4] ss:$8 sps:$4 sm:$0xff]   ;;  %v952_v6 = vld [vmem:[%s1202_s13] ss:$8 sps:$4 sm:$0xff]   ;;  %v953_v7 = vld [vmem:[%s1202_s13 + $0x14] ss:$8 sps:$4 sm:$0xff]  }
  0x1b   : > { %573 = vmatprep.subr.bf16.mxu1 %v950_v5  ;;  %v955_v8 = vld [vmem:[%s1202_s13 + $0x10] ss:$8 sps:$4 sm:$0xff]   ;;  %v956_v9 = vld [vmem:[%s1202_s13 + $0x24] ss:$8 sps:$4 sm:$0xff]   ;;  %v958_v10 = vld [vmem:[%s1202_s13 + $0x20] ss:$8 sps:$4 sm:$0xff]  }
  0x1c   : > { %574 = vmatpush1.bf16.msra.mxu1 %v952_v6  ;;  %v965_v11 = vld [vmem:[%s1202_s13 + $0x104] ss:$8 sps:$4 sm:$0xff]   ;;  %v959_v12 = vld [vmem:[%s1202_s13 + $0x34] ss:$8 sps:$4 sm:$0xff]   ;;  %v969_v13 = vld [vmem:[%s1202_s13 + $0x100] ss:$8 sps:$4 sm:$0xff]  }
  0x1d   : > { %575 = vmatprep.subr.bf16.mxu1 %v953_v7  ;;  %616 = vmatprep.subr.bf16.mxu0 %v965_v11  ;;  %v971_v14 = vld [vmem:[%s1202_s13 + $0x114] ss:$8 sps:$4 sm:$0xff]   ;;  %v961_v15 = vld [vmem:[%s1202_s13 + $0x30] ss:$8 sps:$4 sm:$0xff]   ;;  %v962_v16 = vld [vmem:[%s1202_s13 + $0x44] ss:$8 sps:$4 sm:$0xff]  }
  0x1e   : > { %617 = vmatpush1.bf16.msra.mxu0 %v969_v13  ;;  %v975_v17 = vld [vmem:[%s1202_s13 + $0x110] ss:$8 sps:$4 sm:$0xff]   ;;  %v977_v18 = vld [vmem:[%s1202_s13 + $0x124] ss:$8 sps:$4 sm:$0xff]   ;;  %v964_v19 = vld [vmem:[%s1202_s13 + $0x40] ss:$8 sps:$4 sm:$0xff]  }
  0x1f   : > { %618 = vmatprep.subr.bf16.mxu0 %v971_v14  ;;  %v981_v20 = vld [vmem:[%s1202_s13 + $0x120] ss:$8 sps:$4 sm:$0xff]   ;;  %v983_v21 = vld [vmem:[%s1202_s13 + $0x134] ss:$8 sps:$4 sm:$0xff]   ;;  %v987_v23 = vld [vmem:[%s1202_s13 + $0x130] ss:$8 sps:$4 sm:$0xff]  }
  0x20   : > { %576 = vmatpush1.bf16.msra.mxu1 %v955_v8  ;;  %v967_v22 = vld [vmem:[%s1202_s13 + $0x54] ss:$8 sps:$4 sm:$0xff]   ;;  %v970_v24 = vld [vmem:[%s1202_s13 + $0x50] ss:$8 sps:$4 sm:$0xff]   ;;  %v989_v25 = vld [vmem:[%s1202_s13 + $0x144] ss:$8 sps:$4 sm:$0xff]  }
  0x21   : > { %577 = vmatprep.subr.bf16.mxu1 %v956_v9  ;;  %v973_v26 = vld [vmem:[%s1202_s13 + $0x64] ss:$8 sps:$4 sm:$0xff]   ;;  %v976_v27 = vld [vmem:[%s1202_s13 + $0x60] ss:$8 sps:$4 sm:$0xff]   ;;  %v995_v29 = vld [vmem:[%s1202_s13 + $0x154] ss:$8 sps:$4 sm:$0xff]  }
  0x22   : > { %619 = vmatpush1.bf16.msra.mxu0 %v975_v17  ;;  %v993_v28 = vld [vmem:[%s1202_s13 + $0x140] ss:$8 sps:$4 sm:$0xff]   ;;  %v979_v30 = vld [vmem:[%s1202_s13 + $0x74] ss:$8 sps:$4 sm:$0xff]   ;;  %v999_v31 = vld [vmem:[%s1202_s13 + $0x150] ss:$8 sps:$4 sm:$0xff]  }
  0x23   : > { %620 = vmatprep.subr.bf16.mxu0 %v977_v18  ;;  %v982_v32 = vld [vmem:[%s1202_s13 + $0x70] ss:$8 sps:$4 sm:$0xff]   ;;  %v1001_v33 = vld [vmem:[%s1202_s13 + $0x164] ss:$8 sps:$4 sm:$0xff]   ;;  %v988_v35 = vld [vmem:[%s1202_s13 + $0x80] ss:$8 sps:$4 sm:$0xff]  }
  0x24   : > { %578 = vmatpush1.bf16.msra.mxu1 %v958_v10  ;;  %v985_v34 = vld [vmem:[%s1202_s13 + $0x84] ss:$8 sps:$4 sm:$0xff]   ;;  %v1005_v36 = vld [vmem:[%s1202_s13 + $0x160] ss:$8 sps:$4 sm:$0xff]   ;;  %v1007_v37 = vld [vmem:[%s1202_s13 + $0x174] ss:$8 sps:$4 sm:$0xff]  }
  0x25   : > { %579 = vmatprep.subr.bf16.mxu1 %v959_v12  ;;  %v991_v38 = vld [vmem:[%s1202_s13 + $0x94] ss:$8 sps:$4 sm:$0xff]   ;;  %v1011_v39 = vld [vmem:[%s1202_s13 + $0x170] ss:$8 sps:$4 sm:$0xff]   ;;  %v1013_v41 = vld [vmem:[%s1202_s13 + $0x184] ss:$8 sps:$4 sm:$0xff]  }
  0x26   : > { %621 = vmatpush1.bf16.msra.mxu0 %v981_v20  ;;  %v994_v40 = vld [vmem:[%s1202_s13 + $0x90] ss:$8 sps:$4 sm:$0xff]   ;;  %v997_v42 = vld [vmem:[%s1202_s13 + $0xa4] ss:$8 sps:$4 sm:$0xff]   ;;  %v1017_v43 = vld [vmem:[%s1202_s13 + $0x180] ss:$8 sps:$4 sm:$0xff]  }
  0x27   : > { %622 = vmatprep.subr.bf16.mxu0 %v983_v21  ;;  %v1000_v44 = vld [vmem:[%s1202_s13 + $0xa0] ss:$8 sps:$4 sm:$0xff]   ;;  %v1019_v45 = vld [vmem:[%s1202_s13 + $0x194] ss:$8 sps:$4 sm:$0xff]   ;;  %v1023_v47 = vld [vmem:[%s1202_s13 + $0x190] ss:$8 sps:$4 sm:$0xff]  }
  0x28   : > { %580 = vmatpush1.bf16.msra.mxu1 %v961_v15  ;;  %v1003_v46 = vld [vmem:[%s1202_s13 + $0xb4] ss:$8 sps:$4 sm:$0xff]   ;;  %v1006_v48 = vld [vmem:[%s1202_s13 + $0xb0] ss:$8 sps:$4 sm:$0xff]   ;;  %v1025_v49 = vld [vmem:[%s1202_s13 + $0x1a4] ss:$8 sps:$4 sm:$0xff]  }
  0x29   : > { %581 = vmatprep.subr.bf16.mxu1 %v962_v16  ;;  %v1009_v50 = vld [vmem:[%s1202_s13 + $0xc4] ss:$8 sps:$4 sm:$0xff]   ;;  %v1029_v51 = vld [vmem:[%s1202_s13 + $0x1a0] ss:$8 sps:$4 sm:$0xff]   ;;  %v1015_v53 = vld [vmem:[%s1202_s13 + $0xd4] ss:$8 sps:$4 sm:$0xff]  }
  0x2a   : > { %623 = vmatpush1.bf16.msra.mxu0 %v987_v23  ;;  %v1012_v52 = vld [vmem:[%s1202_s13 + $0xc0] ss:$8 sps:$4 sm:$0xff]   ;;  %v1018_v55 = vld [vmem:[%s1202_s13 + $0xd0] ss:$8 sps:$4 sm:$0xff]   ;;  %v1021_v56 = vld [vmem:[%s1202_s13 + $0xe4] ss:$8 sps:$4 sm:$0xff]  }
  0x2b   : > { %624 = vmatprep.subr.bf16.mxu0 %v989_v25  ;;  %v1024_v57 = vld [vmem:[%s1202_s13 + $0xe0] ss:$8 sps:$4 sm:$0xff]   ;;  %v1027_v58 = vld [vmem:[%s1202_s13 + $0xf4] ss:$8 sps:$4 sm:$0xff]   ;;  %v1030_v59 = vld [vmem:[%s1202_s13 + $0xf0] ss:$8 sps:$4 sm:$0xff]  }
  0x2c   : > { %582 = vmatpush1.bf16.msra.mxu1 %v964_v19  ;;  %s198_s7 = scalar_lea.vmem [#allocation2], %s828_s6  ;;  %s1277_s13 = scalar_lea.sflag [#allocation3], %s196_s29 }
  0x2d   : > { %583 = vmatprep.subr.bf16.mxu1 %v967_v22  ;;  %s737_s8 = sshll.u32 %s198_s7, 4  ;;  %s1045_s20 = sshll.u32 %s1106_s19, 4  ;;  %s1270_s8 = int_to_ptr.vmem [resolvable:$true] %s737_s8  ;;  %s1046_s20 = int_to_ptr.vmem [resolvable:$false] %s1045_s20 }
  0x2e   : > { %625 = vmatpush1.bf16.msra.mxu0 %v993_v28  ;;  %s1041_s14 = scalar_lea.vmem %s1270_s8, 256  ;;  %s1047_s22 = scalar_lea.vmem %s1046_s20, 512 }
  0x2f   : > { %626 = vmatprep.subr.bf16.mxu0 %v995_v29  ;;  %p1042_p11 = scmp.ne.s32.totalorder %s1270_s8, %s1041_s14  ;;  %p1048_p0 = scmp.lt.s32.totalorder %s1270_s8, %s1046_s20 }
  0x30   : > { %584 = vmatpush1.bf16.msra.mxu1 %v970_v24  ;;  %p1049_p1 = scmp.lt.s32.totalorder %s1047_s22, %s1041_s14 }
  0x31   : > { %585 = vmatprep.subr.bf16.mxu1 %v973_v26  ;;  %p1043_p12 = pnand %p1042_p11, %p1172_p5 }
  0x32   : > { %627 = vmatpush1.bf16.msra.mxu0 %v999_v31  ;;  %p1050_p2 = por %p1049_p1, %p1048_p0 }
  0x33   : > { %628 = vmatprep.subr.bf16.mxu0 %v1001_v33  ;;  %p1044_p13 = pneg %p1043_p12 }
  0x34   : > { %586 = vmatpush1.bf16.msra.mxu1 %v976_v27 }
  0x35   : > { %587 = vmatprep.subr.bf16.mxu1 %v979_v30  ;;  %p1051_p3 = pnand %p1050_p2, %p1044_p13 }
  0x36   : > { %629 = vmatpush1.bf16.msra.mxu0 %v1005_v36 }
  0x37   : > { %630 = vmatprep.subr.bf16.mxu0 %v1007_v37 }
  0x38   : > { %588 = vmatpush1.bf16.msra.mxu1 %v982_v32 }
  0x39   : > { %589 = vmatprep.subr.bf16.mxu1 %v985_v34 }
  0x3a   : > { %631 = vmatpush1.bf16.msra.mxu0 %v1011_v39 }
  0x3b   : > { %632 = vmatprep.subr.bf16.mxu0 %v1013_v41 }
  0x3c   : > { %590 = vmatpush1.bf16.msra.mxu1 %v988_v35 }
  0x3d   : > { %591 = vmatprep.subr.bf16.mxu1 %v991_v38 }
  0x3e   : > { %633 = vmatpush1.bf16.msra.mxu0 %v1017_v43 }
  0x3f   : > { %634 = vmatprep.subr.bf16.mxu0 %v1019_v45 }
  0x40   : > { %592 = vmatpush1.bf16.msra.mxu1 %v994_v40 }
  0x41   : > { %593 = vmatprep.subr.bf16.mxu1 %v997_v42 }
  0x42   : > { %635 = vmatpush1.bf16.msra.mxu0 %v1023_v47 }
  0x43   : > { %636 = vmatprep.subr.bf16.mxu0 %v1025_v49 }
  0x44   : > { %594 = vmatpush1.bf16.msra.mxu1 %v1000_v44 }
  0x45   : > { %595 = vmatprep.subr.bf16.mxu1 %v1003_v46 }
  0x46   : > { %637 = vmatpush1.bf16.msra.mxu0 %v1029_v51 }
  0x48   : > { %596 = vmatpush1.bf16.msra.mxu1 %v1006_v48 }
  0x49   : > { %597 = vmatprep.subr.bf16.mxu1 %v1009_v50  ;;  %649 = vmatmul.mubr.bf16.vlgmr.msra.gmra.mrb[0].mxu0 %v1031_v54 }
  0x4c   : > { %598 = vmatpush1.bf16.msra.mxu1 %v1012_v52 }
  0x4d   : > { %599 = vmatprep.subr.bf16.mxu1 %v1015_v53 }
  0x50   : > { %600 = vmatpush1.bf16.msra.mxu1 %v1018_v55 }
  0x51   : > { %601 = vmatprep.subr.bf16.mxu1 %v1021_v56 }
  0x54   : > { %602 = vmatpush1.bf16.msra.mxu1 %v1024_v57 }
  0x55   : > { %603 = vmatprep.subr.bf16.mxu1 %v1027_v58 }
  0x58   : > { %604 = vmatpush1.bf16.msra.mxu1 %v1030_v59 }
  0x5b   : > { %606 = vmatmul.mubr.bf16.vlgmr.msra.gmra.mrb[0].mxu1 %v1034_v60 }
  0x8f   : > { %v273_v1 = vpop.permute.xlu0 %272 }
  0x93   : > { %v278_v3 = vpop.permute.xlu0 %277 }
 0x11c   : > { %v650_v61 = vpop.f32.mrb[0].mxu0 }
 0x11d   : > { %v652_v62 = vpop.f32.mrb[1].mxu0 }
 0x11e   : > { %v654_v63 = vpop.f32.mrb[2].mxu0 }
 0x11f   : > { %v656_v0 = vpop.f32.mrb[3].mxu0 }
 0x12e   : > { %v607_v2 = vpop.f32.mrb[0].mxu1 }
 0x12f   : > { %v608_v4 = vadd.f32 %v607_v2, %v273_v1  ;;  %v609_v5 = vpop.f32.mrb[1].mxu1 }
 0x130   : > { %v610_v6 = vadd.f32 %v609_v5, %v273_v1  ;;  %v611_v7 = vpop.f32.mrb[2].mxu1 }
 0x131   : > { %v651_v8 = vadd.f32 %v650_v61, %v608_v4  ;;  %v612_v9 = vadd.f32 %v611_v7, %v278_v3  ;;  %v613_v10 = vpop.f32.mrb[3].mxu1 }
 0x132   : > { %v653_v11 = vadd.f32 %v652_v62, %v610_v6  ;;  %v614_v12 = vadd.f32 %v613_v10, %v278_v3 }
 0x133   : > { %v655_v13 = vadd.f32 %v654_v63, %v612_v9  ;;  %v668_v14 = vmul.f32 %v651_v8, %v651_v8 }
 0x134   : > { %v657_v15 = vadd.f32 %v656_v0, %v614_v12  ;;  %v659_v16 = vadd.f32 %v653_v11, %v651_v8  ;;  %v669_v17 = vmul.f32 %v653_v11, %v653_v11 }
 0x135   : > { %v670_v20 = vmul.f32 %v655_v13, %v655_v13 }
 0x136   : > { %660 = vadd.xlane.f32.xlu1 %v659_v16  ;;  %v672_v18 = vadd.f32 %v669_v17, %v668_v14  ;;  %v662_v19 = vadd.f32 %v657_v15, %v655_v13  ;;  %v671_v21 = vmul.f32 %v657_v15, %v657_v15 }
 0x138   : > { %673 = vadd.xlane.f32.xlu0 %v672_v18  ;;  %v675_v22 = vadd.f32 %v671_v21, %v670_v20 }
 0x13a   : > { %663 = vadd.xlane.f32.xlu1 %v662_v19 }
 0x13e   : > { %676 = vadd.xlane.f32.xlu1 %v675_v22 }
 0x1c3   : > { %v661_v23 = vpop.xlane.xlu1 %660 }
 0x1c4   : > { %v666_v24 = vmul.f32 0.00390625, %v661_v23 }
 0x1c5   : > { %v674_v25 = vpop.xlane.xlu0 %673 }
 0x1c6   : > { %v678_v26 = vmul.f32 0.00390625, %v674_v25  ;;  %v680_v27 = vmul.f32 %v666_v24, %v666_v24  ;;  %v684_v37 = vsub.f32 %v651_v8, %v666_v24  ;;  %v685_v38 = vsub.f32 %v653_v11, %v666_v24 }
 0x1c7   : > { %v664_v28 = vpop.xlane.xlu1 %663 }
 0x1c8   : > { %v682_v29 = vsub.f32 %v678_v26, %v680_v27  ;;  %v667_v30 = vmul.f32 0.00390625, %v664_v28 }
 0x1ca   : > { %v688_v31 = vadd.f32 1e-05, %v682_v29  ;;  %v681_v33 = vmul.f32 %v667_v30, %v667_v30  ;;  %v686_v44 = vsub.f32 %v655_v13, %v667_v30  ;;  %v687_v45 = vsub.f32 %v657_v15, %v667_v30 }
 0x1cb   : > { %v677_v32 = vpop.xlane.xlu1 %676 }
 0x1cc   : > { %1037 = vrsqrt.f32 %v688_v31  ;;  %v679_v34 = vmul.f32 0.00390625, %v677_v32 }
 0x1ce   : > { %v683_v35 = vsub.f32 %v679_v34, %v681_v33 }
 0x1d0   : > { %v689_v36 = vadd.f32 1e-05, %v683_v35 }
 0x1d2   : > { %1039 = vrsqrt.f32 %v689_v36 }
 0x1d6   : > { %v1038_v39 = vpop.eup %1037 }
 0x1d7   : > { %v692_v40 = vmul.f32 %v1038_v39, %v684_v37  ;;  %v693_v41 = vmul.f32 %v1038_v39, %v685_v38 }
 0x1d9   : > { %v696_v42 = vmax.f32 %v692_v40, 0.0  ;;  %v697_v43 = vmax.f32 %v693_v41, 0.0 }
 0x1db   : > { %701 = vst [vmem:[%s208_s5 + $0x8] sm:$0xff] %v697_v43  ;;  %v704_v46 = vadd.f32 %v697_v43, %v696_v42  ;;  %700 = vst [vmem:[%s208_s5] sm:$0xff] %v696_v42 }
 0x1dc   : > { %v1040_v47 = vpop.eup %1039 }
 0x1dd   : > { %705 = vadd.xlane.f32.xlu1 %v704_v46  ;;  %v694_v48 = vmul.f32 %v1040_v47, %v686_v44  ;;  %v695_v49 = vmul.f32 %v1040_v47, %v687_v45 }
 0x1df   : > { %v698_v50 = vmax.f32 %v694_v48, 0.0  ;;  %v699_v51 = vmax.f32 %v695_v49, 0.0 }
 0x1e1   : > { %703 = vst [vmem:[%s208_s5 + $0x18] sm:$0xff] %v699_v51  ;;  %v707_v52 = vadd.f32 %v699_v51, %v698_v50  ;;  %702 = vst [vmem:[%s208_s5 + $0x10] sm:$0xff] %v698_v50 }
 0x1e3   : > { %708 = vadd.xlane.f32.xlu1 %v707_v52 }
 0x26a   : > { %v706_v53 = vpop.xlane.xlu1 %705 }
 0x26b   : > { %v710_v54 = vmul.f32 0.00390625, %v706_v53 }
 0x26d   : > { %713 = vst.msk [vmem:[%s198_s7] sm:$0xff] %vm712_vm1, %v710_v54 }
 0x270   : > { %v709_v55 = vpop.xlane.xlu1 %708 }
 0x271   : > { %v711_v56 = vmul.f32 0.00390625, %v709_v55 }
 0x273   : > { %714 = vst.msk [vmem:[%s198_s7 + $0x8] sm:$0xff] %vm712_vm1, %v711_v56 }
 0x274   : > { %1054 = shalt.err (!%p1051_p3)
}
 0x275   : > { %s1055_s23 = scalar_lea.hbm %s1275_s12, 256  ;;  %s1059_s30 = scalar_lea.hbm %s1322_s4, 512 }
 0x276   : > { %p1056_p4 = scmp.ne.s32.totalorder %s1275_s12, %s1055_s23  ;;  %p1060_p9 = scmp.lt.u32.totalorder %s1275_s12, %s1322_s4 }
 0x277   : > { %p1061_p10 = scmp.lt.u32.totalorder %s1059_s30, %s1055_s23  ;;  %p1063_p12 = scmp.lt.u32.totalorder %s1055_s23, %s1275_s12 }
 0x278   : > { %p1057_p7 = pnand %p1056_p4, %p1172_p5 }
 0x279   : > { %p1062_p11 = por %p1061_p10, %p1060_p9 }
 0x27a   : > { %p1058_p8 = pneg %p1057_p7 }
 0x27b   : > { %p1064_p13 = por %p1063_p12, %p1062_p11 }
 0x27d   : > { %p1065_p0 = pnand %p1064_p13, %p1058_p8 }
 0x27f   : > { %1068 = shalt.err (!%p1065_p0)
}
 0x280   : > { %s1107_s6 = smov 128   ;;  %s1108_s7 = smov 8  }
 0x281   : > { %907 = dma.vmem_to_hbm [thread:$0]  (%p1172_p5), %s1270_s8, 256, %s1275_s12, %s1277_s13, %s1107_s6, %s1107_s6, %s1108_s7  }
 0x282 PF: > { %p913_p1 = scmp.ge.s32.totalorder %s1103_s18, 2  ;;  %s760_s9 = sand.u32 1, %s1091_s15  }
 0x283   : > { %s761_s10 = scalar_lea.sflag [#allocation3], %s760_s9 }
 0x284   : > { %p910_p2 = pnand %p913_p1, %p1176_p6 }
 0x286   : > { %1086 = dma.done.wait (!%p910_p2), %s761_s10, 256  }
 0x287   : > { %1088 = vsyncadd (!%p910_p2), %s761_s10, 4294967040  ;;  %p15_p3 = scmp.ge.s32.totalorder %s1159_s21, 4   ;;  %s1325_s15 = smov %s1095_s16 }
 0x288   : > { %s1326_s16 = smov %s1099_s17  ;;  %s1327_s17 = smov %s1170_s24 }
 0x289   : > { %s1328_s18 = smov %s1159_s21  ;;  %17 = sbr.rel (!%p15_p3) target bundleno = 3 (0x3), region = 79 }
 0x290   :  { %766 = vsyncpa [#allocation3], 1 }
 0x291   :  { %768 = vsyncpa [#allocation3 + $0x1], 1 }

// kernel: _lambda_.14
= control target key start
LH: loop header
LB: loop body
LE: loop exit
PB: predicated region body
PF: predicated region fallthrough
CT: control target
= control target key end

     0   :  { %s1022_s15 = smov 0   ;;  %s1121_s0 = inlined_call_operand.vmem [shape: bf16[16,432], index: 0, kind: input, shape index: {}]   ;;  %s1122_s1 = inlined_call_operand.vmem [shape: f32[16,1], index: 1, kind: input, shape index: {}]   ;;  %s1123_s2 = inlined_call_operand.vmem [shape: bf16[2,432,256], index: 2, kind: input, shape index: {}]   ;;  %s1124_s3 = inlined_call_operand.vmem [shape: f32[2,16,256], index: 3, kind: output, shape index: {0}]   ;;  %s1125_s4 = inlined_call_operand.vmem [shape: f32[2,16,1], index: 4, kind: output, shape index: {1}]  }
   0x1 LB: > { %s805_s16 = sadd.s32 4294967295, %s994_s15   ;;  %p809_p0 = scmp.ge.s32.totalorder %s994_s15, 1  ;;  %s994_s15 = sphi %s1022_s15, %s15_s15  }
   0x2   : > { %p165_p1 = scmp.lt.s32.totalorder %s994_s15, 3 }
   0x4   : > { %p166_p2 = pnand %p809_p0, %p165_p1 }
   0x5   : > { %p196_p3 = scmp.lt.s32.totalorder (!%p166_p2), %s805_s16, 1  ;;  %vm571_vm0 = vcmask (!%p166_p2), 392192   ;;  %v980_v0 = vld [vmem:[%s1121_s0 + $0xc] ss:$16 sps:$4 sm:$0xff] (!%p166_p2)   ;;  %v983_v1 = vld [vmem:[%s1121_s0 + $0x4] ss:$16 sps:$4 sm:$0xff] (!%p166_p2)  }
   0x6   : > { %169 = sbr.rel (%p166_p2) target bundleno = 619 (0x26b), region = 32  ;;  %v996_v2 = vmov (!%p166_p2), 0   ;;  %v270_v3 = vld [vmem:[%s1122_s1] sm:$0xff] (!%p166_p2)  ;;  %873 = vmatprep.mubr.msk.bf16.mxu0 (!%p166_p2), %vm571_vm0, %v980_v0  ;;  %607 = vmatprep.mubr.bf16.mxu1 (!%p166_p2), %v983_v1  ;;  %v271_v4 = vld [vmem:[%s1122_s1 + $0x8] sm:$0xff] (!%p166_p2)  ;;  %vm714_vm1 = vcmask (!%p166_p2), 7168  }
   0x7   : > { %896 = vset.pattern.permute.xlu0 (!%p166_p2), %v996_v2  ;;  %v978_v54 = vld [vmem:[%s1121_s0 + $0x8] ss:$16 sps:$4 sm:$0xff] (!%p166_p2)   ;;  %v981_v60 = vld [vmem:[%s1121_s0] ss:$16 sps:$4 sm:$0xff] (!%p166_p2)  }
   0x8   : > { %274 = vperm.xlu0 (!%p166_p2), %896, %v270_v3  }
   0xc   : > { %279 = vperm.xlu0 (!%p166_p2), %896, %v271_v4  }
   0xd   : > { %s1127_s16 = smov (!%p196_p3, %s805_s16), 1 }
   0xe   : > { %s886_s23 = smul.u32 432, %s1127_s16  ;;  %s876_s7 = sshll.u32 %s1127_s16, 5 }
   0xf   : > { %s205_s10 = scalar_lea.vmem %s1124_s3, %s876_s7  ;;  %s877_s11 = sshll.u32 %s1127_s16, 4 }
  0x10   : > { %s1048_s28 = scalar_lea.vmem %s1123_s2, %s886_s23  ;;  %s210_s14 = scalar_lea.vmem %s1125_s4, %s877_s11 }
  0x11   : > { %v897_v5 = vld [vmem:[%s1048_s28 + $0x4] ss:$8 sps:$4 sm:$0xff]   ;;  %v899_v6 = vld [vmem:[%s1048_s28] ss:$8 sps:$4 sm:$0xff]   ;;  %v900_v7 = vld [vmem:[%s1048_s28 + $0x14] ss:$8 sps:$4 sm:$0xff]  }
  0x12   : > { %575 = vmatprep.subr.bf16.mxu1 %v897_v5  ;;  %v902_v8 = vld [vmem:[%s1048_s28 + $0x10] ss:$8 sps:$4 sm:$0xff]   ;;  %v903_v9 = vld [vmem:[%s1048_s28 + $0x24] ss:$8 sps:$4 sm:$0xff]   ;;  %v905_v10 = vld [vmem:[%s1048_s28 + $0x20] ss:$8 sps:$4 sm:$0xff]  }
  0x13   : > { %576 = vmatpush1.bf16.msra.mxu1 %v899_v6  ;;  %v912_v11 = vld [vmem:[%s1048_s28 + $0x104] ss:$8 sps:$4 sm:$0xff]   ;;  %v906_v12 = vld [vmem:[%s1048_s28 + $0x34] ss:$8 sps:$4 sm:$0xff]   ;;  %v916_v13 = vld [vmem:[%s1048_s28 + $0x100] ss:$8 sps:$4 sm:$0xff]  }
  0x14   : > { %577 = vmatprep.subr.bf16.mxu1 %v900_v7  ;;  %618 = vmatprep.subr.bf16.mxu0 %v912_v11  ;;  %v918_v14 = vld [vmem:[%s1048_s28 + $0x114] ss:$8 sps:$4 sm:$0xff]   ;;  %v908_v15 = vld [vmem:[%s1048_s28 + $0x30] ss:$8 sps:$4 sm:$0xff]   ;;  %v909_v16 = vld [vmem:[%s1048_s28 + $0x44] ss:$8 sps:$4 sm:$0xff]  }
  0x15   : > { %619 = vmatpush1.bf16.msra.mxu0 %v916_v13  ;;  %v922_v17 = vld [vmem:[%s1048_s28 + $0x110] ss:$8 sps:$4 sm:$0xff]   ;;  %v924_v18 = vld [vmem:[%s1048_s28 + $0x124] ss:$8 sps:$4 sm:$0xff]   ;;  %v911_v19 = vld [vmem:[%s1048_s28 + $0x40] ss:$8 sps:$4 sm:$0xff]  }
  0x16   : > { %620 = vmatprep.subr.bf16.mxu0 %v918_v14  ;;  %v928_v20 = vld [vmem:[%s1048_s28 + $0x120] ss:$8 sps:$4 sm:$0xff]   ;;  %v930_v21 = vld [vmem:[%s1048_s28 + $0x134] ss:$8 sps:$4 sm:$0xff]   ;;  %v934_v23 = vld [vmem:[%s1048_s28 + $0x130] ss:$8 sps:$4 sm:$0xff]  }
  0x17   : > { %578 = vmatpush1.bf16.msra.mxu1 %v902_v8  ;;  %v914_v22 = vld [vmem:[%s1048_s28 + $0x54] ss:$8 sps:$4 sm:$0xff]   ;;  %v917_v24 = vld [vmem:[%s1048_s28 + $0x50] ss:$8 sps:$4 sm:$0xff]   ;;  %v936_v25 = vld [vmem:[%s1048_s28 + $0x144] ss:$8 sps:$4 sm:$0xff]  }
  0x18   : > { %579 = vmatprep.subr.bf16.mxu1 %v903_v9  ;;  %v920_v26 = vld [vmem:[%s1048_s28 + $0x64] ss:$8 sps:$4 sm:$0xff]   ;;  %v923_v27 = vld [vmem:[%s1048_s28 + $0x60] ss:$8 sps:$4 sm:$0xff]   ;;  %v942_v29 = vld [vmem:[%s1048_s28 + $0x154] ss:$8 sps:$4 sm:$0xff]  }
  0x19   : > { %621 = vmatpush1.bf16.msra.mxu0 %v922_v17  ;;  %v940_v28 = vld [vmem:[%s1048_s28 + $0x140] ss:$8 sps:$4 sm:$0xff]   ;;  %v926_v30 = vld [vmem:[%s1048_s28 + $0x74] ss:$8 sps:$4 sm:$0xff]   ;;  %v946_v31 = vld [vmem:[%s1048_s28 + $0x150] ss:$8 sps:$4 sm:$0xff]  }
  0x1a   : > { %622 = vmatprep.subr.bf16.mxu0 %v924_v18  ;;  %v929_v32 = vld [vmem:[%s1048_s28 + $0x70] ss:$8 sps:$4 sm:$0xff]   ;;  %v948_v33 = vld [vmem:[%s1048_s28 + $0x164] ss:$8 sps:$4 sm:$0xff]   ;;  %v935_v35 = vld [vmem:[%s1048_s28 + $0x80] ss:$8 sps:$4 sm:$0xff]  }
  0x1b   : > { %580 = vmatpush1.bf16.msra.mxu1 %v905_v10  ;;  %v932_v34 = vld [vmem:[%s1048_s28 + $0x84] ss:$8 sps:$4 sm:$0xff]   ;;  %v952_v36 = vld [vmem:[%s1048_s28 + $0x160] ss:$8 sps:$4 sm:$0xff]   ;;  %v954_v37 = vld [vmem:[%s1048_s28 + $0x174] ss:$8 sps:$4 sm:$0xff]  }
  0x1c   : > { %581 = vmatprep.subr.bf16.mxu1 %v906_v12  ;;  %v938_v38 = vld [vmem:[%s1048_s28 + $0x94] ss:$8 sps:$4 sm:$0xff]   ;;  %v958_v39 = vld [vmem:[%s1048_s28 + $0x170] ss:$8 sps:$4 sm:$0xff]   ;;  %v960_v41 = vld [vmem:[%s1048_s28 + $0x184] ss:$8 sps:$4 sm:$0xff]  }
  0x1d   : > { %623 = vmatpush1.bf16.msra.mxu0 %v928_v20  ;;  %v941_v40 = vld [vmem:[%s1048_s28 + $0x90] ss:$8 sps:$4 sm:$0xff]   ;;  %v944_v42 = vld [vmem:[%s1048_s28 + $0xa4] ss:$8 sps:$4 sm:$0xff]   ;;  %v964_v43 = vld [vmem:[%s1048_s28 + $0x180] ss:$8 sps:$4 sm:$0xff]  }
  0x1e   : > { %624 = vmatprep.subr.bf16.mxu0 %v930_v21  ;;  %v947_v44 = vld [vmem:[%s1048_s28 + $0xa0] ss:$8 sps:$4 sm:$0xff]   ;;  %v966_v45 = vld [vmem:[%s1048_s28 + $0x194] ss:$8 sps:$4 sm:$0xff]   ;;  %v970_v47 = vld [vmem:[%s1048_s28 + $0x190] ss:$8 sps:$4 sm:$0xff]  }
  0x1f   : > { %582 = vmatpush1.bf16.msra.mxu1 %v908_v15  ;;  %v950_v46 = vld [vmem:[%s1048_s28 + $0xb4] ss:$8 sps:$4 sm:$0xff]   ;;  %v953_v48 = vld [vmem:[%s1048_s28 + $0xb0] ss:$8 sps:$4 sm:$0xff]   ;;  %v972_v49 = vld [vmem:[%s1048_s28 + $0x1a4] ss:$8 sps:$4 sm:$0xff]  }
  0x20   : > { %583 = vmatprep.subr.bf16.mxu1 %v909_v16  ;;  %v956_v50 = vld [vmem:[%s1048_s28 + $0xc4] ss:$8 sps:$4 sm:$0xff]   ;;  %v976_v51 = vld [vmem:[%s1048_s28 + $0x1a0] ss:$8 sps:$4 sm:$0xff]   ;;  %v962_v53 = vld [vmem:[%s1048_s28 + $0xd4] ss:$8 sps:$4 sm:$0xff]  }
  0x21   : > { %625 = vmatpush1.bf16.msra.mxu0 %v934_v23  ;;  %v959_v52 = vld [vmem:[%s1048_s28 + $0xc0] ss:$8 sps:$4 sm:$0xff]   ;;  %v965_v55 = vld [vmem:[%s1048_s28 + $0xd0] ss:$8 sps:$4 sm:$0xff]   ;;  %v968_v56 = vld [vmem:[%s1048_s28 + $0xe4] ss:$8 sps:$4 sm:$0xff]  }
  0x22   : > { %626 = vmatprep.subr.bf16.mxu0 %v936_v25  ;;  %v971_v57 = vld [vmem:[%s1048_s28 + $0xe0] ss:$8 sps:$4 sm:$0xff]   ;;  %v974_v58 = vld [vmem:[%s1048_s28 + $0xf4] ss:$8 sps:$4 sm:$0xff]   ;;  %v977_v59 = vld [vmem:[%s1048_s28 + $0xf0] ss:$8 sps:$4 sm:$0xff]  }
  0x23   : > { %584 = vmatpush1.bf16.msra.mxu1 %v911_v19 }
  0x24   : > { %585 = vmatprep.subr.bf16.mxu1 %v914_v22 }
  0x25   : > { %627 = vmatpush1.bf16.msra.mxu0 %v940_v28 }
  0x26   : > { %628 = vmatprep.subr.bf16.mxu0 %v942_v29 }
  0x27   : > { %586 = vmatpush1.bf16.msra.mxu1 %v917_v24 }
  0x28   : > { %587 = vmatprep.subr.bf16.mxu1 %v920_v26 }
  0x29   : > { %629 = vmatpush1.bf16.msra.mxu0 %v946_v31 }
  0x2a   : > { %630 = vmatprep.subr.bf16.mxu0 %v948_v33 }
  0x2b   : > { %588 = vmatpush1.bf16.msra.mxu1 %v923_v27 }
  0x2c   : > { %589 = vmatprep.subr.bf16.mxu1 %v926_v30 }
  0x2d   : > { %631 = vmatpush1.bf16.msra.mxu0 %v952_v36 }
  0x2e   : > { %632 = vmatprep.subr.bf16.mxu0 %v954_v37 }
  0x2f   : > { %590 = vmatpush1.bf16.msra.mxu1 %v929_v32 }
  0x30   : > { %591 = vmatprep.subr.bf16.mxu1 %v932_v34 }
  0x31   : > { %633 = vmatpush1.bf16.msra.mxu0 %v958_v39 }
  0x32   : > { %634 = vmatprep.subr.bf16.mxu0 %v960_v41 }
  0x33   : > { %592 = vmatpush1.bf16.msra.mxu1 %v935_v35 }
  0x34   : > { %593 = vmatprep.subr.bf16.mxu1 %v938_v38 }
  0x35   : > { %635 = vmatpush1.bf16.msra.mxu0 %v964_v43 }
  0x36   : > { %636 = vmatprep.subr.bf16.mxu0 %v966_v45 }
  0x37   : > { %594 = vmatpush1.bf16.msra.mxu1 %v941_v40 }
  0x38   : > { %595 = vmatprep.subr.bf16.mxu1 %v944_v42 }
  0x39   : > { %637 = vmatpush1.bf16.msra.mxu0 %v970_v47 }
  0x3a   : > { %638 = vmatprep.subr.bf16.mxu0 %v972_v49 }
  0x3b   : > { %596 = vmatpush1.bf16.msra.mxu1 %v947_v44 }
  0x3c   : > { %597 = vmatprep.subr.bf16.mxu1 %v950_v46 }
  0x3d   : > { %639 = vmatpush1.bf16.msra.mxu0 %v976_v51 }
  0x3f   : > { %598 = vmatpush1.bf16.msra.mxu1 %v953_v48 }
  0x40   : > { %599 = vmatprep.subr.bf16.mxu1 %v956_v50  ;;  %651 = vmatmul.mubr.bf16.vlgmr.msra.gmra.mrb[0].mxu0 %v978_v54 }
  0x43   : > { %600 = vmatpush1.bf16.msra.mxu1 %v959_v52 }
  0x44   : > { %601 = vmatprep.subr.bf16.mxu1 %v962_v53 }
  0x47   : > { %602 = vmatpush1.bf16.msra.mxu1 %v965_v55 }
  0x48   : > { %603 = vmatprep.subr.bf16.mxu1 %v968_v56 }
  0x4b   : > { %604 = vmatpush1.bf16.msra.mxu1 %v971_v57 }
  0x4c   : > { %605 = vmatprep.subr.bf16.mxu1 %v974_v58 }
  0x4f   : > { %606 = vmatpush1.bf16.msra.mxu1 %v977_v59 }
  0x52   : > { %608 = vmatmul.mubr.bf16.vlgmr.msra.gmra.mrb[0].mxu1 %v981_v60 }
  0x87   : > { %v275_v1 = vpop.permute.xlu0 %274 }
  0x8b   : > { %v280_v3 = vpop.permute.xlu0 %279 }
 0x113   : > { %v652_v61 = vpop.f32.mrb[0].mxu0 }
 0x114   : > { %v654_v62 = vpop.f32.mrb[1].mxu0 }
 0x115   : > { %v656_v63 = vpop.f32.mrb[2].mxu0 }
 0x116   : > { %v658_v0 = vpop.f32.mrb[3].mxu0 }
 0x125   : > { %v609_v2 = vpop.f32.mrb[0].mxu1 }
 0x126   : > { %v610_v4 = vadd.f32 %v609_v2, %v275_v1  ;;  %v611_v5 = vpop.f32.mrb[1].mxu1 }
 0x127   : > { %v612_v6 = vadd.f32 %v611_v5, %v275_v1  ;;  %v613_v7 = vpop.f32.mrb[2].mxu1 }
 0x128   : > { %v653_v8 = vadd.f32 %v652_v61, %v610_v4  ;;  %v614_v9 = vadd.f32 %v613_v7, %v280_v3  ;;  %v615_v10 = vpop.f32.mrb[3].mxu1 }
 0x129   : > { %v655_v11 = vadd.f32 %v654_v62, %v612_v6  ;;  %v616_v12 = vadd.f32 %v615_v10, %v280_v3 }
 0x12a   : > { %v657_v13 = vadd.f32 %v656_v63, %v614_v9  ;;  %v670_v14 = vmul.f32 %v653_v8, %v653_v8 }
 0x12b   : > { %v659_v15 = vadd.f32 %v658_v0, %v616_v12  ;;  %v661_v16 = vadd.f32 %v655_v11, %v653_v8  ;;  %v671_v17 = vmul.f32 %v655_v11, %v655_v11 }
 0x12c   : > { %v672_v20 = vmul.f32 %v657_v13, %v657_v13 }
 0x12d   : > { %662 = vadd.xlane.f32.xlu1 %v661_v16  ;;  %v674_v18 = vadd.f32 %v671_v17, %v670_v14  ;;  %v664_v19 = vadd.f32 %v659_v15, %v657_v13  ;;  %v673_v21 = vmul.f32 %v659_v15, %v659_v15 }
 0x12f   : > { %675 = vadd.xlane.f32.xlu0 %v674_v18  ;;  %v677_v22 = vadd.f32 %v673_v21, %v672_v20 }
 0x131   : > { %665 = vadd.xlane.f32.xlu1 %v664_v19 }
 0x135   : > { %678 = vadd.xlane.f32.xlu1 %v677_v22 }
 0x1ba   : > { %v663_v23 = vpop.xlane.xlu1 %662 }
 0x1bb   : > { %v668_v24 = vmul.f32 0.00390625, %v663_v23 }
 0x1bc   : > { %v676_v25 = vpop.xlane.xlu0 %675 }
 0x1bd   : > { %v680_v26 = vmul.f32 0.00390625, %v676_v25  ;;  %v682_v27 = vmul.f32 %v668_v24, %v668_v24  ;;  %v686_v37 = vsub.f32 %v653_v8, %v668_v24  ;;  %v687_v38 = vsub.f32 %v655_v11, %v668_v24 }
 0x1be   : > { %v666_v28 = vpop.xlane.xlu1 %665 }
 0x1bf   : > { %v684_v29 = vsub.f32 %v680_v26, %v682_v27  ;;  %v669_v30 = vmul.f32 0.00390625, %v666_v28 }
 0x1c1   : > { %v690_v31 = vadd.f32 1e-05, %v684_v29  ;;  %v683_v33 = vmul.f32 %v669_v30, %v669_v30  ;;  %v688_v44 = vsub.f32 %v657_v13, %v669_v30  ;;  %v689_v45 = vsub.f32 %v659_v15, %v669_v30 }
 0x1c2   : > { %v679_v32 = vpop.xlane.xlu1 %678 }
 0x1c3   : > { %984 = vrsqrt.f32 %v690_v31  ;;  %v681_v34 = vmul.f32 0.00390625, %v679_v32 }
 0x1c5   : > { %v685_v35 = vsub.f32 %v681_v34, %v683_v33 }
 0x1c7   : > { %v691_v36 = vadd.f32 1e-05, %v685_v35 }
 0x1c9   : > { %986 = vrsqrt.f32 %v691_v36 }
 0x1cd   : > { %v985_v39 = vpop.eup %984 }
 0x1ce   : > { %v694_v40 = vmul.f32 %v985_v39, %v686_v37  ;;  %v695_v41 = vmul.f32 %v985_v39, %v687_v38 }
 0x1d0   : > { %v698_v42 = vmax.f32 %v694_v40, 0.0  ;;  %v699_v43 = vmax.f32 %v695_v41, 0.0 }
 0x1d2   : > { %703 = vst [vmem:[%s205_s10 + $0x8] sm:$0xff] %v699_v43  ;;  %v706_v46 = vadd.f32 %v699_v43, %v698_v42  ;;  %702 = vst [vmem:[%s205_s10] sm:$0xff] %v698_v42 }
 0x1d3   : > { %v987_v47 = vpop.eup %986 }
 0x1d4   : > { %707 = vadd.xlane.f32.xlu1 %v706_v46  ;;  %v696_v48 = vmul.f32 %v987_v47, %v688_v44  ;;  %v697_v49 = vmul.f32 %v987_v47, %v689_v45 }
 0x1d6   : > { %v700_v50 = vmax.f32 %v696_v48, 0.0  ;;  %v701_v51 = vmax.f32 %v697_v49, 0.0 }
 0x1d8   : > { %705 = vst [vmem:[%s205_s10 + $0x18] sm:$0xff] %v701_v51  ;;  %v709_v52 = vadd.f32 %v701_v51, %v700_v50  ;;  %704 = vst [vmem:[%s205_s10 + $0x10] sm:$0xff] %v700_v50 }
 0x1da   : > { %710 = vadd.xlane.f32.xlu1 %v709_v52 }
 0x261   : > { %v708_v53 = vpop.xlane.xlu1 %707 }
 0x262   : > { %v712_v54 = vmul.f32 0.00390625, %v708_v53 }
 0x264   : > { %715 = vst.msk [vmem:[%s210_s14] sm:$0xff] %vm714_vm1, %v712_v54 }
 0x267   : > { %v711_v55 = vpop.xlane.xlu1 %710 }
 0x268   : > { %v713_v56 = vmul.f32 0.00390625, %v711_v55 }
 0x26a   : > { %716 = vst.msk [vmem:[%s210_s14 + $0x8] sm:$0xff] %vm714_vm1, %v713_v56 }
 0x26b PF: > { %s15_s15 = sadd.s32 1, %s994_s15  }
 0x26c   : > { %p12_p4 = scmp.ge.s32.totalorder %s15_s15, 4  }
 0x26e   :  { %14 = sbr.rel (!%p12_p4) target bundleno = 1 (0x1), region = 74 }

// kernel: _lambda_.15
= control target key start
LH: loop header
LB: loop body
LE: loop exit
PB: predicated region body
PF: predicated region fallthrough
CT: control target
= control target key end

     0   :  { %s384_s12 = smov 0   ;;  %s407_s0 = inlined_call_operand.vmem [shape: f32[2,16,256], index: 0, kind: input, shape index: {}]   ;;  %s408_s1 = inlined_call_operand.vmem [shape: f32[2,16,1], index: 1, kind: input, shape index: {}]   ;;  %s409_s2 = inlined_call_operand.vmem [shape: f32[2,16,256], index: 2, kind: input, shape index: {}]   ;;  %s410_s3 = inlined_call_operand.vmem [shape: f32[2,16,256], index: 3, kind: output, shape index: {}]  }
   0x1 LB: > { %s326_s13 = sadd.s32 4294967295, %s361_s12   ;;  %p330_p0 = scmp.ge.s32.totalorder %s361_s12, 1  ;;  %s361_s12 = sphi %s384_s12, %s13_s12  }
   0x2   : > { %p157_p1 = scmp.lt.s32.totalorder %s361_s12, 3 }
   0x4   : > { %p158_p2 = pnand %p330_p0, %p157_p1 }
   0x5   : > { %p191_p3 = scmp.lt.s32.totalorder (!%p158_p2), %s326_s13, 1  ;;  %v363_v0 = vmov (!%p158_p2), 0  }
   0x6   : > { %161 = sbr.rel (%p158_p2) target bundleno = 156 (0x9c), region = 32  ;;  %354 = vset.pattern.permute.xlu0 (!%p158_p2), %v363_v0 }
   0xd   : > { %s412_s13 = smov (!%p191_p3, %s326_s13), 1 }
   0xe   : > { %s342_s14 = sshll.u32 %s412_s13, 4  ;;  %s341_s18 = sshll.u32 %s412_s13, 5 }
   0xf   : > { %s200_s17 = scalar_lea.vmem %s408_s1, %s342_s14  ;;  %s195_s21 = scalar_lea.vmem %s407_s0, %s341_s18 }
  0x10   : > { %v215_v1 = vld [vmem:[%s200_s17] sm:$0xff]  ;;  %v216_v2 = vld [vmem:[%s200_s17 + $0x8] sm:$0xff]  ;;  %s205_s24 = scalar_lea.vmem %s409_s2, %s341_s18  ;;  %v213_v10 = vld [vmem:[%s195_s21 + $0x10] sm:$0xff]  ;;  %s210_s27 = scalar_lea.vmem %s410_s3, %s341_s18 }
  0x11   : > { %219 = vperm.xlu0 %354, %v215_v1   ;;  %v211_v3 = vld [vmem:[%s195_s21] sm:$0xff]  ;;  %v212_v4 = vld [vmem:[%s195_s21 + $0x8] sm:$0xff]  ;;  %v214_v11 = vld [vmem:[%s195_s21 + $0x18] sm:$0xff] }
  0x12   : > { %v231_v6 = vld [vmem:[%s205_s24] sm:$0xff]  ;;  %v232_v7 = vld [vmem:[%s205_s24 + $0x8] sm:$0xff]  ;;  %v233_v15 = vld [vmem:[%s205_s24 + $0x10] sm:$0xff] }
  0x13   : > { %v234_v16 = vld [vmem:[%s205_s24 + $0x18] sm:$0xff] }
  0x15   : > { %224 = vperm.xlu0 %354, %v216_v2  }
  0x90   : > { %v220_v5 = vpop.permute.xlu0 %219 }
  0x91   : > { %v227_v8 = vmul.f32 %v220_v5, %v211_v3  ;;  %v228_v9 = vmul.f32 %v220_v5, %v212_v4 }
  0x93   : > { %v235_v12 = vadd.f32 %v231_v6, %v227_v8  ;;  %v236_v13 = vadd.f32 %v232_v7, %v228_v9 }
  0x94   : > { %v225_v14 = vpop.permute.xlu0 %224 }
  0x95   : > { %v239_v17 = vmax.f32 %v235_v12, 0.0  ;;  %v240_v18 = vmax.f32 %v236_v13, 0.0  ;;  %v229_v19 = vmul.f32 %v225_v14, %v213_v10  ;;  %v230_v20 = vmul.f32 %v225_v14, %v214_v11 }
  0x97   : > { %243 = vst [vmem:[%s210_s27] sm:$0xff] %v239_v17  ;;  %244 = vst [vmem:[%s210_s27 + $0x8] sm:$0xff] %v240_v18  ;;  %v237_v21 = vadd.f32 %v233_v15, %v229_v19  ;;  %v238_v22 = vadd.f32 %v234_v16, %v230_v20 }
  0x99   : > { %v241_v23 = vmax.f32 %v237_v21, 0.0  ;;  %v242_v24 = vmax.f32 %v238_v22, 0.0 }
  0x9b   : > { %245 = vst [vmem:[%s210_s27 + $0x10] sm:$0xff] %v241_v23  ;;  %246 = vst [vmem:[%s210_s27 + $0x18] sm:$0xff] %v242_v24 }
  0x9c PF: > { %s13_s12 = sadd.s32 1, %s361_s12  }
  0x9d   : > { %p10_p4 = scmp.ge.s32.totalorder %s13_s12, 4  }
  0x9f   :  { %12 = sbr.rel (!%p10_p4) target bundleno = 1 (0x1), region = 68 }

// kernel: _lambda_.16
= control target key start
LH: loop header
LB: loop body
LE: loop exit
PB: predicated region body
PF: predicated region fallthrough
CT: control target
= control target key end

     0   :  { %s384_s12 = smov 0   ;;  %s407_s0 = inlined_call_operand.vmem [shape: bf16[8,48], index: 0, kind: input, shape index: {}]   ;;  %s408_s1 = inlined_call_operand.vmem [shape: f32[8,1], index: 1, kind: input, shape index: {}]   ;;  %s409_s2 = inlined_call_operand.vmem [shape: bf16[2,48,256], index: 2, kind: input, shape index: {}]   ;;  %s410_s3 = inlined_call_operand.vmem [shape: f32[2,8,256], index: 3, kind: output, shape index: {}]  }
   0x1 LB: > { %s317_s13 = sadd.s32 4294967295, %s361_s12   ;;  %p321_p0 = scmp.ge.s32.totalorder %s361_s12, 1  ;;  %s361_s12 = sphi %s384_s12, %s13_s12  }
   0x2   : > { %p137_p1 = scmp.lt.s32.totalorder %s361_s12, 3 }
   0x4   : > { %p138_p2 = pnand %p321_p0, %p137_p1 }
   0x5   : > { %p161_p3 = scmp.lt.s32.totalorder (!%p138_p2), %s317_s13, 1  ;;  %v179_v0 = vld [vmem:[%s408_s1] sm:$0xff] (!%p138_p2)  ;;  %v363_v1 = vmov (!%p138_p2), 0   ;;  %vm215_vm0 = vcmask (!%p138_p2), 392192  }
   0x6   : > { %141 = sbr.rel (%p138_p2) target bundleno = 246 (0xf6), region = 32  ;;  %251 = vmatprep.mubr.bf16.mxu0 (!%p138_p2), %v363_v1  ;;  %345 = vset.pattern.permute.xlu0 (!%p138_p2), %v363_v1  ;;  %v172_v8 = vld [vmem:[%s407_s0] sm:$0xf] (!%p138_p2) }
   0x7   : > { %182 = vperm.xlu0 (!%p138_p2), %345, %v179_v0  }
   0xd   : > { %s412_s13 = smov (!%p161_p3, %s317_s13), 1 }
   0xe   : > { %s335_s16 = smul.u32 48, %s412_s13  ;;  %s334_s22 = sshll.u32 %s412_s13, 4 }
   0xf   : > { %s170_s25 = scalar_lea.vmem %s410_s3, %s334_s22 }
  0x10   : > { %s165_s19 = scalar_lea.vmem %s409_s2, %s335_s16 }
  0x11   : > { %v346_v2 = vld [vmem:[%s165_s19 + $0x4] ss:$8 sps:$4 sm:$0xff]   ;;  %v348_v3 = vld [vmem:[%s165_s19] ss:$8 sps:$4 sm:$0xff]   ;;  %v349_v4 = vld [vmem:[%s165_s19 + $0x14] ss:$8 sps:$4 sm:$0xff]  }
  0x12   : > { %219 = vmatprep.subr.bf16.mxu0 %v346_v2  ;;  %v351_v5 = vld [vmem:[%s165_s19 + $0x10] ss:$8 sps:$4 sm:$0xff]   ;;  %v352_v6 = vld [vmem:[%s165_s19 + $0x24] ss:$8 sps:$4 sm:$0xff]   ;;  %v354_v7 = vld [vmem:[%s165_s19 + $0x20] ss:$8 sps:$4 sm:$0xff]  }
  0x13   : > { %220 = vmatpush1.bf16.msra.mxu0 %v348_v3 }
  0x14   : > { %221 = vmatprep.subr.bf16.mxu0 %v349_v4 }
  0x17   : > { %222 = vmatpush1.bf16.msra.mxu0 %v351_v5 }
  0x18   : > { %223 = vmatprep.subr.bf16.mxu0 %v352_v6 }
  0x1b   : > { %224 = vmatpush1.bf16.msra.mxu0 %v354_v7 }
  0x1e   : > { %331 = vmatmul.mubr.msk.bf16.vlgmr.msra.gmra.mrb[0].mxu0 %vm215_vm0, %v172_v8 }
  0x86   : > { %v183_v9 = vpop.permute.xlu0 %182 }
  0xf1   : > { %v253_v10 = vpop.f32.mrb[0].mxu0 }
  0xf2   : > { %v254_v11 = vadd.f32 %v253_v10, %v183_v9  ;;  %v255_v12 = vpop.f32.mrb[1].mxu0 }
  0xf3   : > { %v256_v13 = vadd.f32 %v255_v12, %v183_v9  ;;  %v257_v14 = vpop.f32.mrb[2].mxu0 }
  0xf4   : > { %260 = vst [vmem:[%s170_s25] sm:$0xff] %v254_v11  ;;  %v258_v15 = vpop.f32.mrb[3].mxu0 }
  0xf5   : > { %261 = vst [vmem:[%s170_s25 + $0x8] sm:$0xff] %v256_v13 }
  0xf6 PF: > { %s13_s12 = sadd.s32 1, %s361_s12  }
  0xf7   : > { %p10_p4 = scmp.ge.s32.totalorder %s13_s12, 4  }
  0xf9   :  { %12 = sbr.rel (!%p10_p4) target bundleno = 1 (0x1), region = 62 }

// kernel: _lambda_.17
= control target key start
LH: loop header
LB: loop body
LE: loop exit
PB: predicated region body
PF: predicated region fallthrough
CT: control target
= control target key end

     0   :  { %s435_s12 = smov 0   ;;  %s462_s0 = inlined_call_operand.vmem [shape: bf16[8,96], index: 0, kind: input, shape index: {}]   ;;  %s463_s1 = inlined_call_operand.vmem [shape: f32[8,1], index: 1, kind: input, shape index: {}]   ;;  %s464_s2 = inlined_call_operand.vmem [shape: bf16[2,96,256], index: 2, kind: input, shape index: {}]   ;;  %s465_s3 = inlined_call_operand.vmem [shape: f32[2,8,256], index: 3, kind: output, shape index: {}]  }
   0x1 LB: > { %s353_s13 = sadd.s32 4294967295, %s412_s12   ;;  %p357_p0 = scmp.ge.s32.totalorder %s412_s12, 1  ;;  %s412_s12 = sphi %s435_s12, %s13_s12  }
   0x2   : > { %p137_p1 = scmp.lt.s32.totalorder %s412_s12, 3 }
   0x4   : > { %p138_p2 = pnand %p357_p0, %p137_p1 }
   0x5   : > { %p161_p3 = scmp.lt.s32.totalorder (!%p138_p2), %s353_s13, 1  ;;  %v185_v0 = vld [vmem:[%s463_s1] sm:$0xff] (!%p138_p2)  ;;  %v414_v1 = vmov (!%p138_p2), 0   ;;  %vm251_vm0 = vcmask (!%p138_p2), 785408  }
   0x6   : > { %141 = sbr.rel (%p138_p2) target bundleno = 258 (0x102), region = 32  ;;  %287 = vmatprep.mubr.bf16.mxu0 (!%p138_p2), %v414_v1  ;;  %387 = vset.pattern.permute.xlu0 (!%p138_p2), %v414_v1  ;;  %v172_v14 = vld [vmem:[%s462_s0] sm:$0xf] (!%p138_p2) }
   0x7   : > { %188 = vperm.xlu0 (!%p138_p2), %387, %v185_v0  }
   0xd   : > { %s467_s13 = smov (!%p161_p3, %s353_s13), 1 }
   0xe   : > { %s377_s16 = smul.u32 96, %s467_s13  ;;  %s376_s22 = sshll.u32 %s467_s13, 4 }
   0xf   : > { %s170_s25 = scalar_lea.vmem %s465_s3, %s376_s22 }
  0x10   : > { %s165_s19 = scalar_lea.vmem %s464_s2, %s377_s16 }
  0x11   : > { %v388_v2 = vld [vmem:[%s165_s19 + $0x4] ss:$8 sps:$4 sm:$0xff]   ;;  %v390_v3 = vld [vmem:[%s165_s19] ss:$8 sps:$4 sm:$0xff]   ;;  %v391_v4 = vld [vmem:[%s165_s19 + $0x14] ss:$8 sps:$4 sm:$0xff]  }
  0x12   : > { %255 = vmatprep.subr.bf16.mxu0 %v388_v2  ;;  %v393_v5 = vld [vmem:[%s165_s19 + $0x10] ss:$8 sps:$4 sm:$0xff]   ;;  %v394_v6 = vld [vmem:[%s165_s19 + $0x24] ss:$8 sps:$4 sm:$0xff]   ;;  %v396_v7 = vld [vmem:[%s165_s19 + $0x20] ss:$8 sps:$4 sm:$0xff]  }
  0x13   : > { %256 = vmatpush1.bf16.msra.mxu0 %v390_v3  ;;  %v397_v8 = vld [vmem:[%s165_s19 + $0x34] ss:$8 sps:$4 sm:$0xff]   ;;  %v399_v9 = vld [vmem:[%s165_s19 + $0x30] ss:$8 sps:$4 sm:$0xff]   ;;  %v400_v10 = vld [vmem:[%s165_s19 + $0x44] ss:$8 sps:$4 sm:$0xff]  }
  0x14   : > { %257 = vmatprep.subr.bf16.mxu0 %v391_v4  ;;  %v402_v11 = vld [vmem:[%s165_s19 + $0x40] ss:$8 sps:$4 sm:$0xff]   ;;  %v403_v12 = vld [vmem:[%s165_s19 + $0x54] ss:$8 sps:$4 sm:$0xff]   ;;  %v405_v13 = vld [vmem:[%s165_s19 + $0x50] ss:$8 sps:$4 sm:$0xff]  }
  0x17   : > { %258 = vmatpush1.bf16.msra.mxu0 %v393_v5 }
  0x18   : > { %259 = vmatprep.subr.bf16.mxu0 %v394_v6 }
  0x1b   : > { %260 = vmatpush1.bf16.msra.mxu0 %v396_v7 }
  0x1c   : > { %261 = vmatprep.subr.bf16.mxu0 %v397_v8 }
  0x1f   : > { %262 = vmatpush1.bf16.msra.mxu0 %v399_v9 }
  0x20   : > { %263 = vmatprep.subr.bf16.mxu0 %v400_v10 }
  0x23   : > { %264 = vmatpush1.bf16.msra.mxu0 %v402_v11 }
  0x24   : > { %265 = vmatprep.subr.bf16.mxu0 %v403_v12 }
  0x27   : > { %266 = vmatpush1.bf16.msra.mxu0 %v405_v13 }
  0x2a   : > { %373 = vmatmul.mubr.msk.bf16.vlgmr.msra.gmra.mrb[0].mxu0 %vm251_vm0, %v172_v14 }
  0x86   : > { %v189_v15 = vpop.permute.xlu0 %188 }
  0xfd   : > { %v289_v16 = vpop.f32.mrb[0].mxu0 }
  0xfe   : > { %v290_v17 = vadd.f32 %v289_v16, %v189_v15  ;;  %v291_v18 = vpop.f32.mrb[1].mxu0 }
  0xff   : > { %v292_v19 = vadd.f32 %v291_v18, %v189_v15  ;;  %v293_v20 = vpop.f32.mrb[2].mxu0 }
 0x100   : > { %296 = vst [vmem:[%s170_s25] sm:$0xff] %v290_v17  ;;  %v294_v21 = vpop.f32.mrb[3].mxu0 }
 0x101   : > { %297 = vst [vmem:[%s170_s25 + $0x8] sm:$0xff] %v292_v19 }
 0x102 PF: > { %s13_s12 = sadd.s32 1, %s412_s12  }
 0x103   : > { %p10_p4 = scmp.ge.s32.totalorder %s13_s12, 4  }
 0x105   :  { %12 = sbr.rel (!%p10_p4) target bundleno = 1 (0x1), region = 62 }

// kernel: _lambda_.19
= control target key start
LH: loop header
LB: loop body
LE: loop exit
PB: predicated region body
PF: predicated region fallthrough
CT: control target
= control target key end

     0   :  { %s547_s12 = smov 0   ;;  %s600_s0 = inlined_call_operand.vmem [shape: bf16[8,192], index: 0, kind: input, shape index: {}]   ;;  %s601_s1 = inlined_call_operand.vmem [shape: f32[8,1], index: 1, kind: input, shape index: {}]   ;;  %s602_s2 = inlined_call_operand.vmem [shape: bf16[2,192,256], index: 2, kind: input, shape index: {}]   ;;  %s603_s3 = inlined_call_operand.vmem [shape: f32[2,8,256], index: 3, kind: output, shape index: {}]  }
   0x1 LB: > { %s431_s13 = sadd.s32 4294967295, %s524_s12   ;;  %p435_p0 = scmp.ge.s32.totalorder %s524_s12, 1  ;;  %s524_s12 = sphi %s547_s12, %s13_s12  }
   0x2   : > { %p137_p1 = scmp.lt.s32.totalorder %s524_s12, 3 }
   0x4   : > { %p138_p2 = pnand %p435_p0, %p137_p1 }
   0x5   : > { %p161_p3 = scmp.lt.s32.totalorder (!%p138_p2), %s431_s13, 1  ;;  %v172_v0 = vld [vmem:[%s600_s0] sm:$0xff] (!%p138_p2)  ;;  %vm329_vm0 = vcmask (!%p138_p2), 523264   ;;  %v526_v3 = vmov (!%p138_p2), 0  }
   0x6   : > { %141 = sbr.rel (%p138_p2) target bundleno = 282 (0x11a), region = 32  ;;  %v197_v1 = vld [vmem:[%s601_s1] sm:$0xff] (!%p138_p2)  ;;  %v440_v2 = vcombine.high (!%p138_p2), %v172_v0, %v172_v0  ;;  %479 = vset.pattern.permute.xlu0 (!%p138_p2), %v526_v3  ;;  %v439_v28 = vcombine.low (!%p138_p2), %v172_v0, %v172_v0 }
   0x7   : > { %200 = vperm.xlu0 (!%p138_p2), %479, %v197_v1  }
   0x8   : > { %465 = vmatprep.mubr.msk.bf16.mxu0 (!%p138_p2), %vm329_vm0, %v440_v2 }
   0xd   : > { %s605_s13 = smov (!%p161_p3, %s431_s13), 1 }
   0xe   : > { %s469_s18 = smul.u32 192, %s605_s13  ;;  %s468_s22 = sshll.u32 %s605_s13, 4 }
   0xf   : > { %s170_s25 = scalar_lea.vmem %s603_s3, %s468_s22 }
  0x10   : > { %s567_s21 = scalar_lea.vmem %s602_s2, %s469_s18 }
  0x11   : > { %v480_v4 = vld [vmem:[%s567_s21 + $0x4] ss:$8 sps:$4 sm:$0xff]   ;;  %v482_v5 = vld [vmem:[%s567_s21] ss:$8 sps:$4 sm:$0xff]   ;;  %v483_v6 = vld [vmem:[%s567_s21 + $0x14] ss:$8 sps:$4 sm:$0xff]  }
  0x12   : > { %333 = vmatprep.subr.bf16.mxu0 %v480_v4  ;;  %v485_v7 = vld [vmem:[%s567_s21 + $0x10] ss:$8 sps:$4 sm:$0xff]   ;;  %v486_v8 = vld [vmem:[%s567_s21 + $0x24] ss:$8 sps:$4 sm:$0xff]   ;;  %v488_v9 = vld [vmem:[%s567_s21 + $0x20] ss:$8 sps:$4 sm:$0xff]  }
  0x13   : > { %334 = vmatpush1.bf16.msra.mxu0 %v482_v5  ;;  %v489_v10 = vld [vmem:[%s567_s21 + $0x34] ss:$8 sps:$4 sm:$0xff]   ;;  %v491_v11 = vld [vmem:[%s567_s21 + $0x30] ss:$8 sps:$4 sm:$0xff]   ;;  %v492_v12 = vld [vmem:[%s567_s21 + $0x44] ss:$8 sps:$4 sm:$0xff]  }
  0x14   : > { %335 = vmatprep.subr.bf16.mxu0 %v483_v6  ;;  %v494_v13 = vld [vmem:[%s567_s21 + $0x40] ss:$8 sps:$4 sm:$0xff]   ;;  %v495_v14 = vld [vmem:[%s567_s21 + $0x54] ss:$8 sps:$4 sm:$0xff]   ;;  %v497_v15 = vld [vmem:[%s567_s21 + $0x50] ss:$8 sps:$4 sm:$0xff]  }
  0x15   : > { %v498_v16 = vld [vmem:[%s567_s21 + $0x64] ss:$8 sps:$4 sm:$0xff]   ;;  %v500_v17 = vld [vmem:[%s567_s21 + $0x60] ss:$8 sps:$4 sm:$0xff]   ;;  %v501_v18 = vld [vmem:[%s567_s21 + $0x74] ss:$8 sps:$4 sm:$0xff]  }
  0x16   : > { %v503_v19 = vld [vmem:[%s567_s21 + $0x70] ss:$8 sps:$4 sm:$0xff]   ;;  %v504_v20 = vld [vmem:[%s567_s21 + $0x84] ss:$8 sps:$4 sm:$0xff]   ;;  %v506_v21 = vld [vmem:[%s567_s21 + $0x80] ss:$8 sps:$4 sm:$0xff]  }
  0x17   : > { %336 = vmatpush1.bf16.msra.mxu0 %v485_v7  ;;  %v507_v22 = vld [vmem:[%s567_s21 + $0x94] ss:$8 sps:$4 sm:$0xff]   ;;  %v509_v23 = vld [vmem:[%s567_s21 + $0x90] ss:$8 sps:$4 sm:$0xff]   ;;  %v510_v24 = vld [vmem:[%s567_s21 + $0xa4] ss:$8 sps:$4 sm:$0xff]  }
  0x18   : > { %337 = vmatprep.subr.bf16.mxu0 %v486_v8  ;;  %v512_v25 = vld [vmem:[%s567_s21 + $0xa0] ss:$8 sps:$4 sm:$0xff]   ;;  %v513_v26 = vld [vmem:[%s567_s21 + $0xb4] ss:$8 sps:$4 sm:$0xff]   ;;  %v515_v27 = vld [vmem:[%s567_s21 + $0xb0] ss:$8 sps:$4 sm:$0xff]  }
  0x1b   : > { %338 = vmatpush1.bf16.msra.mxu0 %v488_v9 }
  0x1c   : > { %339 = vmatprep.subr.bf16.mxu0 %v489_v10 }
  0x1f   : > { %340 = vmatpush1.bf16.msra.mxu0 %v491_v11 }
  0x20   : > { %341 = vmatprep.subr.bf16.mxu0 %v492_v12 }
  0x23   : > { %342 = vmatpush1.bf16.msra.mxu0 %v494_v13 }
  0x24   : > { %343 = vmatprep.subr.bf16.mxu0 %v495_v14 }
  0x27   : > { %344 = vmatpush1.bf16.msra.mxu0 %v497_v15 }
  0x28   : > { %345 = vmatprep.subr.bf16.mxu0 %v498_v16 }
  0x2b   : > { %346 = vmatpush1.bf16.msra.mxu0 %v500_v17 }
  0x2c   : > { %347 = vmatprep.subr.bf16.mxu0 %v501_v18 }
  0x2f   : > { %348 = vmatpush1.bf16.msra.mxu0 %v503_v19 }
  0x30   : > { %349 = vmatprep.subr.bf16.mxu0 %v504_v20 }
  0x33   : > { %350 = vmatpush1.bf16.msra.mxu0 %v506_v21 }
  0x34   : > { %351 = vmatprep.subr.bf16.mxu0 %v507_v22 }
  0x37   : > { %352 = vmatpush1.bf16.msra.mxu0 %v509_v23 }
  0x38   : > { %353 = vmatprep.subr.bf16.mxu0 %v510_v24 }
  0x3b   : > { %354 = vmatpush1.bf16.msra.mxu0 %v512_v25 }
  0x3c   : > { %355 = vmatprep.subr.bf16.mxu0 %v513_v26 }
  0x3f   : > { %356 = vmatpush1.bf16.msra.mxu0 %v515_v27 }
  0x42   : > { %366 = vmatmul.mubr.bf16.vlgmr.msra.gmra.mrb[0].mxu0 %v439_v28 }
  0x86   : > { %v201_v29 = vpop.permute.xlu0 %200 }
 0x115   : > { %v367_v30 = vpop.f32.mrb[0].mxu0 }
 0x116   : > { %v368_v31 = vadd.f32 %v367_v30, %v201_v29  ;;  %v369_v32 = vpop.f32.mrb[1].mxu0 }
 0x117   : > { %v370_v33 = vadd.f32 %v369_v32, %v201_v29  ;;  %v371_v34 = vpop.f32.mrb[2].mxu0 }
 0x118   : > { %374 = vst [vmem:[%s170_s25] sm:$0xff] %v368_v31  ;;  %v372_v35 = vpop.f32.mrb[3].mxu0 }
 0x119   : > { %375 = vst [vmem:[%s170_s25 + $0x8] sm:$0xff] %v370_v33 }
 0x11a PF: > { %s13_s12 = sadd.s32 1, %s524_s12  }
 0x11b   : > { %p10_p4 = scmp.ge.s32.totalorder %s13_s12, 4  }
 0x11d   :  { %12 = sbr.rel (!%p10_p4) target bundleno = 1 (0x1), region = 62 }

// kernel: _lambda_.20
= control target key start
LH: loop header
LB: loop body
LE: loop exit
PB: predicated region body
PF: predicated region fallthrough
CT: control target
= control target key end

     0   :  { %s382_s12 = smov 0   ;;  %s412_s0 = inlined_call_operand.vmem [shape: f32[2,8,1024], index: 0, kind: input, shape index: {}]   ;;  %s413_s1 = inlined_call_operand.vmem [shape: f32[8,1], index: 1, kind: input, shape index: {}]   ;;  %s414_s2 = inlined_call_operand.vmem [shape: f32[8,1], index: 2, kind: input, shape index: {}]   ;;  %s415_s3 = inlined_call_operand.vmem [shape: f32[2,8,1024], index: 3, kind: output, shape index: {}]  }
   0x1 LB: > { %s327_s13 = sadd.s32 4294967295, %s359_s12   ;;  %p331_p0 = scmp.ge.s32.totalorder %s359_s12, 1  ;;  %s359_s12 = sphi %s382_s12, %s13_s12  }
   0x2   : > { %p137_p1 = scmp.lt.s32.totalorder %s359_s12, 3 }
   0x4   : > { %p138_p2 = pnand %p331_p0, %p137_p1 }
   0x5   : > { %p161_p3 = scmp.lt.s32.totalorder (!%p138_p2), %s327_s13, 1  ;;  %v228_v0 = vld [vmem:[%s413_s1] sm:$0xff] (!%p138_p2)  ;;  %v361_v1 = vmov (!%p138_p2), 0  }
   0x6   : > { %141 = sbr.rel (%p138_p2) target bundleno = 206 (0xce), region = 32  ;;  %349 = vset.pattern.permute.xlu1 (!%p138_p2), %v361_v1  ;;  %350 = vset.pattern.permute.xlu0 (!%p138_p2), %v361_v1  ;;  %v242_v2 = vld [vmem:[%s414_s2] sm:$0xff] (!%p138_p2) }
   0x7   : > { %231 = vperm.xlu1 (!%p138_p2), %349, %v228_v0  }
   0xb   : > { %245 = vperm.xlu1 (!%p138_p2), %349, %v242_v2  }
   0xd   : > { %s417_s13 = smov (!%p161_p3, %s327_s13), 1 }
   0xe   : > { %s338_s18 = sshll.u32 %s417_s13, 6 }
   0xf   : > { %s165_s21 = scalar_lea.vmem %s412_s0, %s338_s18  ;;  %s170_s24 = scalar_lea.vmem %s415_s3, %s338_s18 }
  0x10   : > { %v171_v3 = vld [vmem:[%s165_s21] sm:$0xff]  ;;  %v172_v4 = vld [vmem:[%s165_s21 + $0x8] sm:$0xff]  ;;  %v173_v5 = vld [vmem:[%s165_s21 + $0x10] sm:$0xff] }
  0x11   : > { %v179_v6 = vadd.f32 %v172_v4, %v171_v3  ;;  %v190_v7 = vmul.f32 %v171_v3, %v171_v3  ;;  %v191_v8 = vmul.f32 %v172_v4, %v172_v4  ;;  %v192_v9 = vmul.f32 %v173_v5, %v173_v5  ;;  %v174_v10 = vld [vmem:[%s165_s21 + $0x18] sm:$0xff]  ;;  %v175_v14 = vld [vmem:[%s165_s21 + $0x20] sm:$0xff]  ;;  %v176_v18 = vld [vmem:[%s165_s21 + $0x28] sm:$0xff] }
  0x12   : > { %v193_v12 = vmul.f32 %v174_v10, %v174_v10  ;;  %v194_v16 = vmul.f32 %v175_v14, %v175_v14  ;;  %v195_v20 = vmul.f32 %v176_v18, %v176_v18  ;;  %v177_v22 = vld [vmem:[%s165_s21 + $0x30] sm:$0xff]  ;;  %v178_v26 = vld [vmem:[%s165_s21 + $0x38] sm:$0xff] }
  0x13   : > { %v180_v11 = vadd.f32 %v179_v6, %v173_v5  ;;  %v198_v13 = vadd.f32 %v191_v8, %v190_v7  ;;  %v196_v24 = vmul.f32 %v177_v22, %v177_v22  ;;  %v197_v28 = vmul.f32 %v178_v26, %v178_v26 }
  0x15   : > { %v181_v15 = vadd.f32 %v180_v11, %v174_v10  ;;  %v199_v17 = vadd.f32 %v198_v13, %v192_v9 }
  0x17   : > { %v182_v19 = vadd.f32 %v181_v15, %v175_v14  ;;  %v200_v21 = vadd.f32 %v199_v17, %v193_v12 }
  0x19   : > { %v183_v23 = vadd.f32 %v182_v19, %v176_v18  ;;  %v201_v25 = vadd.f32 %v200_v21, %v194_v16 }
  0x1b   : > { %v184_v27 = vadd.f32 %v183_v23, %v177_v22  ;;  %v202_v29 = vadd.f32 %v201_v25, %v195_v20 }
  0x1d   : > { %v185_v30 = vadd.f32 %v184_v27, %v178_v26  ;;  %v203_v31 = vadd.f32 %v202_v29, %v196_v24 }
  0x1f   : > { %186 = vadd.xlane.f32.xlu0 %v185_v30  ;;  %v204_v32 = vadd.f32 %v203_v31, %v197_v28 }
  0x23   : > { %205 = vadd.xlane.f32.xlu0 %v204_v32 }
  0x86   : > { %v232_v40 = vpop.permute.xlu1 %231 }
  0x8a   : > { %v246_v62 = vpop.permute.xlu1 %245 }
  0xac   : > { %v187_v33 = vpop.xlane.xlu0 %186 }
  0xad   : > { %v189_v34 = vmul.f32 0.0009765625, %v187_v33 }
  0xaf   : > { %v208_v36 = vmul.f32 %v189_v34, %v189_v34  ;;  %v210_v41 = vsub.f32 %v171_v3, %v189_v34  ;;  %v211_v42 = vsub.f32 %v172_v4, %v189_v34  ;;  %v212_v43 = vsub.f32 %v173_v5, %v189_v34 }
  0xb0   : > { %v206_v35 = vpop.xlane.xlu0 %205  ;;  %v213_v44 = vsub.f32 %v174_v10, %v189_v34  ;;  %v214_v46 = vsub.f32 %v175_v14, %v189_v34  ;;  %v215_v47 = vsub.f32 %v176_v18, %v189_v34  ;;  %v216_v48 = vsub.f32 %v177_v22, %v189_v34 }
  0xb1   : > { %v207_v37 = vmul.f32 0.0009765625, %v206_v35  ;;  %v217_v49 = vsub.f32 %v178_v26, %v189_v34 }
  0xb3   : > { %v209_v38 = vsub.f32 %v207_v37, %v208_v36 }
  0xb5   : > { %v218_v39 = vadd.f32 1e-05, %v209_v38 }
  0xb7   : > { %351 = vrsqrt.f32 %v218_v39 }
  0xc1   : > { %v352_v45 = vpop.eup %351 }
  0xc2   : > { %v220_v50 = vmul.f32 %v352_v45, %v210_v41  ;;  %v221_v51 = vmul.f32 %v352_v45, %v211_v42  ;;  %v222_v52 = vmul.f32 %v352_v45, %v212_v43  ;;  %v223_v53 = vmul.f32 %v352_v45, %v213_v44 }
  0xc3   : > { %v224_v54 = vmul.f32 %v352_v45, %v214_v46  ;;  %v225_v55 = vmul.f32 %v352_v45, %v215_v47  ;;  %v226_v56 = vmul.f32 %v352_v45, %v216_v48  ;;  %v227_v57 = vmul.f32 %v352_v45, %v217_v49 }
  0xc4   : > { %v234_v58 = vmul.f32 %v232_v40, %v220_v50  ;;  %v235_v59 = vmul.f32 %v232_v40, %v221_v51  ;;  %v236_v60 = vmul.f32 %v232_v40, %v222_v52  ;;  %v237_v61 = vmul.f32 %v232_v40, %v223_v53 }
  0xc5   : > { %v238_v63 = vmul.f32 %v232_v40, %v224_v54  ;;  %v239_v0 = vmul.f32 %v232_v40, %v225_v55  ;;  %v240_v1 = vmul.f32 %v232_v40, %v226_v56  ;;  %v241_v2 = vmul.f32 %v232_v40, %v227_v57 }
  0xc6   : > { %v248_v3 = vadd.f32 %v246_v62, %v234_v58  ;;  %v249_v4 = vadd.f32 %v246_v62, %v235_v59  ;;  %v250_v5 = vadd.f32 %v246_v62, %v236_v60  ;;  %v251_v6 = vadd.f32 %v246_v62, %v237_v61 }
  0xc7   : > { %v252_v7 = vadd.f32 %v246_v62, %v238_v63  ;;  %v253_v8 = vadd.f32 %v246_v62, %v239_v0  ;;  %v254_v9 = vadd.f32 %v246_v62, %v240_v1  ;;  %v255_v10 = vadd.f32 %v246_v62, %v241_v2 }
  0xc8   : > { %v256_v11 = vmax.f32 %v248_v3, 0.0  ;;  %v257_v12 = vmax.f32 %v249_v4, 0.0  ;;  %v258_v13 = vmax.f32 %v250_v5, 0.0  ;;  %v259_v14 = vmax.f32 %v251_v6, 0.0 }
  0xc9   : > { %v260_v15 = vmax.f32 %v252_v7, 0.0  ;;  %v261_v16 = vmax.f32 %v253_v8, 0.0  ;;  %v262_v17 = vmax.f32 %v254_v9, 0.0  ;;  %v263_v18 = vmax.f32 %v255_v10, 0.0 }
  0xca   : > { %264 = vst [vmem:[%s170_s24] sm:$0xff] %v256_v11  ;;  %265 = vst [vmem:[%s170_s24 + $0x8] sm:$0xff] %v257_v12 }
  0xcb   : > { %266 = vst [vmem:[%s170_s24 + $0x10] sm:$0xff] %v258_v13  ;;  %267 = vst [vmem:[%s170_s24 + $0x18] sm:$0xff] %v259_v14 }
  0xcc   : > { %268 = vst [vmem:[%s170_s24 + $0x20] sm:$0xff] %v260_v15  ;;  %269 = vst [vmem:[%s170_s24 + $0x28] sm:$0xff] %v261_v16 }
  0xcd   : > { %270 = vst [vmem:[%s170_s24 + $0x30] sm:$0xff] %v262_v17  ;;  %271 = vst [vmem:[%s170_s24 + $0x38] sm:$0xff] %v263_v18 }
  0xce PF: > { %s13_s12 = sadd.s32 1, %s359_s12  }
  0xcf   : > { %p10_p4 = scmp.ge.s32.totalorder %s13_s12, 4  }
  0xd1   :  { %12 = sbr.rel (!%p10_p4) target bundleno = 1 (0x1), region = 62 }

// kernel: _lambda_.21
= control target key start
LH: loop header
LB: loop body
LE: loop exit
PB: predicated region body
PF: predicated region fallthrough
CT: control target
= control target key end

     0   :  { %s5424_s12 = smov 0   ;;  %s6162_s0 = inlined_call_operand.vmem [shape: bf16[3,1176], index: 0, kind: input, shape index: {}]   ;;  %s6163_s1 = inlined_call_operand.vmem [shape: f32[3,1], index: 1, kind: input, shape index: {}]   ;;  %s6164_s2 = inlined_call_operand.vmem [shape: bf16[2,1176,1024], index: 2, kind: input, shape index: {}]   ;;  %s6165_s3 = inlined_call_operand.vmem [shape: f32[2,3,1024], index: 3, kind: output, shape index: {}]  }
   0x1 LB: > { %s4687_s13 = sadd.s32 4294967295, %s5400_s12   ;;  %p4691_p0 = scmp.ge.s32.totalorder %s5400_s12, 1  ;;  %s5400_s12 = sphi %s5424_s12, %s13_s12  }
   0x2   : > { %p137_p1 = scmp.lt.s32.totalorder %s5400_s12, 3 }
   0x4   : > { %p138_p2 = pnand %p4691_p0, %p137_p1 }
   0x5   : > { %p161_p3 = scmp.lt.s32.totalorder (!%p138_p2), %s4687_s13, 1  ;;  %v776_v0 = vlaneseq (!%p138_p2)  ;;  %v5402_v1 = vmov (!%p138_p2), 1983009808   ;;  %v5438_v5 = vld [vmem:[%s6162_s0] sm:$0xff] (!%p138_p2)  ;;  %vm3763_vm0 = vcmask (!%p138_p2), 195584   ;;  %vm3767_vm1 = vcmask (!%p138_p2), 1043456  }
   0x6   : > { %141 = sbr.rel (%p138_p2) target bundleno = 831 (0x33f), region = 32  ;;  %v774_v2 = vunpack.c.l.s4 (!%p138_p2), %v5402_v1 }
   0x7   : > { %v777_v3 = vshrl.u32 (!%p138_p2), %v776_v0, 7 }
   0x8   : > { %v775_v4 = vunpack.c.0.s8 (!%p138_p2), %v774_v2 }
   0xa   : > { %v5440_v6 = vsub.s32 (!%p138_p2), %v775_v4, %v777_v3 }
   0xc   : > { %v5452_v10 = vrot.slane (!%p138_p2), %v5438_v5, %v5440_v6 }
   0xd   : > { %s6167_s13 = smov (!%p161_p3, %s4687_s13), 1 }
   0xe   : > { %s5371_s14 = smul.u32 4704, %s6167_s13  ;;  %v5465_v26 = vcombine.high %v5452_v10, %v5452_v10  ;;  %s5298_s26 = sshll.u32 %s6167_s13, 5 }
   0xf   : > { %s6065_s29 = scalar_lea.vmem %s6165_s3, %s5298_s26 }
  0x10   : > { %s5445_s19 = scalar_lea.vmem %s6164_s2, %s5371_s14  ;;  %3824 = vmatprep.mubr.bf16.mxu0 %v5465_v26  ;;  %4029 = vmatprep.mubr.bf16.mxu1 %v5465_v26 }
  0x11   : > { %v175_v7 = vld [vmem:[%s5445_s19] sm:$0xff]  ;;  %v176_v9 = vld [vmem:[%s5445_s19 + $0x8] sm:$0xff] }
  0x12   : > { %v179_v8 = vld [vmem:[%s5445_s19 + $0x20] sm:$0xff]  ;;  %v180_v12 = vld [vmem:[%s5445_s19 + $0x28] sm:$0xff] }
  0x13   : > { %v4697_v11 = vcombine.high %v175_v7, %v179_v8  ;;  %v4696_v13 = vcombine.low %v175_v7, %v179_v8  ;;  %v183_v14 = vld [vmem:[%s5445_s19 + $0x40] sm:$0xff]  ;;  %v4699_v16 = vcombine.high %v176_v9, %v180_v12  ;;  %v4698_v17 = vcombine.low %v176_v9, %v180_v12  ;;  %v184_v19 = vld [vmem:[%s5445_s19 + $0x48] sm:$0xff] }
  0x14   : > { %v187_v15 = vld [vmem:[%s5445_s19 + $0x60] sm:$0xff]  ;;  %v188_v20 = vld [vmem:[%s5445_s19 + $0x68] sm:$0xff] }
  0x15   : > { %v4705_v18 = vcombine.high %v183_v14, %v187_v15  ;;  %v191_v21 = vld [vmem:[%s5445_s19 + $0x80] sm:$0xff]  ;;  %3792 = vmatprep.subr.bf16.mxu0 %v4697_v11  ;;  %v4707_v22 = vcombine.high %v184_v19, %v188_v20  ;;  %v192_v24 = vld [vmem:[%s5445_s19 + $0x88] sm:$0xff]  ;;  %3997 = vmatprep.subr.bf16.mxu1 %v4699_v16  ;;  %v4704_v27 = vcombine.low %v183_v14, %v187_v15 }
  0x16   : > { %v195_v23 = vld [vmem:[%s5445_s19 + $0xa0] sm:$0xff]  ;;  %v196_v25 = vld [vmem:[%s5445_s19 + $0xa8] sm:$0xff]  ;;  %3793 = vmatpush1.bf16.msra.mxu0 %v4696_v13  ;;  %3998 = vmatpush1.bf16.msra.mxu1 %v4698_v17  ;;  %v4706_v28 = vcombine.low %v184_v19, %v188_v20 }
  0x17   : > { %3794 = vmatprep.subr.bf16.mxu0 %v4705_v18  ;;  %v4713_v29 = vcombine.high %v191_v21, %v195_v23  ;;  %3999 = vmatprep.subr.bf16.mxu1 %v4707_v22  ;;  %v4715_v30 = vcombine.high %v192_v24, %v196_v25  ;;  %v199_v31 = vld [vmem:[%s5445_s19 + $0xc0] sm:$0xff]  ;;  %v200_v33 = vld [vmem:[%s5445_s19 + $0xc8] sm:$0xff]  ;;  %v4712_v35 = vcombine.low %v191_v21, %v195_v23 }
  0x18   : > { %v203_v32 = vld [vmem:[%s5445_s19 + $0xe0] sm:$0xff]  ;;  %v204_v34 = vld [vmem:[%s5445_s19 + $0xe8] sm:$0xff]  ;;  %v4714_v36 = vcombine.low %v192_v24, %v196_v25 }
  0x19   : > { %v4721_v37 = vcombine.high %v199_v31, %v203_v32  ;;  %v4723_v38 = vcombine.high %v200_v33, %v204_v34  ;;  %v207_v39 = vld [vmem:[%s5445_s19 + $0x100] sm:$0xff]  ;;  %v208_v41 = vld [vmem:[%s5445_s19 + $0x108] sm:$0xff]  ;;  %v4720_v43 = vcombine.low %v199_v31, %v203_v32  ;;  %v4722_v44 = vcombine.low %v200_v33, %v204_v34 }
  0x1a   : > { %3795 = vmatpush1.bf16.msra.mxu0 %v4704_v27  ;;  %4000 = vmatpush1.bf16.msra.mxu1 %v4706_v28  ;;  %v211_v40 = vld [vmem:[%s5445_s19 + $0x120] sm:$0xff]  ;;  %v212_v42 = vld [vmem:[%s5445_s19 + $0x128] sm:$0xff] }
  0x1b   : > { %3796 = vmatprep.subr.bf16.mxu0 %v4713_v29  ;;  %4001 = vmatprep.subr.bf16.mxu1 %v4715_v30  ;;  %v4729_v45 = vcombine.high %v207_v39, %v211_v40  ;;  %v4731_v46 = vcombine.high %v208_v41, %v212_v42  ;;  %v215_v47 = vld [vmem:[%s5445_s19 + $0x140] sm:$0xff]  ;;  %v216_v49 = vld [vmem:[%s5445_s19 + $0x148] sm:$0xff]  ;;  %v4728_v51 = vcombine.low %v207_v39, %v211_v40 }
  0x1c   : > { %v219_v48 = vld [vmem:[%s5445_s19 + $0x160] sm:$0xff]  ;;  %v220_v50 = vld [vmem:[%s5445_s19 + $0x168] sm:$0xff]  ;;  %v4730_v52 = vcombine.low %v208_v41, %v212_v42 }
  0x1d   : > { %v4737_v53 = vcombine.high %v215_v47, %v219_v48  ;;  %v4739_v54 = vcombine.high %v216_v49, %v220_v50  ;;  %v223_v55 = vld [vmem:[%s5445_s19 + $0x180] sm:$0xff]  ;;  %v224_v57 = vld [vmem:[%s5445_s19 + $0x188] sm:$0xff]  ;;  %v4736_v59 = vcombine.low %v215_v47, %v219_v48  ;;  %v4738_v60 = vcombine.low %v216_v49, %v220_v50 }
  0x1e   : > { %3797 = vmatpush1.bf16.msra.mxu0 %v4712_v35  ;;  %4002 = vmatpush1.bf16.msra.mxu1 %v4714_v36  ;;  %v227_v56 = vld [vmem:[%s5445_s19 + $0x1a0] sm:$0xff]  ;;  %v228_v58 = vld [vmem:[%s5445_s19 + $0x1a8] sm:$0xff] }
  0x1f   : > { %3798 = vmatprep.subr.bf16.mxu0 %v4721_v37  ;;  %4003 = vmatprep.subr.bf16.mxu1 %v4723_v38  ;;  %v4745_v61 = vcombine.high %v223_v55, %v227_v56  ;;  %v4747_v62 = vcombine.high %v224_v57, %v228_v58  ;;  %v231_v63 = vld [vmem:[%s5445_s19 + $0x1c0] sm:$0xff]  ;;  %v232_v1 = vld [vmem:[%s5445_s19 + $0x1c8] sm:$0xff]  ;;  %v4744_v3 = vcombine.low %v223_v55, %v227_v56 }
  0x20   : > { %v235_v0 = vld [vmem:[%s5445_s19 + $0x1e0] sm:$0xff]  ;;  %v236_v2 = vld [vmem:[%s5445_s19 + $0x1e8] sm:$0xff]  ;;  %v4746_v4 = vcombine.low %v224_v57, %v228_v58 }
  0x21   : > { %v4753_v7 = vcombine.high %v231_v63, %v235_v0  ;;  %v4755_v8 = vcombine.high %v232_v1, %v236_v2  ;;  %v239_v9 = vld [vmem:[%s5445_s19 + $0x200] sm:$0xff]  ;;  %v240_v12 = vld [vmem:[%s5445_s19 + $0x208] sm:$0xff]  ;;  %v4752_v14 = vcombine.low %v231_v63, %v235_v0  ;;  %v4754_v15 = vcombine.low %v232_v1, %v236_v2 }
  0x22   : > { %3799 = vmatpush1.bf16.msra.mxu0 %v4720_v43  ;;  %4004 = vmatpush1.bf16.msra.mxu1 %v4722_v44  ;;  %v243_v11 = vld [vmem:[%s5445_s19 + $0x220] sm:$0xff]  ;;  %v244_v13 = vld [vmem:[%s5445_s19 + $0x228] sm:$0xff] }
  0x23   : > { %3800 = vmatprep.subr.bf16.mxu0 %v4729_v45  ;;  %4005 = vmatprep.subr.bf16.mxu1 %v4731_v46  ;;  %v4761_v16 = vcombine.high %v239_v9, %v243_v11  ;;  %v4763_v17 = vcombine.high %v240_v12, %v244_v13  ;;  %v247_v18 = vld [vmem:[%s5445_s19 + $0x240] sm:$0xff]  ;;  %v248_v20 = vld [vmem:[%s5445_s19 + $0x248] sm:$0xff]  ;;  %v4760_v22 = vcombine.low %v239_v9, %v243_v11 }
  0x24   : > { %v251_v19 = vld [vmem:[%s5445_s19 + $0x260] sm:$0xff]  ;;  %v252_v21 = vld [vmem:[%s5445_s19 + $0x268] sm:$0xff]  ;;  %v4762_v23 = vcombine.low %v240_v12, %v244_v13 }
  0x25   : > { %v4769_v24 = vcombine.high %v247_v18, %v251_v19  ;;  %v4771_v25 = vcombine.high %v248_v20, %v252_v21  ;;  %v255_v27 = vld [vmem:[%s5445_s19 + $0x280] sm:$0xff]  ;;  %v256_v29 = vld [vmem:[%s5445_s19 + $0x288] sm:$0xff]  ;;  %v4768_v31 = vcombine.low %v247_v18, %v251_v19  ;;  %v4770_v32 = vcombine.low %v248_v20, %v252_v21 }
  0x26   : > { %3801 = vmatpush1.bf16.msra.mxu0 %v4728_v51  ;;  %4006 = vmatpush1.bf16.msra.mxu1 %v4730_v52  ;;  %v259_v28 = vld [vmem:[%s5445_s19 + $0x2a0] sm:$0xff]  ;;  %v260_v30 = vld [vmem:[%s5445_s19 + $0x2a8] sm:$0xff] }
  0x27   : > { %3802 = vmatprep.subr.bf16.mxu0 %v4737_v53  ;;  %4007 = vmatprep.subr.bf16.mxu1 %v4739_v54  ;;  %v4777_v33 = vcombine.high %v255_v27, %v259_v28  ;;  %v4779_v34 = vcombine.high %v256_v29, %v260_v30  ;;  %v263_v35 = vld [vmem:[%s5445_s19 + $0x2c0] sm:$0xff]  ;;  %v264_v37 = vld [vmem:[%s5445_s19 + $0x2c8] sm:$0xff]  ;;  %v4776_v39 = vcombine.low %v255_v27, %v259_v28 }
  0x28   : > { %v267_v36 = vld [vmem:[%s5445_s19 + $0x2e0] sm:$0xff]  ;;  %v268_v38 = vld [vmem:[%s5445_s19 + $0x2e8] sm:$0xff]  ;;  %v4778_v40 = vcombine.low %v256_v29, %v260_v30 }
  0x29   : > { %v4785_v41 = vcombine.high %v263_v35, %v267_v36  ;;  %v4787_v42 = vcombine.high %v264_v37, %v268_v38  ;;  %v271_v43 = vld [vmem:[%s5445_s19 + $0x300] sm:$0xff]  ;;  %v272_v45 = vld [vmem:[%s5445_s19 + $0x308] sm:$0xff]  ;;  %v4784_v47 = vcombine.low %v263_v35, %v267_v36  ;;  %v4786_v48 = vcombine.low %v264_v37, %v268_v38 }
  0x2a   : > { %3803 = vmatpush1.bf16.msra.mxu0 %v4736_v59  ;;  %4008 = vmatpush1.bf16.msra.mxu1 %v4738_v60  ;;  %v275_v44 = vld [vmem:[%s5445_s19 + $0x320] sm:$0xff]  ;;  %v276_v46 = vld [vmem:[%s5445_s19 + $0x328] sm:$0xff] }
  0x2b   : > { %3804 = vmatprep.subr.bf16.mxu0 %v4745_v61  ;;  %4009 = vmatprep.subr.bf16.mxu1 %v4747_v62  ;;  %v4793_v49 = vcombine.high %v271_v43, %v275_v44  ;;  %v4795_v50 = vcombine.high %v272_v45, %v276_v46  ;;  %v279_v51 = vld [vmem:[%s5445_s19 + $0x340] sm:$0xff]  ;;  %v280_v53 = vld [vmem:[%s5445_s19 + $0x348] sm:$0xff]  ;;  %v4792_v55 = vcombine.low %v271_v43, %v275_v44 }
  0x2c   : > { %v283_v52 = vld [vmem:[%s5445_s19 + $0x360] sm:$0xff]  ;;  %v284_v54 = vld [vmem:[%s5445_s19 + $0x368] sm:$0xff]  ;;  %v4794_v56 = vcombine.low %v272_v45, %v276_v46 }
  0x2d   : > { %v4801_v57 = vcombine.high %v279_v51, %v283_v52  ;;  %v4803_v58 = vcombine.high %v280_v53, %v284_v54  ;;  %v287_v59 = vld [vmem:[%s5445_s19 + $0x380] sm:$0xff]  ;;  %v288_v61 = vld [vmem:[%s5445_s19 + $0x388] sm:$0xff]  ;;  %v4800_v63 = vcombine.low %v279_v51, %v283_v52  ;;  %v4802_v0 = vcombine.low %v280_v53, %v284_v54 }
  0x2e   : > { %3805 = vmatpush1.bf16.msra.mxu0 %v4744_v3  ;;  %4010 = vmatpush1.bf16.msra.mxu1 %v4746_v4  ;;  %v291_v60 = vld [vmem:[%s5445_s19 + $0x3a0] sm:$0xff]  ;;  %v292_v62 = vld [vmem:[%s5445_s19 + $0x3a8] sm:$0xff] }
  0x2f   : > { %3806 = vmatprep.subr.bf16.mxu0 %v4753_v7  ;;  %4011 = vmatprep.subr.bf16.mxu1 %v4755_v8  ;;  %v4809_v1 = vcombine.high %v287_v59, %v291_v60  ;;  %v4811_v2 = vcombine.high %v288_v61, %v292_v62  ;;  %v295_v3 = vld [vmem:[%s5445_s19 + $0x3c0] sm:$0xff]  ;;  %v296_v7 = vld [vmem:[%s5445_s19 + $0x3c8] sm:$0xff]  ;;  %v4808_v9 = vcombine.low %v287_v59, %v291_v60 }
  0x30   : > { %v299_v4 = vld [vmem:[%s5445_s19 + $0x3e0] sm:$0xff]  ;;  %v300_v8 = vld [vmem:[%s5445_s19 + $0x3e8] sm:$0xff]  ;;  %v4810_v11 = vcombine.low %v288_v61, %v292_v62 }
  0x31   : > { %v4817_v12 = vcombine.high %v295_v3, %v299_v4  ;;  %v4819_v13 = vcombine.high %v296_v7, %v300_v8  ;;  %v308_v18 = vld [vmem:[%s5445_s19 + $0x428] sm:$0xff]  ;;  %v4816_v19 = vcombine.low %v295_v3, %v299_v4  ;;  %v4818_v20 = vcombine.low %v296_v7, %v300_v8 }
  0x32   : > { %3807 = vmatpush1.bf16.msra.mxu0 %v4752_v14  ;;  %4012 = vmatpush1.bf16.msra.mxu1 %v4754_v15  ;;  %v303_v14 = vld [vmem:[%s5445_s19 + $0x400] sm:$0xff]  ;;  %v316_v27 = vld [vmem:[%s5445_s19 + $0x468] sm:$0xff] }
  0x33   : > { %3808 = vmatprep.subr.bf16.mxu0 %v4761_v16  ;;  %4013 = vmatprep.subr.bf16.mxu1 %v4763_v17  ;;  %v307_v15 = vld [vmem:[%s5445_s19 + $0x420] sm:$0xff]  ;;  %v772_v16 = vcombine.high %v5438_v5, %v5438_v5  ;;  %v304_v17 = vld [vmem:[%s5445_s19 + $0x408] sm:$0xff] }
  0x34   : > { %v4825_v21 = vcombine.high %v303_v14, %v307_v15  ;;  %v312_v5 = vld [vmem:[%s5445_s19 + $0x448] sm:$0xff]  ;;  %v4824_v28 = vcombine.low %v303_v14, %v307_v15  ;;  %v4826_v29 = vcombine.low %v304_v17, %v308_v18 }
  0x35   : > { %v320_v35 = vld [vmem:[%s5445_s19 + $0x488] sm:$0xff]  ;;  %v4834_v38 = vcombine.low %v312_v5, %v316_v27 }
  0x36   : > { %3809 = vmatpush1.bf16.msra.mxu0 %v4760_v22  ;;  %4014 = vmatpush1.bf16.msra.mxu1 %v4762_v23  ;;  %v4827_v22 = vcombine.high %v304_v17, %v308_v18  ;;  %v311_v23 = vld [vmem:[%s5445_s19 + $0x440] sm:$0xff]  ;;  %v324_v36 = vld [vmem:[%s5445_s19 + $0x4a8] sm:$0xff] }
  0x37   : > { %3810 = vmatprep.subr.bf16.mxu0 %v4769_v24  ;;  %4015 = vmatprep.subr.bf16.mxu1 %v4771_v25  ;;  %v315_v24 = vld [vmem:[%s5445_s19 + $0x460] sm:$0xff]  ;;  %v5530_v25 = vrot.slane %v772_v16, %v5440_v6  ;;  %v328_v43 = vld [vmem:[%s5445_s19 + $0x4c8] sm:$0xff]  ;;  %v4842_v46 = vcombine.low %v320_v35, %v324_v36 }
  0x38   : > { %v4833_v30 = vcombine.high %v311_v23, %v315_v24  ;;  %v4832_v37 = vcombine.low %v311_v23, %v315_v24  ;;  %v332_v44 = vld [vmem:[%s5445_s19 + $0x4e8] sm:$0xff] }
  0x39   : > { %v336_v51 = vld [vmem:[%s5445_s19 + $0x508] sm:$0xff]  ;;  %v4850_v54 = vcombine.low %v328_v43, %v332_v44 }
  0x3a   : > { %3811 = vmatpush1.bf16.msra.mxu0 %v4768_v31  ;;  %4016 = vmatpush1.bf16.msra.mxu1 %v4770_v32  ;;  %v4835_v31 = vcombine.high %v312_v5, %v316_v27  ;;  %v319_v32 = vld [vmem:[%s5445_s19 + $0x480] sm:$0xff]  ;;  %v340_v52 = vld [vmem:[%s5445_s19 + $0x528] sm:$0xff] }
  0x3b   : > { %3812 = vmatprep.subr.bf16.mxu0 %v4777_v33  ;;  %4017 = vmatprep.subr.bf16.mxu1 %v4779_v34  ;;  %v323_v33 = vld [vmem:[%s5445_s19 + $0x4a0] sm:$0xff]  ;;  %v5538_v34 = vcombine.high %v5530_v25, %v5530_v25  ;;  %v344_v59 = vld [vmem:[%s5445_s19 + $0x548] sm:$0xff]  ;;  %v4858_v62 = vcombine.low %v336_v51, %v340_v52 }
  0x3c   : > { %v4840_v45 = vcombine.low %v319_v32, %v323_v33  ;;  %v348_v60 = vld [vmem:[%s5445_s19 + $0x568] sm:$0xff] }
  0x3d   : > { %v352_v3 = vld [vmem:[%s5445_s19 + $0x588] sm:$0xff]  ;;  %v4866_v8 = vcombine.low %v344_v59, %v348_v60 }
  0x3e   : > { %3813 = vmatpush1.bf16.msra.mxu0 %v4776_v39  ;;  %4018 = vmatpush1.bf16.msra.mxu1 %v4778_v40  ;;  %v4841_v39 = vcombine.high %v319_v32, %v323_v33  ;;  %v4843_v40 = vcombine.high %v320_v35, %v324_v36  ;;  %v356_v4 = vld [vmem:[%s5445_s19 + $0x5a8] sm:$0xff] }
  0x3f   : > { %3814 = vmatprep.subr.bf16.mxu0 %v4785_v41  ;;  %4019 = vmatprep.subr.bf16.mxu1 %v4787_v42  ;;  %v327_v41 = vld [vmem:[%s5445_s19 + $0x4c0] sm:$0xff]  ;;  %v360_v14 = vld [vmem:[%s5445_s19 + $0x5c8] sm:$0xff]  ;;  %v4874_v17 = vcombine.low %v352_v3, %v356_v4 }
  0x40   : > { %v331_v42 = vld [vmem:[%s5445_s19 + $0x4e0] sm:$0xff]  ;;  %v364_v15 = vld [vmem:[%s5445_s19 + $0x5e8] sm:$0xff] }
  0x41   : > { %v4848_v53 = vcombine.low %v327_v41, %v331_v42  ;;  %v372_v23 = vld [vmem:[%s5445_s19 + $0x628] sm:$0xff]  ;;  %v4882_v5 = vcombine.low %v360_v14, %v364_v15 }
  0x42   : > { %3815 = vmatpush1.bf16.msra.mxu0 %v4784_v47  ;;  %4020 = vmatpush1.bf16.msra.mxu1 %v4786_v48  ;;  %v4849_v47 = vcombine.high %v327_v41, %v331_v42  ;;  %v4851_v48 = vcombine.high %v328_v43, %v332_v44  ;;  %v380_v32 = vld [vmem:[%s5445_s19 + $0x668] sm:$0xff] }
  0x43   : > { %3816 = vmatprep.subr.bf16.mxu0 %v4793_v49  ;;  %4021 = vmatprep.subr.bf16.mxu1 %v4795_v50  ;;  %v335_v49 = vld [vmem:[%s5445_s19 + $0x500] sm:$0xff]  ;;  %v388_v41 = vld [vmem:[%s5445_s19 + $0x6a8] sm:$0xff] }
  0x44   : > { %v339_v50 = vld [vmem:[%s5445_s19 + $0x520] sm:$0xff] }
  0x45   : > { %v4856_v61 = vcombine.low %v335_v49, %v339_v50 }
  0x46   : > { %3817 = vmatpush1.bf16.msra.mxu0 %v4792_v55  ;;  %4022 = vmatpush1.bf16.msra.mxu1 %v4794_v56  ;;  %v4857_v55 = vcombine.high %v335_v49, %v339_v50  ;;  %v4859_v56 = vcombine.high %v336_v51, %v340_v52  ;;  %v396_v49 = vld [vmem:[%s5445_s19 + $0x6e8] sm:$0xff] }
  0x47   : > { %3818 = vmatprep.subr.bf16.mxu0 %v4801_v57  ;;  %4023 = vmatprep.subr.bf16.mxu1 %v4803_v58  ;;  %v343_v57 = vld [vmem:[%s5445_s19 + $0x540] sm:$0xff] }
  0x48   : > { %v347_v58 = vld [vmem:[%s5445_s19 + $0x560] sm:$0xff] }
  0x49   : > { %v4864_v7 = vcombine.low %v343_v57, %v347_v58 }
  0x4a   : > { %3819 = vmatpush1.bf16.msra.mxu0 %v4800_v63  ;;  %4024 = vmatpush1.bf16.msra.mxu1 %v4802_v0  ;;  %v4865_v63 = vcombine.high %v343_v57, %v347_v58  ;;  %v4867_v0 = vcombine.high %v344_v59, %v348_v60  ;;  %v404_v57 = vld [vmem:[%s5445_s19 + $0x728] sm:$0xff] }
  0x4b   : > { %3820 = vmatprep.subr.bf16.mxu0 %v4809_v1  ;;  %4025 = vmatprep.subr.bf16.mxu1 %v4811_v2  ;;  %v351_v1 = vld [vmem:[%s5445_s19 + $0x580] sm:$0xff] }
  0x4c   : > { %v355_v2 = vld [vmem:[%s5445_s19 + $0x5a0] sm:$0xff] }
  0x4d   : > { %v4872_v16 = vcombine.low %v351_v1, %v355_v2 }
  0x4e   : > { %3821 = vmatpush1.bf16.msra.mxu0 %v4808_v9  ;;  %4026 = vmatpush1.bf16.msra.mxu1 %v4810_v11  ;;  %v4873_v9 = vcombine.high %v351_v1, %v355_v2  ;;  %v4875_v11 = vcombine.high %v352_v3, %v356_v4  ;;  %v412_v1 = vld [vmem:[%s5445_s19 + $0x768] sm:$0xff] }
  0x4f   : > { %3822 = vmatprep.subr.bf16.mxu0 %v4817_v12  ;;  %4027 = vmatprep.subr.bf16.mxu1 %v4819_v13  ;;  %v359_v12 = vld [vmem:[%s5445_s19 + $0x5c0] sm:$0xff] }
  0x50   : > { %v363_v13 = vld [vmem:[%s5445_s19 + $0x5e0] sm:$0xff] }
  0x51   : > { %v4881_v18 = vcombine.high %v359_v12, %v363_v13  ;;  %v4880_v24 = vcombine.low %v359_v12, %v363_v13  ;;  %v420_v12 = vld [vmem:[%s5445_s19 + $0x7a8] sm:$0xff] }
  0x52   : > { %3823 = vmatpush1.bf16.msra.mxu0 %v4816_v19  ;;  %4028 = vmatpush1.bf16.msra.mxu1 %v4818_v20  ;;  %v4883_v19 = vcombine.high %v360_v14, %v364_v15  ;;  %v367_v20 = vld [vmem:[%s5445_s19 + $0x600] sm:$0xff] }
  0x53   : > { %3833 = vmatprep.subr.bf16.mxu0 %v4825_v21  ;;  %4038 = vmatprep.subr.bf16.mxu1 %v4827_v22  ;;  %v371_v21 = vld [vmem:[%s5445_s19 + $0x620] sm:$0xff]  ;;  %v368_v22 = vld [vmem:[%s5445_s19 + $0x608] sm:$0xff] }
  0x54   : > { %v4889_v27 = vcombine.high %v367_v20, %v371_v21  ;;  %v4888_v33 = vcombine.low %v367_v20, %v371_v21  ;;  %v4890_v35 = vcombine.low %v368_v22, %v372_v23  ;;  %v428_v20 = vld [vmem:[%s5445_s19 + $0x7e8] sm:$0xff] }
  0x55   : > { %3825 = vmatmul.mubr.bf16.vlgmr.msra.gmra.mrb[0].mxu0 %v5452_v10  ;;  %4030 = vmatmul.mubr.bf16.vlgmr.msra.gmra.mrb[0].mxu1 %v5452_v10 }
  0x56   : > { %3834 = vmatpush1.bf16.msra.mxu0 %v4824_v28  ;;  %4039 = vmatpush1.bf16.msra.mxu1 %v4826_v29  ;;  %v4891_v28 = vcombine.high %v368_v22, %v372_v23  ;;  %v375_v29 = vld [vmem:[%s5445_s19 + $0x640] sm:$0xff] }
  0x57   : > { %3835 = vmatprep.subr.bf16.mxu0 %v4833_v30  ;;  %4040 = vmatprep.subr.bf16.mxu1 %v4835_v31  ;;  %v379_v30 = vld [vmem:[%s5445_s19 + $0x660] sm:$0xff]  ;;  %v376_v31 = vld [vmem:[%s5445_s19 + $0x648] sm:$0xff] }
  0x58   : > { %3865 = vmatprep.mubr.bf16.mxu0 %v5538_v34  ;;  %4070 = vmatprep.mubr.bf16.mxu1 %v5538_v34  ;;  %v4897_v36 = vcombine.high %v375_v29, %v379_v30  ;;  %v4896_v42 = vcombine.low %v375_v29, %v379_v30  ;;  %v4898_v43 = vcombine.low %v376_v31, %v380_v32  ;;  %v436_v29 = vld [vmem:[%s5445_s19 + $0x828] sm:$0xff] }
  0x59   : > { %v5605_v30 = vld [vmem:[%s6162_s0 + $0x8] sm:$0xff] }
  0x5a   : > { %3836 = vmatpush1.bf16.msra.mxu0 %v4832_v37  ;;  %4041 = vmatpush1.bf16.msra.mxu1 %v4834_v38  ;;  %v4899_v37 = vcombine.high %v376_v31, %v380_v32  ;;  %v383_v38 = vld [vmem:[%s5445_s19 + $0x680] sm:$0xff] }
  0x5b   : > { %3837 = vmatprep.subr.bf16.mxu0 %v4841_v39  ;;  %4042 = vmatprep.subr.bf16.mxu1 %v4843_v40  ;;  %v387_v39 = vld [vmem:[%s5445_s19 + $0x6a0] sm:$0xff]  ;;  %v384_v40 = vld [vmem:[%s5445_s19 + $0x688] sm:$0xff] }
  0x5c   : > { %v4905_v44 = vcombine.high %v383_v38, %v387_v39  ;;  %v4904_v50 = vcombine.low %v383_v38, %v387_v39  ;;  %v4906_v51 = vcombine.low %v384_v40, %v388_v41  ;;  %v5611_v38 = vrot.slane %v5605_v30, %v5440_v6  ;;  %v440_v39 = vld [vmem:[%s5445_s19 + $0x848] sm:$0xff] }
  0x5e   : > { %3838 = vmatpush1.bf16.msra.mxu0 %v4840_v45  ;;  %4043 = vmatpush1.bf16.msra.mxu1 %v4842_v46  ;;  %v4907_v45 = vcombine.high %v384_v40, %v388_v41  ;;  %v391_v46 = vld [vmem:[%s5445_s19 + $0x6c0] sm:$0xff]  ;;  %v444_v40 = vld [vmem:[%s5445_s19 + $0x868] sm:$0xff] }
  0x5f   : > { %3839 = vmatprep.subr.bf16.mxu0 %v4849_v47  ;;  %4044 = vmatprep.subr.bf16.mxu1 %v4851_v48  ;;  %v395_v47 = vld [vmem:[%s5445_s19 + $0x6e0] sm:$0xff]  ;;  %v392_v48 = vld [vmem:[%s5445_s19 + $0x6c8] sm:$0xff] }
  0x60   : > { %v4913_v52 = vcombine.high %v391_v46, %v395_v47  ;;  %v4912_v58 = vcombine.low %v391_v46, %v395_v47  ;;  %v4914_v59 = vcombine.low %v392_v48, %v396_v49  ;;  %v451_v46 = vld [vmem:[%s5445_s19 + $0x8a0] sm:$0xff]  ;;  %v5619_v47 = vcombine.high %v5611_v38, %v5611_v38 }
  0x62   : > { %3840 = vmatpush1.bf16.msra.mxu0 %v4848_v53  ;;  %4045 = vmatpush1.bf16.msra.mxu1 %v4850_v54  ;;  %v4915_v53 = vcombine.high %v392_v48, %v396_v49  ;;  %v399_v54 = vld [vmem:[%s5445_s19 + $0x700] sm:$0xff]  ;;  %v448_v48 = vld [vmem:[%s5445_s19 + $0x888] sm:$0xff] }
  0x63   : > { %3841 = vmatprep.subr.bf16.mxu0 %v4857_v55  ;;  %4046 = vmatprep.subr.bf16.mxu1 %v4859_v56  ;;  %v403_v55 = vld [vmem:[%s5445_s19 + $0x720] sm:$0xff]  ;;  %v400_v56 = vld [vmem:[%s5445_s19 + $0x708] sm:$0xff] }
  0x64   : > { %v4921_v60 = vcombine.high %v399_v54, %v403_v55  ;;  %v4920_v2 = vcombine.low %v399_v54, %v403_v55  ;;  %v4922_v3 = vcombine.low %v400_v56, %v404_v57  ;;  %v452_v49 = vld [vmem:[%s5445_s19 + $0x8a8] sm:$0xff]  ;;  %v455_v54 = vld [vmem:[%s5445_s19 + $0x8c0] sm:$0xff] }
  0x65   : > { %v459_v55 = vld [vmem:[%s5445_s19 + $0x8e0] sm:$0xff] }
  0x66   : > { %3842 = vmatpush1.bf16.msra.mxu0 %v4856_v61  ;;  %4047 = vmatpush1.bf16.msra.mxu1 %v4858_v62  ;;  %v4923_v61 = vcombine.high %v400_v56, %v404_v57  ;;  %v407_v62 = vld [vmem:[%s5445_s19 + $0x740] sm:$0xff]  ;;  %v456_v56 = vld [vmem:[%s5445_s19 + $0x8c8] sm:$0xff] }
  0x67   : > { %3843 = vmatprep.subr.bf16.mxu0 %v4865_v63  ;;  %4048 = vmatprep.subr.bf16.mxu1 %v4867_v0  ;;  %v411_v63 = vld [vmem:[%s5445_s19 + $0x760] sm:$0xff]  ;;  %v408_v0 = vld [vmem:[%s5445_s19 + $0x748] sm:$0xff] }
  0x68   : > { %v4929_v4 = vcombine.high %v407_v62, %v411_v63  ;;  %v4928_v13 = vcombine.low %v407_v62, %v411_v63  ;;  %v4930_v14 = vcombine.low %v408_v0, %v412_v1  ;;  %v460_v57 = vld [vmem:[%s5445_s19 + $0x8e8] sm:$0xff]  ;;  %v463_v62 = vld [vmem:[%s5445_s19 + $0x900] sm:$0xff] }
  0x69   : > { %v467_v63 = vld [vmem:[%s5445_s19 + $0x920] sm:$0xff] }
  0x6a   : > { %3844 = vmatpush1.bf16.msra.mxu0 %v4864_v7  ;;  %4049 = vmatpush1.bf16.msra.mxu1 %v4866_v8  ;;  %v4931_v7 = vcombine.high %v408_v0, %v412_v1  ;;  %v415_v8 = vld [vmem:[%s5445_s19 + $0x780] sm:$0xff]  ;;  %v464_v0 = vld [vmem:[%s5445_s19 + $0x908] sm:$0xff] }
  0x6b   : > { %3845 = vmatprep.subr.bf16.mxu0 %v4873_v9  ;;  %4050 = vmatprep.subr.bf16.mxu1 %v4875_v11  ;;  %v419_v9 = vld [vmem:[%s5445_s19 + $0x7a0] sm:$0xff]  ;;  %v416_v11 = vld [vmem:[%s5445_s19 + $0x788] sm:$0xff] }
  0x6c   : > { %v4937_v15 = vcombine.high %v415_v8, %v419_v9  ;;  %v4936_v21 = vcombine.low %v415_v8, %v419_v9  ;;  %v4938_v22 = vcombine.low %v416_v11, %v420_v12  ;;  %v468_v1 = vld [vmem:[%s5445_s19 + $0x928] sm:$0xff]  ;;  %v471_v8 = vld [vmem:[%s5445_s19 + $0x940] sm:$0xff] }
  0x6d   : > { %v475_v9 = vld [vmem:[%s5445_s19 + $0x960] sm:$0xff] }
  0x6e   : > { %3846 = vmatpush1.bf16.msra.mxu0 %v4872_v16  ;;  %4051 = vmatpush1.bf16.msra.mxu1 %v4874_v17  ;;  %v4939_v16 = vcombine.high %v416_v11, %v420_v12  ;;  %v423_v17 = vld [vmem:[%s5445_s19 + $0x7c0] sm:$0xff]  ;;  %v472_v11 = vld [vmem:[%s5445_s19 + $0x948] sm:$0xff] }
  0x6f   : > { %3847 = vmatprep.subr.bf16.mxu0 %v4881_v18  ;;  %4052 = vmatprep.subr.bf16.mxu1 %v4883_v19  ;;  %v427_v18 = vld [vmem:[%s5445_s19 + $0x7e0] sm:$0xff]  ;;  %v424_v19 = vld [vmem:[%s5445_s19 + $0x7c8] sm:$0xff] }
  0x70   : > { %v4945_v23 = vcombine.high %v423_v17, %v427_v18  ;;  %v4944_v31 = vcombine.low %v423_v17, %v427_v18  ;;  %v4946_v32 = vcombine.low %v424_v19, %v428_v20  ;;  %v476_v12 = vld [vmem:[%s5445_s19 + $0x968] sm:$0xff]  ;;  %v479_v17 = vld [vmem:[%s5445_s19 + $0x980] sm:$0xff] }
  0x71   : > { %v483_v18 = vld [vmem:[%s5445_s19 + $0x9a0] sm:$0xff] }
  0x72   : > { %3848 = vmatpush1.bf16.msra.mxu0 %v4880_v24  ;;  %4053 = vmatpush1.bf16.msra.mxu1 %v4882_v5  ;;  %v4947_v24 = vcombine.high %v424_v19, %v428_v20  ;;  %v431_v5 = vld [vmem:[%s5445_s19 + $0x800] sm:$0xff]  ;;  %v480_v19 = vld [vmem:[%s5445_s19 + $0x988] sm:$0xff] }
  0x73   : > { %3849 = vmatprep.subr.bf16.mxu0 %v4889_v27  ;;  %4054 = vmatprep.subr.bf16.mxu1 %v4891_v28  ;;  %v435_v27 = vld [vmem:[%s5445_s19 + $0x820] sm:$0xff]  ;;  %v432_v28 = vld [vmem:[%s5445_s19 + $0x808] sm:$0xff] }
  0x74   : > { %v4952_v41 = vcombine.low %v431_v5, %v435_v27  ;;  %v484_v20 = vld [vmem:[%s5445_s19 + $0x9a8] sm:$0xff] }
  0x76   : > { %3850 = vmatpush1.bf16.msra.mxu0 %v4888_v33  ;;  %4055 = vmatpush1.bf16.msra.mxu1 %v4890_v35  ;;  %v4953_v33 = vcombine.high %v431_v5, %v435_v27  ;;  %v4955_v35 = vcombine.high %v432_v28, %v436_v29  ;;  %v487_v5 = vld [vmem:[%s5445_s19 + $0x9c0] sm:$0xff] }
  0x77   : > { %3851 = vmatprep.subr.bf16.mxu0 %v4897_v36  ;;  %4056 = vmatprep.subr.bf16.mxu1 %v4899_v37  ;;  %v439_v36 = vld [vmem:[%s5445_s19 + $0x840] sm:$0xff] }
  0x78   : > { %v443_v37 = vld [vmem:[%s5445_s19 + $0x860] sm:$0xff] }
  0x79   : > { %v491_v27 = vld [vmem:[%s5445_s19 + $0x9e0] sm:$0xff] }
  0x7a   : > { %3852 = vmatpush1.bf16.msra.mxu0 %v4896_v42  ;;  %4057 = vmatpush1.bf16.msra.mxu1 %v4898_v43  ;;  %v4954_v42 = vcombine.low %v432_v28, %v436_v29  ;;  %v4961_v43 = vcombine.high %v439_v36, %v443_v37  ;;  %v488_v28 = vld [vmem:[%s5445_s19 + $0x9c8] sm:$0xff] }
  0x7b   : > { %3853 = vmatprep.subr.bf16.mxu0 %v4905_v44  ;;  %4058 = vmatprep.subr.bf16.mxu1 %v4907_v45  ;;  %v4963_v44 = vcombine.high %v440_v39, %v444_v40  ;;  %v447_v45 = vld [vmem:[%s5445_s19 + $0x880] sm:$0xff]  ;;  %v492_v29 = vld [vmem:[%s5445_s19 + $0x9e8] sm:$0xff] }
  0x7e   : > { %3854 = vmatpush1.bf16.msra.mxu0 %v4904_v50  ;;  %4059 = vmatpush1.bf16.msra.mxu1 %v4906_v51  ;;  %v4960_v50 = vcombine.low %v439_v36, %v443_v37  ;;  %v4962_v51 = vcombine.low %v440_v39, %v444_v40  ;;  %v495_v36 = vld [vmem:[%s5445_s19 + $0xa00] sm:$0xff]  ;;  %v496_v39 = vld [vmem:[%s5445_s19 + $0xa08] sm:$0xff] }
  0x7f   : > { %3855 = vmatprep.subr.bf16.mxu0 %v4913_v52  ;;  %4060 = vmatprep.subr.bf16.mxu1 %v4915_v53  ;;  %v4969_v52 = vcombine.high %v447_v45, %v451_v46  ;;  %v4971_v53 = vcombine.high %v448_v48, %v452_v49  ;;  %v499_v37 = vld [vmem:[%s5445_s19 + $0xa20] sm:$0xff]  ;;  %v500_v40 = vld [vmem:[%s5445_s19 + $0xa28] sm:$0xff] }
  0x82   : > { %3856 = vmatpush1.bf16.msra.mxu0 %v4912_v58  ;;  %4061 = vmatpush1.bf16.msra.mxu1 %v4914_v59  ;;  %v4968_v58 = vcombine.low %v447_v45, %v451_v46  ;;  %v4970_v59 = vcombine.low %v448_v48, %v452_v49  ;;  %v503_v45 = vld [vmem:[%s5445_s19 + $0xa40] sm:$0xff]  ;;  %v504_v48 = vld [vmem:[%s5445_s19 + $0xa48] sm:$0xff] }
  0x83   : > { %3857 = vmatprep.subr.bf16.mxu0 %v4921_v60  ;;  %4062 = vmatprep.subr.bf16.mxu1 %v4923_v61  ;;  %v4977_v60 = vcombine.high %v455_v54, %v459_v55  ;;  %v4979_v61 = vcombine.high %v456_v56, %v460_v57  ;;  %v507_v46 = vld [vmem:[%s5445_s19 + $0xa60] sm:$0xff]  ;;  %v508_v49 = vld [vmem:[%s5445_s19 + $0xa68] sm:$0xff] }
  0x86   : > { %3858 = vmatpush1.bf16.msra.mxu0 %v4920_v2  ;;  %4063 = vmatpush1.bf16.msra.mxu1 %v4922_v3  ;;  %v4976_v2 = vcombine.low %v455_v54, %v459_v55  ;;  %v4978_v3 = vcombine.low %v456_v56, %v460_v57  ;;  %v511_v54 = vld [vmem:[%s5445_s19 + $0xa80] sm:$0xff]  ;;  %v512_v56 = vld [vmem:[%s5445_s19 + $0xa88] sm:$0xff] }
  0x87   : > { %3859 = vmatprep.subr.bf16.mxu0 %v4929_v4  ;;  %4064 = vmatprep.subr.bf16.mxu1 %v4931_v7  ;;  %v4985_v4 = vcombine.high %v463_v62, %v467_v63  ;;  %v4987_v7 = vcombine.high %v464_v0, %v468_v1  ;;  %v515_v55 = vld [vmem:[%s5445_s19 + $0xaa0] sm:$0xff]  ;;  %v516_v57 = vld [vmem:[%s5445_s19 + $0xaa8] sm:$0xff] }
  0x8a   : > { %3860 = vmatpush1.bf16.msra.mxu0 %v4928_v13  ;;  %4065 = vmatpush1.bf16.msra.mxu1 %v4930_v14  ;;  %v4984_v13 = vcombine.low %v463_v62, %v467_v63  ;;  %v4986_v14 = vcombine.low %v464_v0, %v468_v1  ;;  %v519_v62 = vld [vmem:[%s5445_s19 + $0xac0] sm:$0xff]  ;;  %v520_v0 = vld [vmem:[%s5445_s19 + $0xac8] sm:$0xff] }
  0x8b   : > { %3861 = vmatprep.subr.bf16.mxu0 %v4937_v15  ;;  %4066 = vmatprep.subr.bf16.mxu1 %v4939_v16  ;;  %v4993_v15 = vcombine.high %v471_v8, %v475_v9  ;;  %v4995_v16 = vcombine.high %v472_v11, %v476_v12  ;;  %v523_v63 = vld [vmem:[%s5445_s19 + $0xae0] sm:$0xff]  ;;  %v524_v1 = vld [vmem:[%s5445_s19 + $0xae8] sm:$0xff] }
  0x8e   : > { %3862 = vmatpush1.bf16.msra.mxu0 %v4936_v21  ;;  %4067 = vmatpush1.bf16.msra.mxu1 %v4938_v22  ;;  %v4992_v21 = vcombine.low %v471_v8, %v475_v9  ;;  %v4994_v22 = vcombine.low %v472_v11, %v476_v12  ;;  %v527_v8 = vld [vmem:[%s5445_s19 + $0xb00] sm:$0xff]  ;;  %v528_v11 = vld [vmem:[%s5445_s19 + $0xb08] sm:$0xff] }
  0x8f   : > { %3863 = vmatprep.subr.bf16.mxu0 %v4945_v23  ;;  %4068 = vmatprep.subr.bf16.mxu1 %v4947_v24  ;;  %v5001_v23 = vcombine.high %v479_v17, %v483_v18  ;;  %v5003_v24 = vcombine.high %v480_v19, %v484_v20  ;;  %v531_v9 = vld [vmem:[%s5445_s19 + $0xb20] sm:$0xff]  ;;  %v532_v12 = vld [vmem:[%s5445_s19 + $0xb28] sm:$0xff] }
  0x92   : > { %3864 = vmatpush1.bf16.msra.mxu0 %v4944_v31  ;;  %4069 = vmatpush1.bf16.msra.mxu1 %v4946_v32  ;;  %v5000_v31 = vcombine.low %v479_v17, %v483_v18  ;;  %v5002_v32 = vcombine.low %v480_v19, %v484_v20  ;;  %v535_v17 = vld [vmem:[%s5445_s19 + $0xb40] sm:$0xff]  ;;  %v536_v19 = vld [vmem:[%s5445_s19 + $0xb48] sm:$0xff] }
  0x93   : > { %3874 = vmatprep.subr.bf16.mxu0 %v4953_v33  ;;  %4079 = vmatprep.subr.bf16.mxu1 %v4955_v35  ;;  %v5009_v33 = vcombine.high %v487_v5, %v491_v27  ;;  %v5011_v35 = vcombine.high %v488_v28, %v492_v29  ;;  %v539_v18 = vld [vmem:[%s5445_s19 + $0xb60] sm:$0xff]  ;;  %v540_v20 = vld [vmem:[%s5445_s19 + $0xb68] sm:$0xff] }
  0x95   : > { %3866 = vmatmul.mubr.bf16.vlgmr.msra.gmra.mrb[0].mxu0 %v5530_v25  ;;  %4071 = vmatmul.mubr.bf16.vlgmr.msra.gmra.mrb[0].mxu1 %v5530_v25 }
  0x96   : > { %3875 = vmatpush1.bf16.msra.mxu0 %v4952_v41  ;;  %4080 = vmatpush1.bf16.msra.mxu1 %v4954_v42  ;;  %v5008_v41 = vcombine.low %v487_v5, %v491_v27  ;;  %v5010_v42 = vcombine.low %v488_v28, %v492_v29  ;;  %v543_v5 = vld [vmem:[%s5445_s19 + $0xb80] sm:$0xff]  ;;  %v544_v28 = vld [vmem:[%s5445_s19 + $0xb88] sm:$0xff] }
  0x97   : > { %3876 = vmatprep.subr.bf16.mxu0 %v4961_v43  ;;  %4081 = vmatprep.subr.bf16.mxu1 %v4963_v44  ;;  %v5017_v43 = vcombine.high %v495_v36, %v499_v37  ;;  %v5019_v44 = vcombine.high %v496_v39, %v500_v40  ;;  %v547_v27 = vld [vmem:[%s5445_s19 + $0xba0] sm:$0xff]  ;;  %v548_v29 = vld [vmem:[%s5445_s19 + $0xba8] sm:$0xff] }
  0x98   : > { %3906 = vmatprep.mubr.bf16.mxu0 %v5619_v47  ;;  %4111 = vmatprep.mubr.bf16.mxu1 %v5619_v47 }
  0x9a   : > { %3877 = vmatpush1.bf16.msra.mxu0 %v4960_v50  ;;  %4082 = vmatpush1.bf16.msra.mxu1 %v4962_v51  ;;  %v5016_v50 = vcombine.low %v495_v36, %v499_v37  ;;  %v5018_v51 = vcombine.low %v496_v39, %v500_v40  ;;  %v551_v36 = vld [vmem:[%s5445_s19 + $0xbc0] sm:$0xff]  ;;  %v552_v39 = vld [vmem:[%s5445_s19 + $0xbc8] sm:$0xff] }
  0x9b   : > { %3878 = vmatprep.subr.bf16.mxu0 %v4969_v52  ;;  %4083 = vmatprep.subr.bf16.mxu1 %v4971_v53  ;;  %v5025_v52 = vcombine.high %v503_v45, %v507_v46  ;;  %v5027_v53 = vcombine.high %v504_v48, %v508_v49  ;;  %v555_v37 = vld [vmem:[%s5445_s19 + $0xbe0] sm:$0xff]  ;;  %v556_v40 = vld [vmem:[%s5445_s19 + $0xbe8] sm:$0xff] }
  0x9e   : > { %3879 = vmatpush1.bf16.msra.mxu0 %v4968_v58  ;;  %4084 = vmatpush1.bf16.msra.mxu1 %v4970_v59  ;;  %v5024_v58 = vcombine.low %v503_v45, %v507_v46  ;;  %v5026_v59 = vcombine.low %v504_v48, %v508_v49  ;;  %v559_v45 = vld [vmem:[%s5445_s19 + $0xc00] sm:$0xff]  ;;  %v789_v48 = vcombine.high %v5605_v30, %v5605_v30  ;;  %v560_v49 = vld [vmem:[%s5445_s19 + $0xc08] sm:$0xff] }
  0x9f   : > { %3880 = vmatprep.subr.bf16.mxu0 %v4977_v60  ;;  %4085 = vmatprep.subr.bf16.mxu1 %v4979_v61  ;;  %v5033_v60 = vcombine.high %v511_v54, %v515_v55  ;;  %v5035_v61 = vcombine.high %v512_v56, %v516_v57  ;;  %v563_v46 = vld [vmem:[%s5445_s19 + $0xc20] sm:$0xff]  ;;  %v568_v30 = vld [vmem:[%s5445_s19 + $0xc48] sm:$0xff] }
  0xa2   : > { %3881 = vmatpush1.bf16.msra.mxu0 %v4976_v2  ;;  %4086 = vmatpush1.bf16.msra.mxu1 %v4978_v3  ;;  %v5032_v2 = vcombine.low %v511_v54, %v515_v55  ;;  %v5034_v3 = vcombine.low %v512_v56, %v516_v57  ;;  %v567_v55 = vld [vmem:[%s5445_s19 + $0xc40] sm:$0xff]  ;;  %v5688_v57 = vrot.slane %v789_v48, %v5440_v6  ;;  %v576_v6 = vld [vmem:[%s5445_s19 + $0xc88] sm:$0xff] }
  0xa3   : > { %3882 = vmatprep.subr.bf16.mxu0 %v4985_v4  ;;  %4087 = vmatprep.subr.bf16.mxu1 %v4987_v7  ;;  %v5041_v4 = vcombine.high %v519_v62, %v523_v63  ;;  %v5043_v7 = vcombine.high %v520_v0, %v524_v1  ;;  %v571_v56 = vld [vmem:[%s5445_s19 + $0xc60] sm:$0xff] }
  0xa4   : > { %v619_v48 = vld [vmem:[%s5445_s19 + $0xde0] sm:$0xff] }
  0xa6   : > { %3883 = vmatpush1.bf16.msra.mxu0 %v4984_v13  ;;  %4088 = vmatpush1.bf16.msra.mxu1 %v4986_v14  ;;  %v5040_v13 = vcombine.low %v519_v62, %v523_v63  ;;  %v5042_v14 = vcombine.low %v520_v0, %v524_v1  ;;  %v575_v63 = vld [vmem:[%s5445_s19 + $0xc80] sm:$0xff]  ;;  %v5696_v1 = vcombine.high %v5688_v57, %v5688_v57 }
  0xa7   : > { %3884 = vmatprep.subr.bf16.mxu0 %v4993_v15  ;;  %4089 = vmatprep.subr.bf16.mxu1 %v4995_v16  ;;  %v5049_v15 = vcombine.high %v527_v8, %v531_v9  ;;  %v5051_v16 = vcombine.high %v528_v11, %v532_v12  ;;  %v579_v0 = vld [vmem:[%s5445_s19 + $0xca0] sm:$0xff] }
  0xaa   : > { %3885 = vmatpush1.bf16.msra.mxu0 %v4992_v21  ;;  %4090 = vmatpush1.bf16.msra.mxu1 %v4994_v22  ;;  %v5048_v21 = vcombine.low %v527_v8, %v531_v9  ;;  %v5050_v22 = vcombine.low %v528_v11, %v532_v12  ;;  %v583_v9 = vld [vmem:[%s5445_s19 + $0xcc0] sm:$0xff]  ;;  %v584_v12 = vld [vmem:[%s5445_s19 + $0xcc8] sm:$0xff] }
  0xab   : > { %3886 = vmatprep.subr.bf16.mxu0 %v5001_v23  ;;  %4091 = vmatprep.subr.bf16.mxu1 %v5003_v24  ;;  %v5057_v23 = vcombine.high %v535_v17, %v539_v18  ;;  %v5059_v24 = vcombine.high %v536_v19, %v540_v20  ;;  %v587_v11 = vld [vmem:[%s5445_s19 + $0xce0] sm:$0xff] }
  0xae   : > { %3887 = vmatpush1.bf16.msra.mxu0 %v5000_v31  ;;  %4092 = vmatpush1.bf16.msra.mxu1 %v5002_v32  ;;  %v5056_v31 = vcombine.low %v535_v17, %v539_v18  ;;  %v5058_v32 = vcombine.low %v536_v19, %v540_v20  ;;  %v591_v18 = vld [vmem:[%s5445_s19 + $0xd00] sm:$0xff]  ;;  %v592_v20 = vld [vmem:[%s5445_s19 + $0xd08] sm:$0xff] }
  0xaf   : > { %3888 = vmatprep.subr.bf16.mxu0 %v5009_v33  ;;  %4093 = vmatprep.subr.bf16.mxu1 %v5011_v35  ;;  %v5065_v33 = vcombine.high %v543_v5, %v547_v27  ;;  %v5067_v35 = vcombine.high %v544_v28, %v548_v29  ;;  %v595_v19 = vld [vmem:[%s5445_s19 + $0xd20] sm:$0xff] }
  0xb2   : > { %3889 = vmatpush1.bf16.msra.mxu0 %v5008_v41  ;;  %4094 = vmatpush1.bf16.msra.mxu1 %v5010_v42  ;;  %v5064_v41 = vcombine.low %v543_v5, %v547_v27  ;;  %v5066_v42 = vcombine.low %v544_v28, %v548_v29  ;;  %v599_v27 = vld [vmem:[%s5445_s19 + $0xd40] sm:$0xff]  ;;  %v600_v29 = vld [vmem:[%s5445_s19 + $0xd48] sm:$0xff] }
  0xb3   : > { %3890 = vmatprep.subr.bf16.mxu0 %v5017_v43  ;;  %4095 = vmatprep.subr.bf16.mxu1 %v5019_v44  ;;  %v5073_v43 = vcombine.high %v551_v36, %v555_v37  ;;  %v5075_v44 = vcombine.high %v552_v39, %v556_v40  ;;  %v603_v28 = vld [vmem:[%s5445_s19 + $0xd60] sm:$0xff] }
  0xb6   : > { %3891 = vmatpush1.bf16.msra.mxu0 %v5016_v50  ;;  %4096 = vmatpush1.bf16.msra.mxu1 %v5018_v51  ;;  %v564_v50 = vld [vmem:[%s5445_s19 + $0xc28] sm:$0xff]  ;;  %v5072_v51 = vcombine.low %v551_v36, %v555_v37  ;;  %v607_v37 = vld [vmem:[%s5445_s19 + $0xd80] sm:$0xff] }
  0xb7   : > { %3892 = vmatprep.subr.bf16.mxu0 %v5025_v52  ;;  %4097 = vmatprep.subr.bf16.mxu1 %v5027_v53  ;;  %v5074_v52 = vcombine.low %v552_v39, %v556_v40  ;;  %v5081_v53 = vcombine.high %v559_v45, %v563_v46  ;;  %v5083_v54 = vcombine.high %v560_v49, %v564_v50  ;;  %v611_v39 = vld [vmem:[%s5445_s19 + $0xda0] sm:$0xff]  ;;  %v608_v40 = vld [vmem:[%s5445_s19 + $0xd88] sm:$0xff] }
  0xba   : > { %3893 = vmatpush1.bf16.msra.mxu0 %v5024_v58  ;;  %4098 = vmatpush1.bf16.msra.mxu1 %v5026_v59  ;;  %v572_v58 = vld [vmem:[%s5445_s19 + $0xc68] sm:$0xff]  ;;  %v5080_v59 = vcombine.low %v559_v45, %v563_v46  ;;  %v615_v46 = vld [vmem:[%s5445_s19 + $0xdc0] sm:$0xff] }
  0xbb   : > { %3894 = vmatprep.subr.bf16.mxu0 %v5033_v60  ;;  %4099 = vmatprep.subr.bf16.mxu1 %v5035_v61  ;;  %v5082_v60 = vcombine.low %v560_v49, %v564_v50  ;;  %v5089_v61 = vcombine.high %v567_v55, %v571_v56  ;;  %v5091_v62 = vcombine.high %v568_v30, %v572_v58  ;;  %v616_v49 = vld [vmem:[%s5445_s19 + $0xdc8] sm:$0xff] }
  0xbc   : > { %v620_v50 = vld [vmem:[%s5445_s19 + $0xde8] sm:$0xff] }
  0xbe   : > { %3895 = vmatpush1.bf16.msra.mxu0 %v5032_v2  ;;  %4100 = vmatpush1.bf16.msra.mxu1 %v5034_v3  ;;  %v580_v2 = vld [vmem:[%s5445_s19 + $0xca8] sm:$0xff]  ;;  %v5088_v3 = vcombine.low %v567_v55, %v571_v56  ;;  %v623_v55 = vld [vmem:[%s5445_s19 + $0xe00] sm:$0xff] }
  0xbf   : > { %3896 = vmatprep.subr.bf16.mxu0 %v5041_v4  ;;  %4101 = vmatprep.subr.bf16.mxu1 %v5043_v7  ;;  %v5090_v4 = vcombine.low %v568_v30, %v572_v58  ;;  %v5097_v7 = vcombine.high %v575_v63, %v579_v0  ;;  %v5099_v8 = vcombine.high %v576_v6, %v580_v2  ;;  %v627_v56 = vld [vmem:[%s5445_s19 + $0xe20] sm:$0xff]  ;;  %v624_v30 = vld [vmem:[%s5445_s19 + $0xe08] sm:$0xff] }
  0xc0   : > { %v628_v58 = vld [vmem:[%s5445_s19 + $0xe28] sm:$0xff] }
  0xc2   : > { %3897 = vmatpush1.bf16.msra.mxu0 %v5040_v13  ;;  %4102 = vmatpush1.bf16.msra.mxu1 %v5042_v14  ;;  %v588_v13 = vld [vmem:[%s5445_s19 + $0xce8] sm:$0xff]  ;;  %v5096_v14 = vcombine.low %v575_v63, %v579_v0  ;;  %v631_v63 = vld [vmem:[%s5445_s19 + $0xe40] sm:$0xff] }
  0xc3   : > { %3898 = vmatprep.subr.bf16.mxu0 %v5049_v15  ;;  %4103 = vmatprep.subr.bf16.mxu1 %v5051_v16  ;;  %v5098_v15 = vcombine.low %v576_v6, %v580_v2  ;;  %v5105_v16 = vcombine.high %v583_v9, %v587_v11  ;;  %v5107_v17 = vcombine.high %v584_v12, %v588_v13  ;;  %v635_v0 = vld [vmem:[%s5445_s19 + $0xe60] sm:$0xff]  ;;  %v632_v6 = vld [vmem:[%s5445_s19 + $0xe48] sm:$0xff] }
  0xc4   : > { %v636_v2 = vld [vmem:[%s5445_s19 + $0xe68] sm:$0xff] }
  0xc6   : > { %3899 = vmatpush1.bf16.msra.mxu0 %v5048_v21  ;;  %4104 = vmatpush1.bf16.msra.mxu1 %v5050_v22  ;;  %v596_v21 = vld [vmem:[%s5445_s19 + $0xd28] sm:$0xff]  ;;  %v5104_v22 = vcombine.low %v583_v9, %v587_v11  ;;  %v639_v9 = vld [vmem:[%s5445_s19 + $0xe80] sm:$0xff] }
  0xc7   : > { %3900 = vmatprep.subr.bf16.mxu0 %v5057_v23  ;;  %4105 = vmatprep.subr.bf16.mxu1 %v5059_v24  ;;  %v5106_v23 = vcombine.low %v584_v12, %v588_v13  ;;  %v5113_v24 = vcombine.high %v591_v18, %v595_v19  ;;  %v5115_v5 = vcombine.high %v592_v20, %v596_v21  ;;  %v643_v11 = vld [vmem:[%s5445_s19 + $0xea0] sm:$0xff]  ;;  %v640_v12 = vld [vmem:[%s5445_s19 + $0xe88] sm:$0xff] }
  0xc8   : > { %v644_v13 = vld [vmem:[%s5445_s19 + $0xea8] sm:$0xff] }
  0xca   : > { %3901 = vmatpush1.bf16.msra.mxu0 %v5056_v31  ;;  %4106 = vmatpush1.bf16.msra.mxu1 %v5058_v32  ;;  %v604_v31 = vld [vmem:[%s5445_s19 + $0xd68] sm:$0xff]  ;;  %v5112_v32 = vcombine.low %v591_v18, %v595_v19  ;;  %v647_v18 = vld [vmem:[%s5445_s19 + $0xec0] sm:$0xff] }
  0xcb   : > { %3902 = vmatprep.subr.bf16.mxu0 %v5065_v33  ;;  %4107 = vmatprep.subr.bf16.mxu1 %v5067_v35  ;;  %v5114_v33 = vcombine.low %v592_v20, %v596_v21  ;;  %v5121_v35 = vcombine.high %v599_v27, %v603_v28  ;;  %v5123_v36 = vcombine.high %v600_v29, %v604_v31  ;;  %v651_v19 = vld [vmem:[%s5445_s19 + $0xee0] sm:$0xff]  ;;  %v648_v20 = vld [vmem:[%s5445_s19 + $0xec8] sm:$0xff] }
  0xcc   : > { %v652_v21 = vld [vmem:[%s5445_s19 + $0xee8] sm:$0xff] }
  0xce   : > { %3903 = vmatpush1.bf16.msra.mxu0 %v5064_v41  ;;  %4108 = vmatpush1.bf16.msra.mxu1 %v5066_v42  ;;  %v612_v41 = vld [vmem:[%s5445_s19 + $0xda8] sm:$0xff]  ;;  %v5120_v42 = vcombine.low %v599_v27, %v603_v28  ;;  %v655_v27 = vld [vmem:[%s5445_s19 + $0xf00] sm:$0xff] }
  0xcf   : > { %3904 = vmatprep.subr.bf16.mxu0 %v5073_v43  ;;  %4109 = vmatprep.subr.bf16.mxu1 %v5075_v44  ;;  %v5122_v43 = vcombine.low %v600_v29, %v604_v31  ;;  %v5129_v44 = vcombine.high %v607_v37, %v611_v39  ;;  %v5131_v45 = vcombine.high %v608_v40, %v612_v41  ;;  %v659_v28 = vld [vmem:[%s5445_s19 + $0xf20] sm:$0xff]  ;;  %v656_v29 = vld [vmem:[%s5445_s19 + $0xf08] sm:$0xff] }
  0xd0   : > { %v660_v31 = vld [vmem:[%s5445_s19 + $0xf28] sm:$0xff] }
  0xd2   : > { %3905 = vmatpush1.bf16.msra.mxu0 %v5072_v51  ;;  %4110 = vmatpush1.bf16.msra.mxu1 %v5074_v52  ;;  %v5128_v51 = vcombine.low %v607_v37, %v611_v39  ;;  %v5130_v52 = vcombine.low %v608_v40, %v612_v41  ;;  %v663_v37 = vld [vmem:[%s5445_s19 + $0xf40] sm:$0xff]  ;;  %v664_v40 = vld [vmem:[%s5445_s19 + $0xf48] sm:$0xff] }
  0xd3   : > { %3915 = vmatprep.subr.bf16.mxu0 %v5081_v53  ;;  %4120 = vmatprep.subr.bf16.mxu1 %v5083_v54  ;;  %v5137_v53 = vcombine.high %v615_v46, %v619_v48  ;;  %v5139_v54 = vcombine.high %v616_v49, %v620_v50  ;;  %v667_v39 = vld [vmem:[%s5445_s19 + $0xf60] sm:$0xff]  ;;  %v668_v41 = vld [vmem:[%s5445_s19 + $0xf68] sm:$0xff] }
  0xd5   : > { %3907 = vmatmul.mubr.bf16.vlgmr.msra.gmra.mrb[0].mxu0 %v5611_v38  ;;  %4112 = vmatmul.mubr.bf16.vlgmr.msra.gmra.mrb[0].mxu1 %v5611_v38 }
  0xd6   : > { %3916 = vmatpush1.bf16.msra.mxu0 %v5080_v59  ;;  %4121 = vmatpush1.bf16.msra.mxu1 %v5082_v60  ;;  %v5136_v59 = vcombine.low %v615_v46, %v619_v48  ;;  %v5138_v60 = vcombine.low %v616_v49, %v620_v50  ;;  %v671_v46 = vld [vmem:[%s5445_s19 + $0xf80] sm:$0xff]  ;;  %v672_v49 = vld [vmem:[%s5445_s19 + $0xf88] sm:$0xff] }
  0xd7   : > { %3917 = vmatprep.subr.bf16.mxu0 %v5089_v61  ;;  %4122 = vmatprep.subr.bf16.mxu1 %v5091_v62  ;;  %v5145_v61 = vcombine.high %v623_v55, %v627_v56  ;;  %v5147_v62 = vcombine.high %v624_v30, %v628_v58  ;;  %v675_v48 = vld [vmem:[%s5445_s19 + $0xfa0] sm:$0xff]  ;;  %v676_v50 = vld [vmem:[%s5445_s19 + $0xfa8] sm:$0xff] }
  0xd8   : > { %3947 = vmatprep.mubr.bf16.mxu0 %v5696_v1  ;;  %4152 = vmatprep.mubr.bf16.mxu1 %v5696_v1 }
  0xda   : > { %3918 = vmatpush1.bf16.msra.mxu0 %v5088_v3  ;;  %4123 = vmatpush1.bf16.msra.mxu1 %v5090_v4  ;;  %v5144_v3 = vcombine.low %v623_v55, %v627_v56  ;;  %v5146_v4 = vcombine.low %v624_v30, %v628_v58  ;;  %v679_v55 = vld [vmem:[%s5445_s19 + $0xfc0] sm:$0xff]  ;;  %v680_v30 = vld [vmem:[%s5445_s19 + $0xfc8] sm:$0xff] }
  0xdb   : > { %3919 = vmatprep.subr.bf16.mxu0 %v5097_v7  ;;  %4124 = vmatprep.subr.bf16.mxu1 %v5099_v8  ;;  %v5153_v7 = vcombine.high %v631_v63, %v635_v0  ;;  %v5155_v8 = vcombine.high %v632_v6, %v636_v2  ;;  %v683_v56 = vld [vmem:[%s5445_s19 + $0xfe0] sm:$0xff]  ;;  %v684_v58 = vld [vmem:[%s5445_s19 + $0xfe8] sm:$0xff] }
  0xde   : > { %3920 = vmatpush1.bf16.msra.mxu0 %v5096_v14  ;;  %4125 = vmatpush1.bf16.msra.mxu1 %v5098_v15  ;;  %v5152_v14 = vcombine.low %v631_v63, %v635_v0  ;;  %v5154_v15 = vcombine.low %v632_v6, %v636_v2  ;;  %v687_v63 = vld [vmem:[%s5445_s19 + $0x1000] sm:$0xff]  ;;  %v688_v6 = vld [vmem:[%s5445_s19 + $0x1008] sm:$0xff] }
  0xdf   : > { %3921 = vmatprep.subr.bf16.mxu0 %v5105_v16  ;;  %4126 = vmatprep.subr.bf16.mxu1 %v5107_v17  ;;  %v5161_v16 = vcombine.high %v639_v9, %v643_v11  ;;  %v5163_v17 = vcombine.high %v640_v12, %v644_v13  ;;  %v691_v0 = vld [vmem:[%s5445_s19 + $0x1020] sm:$0xff]  ;;  %v692_v2 = vld [vmem:[%s5445_s19 + $0x1028] sm:$0xff] }
  0xe2   : > { %3922 = vmatpush1.bf16.msra.mxu0 %v5104_v22  ;;  %4127 = vmatpush1.bf16.msra.mxu1 %v5106_v23  ;;  %v5160_v22 = vcombine.low %v639_v9, %v643_v11  ;;  %v5162_v23 = vcombine.low %v640_v12, %v644_v13  ;;  %v5211_v9 = vcombine.high %v688_v6, %v692_v2  ;;  %v695_v11 = vld [vmem:[%s5445_s19 + $0x1040] sm:$0xff]  ;;  %v5403_v13 = vmov 0  }
  0xe3   : > { %3923 = vmatprep.subr.bf16.mxu0 %v5113_v24  ;;  %4128 = vmatprep.subr.bf16.mxu1 %v5115_v5  ;;  %v5169_v24 = vcombine.high %v647_v18, %v651_v19  ;;  %v5171_v5 = vcombine.high %v648_v20, %v652_v21  ;;  %v699_v12 = vld [vmem:[%s5445_s19 + $0x1060] sm:$0xff] }
  0xe4   : > { %5382 = vset.pattern.permute.xlu0 %v5403_v13 }
  0xe6   : > { %3924 = vmatpush1.bf16.msra.mxu0 %v5112_v32  ;;  %4129 = vmatpush1.bf16.msra.mxu1 %v5114_v33  ;;  %v5168_v32 = vcombine.low %v647_v18, %v651_v19  ;;  %v5170_v33 = vcombine.low %v648_v20, %v652_v21  ;;  %v5210_v18 = vcombine.low %v688_v6, %v692_v2  ;;  %v703_v21 = vld [vmem:[%s5445_s19 + $0x1080] sm:$0xff] }
  0xe7   : > { %3925 = vmatprep.subr.bf16.mxu0 %v5121_v35  ;;  %4130 = vmatprep.subr.bf16.mxu1 %v5123_v36  ;;  %v5177_v35 = vcombine.high %v655_v27, %v659_v28  ;;  %v5179_v36 = vcombine.high %v656_v29, %v660_v31  ;;  %v5217_v19 = vcombine.high %v695_v11, %v699_v12 }
  0xea   : > { %3926 = vmatpush1.bf16.msra.mxu0 %v5120_v42  ;;  %4131 = vmatpush1.bf16.msra.mxu1 %v5122_v43  ;;  %v5176_v42 = vcombine.low %v655_v27, %v659_v28  ;;  %v5178_v43 = vcombine.low %v656_v29, %v660_v31  ;;  %v5216_v27 = vcombine.low %v695_v11, %v699_v12 }
  0xeb   : > { %3927 = vmatprep.subr.bf16.mxu0 %v5129_v44  ;;  %4132 = vmatprep.subr.bf16.mxu1 %v5131_v45  ;;  %v5185_v44 = vcombine.high %v663_v37, %v667_v39  ;;  %v5187_v45 = vcombine.high %v664_v40, %v668_v41 }
  0xee   : > { %3928 = vmatpush1.bf16.msra.mxu0 %v5128_v51  ;;  %4133 = vmatpush1.bf16.msra.mxu1 %v5130_v52  ;;  %v5184_v51 = vcombine.low %v663_v37, %v667_v39  ;;  %v5186_v52 = vcombine.low %v664_v40, %v668_v41 }
  0xef   : > { %3929 = vmatprep.subr.bf16.mxu0 %v5137_v53  ;;  %4134 = vmatprep.subr.bf16.mxu1 %v5139_v54  ;;  %v5193_v53 = vcombine.high %v671_v46, %v675_v48  ;;  %v5195_v54 = vcombine.high %v672_v49, %v676_v50 }
  0xf2   : > { %3930 = vmatpush1.bf16.msra.mxu0 %v5136_v59  ;;  %4135 = vmatpush1.bf16.msra.mxu1 %v5138_v60  ;;  %v5192_v59 = vcombine.low %v671_v46, %v675_v48  ;;  %v5194_v60 = vcombine.low %v672_v49, %v676_v50 }
  0xf3   : > { %3931 = vmatprep.subr.bf16.mxu0 %v5145_v61  ;;  %4136 = vmatprep.subr.bf16.mxu1 %v5147_v62  ;;  %v5201_v61 = vcombine.high %v679_v55, %v683_v56  ;;  %v5203_v62 = vcombine.high %v680_v30, %v684_v58 }
  0xf6   : > { %3932 = vmatpush1.bf16.msra.mxu0 %v5144_v3  ;;  %4137 = vmatpush1.bf16.msra.mxu1 %v5146_v4  ;;  %v5200_v3 = vcombine.low %v679_v55, %v683_v56  ;;  %v5202_v4 = vcombine.low %v680_v30, %v684_v58 }
  0xf7   : > { %3933 = vmatprep.subr.bf16.mxu0 %v5153_v7  ;;  %4138 = vmatprep.subr.bf16.mxu1 %v5155_v8  ;;  %v5209_v7 = vcombine.high %v687_v63, %v691_v0  ;;  %v763_v8 = vld [vmem:[%s6163_s1] sm:$0x7] }
  0xf8   : > { %766 = vperm.xlu0 %5382, %v763_v8   ;;  %v748_v8 = vld [vmem:[%s5445_s19 + $0x11e8] sm:$0xff] }
  0xfa   : > { %3934 = vmatpush1.bf16.msra.mxu0 %v5152_v14  ;;  %4139 = vmatpush1.bf16.msra.mxu1 %v5154_v15  ;;  %v696_v14 = vld [vmem:[%s5445_s19 + $0x1048] sm:$0xff] }
  0xfb   : > { %3935 = vmatprep.subr.bf16.mxu0 %v5161_v16  ;;  %4140 = vmatprep.subr.bf16.mxu1 %v5163_v17  ;;  %v700_v15 = vld [vmem:[%s5445_s19 + $0x1068] sm:$0xff]  ;;  %v5770_v16 = vld.sshfl [vmem:[%s6162_s0 + $0x10] sm:$0x33 pattern:$0x76325410]  ;;  %v5208_v17 = vcombine.low %v687_v63, %v691_v0 }
  0xfc   : > { %v5219_v20 = vcombine.high %v696_v14, %v700_v15  ;;  %v5218_v28 = vcombine.low %v696_v14, %v700_v15  ;;  %v751_v14 = vld [vmem:[%s5445_s19 + $0x1200] sm:$0xff] }
  0xfd   : > { %v755_v15 = vld [vmem:[%s5445_s19 + $0x1220] sm:$0xff] }
  0xfe   : > { %3936 = vmatpush1.bf16.msra.mxu0 %v5160_v22  ;;  %4141 = vmatpush1.bf16.msra.mxu1 %v5162_v23  ;;  %v707_v22 = vld [vmem:[%s5445_s19 + $0x10a0] sm:$0xff]  ;;  %v5776_v23 = vcombine.high %v5770_v16, %v5770_v16 }
  0xff   : > { %3937 = vmatprep.subr.bf16.mxu0 %v5169_v24  ;;  %4142 = vmatprep.subr.bf16.mxu1 %v5171_v5  ;;  %v704_v24 = vld [vmem:[%s5445_s19 + $0x1088] sm:$0xff]  ;;  %v5225_v29 = vcombine.high %v703_v21, %v707_v22  ;;  %v5224_v37 = vcombine.low %v703_v21, %v707_v22  ;;  %v5273_v21 = vcombine.high %v751_v14, %v755_v15 }
 0x100   : > { %v708_v5 = vld [vmem:[%s5445_s19 + $0x10a8] sm:$0xff] }
 0x101   : > { %v5227_v31 = vcombine.high %v704_v24, %v708_v5  ;;  %v5226_v39 = vcombine.low %v704_v24, %v708_v5  ;;  %v759_v24 = vld [vmem:[%s5445_s19 + $0x1240] sm:$0xff]  ;;  %v760_v5 = vld [vmem:[%s5445_s19 + $0x1248] sm:$0xff] }
 0x102   : > { %3938 = vmatpush1.bf16.msra.mxu0 %v5168_v32  ;;  %4143 = vmatpush1.bf16.msra.mxu1 %v5170_v33  ;;  %v711_v32 = vld [vmem:[%s5445_s19 + $0x10c0] sm:$0xff] }
 0x103   : > { %3939 = vmatprep.subr.bf16.mxu0 %v5177_v35  ;;  %4144 = vmatprep.subr.bf16.mxu1 %v5179_v36  ;;  %v715_v33 = vld [vmem:[%s5445_s19 + $0x10e0] sm:$0xff]  ;;  %v712_v35 = vld [vmem:[%s5445_s19 + $0x10c8] sm:$0xff] }
 0x104   : > { %v716_v36 = vld [vmem:[%s5445_s19 + $0x10e8] sm:$0xff]  ;;  %v5233_v40 = vcombine.high %v711_v32, %v715_v33  ;;  %v5232_v46 = vcombine.low %v711_v32, %v715_v33  ;;  %v5283_v32 = vcombine.high %v760_v5, %v760_v5  ;;  %v5282_v33 = vcombine.low %v760_v5, %v760_v5  ;;  %v229_v5 = vld [vmem:[%s5445_s19 + $0x1b0] sm:$0xff] }
 0x105   : > { %v5235_v41 = vcombine.high %v712_v35, %v716_v36  ;;  %v5234_v48 = vcombine.low %v712_v35, %v716_v36  ;;  %v177_v35 = vld [vmem:[%s5445_s19 + $0x10] sm:$0xff] }
 0x106   : > { %3940 = vmatpush1.bf16.msra.mxu0 %v5176_v42  ;;  %4145 = vmatpush1.bf16.msra.mxu1 %v5178_v43  ;;  %v719_v42 = vld [vmem:[%s5445_s19 + $0x1100] sm:$0xff]  ;;  %v181_v36 = vld [vmem:[%s5445_s19 + $0x30] sm:$0xff] }
 0x107   : > { %3941 = vmatprep.subr.bf16.mxu0 %v5185_v44  ;;  %4146 = vmatprep.subr.bf16.mxu1 %v5187_v45  ;;  %v723_v43 = vld [vmem:[%s5445_s19 + $0x1120] sm:$0xff]  ;;  %v720_v44 = vld [vmem:[%s5445_s19 + $0x1108] sm:$0xff] }
 0x108   : > { %v724_v45 = vld [vmem:[%s5445_s19 + $0x1128] sm:$0xff]  ;;  %v5241_v49 = vcombine.high %v719_v42, %v723_v43  ;;  %v5240_v55 = vcombine.low %v719_v42, %v723_v43  ;;  %v3775_v42 = vsel %vm3767_vm1, %v5282_v33, 0 }
 0x109   : > { %v5243_v50 = vcombine.high %v720_v44, %v724_v45  ;;  %v5242_v56 = vcombine.low %v720_v44, %v724_v45  ;;  %v185_v44 = vld [vmem:[%s5445_s19 + $0x50] sm:$0xff] }
 0x10a   : > { %3942 = vmatpush1.bf16.msra.mxu0 %v5184_v51  ;;  %4147 = vmatpush1.bf16.msra.mxu1 %v5186_v52  ;;  %v727_v51 = vld [vmem:[%s5445_s19 + $0x1140] sm:$0xff]  ;;  %v189_v45 = vld [vmem:[%s5445_s19 + $0x70] sm:$0xff] }
 0x10b   : > { %3943 = vmatprep.subr.bf16.mxu0 %v5193_v53  ;;  %4148 = vmatprep.subr.bf16.mxu1 %v5195_v54  ;;  %v731_v52 = vld [vmem:[%s5445_s19 + $0x1160] sm:$0xff]  ;;  %v728_v53 = vld [vmem:[%s5445_s19 + $0x1148] sm:$0xff] }
 0x10c   : > { %v732_v54 = vld [vmem:[%s5445_s19 + $0x1168] sm:$0xff]  ;;  %v5249_v30 = vcombine.high %v727_v51, %v731_v52  ;;  %v5248_v63 = vcombine.low %v727_v51, %v731_v52  ;;  %v4709_v51 = vcombine.high %v185_v44, %v189_v45 }
 0x10d   : > { %v5251_v58 = vcombine.high %v728_v53, %v732_v54  ;;  %v5250_v0 = vcombine.low %v728_v53, %v732_v54  ;;  %v193_v53 = vld [vmem:[%s5445_s19 + $0x90] sm:$0xff] }
 0x10e   : > { %3944 = vmatpush1.bf16.msra.mxu0 %v5192_v59  ;;  %4149 = vmatpush1.bf16.msra.mxu1 %v5194_v60  ;;  %v735_v59 = vld [vmem:[%s5445_s19 + $0x1180] sm:$0xff]  ;;  %v197_v54 = vld [vmem:[%s5445_s19 + $0xb0] sm:$0xff] }
 0x10f   : > { %3945 = vmatprep.subr.bf16.mxu0 %v5201_v61  ;;  %4150 = vmatprep.subr.bf16.mxu1 %v5203_v62  ;;  %v739_v60 = vld [vmem:[%s5445_s19 + $0x11a0] sm:$0xff]  ;;  %v736_v61 = vld [vmem:[%s5445_s19 + $0x1188] sm:$0xff] }
 0x110   : > { %v740_v62 = vld [vmem:[%s5445_s19 + $0x11a8] sm:$0xff]  ;;  %v5257_v6 = vcombine.high %v735_v59, %v739_v60 }
 0x111   : > { %v5259_v2 = vcombine.high %v736_v61, %v740_v62  ;;  %v5258_v11 = vcombine.low %v736_v61, %v740_v62  ;;  %v201_v61 = vld [vmem:[%s5445_s19 + $0xd0] sm:$0xff] }
 0x112   : > { %3946 = vmatpush1.bf16.msra.mxu0 %v5200_v3  ;;  %4151 = vmatpush1.bf16.msra.mxu1 %v5202_v4  ;;  %v743_v3 = vld [vmem:[%s5445_s19 + $0x11c0] sm:$0xff]  ;;  %v205_v62 = vld [vmem:[%s5445_s19 + $0xf0] sm:$0xff] }
 0x113   : > { %3956 = vmatprep.subr.bf16.mxu0 %v5209_v7  ;;  %4161 = vmatprep.subr.bf16.mxu1 %v5211_v9  ;;  %v747_v4 = vld [vmem:[%s5445_s19 + $0x11e0] sm:$0xff]  ;;  %v744_v7 = vld [vmem:[%s5445_s19 + $0x11c8] sm:$0xff]  ;;  %v5256_v9 = vcombine.low %v735_v59, %v739_v60  ;;  %v4717_v59 = vcombine.high %v193_v53, %v197_v54 }
 0x114   : > { %v5265_v12 = vcombine.high %v743_v3, %v747_v4  ;;  %v5267_v13 = vcombine.high %v744_v7, %v748_v8 }
 0x115   : > { %3948 = vmatmul.mubr.bf16.vlgmr.msra.gmra.mrb[0].mxu0 %v5688_v57  ;;  %4153 = vmatmul.mubr.bf16.vlgmr.msra.gmra.mrb[0].mxu1 %v5688_v57 }
 0x116   : > { %3957 = vmatpush1.bf16.msra.mxu0 %v5208_v17  ;;  %4162 = vmatpush1.bf16.msra.mxu1 %v5210_v18  ;;  %v752_v17 = vld [vmem:[%s5445_s19 + $0x1208] sm:$0xff] }
 0x117   : > { %3958 = vmatprep.subr.bf16.mxu0 %v5217_v19  ;;  %4163 = vmatprep.subr.bf16.mxu1 %v5219_v20  ;;  %v756_v18 = vld [vmem:[%s5445_s19 + $0x1228] sm:$0xff]  ;;  %v5264_v19 = vcombine.low %v743_v3, %v747_v4  ;;  %v5266_v20 = vcombine.low %v744_v7, %v748_v8  ;;  %v209_v4 = vld [vmem:[%s5445_s19 + $0x110] sm:$0xff]  ;;  %v210_v8 = vld [vmem:[%s5445_s19 + $0x118] sm:$0xff] }
 0x118   : > { %5289 = vmatprep.mubr.msk.bf16.mxu0 %vm3763_vm0, %v5776_v23  ;;  %5291 = vmatprep.mubr.msk.bf16.mxu1 %vm3763_vm0, %v5776_v23  ;;  %v5275_v22 = vcombine.high %v752_v17, %v756_v18  ;;  %v213_v7 = vld [vmem:[%s5445_s19 + $0x130] sm:$0xff] }
 0x11a   : > { %3959 = vmatpush1.bf16.msra.mxu0 %v5216_v27  ;;  %4164 = vmatpush1.bf16.msra.mxu1 %v5218_v28  ;;  %v5272_v27 = vcombine.low %v751_v14, %v755_v15  ;;  %v5274_v28 = vcombine.low %v752_v17, %v756_v18  ;;  %v217_v14 = vld [vmem:[%s5445_s19 + $0x150] sm:$0xff]  ;;  %v218_v17 = vld [vmem:[%s5445_s19 + $0x158] sm:$0xff] }
 0x11b   : > { %3960 = vmatprep.subr.bf16.mxu0 %v5225_v29  ;;  %4165 = vmatprep.subr.bf16.mxu1 %v5227_v31  ;;  %v5281_v29 = vcombine.high %v759_v24, %v759_v24  ;;  %v5280_v31 = vcombine.low %v759_v24, %v759_v24  ;;  %v221_v15 = vld [vmem:[%s5445_s19 + $0x170] sm:$0xff]  ;;  %v222_v18 = vld [vmem:[%s5445_s19 + $0x178] sm:$0xff] }
 0x11c   : > { %v225_v24 = vld [vmem:[%s5445_s19 + $0x190] sm:$0xff] }
 0x11e   : > { %3961 = vmatpush1.bf16.msra.mxu0 %v5224_v37  ;;  %4166 = vmatpush1.bf16.msra.mxu1 %v5226_v39  ;;  %v178_v37 = vld [vmem:[%s5445_s19 + $0x18] sm:$0xff] }
 0x11f   : > { %3962 = vmatprep.subr.bf16.mxu0 %v5233_v40  ;;  %4167 = vmatprep.subr.bf16.mxu1 %v5235_v41  ;;  %v182_v39 = vld [vmem:[%s5445_s19 + $0x38] sm:$0xff]  ;;  %v3769_v40 = vsel %vm3767_vm1, %v5280_v31, 0  ;;  %v4701_v41 = vcombine.high %v177_v35, %v181_v36  ;;  %v4742_v31 = vcombine.low %v218_v17, %v222_v18 }
 0x120   : > { %v4703_v43 = vcombine.high %v178_v37, %v182_v39 }
 0x122   : > { %3963 = vmatpush1.bf16.msra.mxu0 %v5232_v46  ;;  %4168 = vmatpush1.bf16.msra.mxu1 %v5234_v48  ;;  %v186_v46 = vld [vmem:[%s5445_s19 + $0x58] sm:$0xff] }
 0x123   : > { %3964 = vmatprep.subr.bf16.mxu0 %v5241_v49  ;;  %4169 = vmatprep.subr.bf16.mxu1 %v5243_v50  ;;  %v190_v48 = vld [vmem:[%s5445_s19 + $0x78] sm:$0xff]  ;;  %v4700_v49 = vcombine.low %v177_v35, %v181_v36  ;;  %v4702_v50 = vcombine.low %v178_v37, %v182_v39  ;;  %v233_v35 = vld [vmem:[%s5445_s19 + $0x1d0] sm:$0xff] }
 0x124   : > { %v4711_v52 = vcombine.high %v186_v46, %v190_v48  ;;  %v237_v36 = vld [vmem:[%s5445_s19 + $0x1f0] sm:$0xff]  ;;  %v234_v37 = vld [vmem:[%s5445_s19 + $0x1d8] sm:$0xff] }
 0x125   : > { %v238_v39 = vld [vmem:[%s5445_s19 + $0x1f8] sm:$0xff] }
 0x126   : > { %3965 = vmatpush1.bf16.msra.mxu0 %v5240_v55  ;;  %4170 = vmatpush1.bf16.msra.mxu1 %v5242_v56  ;;  %v194_v55 = vld [vmem:[%s5445_s19 + $0x98] sm:$0xff] }
 0x127   : > { %3966 = vmatprep.subr.bf16.mxu0 %v5249_v30  ;;  %4171 = vmatprep.subr.bf16.mxu1 %v5251_v58  ;;  %v198_v56 = vld [vmem:[%s5445_s19 + $0xb8] sm:$0xff]  ;;  %v4708_v30 = vcombine.low %v185_v44, %v189_v45  ;;  %v4710_v58 = vcombine.low %v186_v46, %v190_v48  ;;  %v241_v44 = vld [vmem:[%s5445_s19 + $0x210] sm:$0xff] }
 0x128   : > { %v4719_v60 = vcombine.high %v194_v55, %v198_v56  ;;  %v245_v45 = vld [vmem:[%s5445_s19 + $0x230] sm:$0xff]  ;;  %v242_v46 = vld [vmem:[%s5445_s19 + $0x218] sm:$0xff] }
 0x129   : > { %v246_v48 = vld [vmem:[%s5445_s19 + $0x238] sm:$0xff] }
 0x12a   : > { %3967 = vmatpush1.bf16.msra.mxu0 %v5248_v63  ;;  %4172 = vmatpush1.bf16.msra.mxu1 %v5250_v0  ;;  %v202_v63 = vld [vmem:[%s5445_s19 + $0xd8] sm:$0xff] }
 0x12b   : > { %3968 = vmatprep.subr.bf16.mxu0 %v5257_v6  ;;  %4173 = vmatprep.subr.bf16.mxu1 %v5259_v2  ;;  %v206_v0 = vld [vmem:[%s5445_s19 + $0xf8] sm:$0xff]  ;;  %v4718_v6 = vcombine.low %v194_v55, %v198_v56  ;;  %v4725_v2 = vcombine.high %v201_v61, %v205_v62 }
 0x12c   : > { %v4727_v3 = vcombine.high %v202_v63, %v206_v0  ;;  %v250_v55 = vld [vmem:[%s5445_s19 + $0x258] sm:$0xff] }
 0x12d   : > { %v254_v56 = vld [vmem:[%s5445_s19 + $0x278] sm:$0xff] }
 0x12e   : > { %3969 = vmatpush1.bf16.msra.mxu0 %v5256_v9  ;;  %4174 = vmatpush1.bf16.msra.mxu1 %v5258_v11  ;;  %v214_v9 = vld [vmem:[%s5445_s19 + $0x138] sm:$0xff]  ;;  %v4724_v11 = vcombine.low %v201_v61, %v205_v62  ;;  %v257_v61 = vld [vmem:[%s5445_s19 + $0x290] sm:$0xff] }
 0x12f   : > { %3970 = vmatprep.subr.bf16.mxu0 %v5265_v12  ;;  %4175 = vmatprep.subr.bf16.mxu1 %v5267_v13  ;;  %v4733_v12 = vcombine.high %v209_v4, %v213_v7  ;;  %v4735_v13 = vcombine.high %v210_v8, %v214_v9  ;;  %v261_v62 = vld [vmem:[%s5445_s19 + $0x2b0] sm:$0xff] }
 0x132   : > { %3971 = vmatpush1.bf16.msra.mxu0 %v5264_v19  ;;  %4176 = vmatpush1.bf16.msra.mxu1 %v5266_v20  ;;  %v4732_v19 = vcombine.low %v209_v4, %v213_v7  ;;  %v4734_v20 = vcombine.low %v210_v8, %v214_v9  ;;  %v265_v4 = vld [vmem:[%s5445_s19 + $0x2d0] sm:$0xff]  ;;  %v266_v8 = vld [vmem:[%s5445_s19 + $0x2d8] sm:$0xff] }
 0x133   : > { %3972 = vmatprep.subr.bf16.mxu0 %v5273_v21  ;;  %4177 = vmatprep.subr.bf16.mxu1 %v5275_v22  ;;  %v4741_v21 = vcombine.high %v217_v14, %v221_v15  ;;  %v4743_v22 = vcombine.high %v218_v17, %v222_v18  ;;  %v269_v7 = vld [vmem:[%s5445_s19 + $0x2f0] sm:$0xff]  ;;  %v270_v9 = vld [vmem:[%s5445_s19 + $0x2f8] sm:$0xff] }
 0x134   : > { %v274_v17 = vld [vmem:[%s5445_s19 + $0x318] sm:$0xff] }
 0x135   : > { %v278_v18 = vld [vmem:[%s5445_s19 + $0x338] sm:$0xff] }
 0x136   : > { %3973 = vmatpush1.bf16.msra.mxu0 %v5272_v27  ;;  %4178 = vmatpush1.bf16.msra.mxu1 %v5274_v28  ;;  %v226_v27 = vld [vmem:[%s5445_s19 + $0x198] sm:$0xff] }
 0x137   : > { %5288 = vmatprep.subr.msk.bf16.mxu0 %vm3767_vm1, %v5281_v29  ;;  %5290 = vmatprep.subr.msk.bf16.mxu1 %vm3767_vm1, %v5283_v32  ;;  %v230_v28 = vld [vmem:[%s5445_s19 + $0x1b8] sm:$0xff]  ;;  %v4740_v29 = vcombine.low %v217_v14, %v221_v15  ;;  %v4749_v32 = vcombine.high %v225_v24, %v229_v5  ;;  %v273_v14 = vld [vmem:[%s5445_s19 + $0x310] sm:$0xff] }
 0x138   : > { %v4751_v33 = vcombine.high %v226_v27, %v230_v28  ;;  %v277_v15 = vld [vmem:[%s5445_s19 + $0x330] sm:$0xff] }
 0x13a   : > { %3975 = vmatpush1.bf16.msra.mxu0 %v3769_v40  ;;  %4180 = vmatpush1.bf16.msra.mxu1 %v3775_v42  ;;  %v4748_v40 = vcombine.low %v225_v24, %v229_v5  ;;  %v4757_v42 = vcombine.high %v233_v35, %v237_v36  ;;  %v281_v24 = vld [vmem:[%s5445_s19 + $0x350] sm:$0xff] }
 0x13b   : > { %4202 = vmatprep.subr.bf16.mxu0 %v4701_v41  ;;  %4407 = vmatprep.subr.bf16.mxu1 %v4703_v43  ;;  %v4750_v41 = vcombine.low %v226_v27, %v230_v28  ;;  %v4759_v43 = vcombine.high %v234_v37, %v238_v39  ;;  %v285_v5 = vld [vmem:[%s5445_s19 + $0x370] sm:$0xff]  ;;  %v282_v27 = vld [vmem:[%s5445_s19 + $0x358] sm:$0xff] }
 0x13c   : > { %v286_v28 = vld [vmem:[%s5445_s19 + $0x378] sm:$0xff] }
 0x13d   : > { %3989 = vmatmul.mubr.bf16.vlgmr.msra.gmra.mrb[0].mxu0 %v5770_v16  ;;  %4194 = vmatmul.mubr.bf16.vlgmr.msra.gmra.mrb[0].mxu1 %v5770_v16  ;;  %v4716_v16 = vcombine.low %v193_v53, %v197_v54  ;;  %v249_v53 = vld [vmem:[%s5445_s19 + $0x250] sm:$0xff] }
 0x13e   : > { %4203 = vmatpush1.bf16.msra.mxu0 %v4700_v49  ;;  %4408 = vmatpush1.bf16.msra.mxu1 %v4702_v50  ;;  %v4756_v49 = vcombine.low %v233_v35, %v237_v36  ;;  %v4758_v50 = vcombine.low %v234_v37, %v238_v39  ;;  %v253_v54 = vld [vmem:[%s5445_s19 + $0x270] sm:$0xff]  ;;  %v290_v37 = vld [vmem:[%s5445_s19 + $0x398] sm:$0xff] }
 0x13f   : > { %4204 = vmatprep.subr.bf16.mxu0 %v4709_v51  ;;  %4409 = vmatprep.subr.bf16.mxu1 %v4711_v52  ;;  %v4765_v51 = vcombine.high %v241_v44, %v245_v45  ;;  %v4767_v52 = vcombine.high %v242_v46, %v246_v48  ;;  %v289_v35 = vld [vmem:[%s5445_s19 + $0x390] sm:$0xff]  ;;  %v294_v39 = vld [vmem:[%s5445_s19 + $0x3b8] sm:$0xff] }
 0x140   : > { %4234 = vmatprep.mubr.bf16.mxu0 %v5465_v26  ;;  %4439 = vmatprep.mubr.bf16.mxu1 %v5465_v26  ;;  %v4726_v26 = vcombine.low %v202_v63, %v206_v0  ;;  %v258_v63 = vld [vmem:[%s5445_s19 + $0x298] sm:$0xff]  ;;  %v293_v36 = vld [vmem:[%s5445_s19 + $0x3b0] sm:$0xff] }
 0x141   : > { %v262_v0 = vld [vmem:[%s5445_s19 + $0x2b8] sm:$0xff] }
 0x142   : > { %4205 = vmatpush1.bf16.msra.mxu0 %v4708_v30  ;;  %4410 = vmatpush1.bf16.msra.mxu1 %v4710_v58  ;;  %v4764_v30 = vcombine.low %v241_v44, %v245_v45  ;;  %v4766_v58 = vcombine.low %v242_v46, %v246_v48  ;;  %v297_v44 = vld [vmem:[%s5445_s19 + $0x3d0] sm:$0xff]  ;;  %v298_v46 = vld [vmem:[%s5445_s19 + $0x3d8] sm:$0xff] }
 0x143   : > { %4206 = vmatprep.subr.bf16.mxu0 %v4717_v59  ;;  %4411 = vmatprep.subr.bf16.mxu1 %v4719_v60  ;;  %v4773_v59 = vcombine.high %v249_v53, %v253_v54  ;;  %v4775_v60 = vcombine.high %v250_v55, %v254_v56  ;;  %v301_v45 = vld [vmem:[%s5445_s19 + $0x3f0] sm:$0xff]  ;;  %v302_v48 = vld [vmem:[%s5445_s19 + $0x3f8] sm:$0xff] }
 0x146   : > { %4207 = vmatpush1.bf16.msra.mxu0 %v4716_v16  ;;  %4412 = vmatpush1.bf16.msra.mxu1 %v4718_v6  ;;  %v4772_v16 = vcombine.low %v249_v53, %v253_v54  ;;  %v4774_v6 = vcombine.low %v250_v55, %v254_v56  ;;  %v305_v53 = vld [vmem:[%s5445_s19 + $0x410] sm:$0xff]  ;;  %v306_v55 = vld [vmem:[%s5445_s19 + $0x418] sm:$0xff] }
 0x147   : > { %4208 = vmatprep.subr.bf16.mxu0 %v4725_v2  ;;  %4413 = vmatprep.subr.bf16.mxu1 %v4727_v3  ;;  %v4781_v2 = vcombine.high %v257_v61, %v261_v62  ;;  %v4783_v3 = vcombine.high %v258_v63, %v262_v0  ;;  %v309_v54 = vld [vmem:[%s5445_s19 + $0x430] sm:$0xff]  ;;  %v310_v56 = vld [vmem:[%s5445_s19 + $0x438] sm:$0xff] }
 0x14a   : > { %4209 = vmatpush1.bf16.msra.mxu0 %v4724_v11  ;;  %4414 = vmatpush1.bf16.msra.mxu1 %v4726_v26  ;;  %v4780_v11 = vcombine.low %v257_v61, %v261_v62  ;;  %v4782_v26 = vcombine.low %v258_v63, %v262_v0  ;;  %v313_v61 = vld [vmem:[%s5445_s19 + $0x450] sm:$0xff]  ;;  %v314_v63 = vld [vmem:[%s5445_s19 + $0x458] sm:$0xff] }
 0x14b   : > { %4210 = vmatprep.subr.bf16.mxu0 %v4733_v12  ;;  %4415 = vmatprep.subr.bf16.mxu1 %v4735_v13  ;;  %v4789_v12 = vcombine.high %v265_v4, %v269_v7  ;;  %v4791_v13 = vcombine.high %v266_v8, %v270_v9  ;;  %v317_v62 = vld [vmem:[%s5445_s19 + $0x470] sm:$0xff]  ;;  %v318_v0 = vld [vmem:[%s5445_s19 + $0x478] sm:$0xff] }
 0x14e   : > { %4211 = vmatpush1.bf16.msra.mxu0 %v4732_v19  ;;  %4416 = vmatpush1.bf16.msra.mxu1 %v4734_v20  ;;  %v4788_v19 = vcombine.low %v265_v4, %v269_v7  ;;  %v4790_v20 = vcombine.low %v266_v8, %v270_v9  ;;  %v321_v4 = vld [vmem:[%s5445_s19 + $0x490] sm:$0xff]  ;;  %v322_v8 = vld [vmem:[%s5445_s19 + $0x498] sm:$0xff] }
 0x14f   : > { %4212 = vmatprep.subr.bf16.mxu0 %v4741_v21  ;;  %4417 = vmatprep.subr.bf16.mxu1 %v4743_v22  ;;  %v4797_v21 = vcombine.high %v273_v14, %v277_v15  ;;  %v4799_v22 = vcombine.high %v274_v17, %v278_v18  ;;  %v325_v7 = vld [vmem:[%s5445_s19 + $0x4b0] sm:$0xff]  ;;  %v326_v9 = vld [vmem:[%s5445_s19 + $0x4b8] sm:$0xff] }
 0x152   : > { %4213 = vmatpush1.bf16.msra.mxu0 %v4740_v29  ;;  %4418 = vmatpush1.bf16.msra.mxu1 %v4742_v31  ;;  %v4796_v29 = vcombine.low %v273_v14, %v277_v15  ;;  %v4798_v31 = vcombine.low %v274_v17, %v278_v18  ;;  %v329_v14 = vld [vmem:[%s5445_s19 + $0x4d0] sm:$0xff]  ;;  %v330_v17 = vld [vmem:[%s5445_s19 + $0x4d8] sm:$0xff] }
 0x153   : > { %4214 = vmatprep.subr.bf16.mxu0 %v4749_v32  ;;  %4419 = vmatprep.subr.bf16.mxu1 %v4751_v33  ;;  %v4805_v32 = vcombine.high %v281_v24, %v285_v5  ;;  %v4807_v33 = vcombine.high %v282_v27, %v286_v28  ;;  %v333_v15 = vld [vmem:[%s5445_s19 + $0x4f0] sm:$0xff]  ;;  %v334_v18 = vld [vmem:[%s5445_s19 + $0x4f8] sm:$0xff] }
 0x156   : > { %4215 = vmatpush1.bf16.msra.mxu0 %v4748_v40  ;;  %4420 = vmatpush1.bf16.msra.mxu1 %v4750_v41  ;;  %v4804_v40 = vcombine.low %v281_v24, %v285_v5  ;;  %v4806_v41 = vcombine.low %v282_v27, %v286_v28  ;;  %v341_v24 = vld [vmem:[%s5445_s19 + $0x530] sm:$0xff]  ;;  %v338_v5 = vld [vmem:[%s5445_s19 + $0x518] sm:$0xff]  ;;  %v4852_v28 = vcombine.low %v329_v14, %v333_v15 }
 0x157   : > { %4216 = vmatprep.subr.bf16.mxu0 %v4757_v42  ;;  %4421 = vmatprep.subr.bf16.mxu1 %v4759_v43  ;;  %v4813_v42 = vcombine.high %v289_v35, %v293_v36  ;;  %v4815_v43 = vcombine.high %v290_v37, %v294_v39  ;;  %v342_v27 = vld [vmem:[%s5445_s19 + $0x538] sm:$0xff] }
 0x15a   : > { %4217 = vmatpush1.bf16.msra.mxu0 %v4756_v49  ;;  %4422 = vmatpush1.bf16.msra.mxu1 %v4758_v50  ;;  %v4812_v49 = vcombine.low %v289_v35, %v293_v36  ;;  %v4814_v50 = vcombine.low %v290_v37, %v294_v39  ;;  %v346_v35 = vld [vmem:[%s5445_s19 + $0x558] sm:$0xff]  ;;  %v4862_v39 = vcombine.low %v338_v5, %v342_v27 }
 0x15b   : > { %4218 = vmatprep.subr.bf16.mxu0 %v4765_v51  ;;  %4423 = vmatprep.subr.bf16.mxu1 %v4767_v52  ;;  %v4821_v51 = vcombine.high %v297_v44, %v301_v45  ;;  %v4823_v52 = vcombine.high %v298_v46, %v302_v48  ;;  %v350_v36 = vld [vmem:[%s5445_s19 + $0x578] sm:$0xff] }
 0x15e   : > { %4219 = vmatpush1.bf16.msra.mxu0 %v4764_v30  ;;  %4424 = vmatpush1.bf16.msra.mxu1 %v4766_v58  ;;  %v4820_v30 = vcombine.low %v297_v44, %v301_v45  ;;  %v4822_v58 = vcombine.low %v298_v46, %v302_v48  ;;  %v354_v44 = vld [vmem:[%s5445_s19 + $0x598] sm:$0xff]  ;;  %v4870_v48 = vcombine.low %v346_v35, %v350_v36 }
 0x15f   : > { %4220 = vmatprep.subr.bf16.mxu0 %v4773_v59  ;;  %4425 = vmatprep.subr.bf16.mxu1 %v4775_v60  ;;  %v4829_v59 = vcombine.high %v305_v53, %v309_v54  ;;  %v4831_v60 = vcombine.high %v306_v55, %v310_v56  ;;  %v358_v45 = vld [vmem:[%s5445_s19 + $0x5b8] sm:$0xff] }
 0x162   : > { %4221 = vmatpush1.bf16.msra.mxu0 %v4772_v16  ;;  %4426 = vmatpush1.bf16.msra.mxu1 %v4774_v6  ;;  %v4828_v16 = vcombine.low %v305_v53, %v309_v54  ;;  %v4830_v6 = vcombine.low %v306_v55, %v310_v56  ;;  %v362_v53 = vld [vmem:[%s5445_s19 + $0x5d8] sm:$0xff]  ;;  %v4878_v56 = vcombine.low %v354_v44, %v358_v45 }
 0x163   : > { %4222 = vmatprep.subr.bf16.mxu0 %v4781_v2  ;;  %4427 = vmatprep.subr.bf16.mxu1 %v4783_v3  ;;  %v4837_v2 = vcombine.high %v313_v61, %v317_v62  ;;  %v4839_v3 = vcombine.high %v314_v63, %v318_v0  ;;  %v366_v54 = vld [vmem:[%s5445_s19 + $0x5f8] sm:$0xff] }
 0x166   : > { %4223 = vmatpush1.bf16.msra.mxu0 %v4780_v11  ;;  %4428 = vmatpush1.bf16.msra.mxu1 %v4782_v26  ;;  %v4836_v11 = vcombine.low %v313_v61, %v317_v62  ;;  %v4838_v26 = vcombine.low %v314_v63, %v318_v0  ;;  %v370_v61 = vld [vmem:[%s5445_s19 + $0x618] sm:$0xff]  ;;  %v4886_v0 = vcombine.low %v362_v53, %v366_v54 }
 0x167   : > { %4224 = vmatprep.subr.bf16.mxu0 %v4789_v12  ;;  %4429 = vmatprep.subr.bf16.mxu1 %v4791_v13  ;;  %v4845_v12 = vcombine.high %v321_v4, %v325_v7  ;;  %v4847_v13 = vcombine.high %v322_v8, %v326_v9  ;;  %v374_v62 = vld [vmem:[%s5445_s19 + $0x638] sm:$0xff] }
 0x16a   : > { %4225 = vmatpush1.bf16.msra.mxu0 %v4788_v19  ;;  %4430 = vmatpush1.bf16.msra.mxu1 %v4790_v20  ;;  %v4846_v19 = vcombine.low %v322_v8, %v326_v9  ;;  %v4853_v20 = vcombine.high %v329_v14, %v333_v15  ;;  %v4894_v9 = vcombine.low %v370_v61, %v374_v62  ;;  %v386_v14 = vld [vmem:[%s5445_s19 + $0x698] sm:$0xff] }
 0x16b   : > { %4226 = vmatprep.subr.bf16.mxu0 %v4797_v21  ;;  %4431 = vmatprep.subr.bf16.mxu1 %v4799_v22  ;;  %v4855_v21 = vcombine.high %v330_v17, %v334_v18  ;;  %v337_v22 = vld [vmem:[%s5445_s19 + $0x510] sm:$0xff]  ;;  %v390_v15 = vld [vmem:[%s5445_s19 + $0x6b8] sm:$0xff] }
 0x16c   : > { %v4860_v37 = vcombine.low %v337_v22, %v341_v24 }
 0x16e   : > { %4227 = vmatpush1.bf16.msra.mxu0 %v4796_v29  ;;  %4432 = vmatpush1.bf16.msra.mxu1 %v4798_v31  ;;  %v4861_v29 = vcombine.high %v337_v22, %v341_v24  ;;  %v4863_v31 = vcombine.high %v338_v5, %v342_v27  ;;  %v394_v22 = vld [vmem:[%s5445_s19 + $0x6d8] sm:$0xff]  ;;  %v4910_v27 = vcombine.low %v386_v14, %v390_v15 }
 0x16f   : > { %4228 = vmatprep.subr.bf16.mxu0 %v4805_v32  ;;  %4433 = vmatprep.subr.bf16.mxu1 %v4807_v33  ;;  %v345_v32 = vld [vmem:[%s5445_s19 + $0x550] sm:$0xff]  ;;  %v398_v24 = vld [vmem:[%s5445_s19 + $0x6f8] sm:$0xff] }
 0x170   : > { %v349_v33 = vld [vmem:[%s5445_s19 + $0x570] sm:$0xff] }
 0x171   : > { %v4868_v46 = vcombine.low %v345_v32, %v349_v33 }
 0x172   : > { %4229 = vmatpush1.bf16.msra.mxu0 %v4804_v40  ;;  %4434 = vmatpush1.bf16.msra.mxu1 %v4806_v41  ;;  %v4869_v40 = vcombine.high %v345_v32, %v349_v33  ;;  %v4871_v41 = vcombine.high %v346_v35, %v350_v36  ;;  %v402_v32 = vld [vmem:[%s5445_s19 + $0x718] sm:$0xff]  ;;  %v4918_v36 = vcombine.low %v394_v22, %v398_v24 }
 0x173   : > { %4230 = vmatprep.subr.bf16.mxu0 %v4813_v42  ;;  %4435 = vmatprep.subr.bf16.mxu1 %v4815_v43  ;;  %v353_v42 = vld [vmem:[%s5445_s19 + $0x590] sm:$0xff]  ;;  %v406_v33 = vld [vmem:[%s5445_s19 + $0x738] sm:$0xff] }
 0x174   : > { %v357_v43 = vld [vmem:[%s5445_s19 + $0x5b0] sm:$0xff] }
 0x175   : > { %v4876_v55 = vcombine.low %v353_v42, %v357_v43 }
 0x176   : > { %4231 = vmatpush1.bf16.msra.mxu0 %v4812_v49  ;;  %4436 = vmatpush1.bf16.msra.mxu1 %v4814_v50  ;;  %v4877_v49 = vcombine.high %v353_v42, %v357_v43  ;;  %v4879_v50 = vcombine.high %v354_v44, %v358_v45  ;;  %v410_v42 = vld [vmem:[%s5445_s19 + $0x758] sm:$0xff]  ;;  %v4926_v45 = vcombine.low %v402_v32, %v406_v33 }
 0x177   : > { %4232 = vmatprep.subr.bf16.mxu0 %v4821_v51  ;;  %4437 = vmatprep.subr.bf16.mxu1 %v4823_v52  ;;  %v361_v51 = vld [vmem:[%s5445_s19 + $0x5d0] sm:$0xff]  ;;  %v414_v43 = vld [vmem:[%s5445_s19 + $0x778] sm:$0xff] }
 0x178   : > { %v365_v52 = vld [vmem:[%s5445_s19 + $0x5f0] sm:$0xff] }
 0x179   : > { %v4884_v63 = vcombine.low %v361_v51, %v365_v52 }
 0x17a   : > { %4233 = vmatpush1.bf16.msra.mxu0 %v4820_v30  ;;  %4438 = vmatpush1.bf16.msra.mxu1 %v4822_v58  ;;  %v4885_v30 = vcombine.high %v361_v51, %v365_v52  ;;  %v4887_v58 = vcombine.high %v362_v53, %v366_v54  ;;  %v418_v51 = vld [vmem:[%s5445_s19 + $0x798] sm:$0xff]  ;;  %v4934_v54 = vcombine.low %v410_v42, %v414_v43 }
 0x17b   : > { %4243 = vmatprep.subr.bf16.mxu0 %v4829_v59  ;;  %4448 = vmatprep.subr.bf16.mxu1 %v4831_v60  ;;  %v369_v59 = vld [vmem:[%s5445_s19 + $0x610] sm:$0xff]  ;;  %v422_v52 = vld [vmem:[%s5445_s19 + $0x7b8] sm:$0xff] }
 0x17c   : > { %v373_v60 = vld [vmem:[%s5445_s19 + $0x630] sm:$0xff] }
 0x17d   : > { %4235 = vmatmul.mubr.bf16.vlgmr.msra.gmra.mrb[4].mxu0 %v5452_v10  ;;  %4440 = vmatmul.mubr.bf16.vlgmr.msra.gmra.mrb[4].mxu1 %v5452_v10  ;;  %v4844_v10 = vcombine.low %v321_v4, %v325_v7  ;;  %v378_v4 = vld [vmem:[%s5445_s19 + $0x658] sm:$0xff]  ;;  %v4892_v8 = vcombine.low %v369_v59, %v373_v60 }
 0x17e   : > { %4244 = vmatpush1.bf16.msra.mxu0 %v4828_v16  ;;  %4449 = vmatpush1.bf16.msra.mxu1 %v4830_v6  ;;  %v4893_v16 = vcombine.high %v369_v59, %v373_v60  ;;  %v4895_v6 = vcombine.high %v370_v61, %v374_v62  ;;  %v382_v7 = vld [vmem:[%s5445_s19 + $0x678] sm:$0xff]  ;;  %v4942_v62 = vcombine.low %v418_v51, %v422_v52 }
 0x17f   : > { %4245 = vmatprep.subr.bf16.mxu0 %v4837_v2  ;;  %4450 = vmatprep.subr.bf16.mxu1 %v4839_v3  ;;  %v377_v2 = vld [vmem:[%s5445_s19 + $0x650] sm:$0xff]  ;;  %v426_v59 = vld [vmem:[%s5445_s19 + $0x7d8] sm:$0xff] }
 0x180   : > { %4275 = vmatprep.mubr.bf16.mxu0 %v5538_v34  ;;  %4480 = vmatprep.mubr.bf16.mxu1 %v5538_v34  ;;  %v4854_v34 = vcombine.low %v330_v17, %v334_v18  ;;  %v381_v3 = vld [vmem:[%s5445_s19 + $0x670] sm:$0xff]  ;;  %v4902_v18 = vcombine.low %v378_v4, %v382_v7  ;;  %v430_v60 = vld [vmem:[%s5445_s19 + $0x7f8] sm:$0xff] }
 0x181   : > { %v4900_v17 = vcombine.low %v377_v2, %v381_v3 }
 0x182   : > { %4246 = vmatpush1.bf16.msra.mxu0 %v4836_v11  ;;  %4451 = vmatpush1.bf16.msra.mxu1 %v4838_v26  ;;  %v4901_v11 = vcombine.high %v377_v2, %v381_v3  ;;  %v4903_v26 = vcombine.high %v378_v4, %v382_v7  ;;  %v434_v2 = vld [vmem:[%s5445_s19 + $0x818] sm:$0xff]  ;;  %v4950_v7 = vcombine.low %v426_v59, %v430_v60 }
 0x183   : > { %4247 = vmatprep.subr.bf16.mxu0 %v4845_v12  ;;  %4452 = vmatprep.subr.bf16.mxu1 %v4847_v13  ;;  %v385_v12 = vld [vmem:[%s5445_s19 + $0x690] sm:$0xff]  ;;  %v438_v3 = vld [vmem:[%s5445_s19 + $0x838] sm:$0xff] }
 0x184   : > { %v389_v13 = vld [vmem:[%s5445_s19 + $0x6b0] sm:$0xff] }
 0x185   : > { %v4908_v5 = vcombine.low %v385_v12, %v389_v13 }
 0x186   : > { %4248 = vmatpush1.bf16.msra.mxu0 %v4844_v10  ;;  %4453 = vmatpush1.bf16.msra.mxu1 %v4846_v19  ;;  %v4909_v10 = vcombine.high %v385_v12, %v389_v13  ;;  %v4911_v19 = vcombine.high %v386_v14, %v390_v15  ;;  %v442_v12 = vld [vmem:[%s5445_s19 + $0x858] sm:$0xff]  ;;  %v4958_v15 = vcombine.low %v434_v2, %v438_v3 }
 0x187   : > { %4249 = vmatprep.subr.bf16.mxu0 %v4853_v20  ;;  %4454 = vmatprep.subr.bf16.mxu1 %v4855_v21  ;;  %v393_v20 = vld [vmem:[%s5445_s19 + $0x6d0] sm:$0xff]  ;;  %v446_v13 = vld [vmem:[%s5445_s19 + $0x878] sm:$0xff] }
 0x188   : > { %v397_v21 = vld [vmem:[%s5445_s19 + $0x6f0] sm:$0xff] }
 0x189   : > { %v4916_v35 = vcombine.low %v393_v20, %v397_v21 }
 0x18a   : > { %4250 = vmatpush1.bf16.msra.mxu0 %v4852_v28  ;;  %4455 = vmatpush1.bf16.msra.mxu1 %v4854_v34  ;;  %v4917_v28 = vcombine.high %v393_v20, %v397_v21  ;;  %v4919_v34 = vcombine.high %v394_v22, %v398_v24  ;;  %v450_v20 = vld [vmem:[%s5445_s19 + $0x898] sm:$0xff]  ;;  %v4966_v24 = vcombine.low %v442_v12, %v446_v13 }
 0x18b   : > { %4251 = vmatprep.subr.bf16.mxu0 %v4861_v29  ;;  %4456 = vmatprep.subr.bf16.mxu1 %v4863_v31  ;;  %v401_v29 = vld [vmem:[%s5445_s19 + $0x710] sm:$0xff]  ;;  %v454_v21 = vld [vmem:[%s5445_s19 + $0x8b8] sm:$0xff] }
 0x18c   : > { %v405_v31 = vld [vmem:[%s5445_s19 + $0x730] sm:$0xff] }
 0x18d   : > { %v4924_v44 = vcombine.low %v401_v29, %v405_v31 }
 0x18e   : > { %4252 = vmatpush1.bf16.msra.mxu0 %v4860_v37  ;;  %4457 = vmatpush1.bf16.msra.mxu1 %v4862_v39  ;;  %v4925_v37 = vcombine.high %v401_v29, %v405_v31  ;;  %v4927_v39 = vcombine.high %v402_v32, %v406_v33  ;;  %v458_v29 = vld [vmem:[%s5445_s19 + $0x8d8] sm:$0xff]  ;;  %v4974_v32 = vcombine.low %v450_v20, %v454_v21 }
 0x18f   : > { %4253 = vmatprep.subr.bf16.mxu0 %v4869_v40  ;;  %4458 = vmatprep.subr.bf16.mxu1 %v4871_v41  ;;  %v409_v40 = vld [vmem:[%s5445_s19 + $0x750] sm:$0xff]  ;;  %v462_v31 = vld [vmem:[%s5445_s19 + $0x8f8] sm:$0xff] }
 0x190   : > { %v413_v41 = vld [vmem:[%s5445_s19 + $0x770] sm:$0xff] }
 0x191   : > { %v4932_v53 = vcombine.low %v409_v40, %v413_v41 }
 0x192   : > { %4254 = vmatpush1.bf16.msra.mxu0 %v4868_v46  ;;  %4459 = vmatpush1.bf16.msra.mxu1 %v4870_v48  ;;  %v4933_v46 = vcombine.high %v409_v40, %v413_v41  ;;  %v4935_v48 = vcombine.high %v410_v42, %v414_v43  ;;  %v470_v40 = vld [vmem:[%s5445_s19 + $0x938] sm:$0xff] }
 0x193   : > { %4255 = vmatprep.subr.bf16.mxu0 %v4877_v49  ;;  %4460 = vmatprep.subr.bf16.mxu1 %v4879_v50  ;;  %v417_v49 = vld [vmem:[%s5445_s19 + $0x790] sm:$0xff] }
 0x194   : > { %v421_v50 = vld [vmem:[%s5445_s19 + $0x7b0] sm:$0xff] }
 0x195   : > { %v4940_v61 = vcombine.low %v417_v49, %v421_v50 }
 0x196   : > { %4256 = vmatpush1.bf16.msra.mxu0 %v4876_v55  ;;  %4461 = vmatpush1.bf16.msra.mxu1 %v4878_v56  ;;  %v4941_v55 = vcombine.high %v417_v49, %v421_v50  ;;  %v4943_v56 = vcombine.high %v418_v51, %v422_v52 }
 0x197   : > { %4257 = vmatprep.subr.bf16.mxu0 %v4885_v30  ;;  %4462 = vmatprep.subr.bf16.mxu1 %v4887_v58  ;;  %v425_v30 = vld [vmem:[%s5445_s19 + $0x7d0] sm:$0xff] }
 0x198   : > { %v429_v58 = vld [vmem:[%s5445_s19 + $0x7f0] sm:$0xff] }
 0x199   : > { %v4948_v4 = vcombine.low %v425_v30, %v429_v58 }
 0x19a   : > { %4258 = vmatpush1.bf16.msra.mxu0 %v4884_v63  ;;  %4463 = vmatpush1.bf16.msra.mxu1 %v4886_v0  ;;  %v4949_v63 = vcombine.high %v425_v30, %v429_v58  ;;  %v4951_v0 = vcombine.high %v426_v59, %v430_v60 }
 0x19b   : > { %4259 = vmatprep.subr.bf16.mxu0 %v4893_v16  ;;  %4464 = vmatprep.subr.bf16.mxu1 %v4895_v6  ;;  %v433_v16 = vld [vmem:[%s5445_s19 + $0x810] sm:$0xff] }
 0x19c   : > { %v437_v6 = vld [vmem:[%s5445_s19 + $0x830] sm:$0xff] }
 0x19d   : > { %v4956_v14 = vcombine.low %v433_v16, %v437_v6 }
 0x19e   : > { %4260 = vmatpush1.bf16.msra.mxu0 %v4892_v8  ;;  %4465 = vmatpush1.bf16.msra.mxu1 %v4894_v9  ;;  %v4957_v8 = vcombine.high %v433_v16, %v437_v6  ;;  %v4959_v9 = vcombine.high %v434_v2, %v438_v3 }
 0x19f   : > { %4261 = vmatprep.subr.bf16.mxu0 %v4901_v11  ;;  %4466 = vmatprep.subr.bf16.mxu1 %v4903_v26  ;;  %v441_v11 = vld [vmem:[%s5445_s19 + $0x850] sm:$0xff] }
 0x1a0   : > { %v445_v26 = vld [vmem:[%s5445_s19 + $0x870] sm:$0xff] }
 0x1a1   : > { %v4964_v22 = vcombine.low %v441_v11, %v445_v26 }
 0x1a2   : > { %4262 = vmatpush1.bf16.msra.mxu0 %v4900_v17  ;;  %4467 = vmatpush1.bf16.msra.mxu1 %v4902_v18  ;;  %v4965_v17 = vcombine.high %v441_v11, %v445_v26  ;;  %v4967_v18 = vcombine.high %v442_v12, %v446_v13 }
 0x1a3   : > { %4263 = vmatprep.subr.bf16.mxu0 %v4909_v10  ;;  %4468 = vmatprep.subr.bf16.mxu1 %v4911_v19  ;;  %v449_v10 = vld [vmem:[%s5445_s19 + $0x890] sm:$0xff] }
 0x1a4   : > { %v453_v19 = vld [vmem:[%s5445_s19 + $0x8b0] sm:$0xff] }
 0x1a6   : > { %4264 = vmatpush1.bf16.msra.mxu0 %v4908_v5  ;;  %4469 = vmatpush1.bf16.msra.mxu1 %v4910_v27  ;;  %v4973_v5 = vcombine.high %v449_v10, %v453_v19  ;;  %v4975_v27 = vcombine.high %v450_v20, %v454_v21 }
 0x1a7   : > { %4265 = vmatprep.subr.bf16.mxu0 %v4917_v28  ;;  %4470 = vmatprep.subr.bf16.mxu1 %v4919_v34  ;;  %v457_v28 = vld [vmem:[%s5445_s19 + $0x8d0] sm:$0xff] }
 0x1a8   : > { %v461_v34 = vld [vmem:[%s5445_s19 + $0x8f0] sm:$0xff] }
 0x1a9   : > { %v4981_v33 = vcombine.high %v457_v28, %v461_v34  ;;  %v4980_v41 = vcombine.low %v457_v28, %v461_v34 }
 0x1aa   : > { %4266 = vmatpush1.bf16.msra.mxu0 %v4916_v35  ;;  %4471 = vmatpush1.bf16.msra.mxu1 %v4918_v36  ;;  %v4983_v35 = vcombine.high %v458_v29, %v462_v31  ;;  %v465_v36 = vld [vmem:[%s5445_s19 + $0x910] sm:$0xff] }
 0x1ab   : > { %4267 = vmatprep.subr.bf16.mxu0 %v4925_v37  ;;  %4472 = vmatprep.subr.bf16.mxu1 %v4927_v39  ;;  %v469_v37 = vld [vmem:[%s5445_s19 + $0x930] sm:$0xff]  ;;  %v466_v39 = vld [vmem:[%s5445_s19 + $0x918] sm:$0xff] }
 0x1ac   : > { %v4989_v42 = vcombine.high %v465_v36, %v469_v37  ;;  %v4991_v43 = vcombine.high %v466_v39, %v470_v40  ;;  %v4988_v49 = vcombine.low %v465_v36, %v469_v37  ;;  %v4990_v50 = vcombine.low %v466_v39, %v470_v40 }
 0x1ae   : > { %4268 = vmatpush1.bf16.msra.mxu0 %v4924_v44  ;;  %4473 = vmatpush1.bf16.msra.mxu1 %v4926_v45  ;;  %v473_v44 = vld [vmem:[%s5445_s19 + $0x950] sm:$0xff] }
 0x1af   : > { %4269 = vmatprep.subr.bf16.mxu0 %v4933_v46  ;;  %4474 = vmatprep.subr.bf16.mxu1 %v4935_v48  ;;  %v477_v45 = vld [vmem:[%s5445_s19 + $0x970] sm:$0xff]  ;;  %v474_v46 = vld [vmem:[%s5445_s19 + $0x958] sm:$0xff] }
 0x1b0   : > { %v478_v48 = vld [vmem:[%s5445_s19 + $0x978] sm:$0xff]  ;;  %v4997_v51 = vcombine.high %v473_v44, %v477_v45  ;;  %v4996_v30 = vcombine.low %v473_v44, %v477_v45 }
 0x1b1   : > { %v4999_v52 = vcombine.high %v474_v46, %v478_v48  ;;  %v4998_v58 = vcombine.low %v474_v46, %v478_v48 }
 0x1b2   : > { %4270 = vmatpush1.bf16.msra.mxu0 %v4932_v53  ;;  %4475 = vmatpush1.bf16.msra.mxu1 %v4934_v54  ;;  %v481_v53 = vld [vmem:[%s5445_s19 + $0x990] sm:$0xff] }
 0x1b3   : > { %4271 = vmatprep.subr.bf16.mxu0 %v4941_v55  ;;  %4476 = vmatprep.subr.bf16.mxu1 %v4943_v56  ;;  %v485_v54 = vld [vmem:[%s5445_s19 + $0x9b0] sm:$0xff]  ;;  %v482_v55 = vld [vmem:[%s5445_s19 + $0x998] sm:$0xff] }
 0x1b4   : > { %v486_v56 = vld [vmem:[%s5445_s19 + $0x9b8] sm:$0xff]  ;;  %v5005_v59 = vcombine.high %v481_v53, %v485_v54  ;;  %v5004_v16 = vcombine.low %v481_v53, %v485_v54 }
 0x1b5   : > { %v5007_v60 = vcombine.high %v482_v55, %v486_v56  ;;  %v5006_v6 = vcombine.low %v482_v55, %v486_v56 }
 0x1b6   : > { %4272 = vmatpush1.bf16.msra.mxu0 %v4940_v61  ;;  %4477 = vmatpush1.bf16.msra.mxu1 %v4942_v62  ;;  %v489_v61 = vld [vmem:[%s5445_s19 + $0x9d0] sm:$0xff] }
 0x1b7   : > { %4273 = vmatprep.subr.bf16.mxu0 %v4949_v63  ;;  %4478 = vmatprep.subr.bf16.mxu1 %v4951_v0  ;;  %v493_v62 = vld [vmem:[%s5445_s19 + $0x9f0] sm:$0xff]  ;;  %v490_v63 = vld [vmem:[%s5445_s19 + $0x9d8] sm:$0xff] }
 0x1b8   : > { %v494_v0 = vld [vmem:[%s5445_s19 + $0x9f8] sm:$0xff]  ;;  %v5013_v2 = vcombine.high %v489_v61, %v493_v62  ;;  %v5012_v11 = vcombine.low %v489_v61, %v493_v62 }
 0x1b9   : > { %v5015_v3 = vcombine.high %v490_v63, %v494_v0  ;;  %v5014_v26 = vcombine.low %v490_v63, %v494_v0 }
 0x1ba   : > { %4274 = vmatpush1.bf16.msra.mxu0 %v4948_v4  ;;  %4479 = vmatpush1.bf16.msra.mxu1 %v4950_v7  ;;  %v497_v4 = vld [vmem:[%s5445_s19 + $0xa10] sm:$0xff] }
 0x1bb   : > { %4284 = vmatprep.subr.bf16.mxu0 %v4957_v8  ;;  %4489 = vmatprep.subr.bf16.mxu1 %v4959_v9  ;;  %v501_v7 = vld [vmem:[%s5445_s19 + $0xa30] sm:$0xff]  ;;  %v498_v8 = vld [vmem:[%s5445_s19 + $0xa18] sm:$0xff] }
 0x1bc   : > { %v502_v9 = vld [vmem:[%s5445_s19 + $0xa38] sm:$0xff]  ;;  %v5021_v12 = vcombine.high %v497_v4, %v501_v7 }
 0x1bd   : > { %4276 = vmatmul.mubr.bf16.vlgmr.msra.gmra.mrb[4].mxu0 %v5530_v25  ;;  %4481 = vmatmul.mubr.bf16.vlgmr.msra.gmra.mrb[4].mxu1 %v5530_v25  ;;  %v4972_v25 = vcombine.low %v449_v10, %v453_v19  ;;  %v5023_v13 = vcombine.high %v498_v8, %v502_v9  ;;  %v5020_v10 = vcombine.low %v497_v4, %v501_v7 }
 0x1be   : > { %4285 = vmatpush1.bf16.msra.mxu0 %v4956_v14  ;;  %4490 = vmatpush1.bf16.msra.mxu1 %v4958_v15  ;;  %v505_v14 = vld [vmem:[%s5445_s19 + $0xa50] sm:$0xff]  ;;  %v5022_v19 = vcombine.low %v498_v8, %v502_v9 }
 0x1bf   : > { %4286 = vmatprep.subr.bf16.mxu0 %v4965_v17  ;;  %4491 = vmatprep.subr.bf16.mxu1 %v4967_v18  ;;  %v509_v15 = vld [vmem:[%s5445_s19 + $0xa70] sm:$0xff]  ;;  %v506_v17 = vld [vmem:[%s5445_s19 + $0xa58] sm:$0xff] }
 0x1c0   : > { %4316 = vmatprep.mubr.bf16.mxu0 %v5619_v47  ;;  %4521 = vmatprep.mubr.bf16.mxu1 %v5619_v47  ;;  %v4982_v47 = vcombine.low %v458_v29, %v462_v31  ;;  %v510_v18 = vld [vmem:[%s5445_s19 + $0xa78] sm:$0xff]  ;;  %v5029_v20 = vcombine.high %v505_v14, %v509_v15  ;;  %v5028_v28 = vcombine.low %v505_v14, %v509_v15 }
 0x1c1   : > { %v5031_v21 = vcombine.high %v506_v17, %v510_v18  ;;  %v5030_v34 = vcombine.low %v506_v17, %v510_v18 }
 0x1c2   : > { %4287 = vmatpush1.bf16.msra.mxu0 %v4964_v22  ;;  %4492 = vmatpush1.bf16.msra.mxu1 %v4966_v24  ;;  %v513_v22 = vld [vmem:[%s5445_s19 + $0xa90] sm:$0xff] }
 0x1c3   : > { %4288 = vmatprep.subr.bf16.mxu0 %v4973_v5  ;;  %4493 = vmatprep.subr.bf16.mxu1 %v4975_v27  ;;  %v517_v24 = vld [vmem:[%s5445_s19 + $0xab0] sm:$0xff]  ;;  %v514_v5 = vld [vmem:[%s5445_s19 + $0xa98] sm:$0xff] }
 0x1c4   : > { %v518_v27 = vld [vmem:[%s5445_s19 + $0xab8] sm:$0xff]  ;;  %v5037_v29 = vcombine.high %v513_v22, %v517_v24  ;;  %v5036_v36 = vcombine.low %v513_v22, %v517_v24 }
 0x1c5   : > { %v5039_v31 = vcombine.high %v514_v5, %v518_v27  ;;  %v5038_v37 = vcombine.low %v514_v5, %v518_v27 }
 0x1c6   : > { %4289 = vmatpush1.bf16.msra.mxu0 %v4972_v25  ;;  %4494 = vmatpush1.bf16.msra.mxu1 %v4974_v32  ;;  %v521_v25 = vld [vmem:[%s5445_s19 + $0xad0] sm:$0xff] }
 0x1c7   : > { %4290 = vmatprep.subr.bf16.mxu0 %v4981_v33  ;;  %4495 = vmatprep.subr.bf16.mxu1 %v4983_v35  ;;  %v525_v32 = vld [vmem:[%s5445_s19 + $0xaf0] sm:$0xff]  ;;  %v522_v33 = vld [vmem:[%s5445_s19 + $0xad8] sm:$0xff] }
 0x1c8   : > { %v526_v35 = vld [vmem:[%s5445_s19 + $0xaf8] sm:$0xff]  ;;  %v5045_v39 = vcombine.high %v521_v25, %v525_v32  ;;  %v5044_v44 = vcombine.low %v521_v25, %v525_v32 }
 0x1c9   : > { %v5047_v40 = vcombine.high %v522_v33, %v526_v35  ;;  %v5046_v45 = vcombine.low %v522_v33, %v526_v35 }
 0x1ca   : > { %4291 = vmatpush1.bf16.msra.mxu0 %v4980_v41  ;;  %4496 = vmatpush1.bf16.msra.mxu1 %v4982_v47  ;;  %v529_v41 = vld [vmem:[%s5445_s19 + $0xb10] sm:$0xff] }
 0x1cb   : > { %4292 = vmatprep.subr.bf16.mxu0 %v4989_v42  ;;  %4497 = vmatprep.subr.bf16.mxu1 %v4991_v43  ;;  %v533_v47 = vld [vmem:[%s5445_s19 + $0xb30] sm:$0xff]  ;;  %v530_v42 = vld [vmem:[%s5445_s19 + $0xb18] sm:$0xff] }
 0x1cc   : > { %v534_v43 = vld [vmem:[%s5445_s19 + $0xb38] sm:$0xff]  ;;  %v5053_v46 = vcombine.high %v529_v41, %v533_v47  ;;  %v5052_v53 = vcombine.low %v529_v41, %v533_v47 }
 0x1cd   : > { %v5055_v48 = vcombine.high %v530_v42, %v534_v43  ;;  %v5054_v54 = vcombine.low %v530_v42, %v534_v43  ;;  %v593_v43 = vld [vmem:[%s5445_s19 + $0xd10] sm:$0xff] }
 0x1ce   : > { %4293 = vmatpush1.bf16.msra.mxu0 %v4988_v49  ;;  %4498 = vmatpush1.bf16.msra.mxu1 %v4990_v50  ;;  %v537_v49 = vld [vmem:[%s5445_s19 + $0xb50] sm:$0xff] }
 0x1cf   : > { %4294 = vmatprep.subr.bf16.mxu0 %v4997_v51  ;;  %4499 = vmatprep.subr.bf16.mxu1 %v4999_v52  ;;  %v541_v50 = vld [vmem:[%s5445_s19 + $0xb70] sm:$0xff]  ;;  %v538_v51 = vld [vmem:[%s5445_s19 + $0xb58] sm:$0xff] }
 0x1d0   : > { %v542_v52 = vld [vmem:[%s5445_s19 + $0xb78] sm:$0xff]  ;;  %v5061_v55 = vcombine.high %v537_v49, %v541_v50  ;;  %v5060_v61 = vcombine.low %v537_v49, %v541_v50 }
 0x1d1   : > { %v5063_v56 = vcombine.high %v538_v51, %v542_v52  ;;  %v5062_v62 = vcombine.low %v538_v51, %v542_v52  ;;  %v601_v51 = vld [vmem:[%s5445_s19 + $0xd50] sm:$0xff] }
 0x1d2   : > { %4295 = vmatpush1.bf16.msra.mxu0 %v4996_v30  ;;  %4500 = vmatpush1.bf16.msra.mxu1 %v4998_v58  ;;  %v545_v30 = vld [vmem:[%s5445_s19 + $0xb90] sm:$0xff] }
 0x1d3   : > { %4296 = vmatprep.subr.bf16.mxu0 %v5005_v59  ;;  %4501 = vmatprep.subr.bf16.mxu1 %v5007_v60  ;;  %v549_v58 = vld [vmem:[%s5445_s19 + $0xbb0] sm:$0xff]  ;;  %v546_v59 = vld [vmem:[%s5445_s19 + $0xb98] sm:$0xff] }
 0x1d4   : > { %v550_v60 = vld [vmem:[%s5445_s19 + $0xbb8] sm:$0xff]  ;;  %v5069_v63 = vcombine.high %v545_v30, %v549_v58  ;;  %v5068_v4 = vcombine.low %v545_v30, %v549_v58  ;;  %v605_v52 = vld [vmem:[%s5445_s19 + $0xd70] sm:$0xff] }
 0x1d5   : > { %v5071_v0 = vcombine.high %v546_v59, %v550_v60  ;;  %v5070_v7 = vcombine.low %v546_v59, %v550_v60  ;;  %v5125_v30 = vcombine.high %v601_v51, %v605_v52  ;;  %v609_v59 = vld [vmem:[%s5445_s19 + $0xd90] sm:$0xff] }
 0x1d6   : > { %4297 = vmatpush1.bf16.msra.mxu0 %v5004_v16  ;;  %4502 = vmatpush1.bf16.msra.mxu1 %v5006_v6  ;;  %v553_v16 = vld [vmem:[%s5445_s19 + $0xbd0] sm:$0xff] }
 0x1d7   : > { %4298 = vmatprep.subr.bf16.mxu0 %v5013_v2  ;;  %4503 = vmatprep.subr.bf16.mxu1 %v5015_v3  ;;  %v557_v6 = vld [vmem:[%s5445_s19 + $0xbf0] sm:$0xff]  ;;  %v554_v2 = vld [vmem:[%s5445_s19 + $0xbd8] sm:$0xff] }
 0x1d8   : > { %v558_v3 = vld [vmem:[%s5445_s19 + $0xbf8] sm:$0xff]  ;;  %v5077_v8 = vcombine.high %v553_v16, %v557_v6  ;;  %v5076_v14 = vcombine.low %v553_v16, %v557_v6  ;;  %v613_v60 = vld [vmem:[%s5445_s19 + $0xdb0] sm:$0xff] }
 0x1d9   : > { %v5079_v9 = vcombine.high %v554_v2, %v558_v3  ;;  %v5078_v15 = vcombine.low %v554_v2, %v558_v3  ;;  %v5133_v6 = vcombine.high %v609_v59, %v613_v60 }
 0x1da   : > { %4299 = vmatpush1.bf16.msra.mxu0 %v5012_v11  ;;  %4504 = vmatpush1.bf16.msra.mxu1 %v5014_v26  ;;  %v561_v11 = vld [vmem:[%s5445_s19 + $0xc10] sm:$0xff] }
 0x1db   : > { %4300 = vmatprep.subr.bf16.mxu0 %v5021_v12  ;;  %4505 = vmatprep.subr.bf16.mxu1 %v5023_v13  ;;  %v565_v26 = vld [vmem:[%s5445_s19 + $0xc30] sm:$0xff]  ;;  %v562_v12 = vld [vmem:[%s5445_s19 + $0xc18] sm:$0xff] }
 0x1dc   : > { %v566_v13 = vld [vmem:[%s5445_s19 + $0xc38] sm:$0xff]  ;;  %v5085_v17 = vcombine.high %v561_v11, %v565_v26  ;;  %v5084_v22 = vcombine.low %v561_v11, %v565_v26 }
 0x1dd   : > { %v5087_v18 = vcombine.high %v562_v12, %v566_v13  ;;  %v5086_v24 = vcombine.low %v562_v12, %v566_v13  ;;  %v618_v26 = vld [vmem:[%s5445_s19 + $0xdd8] sm:$0xff] }
 0x1de   : > { %4301 = vmatpush1.bf16.msra.mxu0 %v5020_v10  ;;  %4506 = vmatpush1.bf16.msra.mxu1 %v5022_v19  ;;  %v569_v10 = vld [vmem:[%s5445_s19 + $0xc50] sm:$0xff]  ;;  %v622_v12 = vld [vmem:[%s5445_s19 + $0xdf8] sm:$0xff] }
 0x1df   : > { %4302 = vmatprep.subr.bf16.mxu0 %v5029_v20  ;;  %4507 = vmatprep.subr.bf16.mxu1 %v5031_v21  ;;  %v573_v19 = vld [vmem:[%s5445_s19 + $0xc70] sm:$0xff]  ;;  %v570_v20 = vld [vmem:[%s5445_s19 + $0xc58] sm:$0xff] }
 0x1e0   : > { %v574_v21 = vld [vmem:[%s5445_s19 + $0xc78] sm:$0xff]  ;;  %v5093_v5 = vcombine.high %v569_v10, %v573_v19  ;;  %v5092_v25 = vcombine.low %v569_v10, %v573_v19 }
 0x1e1   : > { %v5095_v27 = vcombine.high %v570_v20, %v574_v21  ;;  %v5094_v32 = vcombine.low %v570_v20, %v574_v21 }
 0x1e2   : > { %4303 = vmatpush1.bf16.msra.mxu0 %v5028_v28  ;;  %4508 = vmatpush1.bf16.msra.mxu1 %v5030_v34  ;;  %v577_v28 = vld [vmem:[%s5445_s19 + $0xc90] sm:$0xff] }
 0x1e3   : > { %4304 = vmatprep.subr.bf16.mxu0 %v5037_v29  ;;  %4509 = vmatprep.subr.bf16.mxu1 %v5039_v31  ;;  %v581_v34 = vld [vmem:[%s5445_s19 + $0xcb0] sm:$0xff]  ;;  %v578_v29 = vld [vmem:[%s5445_s19 + $0xc98] sm:$0xff] }
 0x1e4   : > { %v582_v31 = vld [vmem:[%s5445_s19 + $0xcb8] sm:$0xff]  ;;  %v5101_v33 = vcombine.high %v577_v28, %v581_v34 }
 0x1e5   : > { %v5103_v35 = vcombine.high %v578_v29, %v582_v31  ;;  %v5102_v41 = vcombine.low %v578_v29, %v582_v31  ;;  %v626_v31 = vld [vmem:[%s5445_s19 + $0xe18] sm:$0xff] }
 0x1e6   : > { %4305 = vmatpush1.bf16.msra.mxu0 %v5036_v36  ;;  %4510 = vmatpush1.bf16.msra.mxu1 %v5038_v37  ;;  %v585_v36 = vld [vmem:[%s5445_s19 + $0xcd0] sm:$0xff] }
 0x1e7   : > { %4306 = vmatprep.subr.bf16.mxu0 %v5045_v39  ;;  %4511 = vmatprep.subr.bf16.mxu1 %v5047_v40  ;;  %v589_v37 = vld [vmem:[%s5445_s19 + $0xcf0] sm:$0xff]  ;;  %v586_v39 = vld [vmem:[%s5445_s19 + $0xcd8] sm:$0xff] }
 0x1e8   : > { %v590_v40 = vld [vmem:[%s5445_s19 + $0xcf8] sm:$0xff]  ;;  %v5109_v47 = vcombine.high %v585_v36, %v589_v37 }
 0x1e9   : > { %v5111_v42 = vcombine.high %v586_v39, %v590_v40 }
 0x1ea   : > { %4307 = vmatpush1.bf16.msra.mxu0 %v5044_v44  ;;  %4512 = vmatpush1.bf16.msra.mxu1 %v5046_v45  ;;  %v597_v44 = vld [vmem:[%s5445_s19 + $0xd30] sm:$0xff]  ;;  %v594_v45 = vld [vmem:[%s5445_s19 + $0xd18] sm:$0xff] }
 0x1eb   : > { %4308 = vmatprep.subr.bf16.mxu0 %v5053_v46  ;;  %4513 = vmatprep.subr.bf16.mxu1 %v5055_v48  ;;  %v598_v46 = vld [vmem:[%s5445_s19 + $0xd38] sm:$0xff]  ;;  %v5108_v48 = vcombine.low %v585_v36, %v589_v37  ;;  %v5117_v49 = vcombine.high %v593_v43, %v597_v44  ;;  %v633_v37 = vld [vmem:[%s5445_s19 + $0xe50] sm:$0xff] }
 0x1ec   : > { %v5119_v50 = vcombine.high %v594_v45, %v598_v46 }
 0x1ee   : > { %4309 = vmatpush1.bf16.msra.mxu0 %v5052_v53  ;;  %4514 = vmatpush1.bf16.msra.mxu1 %v5054_v54  ;;  %v602_v53 = vld [vmem:[%s5445_s19 + $0xd58] sm:$0xff] }
 0x1ef   : > { %4310 = vmatprep.subr.bf16.mxu0 %v5061_v55  ;;  %4515 = vmatprep.subr.bf16.mxu1 %v5063_v56  ;;  %v606_v54 = vld [vmem:[%s5445_s19 + $0xd78] sm:$0xff]  ;;  %v5116_v55 = vcombine.low %v593_v43, %v597_v44  ;;  %v5118_v56 = vcombine.low %v594_v45, %v598_v46  ;;  %v641_v44 = vld [vmem:[%s5445_s19 + $0xe90] sm:$0xff] }
 0x1f0   : > { %v5127_v58 = vcombine.high %v602_v53, %v606_v54  ;;  %v5126_v16 = vcombine.low %v602_v53, %v606_v54  ;;  %v645_v45 = vld [vmem:[%s5445_s19 + $0xeb0] sm:$0xff]  ;;  %v642_v46 = vld [vmem:[%s5445_s19 + $0xe98] sm:$0xff] }
 0x1f1   : > { %v653_v53 = vld [vmem:[%s5445_s19 + $0xef0] sm:$0xff]  ;;  %v650_v54 = vld [vmem:[%s5445_s19 + $0xed8] sm:$0xff] }
 0x1f2   : > { %4311 = vmatpush1.bf16.msra.mxu0 %v5060_v61  ;;  %4516 = vmatpush1.bf16.msra.mxu1 %v5062_v62  ;;  %v610_v61 = vld [vmem:[%s5445_s19 + $0xd98] sm:$0xff] }
 0x1f3   : > { %4312 = vmatprep.subr.bf16.mxu0 %v5069_v63  ;;  %4517 = vmatprep.subr.bf16.mxu1 %v5071_v0  ;;  %v614_v62 = vld [vmem:[%s5445_s19 + $0xdb8] sm:$0xff]  ;;  %v6052_v63 = vpop.permute.xlu0 %766  ;;  %v5124_v0 = vcombine.low %v601_v51, %v605_v52  ;;  %v649_v52 = vld [vmem:[%s5445_s19 + $0xed0] sm:$0xff] }
 0x1f4   : > { %v5135_v3 = vcombine.high %v610_v61, %v614_v62  ;;  %v5134_v21 = vcombine.low %v610_v61, %v614_v62  ;;  %v661_v61 = vld [vmem:[%s5445_s19 + $0xf30] sm:$0xff]  ;;  %v658_v62 = vld [vmem:[%s5445_s19 + $0xf18] sm:$0xff] }
 0x1f6   : > { %4313 = vmatpush1.bf16.msra.mxu0 %v5068_v4  ;;  %4518 = vmatpush1.bf16.msra.mxu1 %v5070_v7  ;;  %v617_v4 = vld [vmem:[%s5445_s19 + $0xdd0] sm:$0xff] }
 0x1f7   : > { %4314 = vmatprep.subr.bf16.mxu0 %v5077_v8  ;;  %4519 = vmatprep.subr.bf16.mxu1 %v5079_v9  ;;  %v621_v7 = vld [vmem:[%s5445_s19 + $0xdf0] sm:$0xff] }
 0x1fa   : > { %4315 = vmatpush1.bf16.msra.mxu0 %v5076_v14  ;;  %4520 = vmatpush1.bf16.msra.mxu1 %v5078_v15 }
 0x1fb   : > { %4325 = vmatprep.subr.bf16.mxu0 %v5085_v17  ;;  %4530 = vmatprep.subr.bf16.mxu1 %v5087_v18  ;;  %v5132_v18 = vcombine.low %v609_v59, %v613_v60  ;;  %v657_v60 = vld [vmem:[%s5445_s19 + $0xf10] sm:$0xff] }
 0x1fd   : > { %4317 = vmatmul.mubr.bf16.vlgmr.msra.gmra.mrb[4].mxu0 %v5611_v38  ;;  %4522 = vmatmul.mubr.bf16.vlgmr.msra.gmra.mrb[4].mxu1 %v5611_v38  ;;  %v5100_v38 = vcombine.low %v577_v28, %v581_v34  ;;  %v625_v28 = vld [vmem:[%s5445_s19 + $0xe10] sm:$0xff] }
 0x1fe   : > { %4326 = vmatpush1.bf16.msra.mxu0 %v5084_v22  ;;  %4531 = vmatpush1.bf16.msra.mxu1 %v5086_v24  ;;  %v5141_v22 = vcombine.high %v617_v4, %v621_v7  ;;  %v629_v34 = vld [vmem:[%s5445_s19 + $0xe30] sm:$0xff] }
 0x1ff   : > { %4327 = vmatprep.subr.bf16.mxu0 %v5093_v5  ;;  %4532 = vmatprep.subr.bf16.mxu1 %v5095_v27  ;;  %v5143_v27 = vcombine.high %v618_v26, %v622_v12 }
 0x200   : > { %4357 = vmatprep.mubr.bf16.mxu0 %v5696_v1  ;;  %4562 = vmatprep.mubr.bf16.mxu1 %v5696_v1  ;;  %v5110_v1 = vcombine.low %v586_v39, %v590_v40  ;;  %v637_v39 = vld [vmem:[%s5445_s19 + $0xe70] sm:$0xff]  ;;  %v634_v40 = vld [vmem:[%s5445_s19 + $0xe58] sm:$0xff] }
 0x202   : > { %4328 = vmatpush1.bf16.msra.mxu0 %v5092_v25  ;;  %4533 = vmatpush1.bf16.msra.mxu1 %v5094_v32  ;;  %v630_v25 = vld [vmem:[%s5445_s19 + $0xe38] sm:$0xff]  ;;  %v5140_v32 = vcombine.low %v617_v4, %v621_v7  ;;  %v665_v4 = vld [vmem:[%s5445_s19 + $0xf50] sm:$0xff] }
 0x203   : > { %4329 = vmatprep.subr.bf16.mxu0 %v5101_v33  ;;  %4534 = vmatprep.subr.bf16.mxu1 %v5103_v35  ;;  %v5142_v33 = vcombine.low %v618_v26, %v622_v12  ;;  %v5149_v35 = vcombine.high %v625_v28, %v629_v34  ;;  %v5151_v36 = vcombine.high %v626_v31, %v630_v25  ;;  %v669_v7 = vld [vmem:[%s5445_s19 + $0xf70] sm:$0xff] }
 0x204   : > { %v5189_v12 = vcombine.high %v665_v4, %v669_v7 }
 0x206   : > { %4330 = vmatpush1.bf16.msra.mxu0 %v5100_v38  ;;  %4535 = vmatpush1.bf16.msra.mxu1 %v5102_v41  ;;  %v638_v38 = vld [vmem:[%s5445_s19 + $0xe78] sm:$0xff]  ;;  %v5148_v41 = vcombine.low %v625_v28, %v629_v34 }
 0x207   : > { %4331 = vmatprep.subr.bf16.mxu0 %v5109_v47  ;;  %4536 = vmatprep.subr.bf16.mxu1 %v5111_v42  ;;  %v5150_v47 = vcombine.low %v626_v31, %v630_v25  ;;  %v5157_v42 = vcombine.high %v633_v37, %v637_v39  ;;  %v5159_v43 = vcombine.high %v634_v40, %v638_v38  ;;  %v689_v25 = vld [vmem:[%s5445_s19 + $0x1010] sm:$0xff] }
 0x20a   : > { %4332 = vmatpush1.bf16.msra.mxu0 %v5108_v48  ;;  %4537 = vmatpush1.bf16.msra.mxu1 %v5110_v1  ;;  %v646_v48 = vld [vmem:[%s5445_s19 + $0xeb8] sm:$0xff]  ;;  %v5156_v1 = vcombine.low %v633_v37, %v637_v39 }
 0x20b   : > { %4333 = vmatprep.subr.bf16.mxu0 %v5117_v49  ;;  %4538 = vmatprep.subr.bf16.mxu1 %v5119_v50  ;;  %v5158_v49 = vcombine.low %v634_v40, %v638_v38  ;;  %v5165_v50 = vcombine.high %v641_v44, %v645_v45  ;;  %v5167_v51 = vcombine.high %v642_v46, %v646_v48  ;;  %v697_v38 = vld [vmem:[%s5445_s19 + $0x1050] sm:$0xff] }
 0x20e   : > { %4334 = vmatpush1.bf16.msra.mxu0 %v5116_v55  ;;  %4539 = vmatpush1.bf16.msra.mxu1 %v5118_v56  ;;  %v654_v55 = vld [vmem:[%s5445_s19 + $0xef8] sm:$0xff]  ;;  %v5164_v56 = vcombine.low %v641_v44, %v645_v45 }
 0x20f   : > { %4335 = vmatprep.subr.bf16.mxu0 %v5125_v30  ;;  %4540 = vmatprep.subr.bf16.mxu1 %v5127_v58  ;;  %v5166_v30 = vcombine.low %v642_v46, %v646_v48  ;;  %v5173_v58 = vcombine.high %v649_v52, %v653_v53  ;;  %v5175_v59 = vcombine.high %v650_v54, %v654_v55  ;;  %v705_v48 = vld [vmem:[%s5445_s19 + $0x1090] sm:$0xff] }
 0x210   : > { %v3990_v2 = vpop.f32.mrb[0].mxu0  ;;  %v4195_v9 = vpop.f32.mrb[0].mxu1 }
 0x211   : > { %v5299_v8 = vadd.f32 %v3990_v2, %v6052_v63  ;;  %v3992_v11 = vpop.f32.mrb[1].mxu0  ;;  %v5301_v13 = vadd.f32 %v4195_v9, %v6052_v63  ;;  %v4197_v15 = vpop.f32.mrb[1].mxu1  ;;  %v5181_v2 = vcombine.high %v657_v60, %v661_v61  ;;  %v670_v9 = vld [vmem:[%s5445_s19 + $0xf78] sm:$0xff] }
 0x212   : > { %v5300_v14 = vadd.f32 %v3992_v11, %v6052_v63  ;;  %v3994_v17 = vpop.f32.mrb[2].mxu0  ;;  %4336 = vmatpush1.bf16.msra.mxu0 %v5124_v0  ;;  %v5302_v10 = vadd.f32 %v4197_v15, %v6052_v63  ;;  %v4199_v19 = vpop.f32.mrb[2].mxu1  ;;  %4541 = vmatpush1.bf16.msra.mxu1 %v5126_v16  ;;  %v662_v0 = vld [vmem:[%s5445_s19 + $0xf38] sm:$0xff]  ;;  %v5172_v16 = vcombine.low %v649_v52, %v653_v53  ;;  %v677_v15 = vld [vmem:[%s5445_s19 + $0xfb0] sm:$0xff] }
 0x213   : > { %v3995_v20 = vpop.f32.mrb[3].mxu0  ;;  %4337 = vmatprep.subr.bf16.mxu0 %v5133_v6  ;;  %v4200_v5 = vpop.f32.mrb[3].mxu1  ;;  %4542 = vmatprep.subr.bf16.mxu1 %v5135_v3  ;;  %v5174_v6 = vcombine.low %v650_v54, %v654_v55  ;;  %v5183_v3 = vcombine.high %v658_v62, %v662_v0  ;;  %v5180_v11 = vcombine.low %v657_v60, %v661_v61  ;;  %v674_v17 = vld [vmem:[%s5445_s19 + $0xf98] sm:$0xff]  ;;  %v713_v55 = vld [vmem:[%s5445_s19 + $0x10d0] sm:$0xff] }
 0x214   : > { %v4620_v24 = vcombine.low %v5299_v8, %v5300_v14  ;;  %v4621_v29 = vcombine.low %v5301_v13, %v5302_v10  ;;  %v666_v8 = vld [vmem:[%s5445_s19 + $0xf58] sm:$0xff]  ;;  %v5182_v26 = vcombine.low %v658_v62, %v662_v0  ;;  %v673_v14 = vld [vmem:[%s5445_s19 + $0xf90] sm:$0xff]  ;;  %v5188_v10 = vcombine.low %v665_v4, %v669_v7 }
 0x215   : > { %v5191_v13 = vcombine.high %v666_v8, %v670_v9  ;;  %v5190_v19 = vcombine.low %v666_v8, %v670_v9  ;;  %v5197_v20 = vcombine.high %v673_v14, %v677_v15  ;;  %v682_v5 = vld [vmem:[%s5445_s19 + $0xfd8] sm:$0xff]  ;;  %v5196_v28 = vcombine.low %v673_v14, %v677_v15  ;;  %v721_v62 = vld [vmem:[%s5445_s19 + $0x1110] sm:$0xff] }
 0x216   : > { %4628 = vst [vmem:[%s6065_s29] sm:$0x77] %v4620_v24  ;;  %4338 = vmatpush1.bf16.msra.mxu0 %v5132_v18  ;;  %4629 = vst [vmem:[%s6065_s29 + $0x8] sm:$0x77] %v4621_v29  ;;  %4543 = vmatpush1.bf16.msra.mxu1 %v5134_v21  ;;  %v678_v18 = vld [vmem:[%s5445_s19 + $0xfb8] sm:$0xff]  ;;  %v685_v24 = vld [vmem:[%s5445_s19 + $0xff0] sm:$0xff] }
 0x217   : > { %4339 = vmatprep.subr.bf16.mxu0 %v5141_v22  ;;  %4544 = vmatprep.subr.bf16.mxu1 %v5143_v27  ;;  %v5199_v21 = vcombine.high %v674_v17, %v678_v18  ;;  %v681_v22 = vld [vmem:[%s5445_s19 + $0xfd0] sm:$0xff]  ;;  %v686_v27 = vld [vmem:[%s5445_s19 + $0xff8] sm:$0xff]  ;;  %v5198_v34 = vcombine.low %v674_v17, %v678_v18 }
 0x218   : > { %v5205_v29 = vcombine.high %v681_v22, %v685_v24  ;;  %v5207_v31 = vcombine.high %v682_v5, %v686_v27  ;;  %v5206_v37 = vcombine.low %v682_v5, %v686_v27  ;;  %v725_v0 = vld [vmem:[%s5445_s19 + $0x1130] sm:$0xff]  ;;  %v730_v9 = vld [vmem:[%s5445_s19 + $0x1158] sm:$0xff] }
 0x219   : > { %v729_v7 = vld [vmem:[%s5445_s19 + $0x1150] sm:$0xff]  ;;  %v738_v18 = vld [vmem:[%s5445_s19 + $0x1198] sm:$0xff] }
 0x21a   : > { %4340 = vmatpush1.bf16.msra.mxu0 %v5140_v32  ;;  %4545 = vmatpush1.bf16.msra.mxu1 %v5142_v33  ;;  %v693_v32 = vld [vmem:[%s5445_s19 + $0x1030] sm:$0xff]  ;;  %v690_v33 = vld [vmem:[%s5445_s19 + $0x1018] sm:$0xff] }
 0x21b   : > { %4341 = vmatprep.subr.bf16.mxu0 %v5149_v35  ;;  %4546 = vmatprep.subr.bf16.mxu1 %v5151_v36  ;;  %v694_v35 = vld [vmem:[%s5445_s19 + $0x1038] sm:$0xff]  ;;  %v5204_v36 = vcombine.low %v681_v22, %v685_v24  ;;  %v5213_v39 = vcombine.high %v689_v25, %v693_v32  ;;  %v733_v8 = vld [vmem:[%s5445_s19 + $0x1170] sm:$0xff] }
 0x21c   : > { %v5215_v40 = vcombine.high %v690_v33, %v694_v35  ;;  %v5214_v44 = vcombine.low %v690_v33, %v694_v35  ;;  %v737_v15 = vld [vmem:[%s5445_s19 + $0x1190] sm:$0xff]  ;;  %v746_v27 = vld [vmem:[%s5445_s19 + $0x11d8] sm:$0xff] }
 0x21d   : > { %v741_v17 = vld [vmem:[%s5445_s19 + $0x11b0] sm:$0xff]  ;;  %v754_v35 = vld [vmem:[%s5445_s19 + $0x1218] sm:$0xff] }
 0x21e   : > { %4342 = vmatpush1.bf16.msra.mxu0 %v5148_v41  ;;  %4547 = vmatpush1.bf16.msra.mxu1 %v5150_v47  ;;  %v701_v41 = vld [vmem:[%s5445_s19 + $0x1070] sm:$0xff]  ;;  %v698_v47 = vld [vmem:[%s5445_s19 + $0x1058] sm:$0xff] }
 0x21f   : > { %4343 = vmatprep.subr.bf16.mxu0 %v5157_v42  ;;  %4548 = vmatprep.subr.bf16.mxu1 %v5159_v43  ;;  %v702_v42 = vld [vmem:[%s5445_s19 + $0x1078] sm:$0xff]  ;;  %v5212_v43 = vcombine.low %v689_v25, %v693_v32  ;;  %v5221_v45 = vcombine.high %v697_v38, %v701_v41  ;;  %v745_v24 = vld [vmem:[%s5445_s19 + $0x11d0] sm:$0xff] }
 0x220   : > { %v5223_v46 = vcombine.high %v698_v47, %v702_v42  ;;  %v5222_v52 = vcombine.low %v698_v47, %v702_v42  ;;  %v749_v5 = vld [vmem:[%s5445_s19 + $0x11f0] sm:$0xff]  ;;  %v762_v47 = vld [vmem:[%s5445_s19 + $0x1258] sm:$0xff] }
 0x221   : > { %v753_v32 = vld [vmem:[%s5445_s19 + $0x1210] sm:$0xff] }
 0x222   : > { %4344 = vmatpush1.bf16.msra.mxu0 %v5156_v1  ;;  %4549 = vmatpush1.bf16.msra.mxu1 %v5158_v49  ;;  %v709_v1 = vld [vmem:[%s5445_s19 + $0x10b0] sm:$0xff]  ;;  %v706_v49 = vld [vmem:[%s5445_s19 + $0x1098] sm:$0xff] }
 0x223   : > { %4345 = vmatprep.subr.bf16.mxu0 %v5165_v50  ;;  %4550 = vmatprep.subr.bf16.mxu1 %v5167_v51  ;;  %v710_v50 = vld [vmem:[%s5445_s19 + $0x10b8] sm:$0xff]  ;;  %v5220_v51 = vcombine.low %v697_v38, %v701_v41  ;;  %v5229_v53 = vcombine.high %v705_v48, %v709_v1  ;;  %v757_v33 = vld [vmem:[%s5445_s19 + $0x1230] sm:$0xff] }
 0x224   : > { %v5231_v54 = vcombine.high %v706_v49, %v710_v50  ;;  %v761_v41 = vld [vmem:[%s5445_s19 + $0x1250] sm:$0xff]  ;;  %v5276_v42 = vcombine.low %v753_v32, %v757_v33 }
 0x226   : > { %4346 = vmatpush1.bf16.msra.mxu0 %v5164_v56  ;;  %4551 = vmatpush1.bf16.msra.mxu1 %v5166_v30  ;;  %v717_v56 = vld [vmem:[%s5445_s19 + $0x10f0] sm:$0xff]  ;;  %v714_v30 = vld [vmem:[%s5445_s19 + $0x10d8] sm:$0xff] }
 0x227   : > { %4347 = vmatprep.subr.bf16.mxu0 %v5173_v58  ;;  %4552 = vmatprep.subr.bf16.mxu1 %v5175_v59  ;;  %v718_v58 = vld [vmem:[%s5445_s19 + $0x10f8] sm:$0xff]  ;;  %v5230_v59 = vcombine.low %v706_v49, %v710_v50  ;;  %v5237_v60 = vcombine.high %v713_v55, %v717_v56  ;;  %v5393_v50 = vld.sshfl [vmem:[%s6162_s0 + $0x10] sm:$0x33 pattern:$0x76325410] }
 0x228   : > { %v5239_v61 = vcombine.high %v714_v30, %v718_v58 }
 0x22a   : > { %4348 = vmatpush1.bf16.msra.mxu0 %v5172_v16  ;;  %4553 = vmatpush1.bf16.msra.mxu1 %v5174_v6  ;;  %v722_v16 = vld [vmem:[%s5445_s19 + $0x1118] sm:$0xff] }
 0x22b   : > { %4349 = vmatprep.subr.bf16.mxu0 %v5181_v2  ;;  %4554 = vmatprep.subr.bf16.mxu1 %v5183_v3  ;;  %v726_v6 = vld [vmem:[%s5445_s19 + $0x1138] sm:$0xff]  ;;  %v5236_v2 = vcombine.low %v713_v55, %v717_v56  ;;  %v5245_v3 = vcombine.high %v721_v62, %v725_v0 }
 0x22c   : > { %v5247_v4 = vcombine.high %v722_v16, %v726_v6 }
 0x22e   : > { %4350 = vmatpush1.bf16.msra.mxu0 %v5180_v11  ;;  %4555 = vmatpush1.bf16.msra.mxu1 %v5182_v26  ;;  %v734_v11 = vld [vmem:[%s5445_s19 + $0x1178] sm:$0xff]  ;;  %v5244_v26 = vcombine.low %v721_v62, %v725_v0 }
 0x22f   : > { %4351 = vmatprep.subr.bf16.mxu0 %v5189_v12  ;;  %4556 = vmatprep.subr.bf16.mxu1 %v5191_v13  ;;  %v5246_v12 = vcombine.low %v722_v16, %v726_v6  ;;  %v5253_v13 = vcombine.high %v729_v7, %v733_v8  ;;  %v5255_v14 = vcombine.high %v730_v9, %v734_v11 }
 0x232   : > { %4352 = vmatpush1.bf16.msra.mxu0 %v5188_v10  ;;  %4557 = vmatpush1.bf16.msra.mxu1 %v5190_v19  ;;  %v742_v10 = vld [vmem:[%s5445_s19 + $0x11b8] sm:$0xff]  ;;  %v5252_v19 = vcombine.low %v729_v7, %v733_v8 }
 0x233   : > { %4353 = vmatprep.subr.bf16.mxu0 %v5197_v20  ;;  %4558 = vmatprep.subr.bf16.mxu1 %v5199_v21  ;;  %v5254_v20 = vcombine.low %v730_v9, %v734_v11  ;;  %v5261_v21 = vcombine.high %v737_v15, %v741_v17  ;;  %v5263_v22 = vcombine.high %v738_v18, %v742_v10 }
 0x236   : > { %4354 = vmatpush1.bf16.msra.mxu0 %v5196_v28  ;;  %4559 = vmatpush1.bf16.msra.mxu1 %v5198_v34  ;;  %v750_v28 = vld [vmem:[%s5445_s19 + $0x11f8] sm:$0xff]  ;;  %v5260_v34 = vcombine.low %v737_v15, %v741_v17 }
 0x237   : > { %4355 = vmatprep.subr.bf16.mxu0 %v5205_v29  ;;  %4560 = vmatprep.subr.bf16.mxu1 %v5207_v31  ;;  %v5262_v29 = vcombine.low %v738_v18, %v742_v10  ;;  %v5269_v31 = vcombine.high %v745_v24, %v749_v5  ;;  %v5271_v25 = vcombine.high %v746_v27, %v750_v28 }
 0x23a   : > { %4356 = vmatpush1.bf16.msra.mxu0 %v5204_v36  ;;  %4561 = vmatpush1.bf16.msra.mxu1 %v5206_v37  ;;  %v758_v36 = vld [vmem:[%s5445_s19 + $0x1238] sm:$0xff]  ;;  %v5268_v37 = vcombine.low %v745_v24, %v749_v5 }
 0x23b   : > { %4366 = vmatprep.subr.bf16.mxu0 %v5213_v39  ;;  %4571 = vmatprep.subr.bf16.mxu1 %v5215_v40  ;;  %v5270_v39 = vcombine.low %v746_v27, %v750_v28  ;;  %v5277_v40 = vcombine.high %v753_v32, %v757_v33  ;;  %v5279_v38 = vcombine.high %v754_v35, %v758_v36 }
 0x23d   : > { %4358 = vmatmul.mubr.bf16.vlgmr.msra.gmra.mrb[4].mxu0 %v5688_v57  ;;  %4563 = vmatmul.mubr.bf16.vlgmr.msra.gmra.mrb[4].mxu1 %v5688_v57  ;;  %v5228_v57 = vcombine.low %v705_v48, %v709_v1  ;;  %v5286_v48 = vcombine.low %v762_v47, %v762_v47 }
 0x23e   : > { %4367 = vmatpush1.bf16.msra.mxu0 %v5212_v43  ;;  %4572 = vmatpush1.bf16.msra.mxu1 %v5214_v44  ;;  %v5278_v43 = vcombine.low %v754_v35, %v758_v36  ;;  %v5285_v44 = vcombine.high %v761_v41, %v761_v41 }
 0x23f   : > { %4368 = vmatprep.subr.bf16.mxu0 %v5221_v45  ;;  %4573 = vmatprep.subr.bf16.mxu1 %v5223_v46  ;;  %v5284_v45 = vcombine.low %v761_v41, %v761_v41  ;;  %v5287_v46 = vcombine.high %v762_v47, %v762_v47  ;;  %v3787_v49 = vsel %vm3767_vm1, %v5286_v48, 0 }
 0x240   : > { %5293 = vmatprep.mubr.msk.bf16.mxu0 %vm3763_vm0, %v5776_v23  ;;  %5295 = vmatprep.mubr.msk.bf16.mxu1 %vm3763_vm0, %v5776_v23  ;;  %v5238_v23 = vcombine.low %v714_v30, %v718_v58 }
 0x241   : > { %v3781_v1 = vsel %vm3767_vm1, %v5284_v45, 0 }
 0x242   : > { %4369 = vmatpush1.bf16.msra.mxu0 %v5220_v51  ;;  %4574 = vmatpush1.bf16.msra.mxu1 %v5222_v52 }
 0x243   : > { %4370 = vmatprep.subr.bf16.mxu0 %v5229_v53  ;;  %4575 = vmatprep.subr.bf16.mxu1 %v5231_v54 }
 0x246   : > { %4371 = vmatpush1.bf16.msra.mxu0 %v5228_v57  ;;  %4576 = vmatpush1.bf16.msra.mxu1 %v5230_v59 }
 0x247   : > { %4372 = vmatprep.subr.bf16.mxu0 %v5237_v60  ;;  %4577 = vmatprep.subr.bf16.mxu1 %v5239_v61 }
 0x24a   : > { %4373 = vmatpush1.bf16.msra.mxu0 %v5236_v2  ;;  %4578 = vmatpush1.bf16.msra.mxu1 %v5238_v23 }
 0x24b   : > { %4374 = vmatprep.subr.bf16.mxu0 %v5245_v3  ;;  %4579 = vmatprep.subr.bf16.mxu1 %v5247_v4 }
 0x24e   : > { %4375 = vmatpush1.bf16.msra.mxu0 %v5244_v26  ;;  %4580 = vmatpush1.bf16.msra.mxu1 %v5246_v12 }
 0x24f   : > { %4376 = vmatprep.subr.bf16.mxu0 %v5253_v13  ;;  %4581 = vmatprep.subr.bf16.mxu1 %v5255_v14 }
 0x252   : > { %4377 = vmatpush1.bf16.msra.mxu0 %v5252_v19  ;;  %4582 = vmatpush1.bf16.msra.mxu1 %v5254_v20 }
 0x253   : > { %4378 = vmatprep.subr.bf16.mxu0 %v5261_v21  ;;  %4583 = vmatprep.subr.bf16.mxu1 %v5263_v22 }
 0x256   : > { %4379 = vmatpush1.bf16.msra.mxu0 %v5260_v34  ;;  %4584 = vmatpush1.bf16.msra.mxu1 %v5262_v29 }
 0x257   : > { %4380 = vmatprep.subr.bf16.mxu0 %v5269_v31  ;;  %4585 = vmatprep.subr.bf16.mxu1 %v5271_v25 }
 0x25a   : > { %4381 = vmatpush1.bf16.msra.mxu0 %v5268_v37  ;;  %4586 = vmatpush1.bf16.msra.mxu1 %v5270_v39 }
 0x25b   : > { %4382 = vmatprep.subr.bf16.mxu0 %v5277_v40  ;;  %4587 = vmatprep.subr.bf16.mxu1 %v5279_v38 }
 0x25e   : > { %4383 = vmatpush1.bf16.msra.mxu0 %v5276_v42  ;;  %4588 = vmatpush1.bf16.msra.mxu1 %v5278_v43 }
 0x25f   : > { %5292 = vmatprep.subr.msk.bf16.mxu0 %vm3767_vm1, %v5285_v44  ;;  %5294 = vmatprep.subr.msk.bf16.mxu1 %vm3767_vm1, %v5287_v46 }
 0x262   : > { %4385 = vmatpush1.bf16.msra.mxu0 %v3781_v1  ;;  %4590 = vmatpush1.bf16.msra.mxu1 %v3787_v49 }
 0x265   : > { %4399 = vmatmul.mubr.bf16.vlgmr.msra.gmra.mrb[4].mxu0 %v5393_v50  ;;  %4604 = vmatmul.mubr.bf16.vlgmr.msra.gmra.mrb[4].mxu1 %v5393_v50 }
 0x338   : > { %v4400_v51 = vpop.f32.mrb[4].mxu0  ;;  %v4605_v53 = vpop.f32.mrb[4].mxu1 }
 0x339   : > { %v5303_v52 = vadd.f32 %v4400_v51, %v6052_v63  ;;  %v4402_v54 = vpop.f32.mrb[5].mxu0  ;;  %v5305_v55 = vadd.f32 %v4605_v53, %v6052_v63  ;;  %v4607_v30 = vpop.f32.mrb[5].mxu1 }
 0x33a   : > { %v5304_v56 = vadd.f32 %v4402_v54, %v6052_v63  ;;  %v4404_v58 = vpop.f32.mrb[6].mxu0  ;;  %v5306_v57 = vadd.f32 %v4607_v30, %v6052_v63  ;;  %v4609_v59 = vpop.f32.mrb[6].mxu1 }
 0x33b   : > { %v4405_v60 = vpop.f32.mrb[7].mxu0  ;;  %v4610_v62 = vpop.f32.mrb[7].mxu1 }
 0x33c   : > { %v4622_v61 = vcombine.low %v5303_v52, %v5304_v56  ;;  %v4623_v0 = vcombine.low %v5305_v55, %v5306_v57 }
 0x33e   : > { %4630 = vst [vmem:[%s6065_s29 + $0x10] sm:$0x77] %v4622_v61  ;;  %4631 = vst [vmem:[%s6065_s29 + $0x18] sm:$0x77] %v4623_v0 }
 0x33f PF: > { %s13_s12 = sadd.s32 1, %s5400_s12  }
 0x340   : > { %p10_p4 = scmp.ge.s32.totalorder %s13_s12, 4  }
 0x342   :  { %12 = sbr.rel (!%p10_p4) target bundleno = 1 (0x1), region = 62 }

</bundles_post_ra>
